<compile_context>
chip_gen: v7x
topology: tpu7x:2x2x1
jax: 0.10.0
libtpu: 0.0.40
codegen_flags: <defaults>
</compile_context>

<pallas_src>
import math
from functools import partial

import jax
import jax.numpy as jnp
from jax.experimental import pallas as pl
from jax.experimental.pallas import tpu as pltpu

_EPS = 1e-5
_MIB = 1024 * 1024


def _layer_norm_f32(x_f32, gamma_f32, beta_f32):
    mu = jnp.mean(x_f32, axis=-1, keepdims=True)
    var = jnp.mean(jnp.square(x_f32 - mu), axis=-1, keepdims=True)
    return (x_f32 - mu) * jax.lax.rsqrt(var + _EPS) * gamma_f32 + beta_f32


def _split_heads(x2d, num_heads, head_dim):
    # (T, H*Dh) -> (H, T, Dh) with static lane slices + leading-axis stack
    # (in-VMEM relayout; avoids any HBM relayout between kernels).
    return jnp.stack(
        [x2d[:, h * head_dim:(h + 1) * head_dim] for h in range(num_heads)],
        axis=0)


def _merge_heads(x3d):
    # (H, T, Dh) -> (T, H*Dh): lane-dense concatenation for an unmasked store.
    num_heads = x3d.shape[0]
    return jnp.concatenate([x3d[h] for h in range(num_heads)], axis=-1)


# ----------------------------------------------------------------------------
# Kernel 1: LayerNorm1 + fused QKV projection, row-tiled over (B*S, E).
#           Emits q/k/v as three separate (row_tile, E) blocks.
# ----------------------------------------------------------------------------
def _ln_qkv_kernel(x_ref, g_ref, b_ref, w_ref, wb_ref, q_ref, k_ref, v_ref):
    emb = q_ref.shape[-1]
    x = x_ref[...].astype(jnp.float32)                     # (TS, E)
    gamma = g_ref[0].astype(jnp.float32)                   # hoisted loads
    beta = b_ref[0].astype(jnp.float32)
    xn = _layer_norm_f32(x, gamma, beta).astype(w_ref.dtype)
    qkv = jnp.dot(xn, w_ref[...], preferred_element_type=jnp.float32)
    qkv = qkv + wb_ref[0].astype(jnp.float32)              # (TS, 3E)
    q_ref[...] = qkv[:, :emb].astype(q_ref.dtype)
    k_ref[...] = qkv[:, emb:2 * emb].astype(k_ref.dtype)
    v_ref[...] = qkv[:, 2 * emb:].astype(v_ref.dtype)


# ----------------------------------------------------------------------------
# Kernel 2: flash-style multi-head attention.
#   q/k/v blocks arrive as (1, TQ|TK, E); heads are split in-kernel and
#   batched into a single dot_general. Output is written lane-dense (TQ, E).
#   Softmax scale is pre-folded into the Q projection (no scale mul here).
# ----------------------------------------------------------------------------
def _flash_attn_kernel(q_ref, k_ref, v_ref, o_ref,
                       qh_sc, m_sc, l_sc, acc_sc, *, num_heads, head_dim):
    ki = pl.program_id(2)

    @pl.when(ki == 0)
    def _():
        m_sc[...] = jnp.full(m_sc.shape, -jnp.inf, jnp.float32)
        l_sc[...] = jnp.zeros(l_sc.shape, jnp.float32)
        acc_sc[...] = jnp.zeros(acc_sc.shape, jnp.float32)
        # head reshuffle of the q tile once per (batch, q-tile) block
        qh_sc[...] = _split_heads(q_ref[0], num_heads, head_dim)

    kh = _split_heads(k_ref[0], num_heads, head_dim)        # (H, TK, Dh)
    vh = _split_heads(v_ref[0], num_heads, head_dim)        # (H, TK, Dh)

    # Contract the last dims directly (no materialized K transpose),
    # batched over heads -> one MXU contraction per block.
    s = jax.lax.dot_general(
        qh_sc[...], kh,
        dimension_numbers=(((2,), (2,)), ((0,), (0,))),
        preferred_element_type=jnp.float32)                 # (H, TQ, TK)

    m_prev = m_sc[...]
    m_new = jnp.maximum(m_prev, jnp.max(s, axis=-1, keepdims=True))
    alpha = jnp.exp(m_prev - m_new)
    p = jnp.exp(s - m_new)
    l_sc[...] = alpha * l_sc[...] + jnp.sum(p, axis=-1, keepdims=True)
    pv = jax.lax.dot_general(
        p.astype(vh.dtype), vh,
        dimension_numbers=(((2,), (1,)), ((0,), (0,))),
        preferred_element_type=jnp.float32)                 # (H, TQ, Dh)
    acc_sc[...] = alpha * acc_sc[...] + pv
    m_sc[...] = m_new

    @pl.when(ki == pl.num_programs(2) - 1)
    def _():
        inv = pl.reciprocal(l_sc[...], approx=False)        # exact EUP recip
        out = acc_sc[...] * inv                             # (H, TQ, Dh) f32
        o_ref[0] = _merge_heads(out).astype(o_ref.dtype)    # lane-dense (TQ,E)


# ----------------------------------------------------------------------------
# Kernel 3: out-projection + residual + LayerNorm2 + MLP + residual,
#           row-tiled over (B*S, E).
# ----------------------------------------------------------------------------
def _proj_mlp_kernel(x_ref, a_ref, wo_ref, bo_ref, g2_ref, b2_ref,
                     w1_ref, bb1_ref, w2_ref, bb2_ref, o_ref):
    x = x_ref[...].astype(jnp.float32)                      # (TS, E) residual
    a = a_ref[...].astype(wo_ref.dtype)                     # (TS, E) heads cat

    attn_out = jnp.dot(a, wo_ref[...], preferred_element_type=jnp.float32)
    attn_out = attn_out + bo_ref[0].astype(jnp.float32)
    x1 = x + attn_out                                       # residual 1 (f32)

    gamma2 = g2_ref[0].astype(jnp.float32)
    beta2 = b2_ref[0].astype(jnp.float32)
    xn = _layer_norm_f32(x1, gamma2, beta2).astype(w1_ref.dtype)

    h = jnp.dot(xn, w1_ref[...], preferred_element_type=jnp.float32)
    h = h + bb1_ref[0].astype(jnp.float32)
    # exact (erf) GELU, matching torch.nn.GELU() default numerics
    g = 0.5 * h * (1.0 + jax.lax.erf(h * (1.0 / math.sqrt(2.0))))
    y = jnp.dot(g.astype(w2_ref.dtype), w2_ref[...],
                preferred_element_type=jnp.float32)
    y = y + bb2_ref[0].astype(jnp.float32)

    o_ref[...] = (x1 + y).astype(o_ref.dtype)               # residual 2


# ----------------------------------------------------------------------------
# Wrapper: parameter packing + three pallas_calls
# ----------------------------------------------------------------------------
def transformer_encoder_block(x, params, *, num_heads,
                              row_tile=None, q_tile=None, kv_tile=None,
                              weight_buffers=1):
    B, S, E = x.shape
    M = params["w1"].shape[0]
    assert E % num_heads == 0
    head_dim = E // num_heads
    N = B * S

    if row_tile is None:
        # sweepable; 256 amortizes grid-step overhead. 512 often better on
        # v5e/v6e (128 MiB VMEM); keep <=256 on v7x (64 MiB) at large E/M.
        row_tile = min(N, 256)
    if q_tile is None:
        q_tile = min(S, 256)        # 256 fills the 256-wide v6e/v7x MXU
    if kv_tile is None:
        kv_tile = min(S, 256)
    assert N % row_tile == 0 and row_tile % 8 == 0
    assert S % q_tile == 0 and S % kv_tile == 0
    assert q_tile % 8 == 0 and kv_tile % 8 == 0
    # NOTE(v7x): keep parallel grid extents (N//row_tile, B, S//q_tile) >= 2
    # and even so both TensorCores get balanced work.

    itemsize = x.dtype.itemsize
    wsize = params["in_proj_weight"].dtype.itemsize

    def row(v):
        return v.reshape(1, -1)

    def resident(shape):
        # Constant-index weights/biases are fetched once; single buffering
        # (pl.Buffered(1)) avoids allocating a useless second VMEM buffer.
        idx = lambda *args: (0,) * len(shape)
        if weight_buffers == 1:
            return pl.BlockSpec(shape, idx, pipeline_mode=pl.Buffered(1))
        return pl.BlockSpec(shape, idx)

    def vmem_limit(nbytes):
        return int(min(128 * _MIB, max(32 * _MIB, 2 * int(nbytes))))

    x2d = x.reshape(N, E)

    # Fold 1/sqrt(head_dim) into the Q projection columns (one-time parameter
    # transform) so the flash inner loop has no per-score scale multiply.
    scale = 1.0 / math.sqrt(head_dim)
    w_in = params["in_proj_weight"].T                       # (E, 3E)
    col_scale = jnp.concatenate(
        [jnp.full((E,), scale, w_in.dtype), jnp.ones((2 * E,), w_in.dtype)])
    w_in = w_in * col_scale[None, :]
    b_in = row(params["in_proj_bias"] * col_scale)          # (1, 3E)

    # ---- stage 1: LN1 + fused QKV projection -> q/k/v as (N, E) each --------
    s1_bytes = (2 * row_tile * E * itemsize                 # x tile (db)
                + 2 * 3 * row_tile * E * itemsize           # q/k/v out tiles
                + (3 * E * E + 3 * E + 4 * E) * wsize       # resident params
                + 5 * row_tile * E * 4)                     # f32 intermediates
    q2d, k2d, v2d = pl.pallas_call(
        _ln_qkv_kernel,
        out_shape=(jax.ShapeDtypeStruct((N, E), x.dtype),) * 3,
        grid=(N // row_tile,),
        in_specs=[
            pl.BlockSpec((row_tile, E), lambda i: (i, 0)),
            resident((1, E)), resident((1, E)),             # ln1 gamma/beta
            resident((E, 3 * E)), resident((1, 3 * E)),     # W_in, b_in
        ],
        out_specs=(pl.BlockSpec((row_tile, E), lambda i: (i, 0)),) * 3,
        compiler_params=pltpu.CompilerParams(
            dimension_semantics=("parallel",),
            vmem_limit_bytes=vmem_limit(s1_bytes)),
    )(x2d, row(params["ln1_g"]), row(params["ln1_b"]), w_in, b_in)

    # free reshapes only (no HBM relayout / XLA transpose between kernels)
    qh = q2d.reshape(B, S, E)
    kh = k2d.reshape(B, S, E)
    vh = v2d.reshape(B, S, E)

    # ---- stage 2: flash multi-head attention, lane-dense (TQ, E) output -----
    s2_bytes = (2 * (2 * q_tile + 2 * kv_tile) * E * itemsize   # q/k/v/o tiles
                + num_heads * q_tile * head_dim * (4 + itemsize)  # acc + q scr
                + num_heads * q_tile * 8                          # m, l
                + 3 * num_heads * q_tile * kv_tile * 4)           # s/p f32
    attn = pl.pallas_call(
        partial(_flash_attn_kernel, num_heads=num_heads, head_dim=head_dim),
        out_shape=jax.ShapeDtypeStruct((B, S, E), x.dtype),
        grid=(B, S // q_tile, S // kv_tile),
        in_specs=[
            pl.BlockSpec((1, q_tile, E), lambda b, qi, ki: (b, qi, 0)),
            pl.BlockSpec((1, kv_tile, E), lambda b, qi, ki: (b, ki, 0)),
            pl.BlockSpec((1, kv_tile, E), lambda b, qi, ki: (b, ki, 0)),
        ],
        out_specs=pl.BlockSpec((1, q_tile, E), lambda b, qi, ki: (b, qi, 0)),
        scratch_shapes=[
            pltpu.VMEM((num_heads, q_tile, head_dim), x.dtype),      # q heads
            pltpu.VMEM((num_heads, q_tile, 1), jnp.float32),         # run max
            pltpu.VMEM((num_heads, q_tile, 1), jnp.float32),         # run sum
            pltpu.VMEM((num_heads, q_tile, head_dim), jnp.float32),  # acc
        ],
        compiler_params=pltpu.CompilerParams(
            dimension_semantics=("parallel", "parallel", "arbitrary"),
            vmem_limit_bytes=vmem_limit(s2_bytes)),
    )(qh, kh, vh)

    attn2d = attn.reshape(N, E)                             # free reshape

    # ---- stage 3: out-proj + residual + LN2 + MLP + residual ----------------
    s3_bytes = ((E * E + E * M + M * E + 4 * E + M) * wsize   # resident params
                + 2 * 3 * row_tile * E * itemsize             # x/attn/out (db)
                + row_tile * (3 * E + 2 * M) * 4)             # f32 interms
    y = pl.pallas_call(
        _proj_mlp_kernel,
        out_shape=jax.ShapeDtypeStruct((N, E), x.dtype),
        grid=(N // row_tile,),
        in_specs=[
            pl.BlockSpec((row_tile, E), lambda i: (i, 0)),    # x residual
            pl.BlockSpec((row_tile, E), lambda i: (i, 0)),    # attn (heads cat)
            resident((E, E)), resident((1, E)),               # Wo^T, bo
            resident((1, E)), resident((1, E)),               # ln2 gamma/beta
            resident((E, M)), resident((1, M)),               # W1^T, b1
            resident((M, E)), resident((1, E)),               # W2^T, b2
        ],
        out_specs=pl.BlockSpec((row_tile, E), lambda i: (i, 0)),
        compiler_params=pltpu.CompilerParams(
            dimension_semantics=("parallel",),
            vmem_limit_bytes=vmem_limit(s3_bytes)),
    )(x2d, attn2d,
      params["out_proj_w"].T, row(params["out_proj_b"]),
      row(params["ln2_g"]), row(params["ln2_b"]),
      params["w1"].T, row(params["b1"]),
      params["w2"].T, row(params["b2"]))

    return y.reshape(B, S, E)


# ----------------------------------------------------------------------------
# Pure-JAX reference (mirrors the PyTorch forward in eval mode)
# ----------------------------------------------------------------------------
def reference_block(x, params, *, num_heads):
    E = x.shape[-1]
    head_dim = E // num_heads
    eps = 1e-5

    def ln(v, g, b):
        mu = jnp.mean(v, axis=-1, keepdims=True)
        var = jnp.mean((v - mu) ** 2, axis=-1, keepdims=True)
        return (v - mu) / jnp.sqrt(var + eps) * g + b

    xn = ln(x, params["ln1_g"], params["ln1_b"])
    wq, wk, wv = jnp.split(params["in_proj_weight"], 3, axis=0)
    bq, bk, bv = jnp.split(params["in_proj_bias"], 3, axis=0)
    q = xn @ wq.T + bq
    k = xn @ wk.T + bk
    v = xn @ wv.T + bv
    B, S, _ = x.shape
    q = q.reshape(B, S, num_heads, head_dim).transpose(0, 2, 1, 3)
    k = k.reshape(B, S, num_heads, head_dim).transpose(0, 2, 1, 3)
    v = v.reshape(B, S, num_heads, head_dim).transpose(0, 2, 1, 3)
    scores = jnp.einsum("bhsd,bhtd->bhst", q, k) / math.sqrt(head_dim)
    attn = jax.nn.softmax(scores, axis=-1)
    out = jnp.einsum("bhst,bhtd->bhsd", attn, v)
    out = out.transpose(0, 2, 1, 3).reshape(B, S, E)
    out = out @ params["out_proj_w"].T + params["out_proj_b"]
    x = x + out

    xn2 = ln(x, params["ln2_g"], params["ln2_b"])
    h = xn2 @ params["w1"].T + params["b1"]
    h = 0.5 * h * (1.0 + jax.lax.erf(h / math.sqrt(2.0)))
    h = h @ params["w2"].T + params["b2"]
    return x + h


# ----------------------------------------------------------------------------
if __name__ == "__main__":
    B, S = 2, 64
    EMB, HEADS, MLP = 32, 4, 64

    key = jax.random.PRNGKey(0)
    ks = jax.random.split(key, 12)

    def init(k, shape, scale=0.05):
        return (scale * jax.random.normal(k, shape)).astype(jnp.float32)

    params = {
        "ln1_g": jnp.ones((EMB,), jnp.float32),
        "ln1_b": jnp.zeros((EMB,), jnp.float32),
        "in_proj_weight": init(ks[0], (3 * EMB, EMB)),
        "in_proj_bias": init(ks[1], (3 * EMB,)),
        "out_proj_w": init(ks[2], (EMB, EMB)),
        "out_proj_b": init(ks[3], (EMB,)),
        "ln2_g": jnp.ones((EMB,), jnp.float32),
        "ln2_b": jnp.zeros((EMB,), jnp.float32),
        "w1": init(ks[4], (MLP, EMB)),
        "b1": init(ks[5], (MLP,)),
        "w2": init(ks[6], (EMB, MLP)),
        "b2": init(ks[7], (EMB,)),
    }

    x = jax.random.normal(ks[8], (B, S, EMB), dtype=jnp.float32)

    # explicit small tiles so every grid has >= 2 steps (exercises pipelining
    # and the flash KV loop even at toy sizes)
    def run(weight_buffers):
        fwd = jax.jit(partial(transformer_encoder_block, num_heads=HEADS,
                              row_tile=64, q_tile=32, kv_tile=32,
                              weight_buffers=weight_buffers))
        return jax.block_until_ready(fwd(x, params))

    try:
        out = run(1)       # single-buffered resident weights (VMEM saver)
    except Exception:      # jax build without BlockSpec pipeline_mode support
        out = run(2)       # fall back to default double buffering

    ref = reference_block(x, params, num_heads=HEADS)
    assert out.shape == (B, S, EMB)
    max_err = float(jnp.max(jnp.abs(out - ref)))
    # exact EUP reciprocal + f32 stats -> tight tolerance
    assert jnp.allclose(out, ref, atol=5e-4, rtol=5e-4), max_err

    print("KERNEL_OK")
</pallas_src>

<mosaic_0001>
module attributes {stable_mosaic.version = 11 : i64} {
  func.func @_ln_qkv_kernel(%arg0: i32, %arg1: memref<64x32xf32, #tpu.memory_space<vmem>>, %arg2: memref<1x32xf32, #tpu.memory_space<vmem>>, %arg3: memref<1x32xf32, #tpu.memory_space<vmem>>, %arg4: memref<32x96xf32, #tpu.memory_space<vmem>>, %arg5: memref<1x96xf32, #tpu.memory_space<vmem>>, %arg6: memref<64x32xf32, #tpu.memory_space<vmem>>, %arg7: memref<64x32xf32, #tpu.memory_space<vmem>>, %arg8: memref<64x32xf32, #tpu.memory_space<vmem>>) attributes {dimension_semantics = [#tpu.dimension_semantics<parallel>], iteration_bounds = array<i64: 2>, scalar_prefetch = 0 : i64, scratch_operands = 0 : i64, tpu.core_type = #tpu.core_type<tc>, window_params = [{transform_indices = @transform_0, window_bounds = array<i64: 64, 32>}, {pipeline_mode = #tpu.pipeline_mode<synchronous>, transform_indices = @transform_1, window_bounds = array<i64: 1, 32>}, {pipeline_mode = #tpu.pipeline_mode<synchronous>, transform_indices = @transform_2, window_bounds = array<i64: 1, 32>}, {pipeline_mode = #tpu.pipeline_mode<synchronous>, transform_indices = @transform_3, window_bounds = array<i64: 32, 96>}, {pipeline_mode = #tpu.pipeline_mode<synchronous>, transform_indices = @transform_4, window_bounds = array<i64: 1, 96>}, {transform_indices = @transform_5, window_bounds = array<i64: 64, 32>}, {transform_indices = @transform_6, window_bounds = array<i64: 64, 32>}, {transform_indices = @transform_7, window_bounds = array<i64: 64, 32>}]} {
    %c0 = arith.constant 0 : index
    %c0_0 = arith.constant 0 : index
    %0 = vector.load %arg1[%c0, %c0_0] : memref<64x32xf32, #tpu.memory_space<vmem>>, vector<64x32xf32>
    %c0_1 = arith.constant 0 : index
    %c0_2 = arith.constant 0 : index
    %1 = vector.load %arg2[%c0_1, %c0_2] : memref<1x32xf32, #tpu.memory_space<vmem>>, vector<1x32xf32>
    %2 = vector.shape_cast %1 : vector<1x32xf32> to vector<32xf32>
    %c0_3 = arith.constant 0 : index
    %c0_4 = arith.constant 0 : index
    %3 = vector.load %arg3[%c0_3, %c0_4] : memref<1x32xf32, #tpu.memory_space<vmem>>, vector<1x32xf32>
    %4 = vector.shape_cast %3 : vector<1x32xf32> to vector<32xf32>
    %cst = arith.constant dense<0.000000e+00> : vector<64xf32>
    %5 = vector.multi_reduction <add>, %0, %cst [1] : vector<64x32xf32> to vector<64xf32>
    %6 = vector.shape_cast %5 : vector<64xf32> to vector<64x1xf32>
    %cst_5 = arith.constant 3.200000e+01 : f32
    %7 = vector.broadcast %cst_5 : f32 to vector<64x1xf32>
    %8 = arith.divf %6, %7 : vector<64x1xf32>
    %9 = vector.broadcast %8 : vector<64x1xf32> to vector<64x32xf32>
    %10 = arith.subf %0, %9 : vector<64x32xf32>
    %11 = arith.mulf %10, %10 : vector<64x32xf32>
    %cst_6 = arith.constant dense<0.000000e+00> : vector<64xf32>
    %12 = vector.multi_reduction <add>, %11, %cst_6 [1] : vector<64x32xf32> to vector<64xf32>
    %13 = vector.shape_cast %12 : vector<64xf32> to vector<64x1xf32>
    %cst_7 = arith.constant 3.200000e+01 : f32
    %14 = vector.broadcast %cst_7 : f32 to vector<64x1xf32>
    %15 = arith.divf %13, %14 : vector<64x1xf32>
    %16 = vector.broadcast %8 : vector<64x1xf32> to vector<64x32xf32>
    %17 = arith.subf %0, %16 : vector<64x32xf32>
    %cst_8 = arith.constant 9.99999974E-6 : f32
    %18 = vector.broadcast %cst_8 : f32 to vector<64x1xf32>
    %19 = arith.addf %15, %18 : vector<64x1xf32>
    %20 = math.rsqrt %19 : vector<64x1xf32>
    %21 = vector.broadcast %20 : vector<64x1xf32> to vector<64x32xf32>
    %22 = arith.mulf %17, %21 : vector<64x32xf32>
    %23 = vector.shape_cast %2 : vector<32xf32> to vector<1x32xf32>
    %24 = vector.broadcast %23 : vector<1x32xf32> to vector<64x32xf32>
    %25 = arith.mulf %22, %24 : vector<64x32xf32>
    %26 = vector.shape_cast %4 : vector<32xf32> to vector<1x32xf32>
    %27 = vector.broadcast %26 : vector<1x32xf32> to vector<64x32xf32>
    %28 = arith.addf %25, %27 : vector<64x32xf32>
    %c0_9 = arith.constant 0 : index
    %c0_10 = arith.constant 0 : index
    %29 = vector.load %arg4[%c0_9, %c0_10] : memref<32x96xf32, #tpu.memory_space<vmem>>, vector<32x96xf32>
    %cst_11 = arith.constant dense<0.000000e+00> : vector<64x96xf32>
    %30 = tpu.matmul %28, %29, %cst_11 {dimension_numbers = #tpu.dot_dimension_numbers<[1], [0], [0], [1], [0, 0, 1, 1], [], []>} : vector<64x32xf32>, vector<32x96xf32>, vector<64x96xf32> -> vector<64x96xf32>
    %c0_12 = arith.constant 0 : index
    %c0_13 = arith.constant 0 : index
    %31 = vector.load %arg5[%c0_12, %c0_13] : memref<1x96xf32, #tpu.memory_space<vmem>>, vector<1x96xf32>
    %32 = vector.shape_cast %31 : vector<1x96xf32> to vector<96xf32>
    %33 = vector.shape_cast %32 : vector<96xf32> to vector<1x96xf32>
    %34 = vector.broadcast %33 : vector<1x96xf32> to vector<64x96xf32>
    %35 = arith.addf %30, %34 : vector<64x96xf32>
    %36 = vector.extract_strided_slice %35 {offsets = [0, 0], sizes = [64, 32], strides = [1, 1]} : vector<64x96xf32> to vector<64x32xf32>
    %c0_14 = arith.constant 0 : index
    %c0_15 = arith.constant 0 : index
    %37 = vector.load %arg6[%c0_14, %c0_15] : memref<64x32xf32, #tpu.memory_space<vmem>>, vector<64x32xf32>
    tpu.vector_store %arg6[%c0_14, %c0_15], %36 {strides = array<i32>} : memref<64x32xf32, #tpu.memory_space<vmem>>, vector<64x32xf32>,
    %38 = vector.extract_strided_slice %35 {offsets = [0, 32], sizes = [64, 32], strides = [1, 1]} : vector<64x96xf32> to vector<64x32xf32>
    %c0_16 = arith.constant 0 : index
    %c0_17 = arith.constant 0 : index
    %39 = vector.load %arg7[%c0_16, %c0_17] : memref<64x32xf32, #tpu.memory_space<vmem>>, vector<64x32xf32>
    tpu.vector_store %arg7[%c0_16, %c0_17], %38 {strides = array<i32>} : memref<64x32xf32, #tpu.memory_space<vmem>>, vector<64x32xf32>,
    %40 = vector.extract_strided_slice %35 {offsets = [0, 64], sizes = [64, 32], strides = [1, 1]} : vector<64x96xf32> to vector<64x32xf32>
    %c0_18 = arith.constant 0 : index
    %c0_19 = arith.constant 0 : index
    %41 = vector.load %arg8[%c0_18, %c0_19] : memref<64x32xf32, #tpu.memory_space<vmem>>, vector<64x32xf32>
    tpu.vector_store %arg8[%c0_18, %c0_19], %40 {strides = array<i32>} : memref<64x32xf32, #tpu.memory_space<vmem>>, vector<64x32xf32>,
    return
  }
  func.func @transform_0(%arg0: i32) -> (i32, i32) {
    %c0_i32 = arith.constant 0 : i32
    %c0_i32_0 = arith.constant 0 : i32
    return %arg0, %c0_i32 : i32, i32
  }
  func.func @transform_1(%arg0: i32) -> (i32, i32) {
    %c0_i32 = arith.constant 0 : i32
    %c0_i32_0 = arith.constant 0 : i32
    %c0_i32_1 = arith.constant 0 : i32
    return %c0_i32, %c0_i32_0 : i32, i32
  }
  func.func @transform_2(%arg0: i32) -> (i32, i32) {
    %c0_i32 = arith.constant 0 : i32
    %c0_i32_0 = arith.constant 0 : i32
    %c0_i32_1 = arith.constant 0 : i32
    return %c0_i32, %c0_i32_0 : i32, i32
  }
  func.func @transform_3(%arg0: i32) -> (i32, i32) {
    %c0_i32 = arith.constant 0 : i32
    %c0_i32_0 = arith.constant 0 : i32
    %c0_i32_1 = arith.constant 0 : i32
    return %c0_i32, %c0_i32_0 : i32, i32
  }
  func.func @transform_4(%arg0: i32) -> (i32, i32) {
    %c0_i32 = arith.constant 0 : i32
    %c0_i32_0 = arith.constant 0 : i32
    %c0_i32_1 = arith.constant 0 : i32
    return %c0_i32, %c0_i32_0 : i32, i32
  }
  func.func @transform_5(%arg0: i32) -> (i32, i32) {
    %c0_i32 = arith.constant 0 : i32
    %c0_i32_0 = arith.constant 0 : i32
    return %arg0, %c0_i32 : i32, i32
  }
  func.func @transform_6(%arg0: i32) -> (i32, i32) {
    %c0_i32 = arith.constant 0 : i32
    %c0_i32_0 = arith.constant 0 : i32
    return %arg0, %c0_i32 : i32, i32
  }
  func.func @transform_7(%arg0: i32) -> (i32, i32) {
    %c0_i32 = arith.constant 0 : i32
    %c0_i32_0 = arith.constant 0 : i32
    return %arg0, %c0_i32 : i32, i32
  }
}

module attributes {stable_mosaic.version = 11 : i64} {
  func.func @_flash_attn_kernel(%arg0: i32, %arg1: i32, %arg2: i32, %arg3: memref<1x32x32xf32, #tpu.memory_space<vmem>>, %arg4: memref<1x32x32xf32, #tpu.memory_space<vmem>>, %arg5: memref<1x32x32xf32, #tpu.memory_space<vmem>>, %arg6: memref<1x32x32xf32, #tpu.memory_space<vmem>>, %arg7: memref<4x32x8xf32, #tpu.memory_space<vmem>>, %arg8: memref<4x32x1xf32, #tpu.memory_space<vmem>>, %arg9: memref<4x32x1xf32, #tpu.memory_space<vmem>>, %arg10: memref<4x32x8xf32, #tpu.memory_space<vmem>>) attributes {dimension_semantics = [#tpu.dimension_semantics<parallel>, #tpu.dimension_semantics<parallel>, #tpu.dimension_semantics<arbitrary>], iteration_bounds = array<i64: 2, 2, 2>, scalar_prefetch = 0 : i64, scratch_operands = 4 : i64, tpu.core_type = #tpu.core_type<tc>, window_params = [{transform_indices = @transform_0, window_bounds = array<i64: 1, 32, 32>}, {transform_indices = @transform_1, window_bounds = array<i64: 1, 32, 32>}, {transform_indices = @transform_2, window_bounds = array<i64: 1, 32, 32>}, {transform_indices = @transform_3, window_bounds = array<i64: 1, 32, 32>}]} {
    %c0_i32 = arith.constant 0 : i32
    %0 = arith.cmpi eq, %arg2, %c0_i32 : i32
    %1 = arith.extui %0 : i1 to i32
    %c0_i32_0 = arith.constant 0 : i32
    %2 = arith.cmpi ne, %1, %c0_i32_0 : i32
    scf.if %2 {
      %cst_31 = arith.constant 0xFF800000 : f32
      %52 = vector.broadcast %cst_31 : f32 to vector<4x32x1xf32>
      %c0_32 = arith.constant 0 : index
      %c0_33 = arith.constant 0 : index
      %c0_34 = arith.constant 0 : index
      %53 = vector.load %arg8[%c0_32, %c0_33, %c0_34] : memref<4x32x1xf32, #tpu.memory_space<vmem>>, vector<4x32x1xf32>
      tpu.vector_store %arg8[%c0_32, %c0_33, %c0_34], %52 {strides = array<i32>} : memref<4x32x1xf32, #tpu.memory_space<vmem>>, vector<4x32x1xf32>,
      %cst_35 = arith.constant 0.000000e+00 : f32
      %54 = vector.broadcast %cst_35 : f32 to vector<4x32x1xf32>
      %c0_36 = arith.constant 0 : index
      %c0_37 = arith.constant 0 : index
      %c0_38 = arith.constant 0 : index
      %55 = vector.load %arg9[%c0_36, %c0_37, %c0_38] : memref<4x32x1xf32, #tpu.memory_space<vmem>>, vector<4x32x1xf32>
      tpu.vector_store %arg9[%c0_36, %c0_37, %c0_38], %54 {strides = array<i32>} : memref<4x32x1xf32, #tpu.memory_space<vmem>>, vector<4x32x1xf32>,
      %cst_39 = arith.constant 0.000000e+00 : f32
      %56 = vector.broadcast %cst_39 : f32 to vector<4x32x8xf32>
      %c0_40 = arith.constant 0 : index
      %c0_41 = arith.constant 0 : index
      %c0_42 = arith.constant 0 : index
      %57 = vector.load %arg10[%c0_40, %c0_41, %c0_42] : memref<4x32x8xf32, #tpu.memory_space<vmem>>, vector<4x32x8xf32>
      tpu.vector_store %arg10[%c0_40, %c0_41, %c0_42], %56 {strides = array<i32>} : memref<4x32x8xf32, #tpu.memory_space<vmem>>, vector<4x32x8xf32>,
      %c0_43 = arith.constant 0 : index
      %c0_44 = arith.constant 0 : index
      %c0_45 = arith.constant 0 : index
      %58 = vector.load %arg3[%c0_43, %c0_44, %c0_45] : memref<1x32x32xf32, #tpu.memory_space<vmem>>, vector<1x32x32xf32>
      %59 = vector.shape_cast %58 : vector<1x32x32xf32> to vector<32x32xf32>
      %60 = vector.extract_strided_slice %59 {offsets = [0, 0], sizes = [32, 8], strides = [1, 1]} : vector<32x32xf32> to vector<32x8xf32>
      %61 = vector.extract_strided_slice %59 {offsets = [0, 8], sizes = [32, 8], strides = [1, 1]} : vector<32x32xf32> to vector<32x8xf32>
      %62 = vector.extract_strided_slice %59 {offsets = [0, 16], sizes = [32, 8], strides = [1, 1]} : vector<32x32xf32> to vector<32x8xf32>
      %63 = vector.extract_strided_slice %59 {offsets = [0, 24], sizes = [32, 8], strides = [1, 1]} : vector<32x32xf32> to vector<32x8xf32>
      %64 = vector.shape_cast %60 : vector<32x8xf32> to vector<1x32x8xf32>
      %65 = vector.shape_cast %61 : vector<32x8xf32> to vector<1x32x8xf32>
      %66 = vector.shape_cast %62 : vector<32x8xf32> to vector<1x32x8xf32>
      %67 = vector.shape_cast %63 : vector<32x8xf32> to vector<1x32x8xf32>
      %68 = tpu.concatenate %64, %65, %66, %67 in 0 : vector<1x32x8xf32>, vector<1x32x8xf32>, vector<1x32x8xf32>, vector<1x32x8xf32> -> vector<4x32x8xf32>
      %c0_46 = arith.constant 0 : index
      %c0_47 = arith.constant 0 : index
      %c0_48 = arith.constant 0 : index
      %69 = vector.load %arg7[%c0_46, %c0_47, %c0_48] : memref<4x32x8xf32, #tpu.memory_space<vmem>>, vector<4x32x8xf32>
      tpu.vector_store %arg7[%c0_46, %c0_47, %c0_48], %68 {strides = array<i32>} : memref<4x32x8xf32, #tpu.memory_space<vmem>>, vector<4x32x8xf32>,
    } else {
    }
    %c0 = arith.constant 0 : index
    %c0_1 = arith.constant 0 : index
    %c0_2 = arith.constant 0 : index
    %3 = vector.load %arg4[%c0, %c0_1, %c0_2] : memref<1x32x32xf32, #tpu.memory_space<vmem>>, vector<1x32x32xf32>
    %4 = vector.shape_cast %3 : vector<1x32x32xf32> to vector<32x32xf32>
    %5 = vector.extract_strided_slice %4 {offsets = [0, 0], sizes = [32, 8], strides = [1, 1]} : vector<32x32xf32> to vector<32x8xf32>
    %6 = vector.extract_strided_slice %4 {offsets = [0, 8], sizes = [32, 8], strides = [1, 1]} : vector<32x32xf32> to vector<32x8xf32>
    %7 = vector.extract_strided_slice %4 {offsets = [0, 16], sizes = [32, 8], strides = [1, 1]} : vector<32x32xf32> to vector<32x8xf32>
    %8 = vector.extract_strided_slice %4 {offsets = [0, 24], sizes = [32, 8], strides = [1, 1]} : vector<32x32xf32> to vector<32x8xf32>
    %9 = vector.shape_cast %5 : vector<32x8xf32> to vector<1x32x8xf32>
    %10 = vector.shape_cast %6 : vector<32x8xf32> to vector<1x32x8xf32>
    %11 = vector.shape_cast %7 : vector<32x8xf32> to vector<1x32x8xf32>
    %12 = vector.shape_cast %8 : vector<32x8xf32> to vector<1x32x8xf32>
    %13 = tpu.concatenate %9, %10, %11, %12 in 0 : vector<1x32x8xf32>, vector<1x32x8xf32>, vector<1x32x8xf32>, vector<1x32x8xf32> -> vector<4x32x8xf32>
    %c0_3 = arith.constant 0 : index
    %c0_4 = arith.constant 0 : index
    %c0_5 = arith.constant 0 : index
    %14 = vector.load %arg5[%c0_3, %c0_4, %c0_5] : memref<1x32x32xf32, #tpu.memory_space<vmem>>, vector<1x32x32xf32>
    %15 = vector.shape_cast %14 : vector<1x32x32xf32> to vector<32x32xf32>
    %16 = vector.extract_strided_slice %15 {offsets = [0, 0], sizes = [32, 8], strides = [1, 1]} : vector<32x32xf32> to vector<32x8xf32>
    %17 = vector.extract_strided_slice %15 {offsets = [0, 8], sizes = [32, 8], strides = [1, 1]} : vector<32x32xf32> to vector<32x8xf32>
    %18 = vector.extract_strided_slice %15 {offsets = [0, 16], sizes = [32, 8], strides = [1, 1]} : vector<32x32xf32> to vector<32x8xf32>
    %19 = vector.extract_strided_slice %15 {offsets = [0, 24], sizes = [32, 8], strides = [1, 1]} : vector<32x32xf32> to vector<32x8xf32>
    %20 = vector.shape_cast %16 : vector<32x8xf32> to vector<1x32x8xf32>
    %21 = vector.shape_cast %17 : vector<32x8xf32> to vector<1x32x8xf32>
    %22 = vector.shape_cast %18 : vector<32x8xf32> to vector<1x32x8xf32>
    %23 = vector.shape_cast %19 : vector<32x8xf32> to vector<1x32x8xf32>
    %24 = tpu.concatenate %20, %21, %22, %23 in 0 : vector<1x32x8xf32>, vector<1x32x8xf32>, vector<1x32x8xf32>, vector<1x32x8xf32> -> vector<4x32x8xf32>
    %c0_6 = arith.constant 0 : index
    %c0_7 = arith.constant 0 : index
    %c0_8 = arith.constant 0 : index
    %25 = vector.load %arg7[%c0_6, %c0_7, %c0_8] : memref<4x32x8xf32, #tpu.memory_space<vmem>>, vector<4x32x8xf32>
    %cst = arith.constant dense<0.000000e+00> : vector<4x32x32xf32>
    %26 = tpu.matmul %25, %13, %cst {dimension_numbers = #tpu.dot_dimension_numbers<[2], [2], [1], [1], [0, 0, 0, 1, 1, 1], [0], [0]>} : vector<4x32x8xf32>, vector<4x32x8xf32>, vector<4x32x32xf32> -> vector<4x32x32xf32>
    %c0_9 = arith.constant 0 : index
    %c0_10 = arith.constant 0 : index
    %c0_11 = arith.constant 0 : index
    %27 = vector.load %arg8[%c0_9, %c0_10, %c0_11] : memref<4x32x1xf32, #tpu.memory_space<vmem>>, vector<4x32x1xf32>
    %cst_12 = arith.constant dense<0xFF800000> : vector<4x32xf32>
    %28 = vector.multi_reduction <maximumf>, %26, %cst_12 [2] : vector<4x32x32xf32> to vector<4x32xf32>
    %29 = vector.shape_cast %28 : vector<4x32xf32> to vector<4x32x1xf32>
    %30 = arith.maximumf %27, %29 : vector<4x32x1xf32>
    %31 = arith.subf %27, %30 : vector<4x32x1xf32>
    %32 = math.exp %31 : vector<4x32x1xf32>
    %33 = vector.broadcast %30 : vector<4x32x1xf32> to vector<4x32x32xf32>
    %34 = arith.subf %26, %33 : vector<4x32x32xf32>
    %35 = math.exp %34 : vector<4x32x32xf32>
    %c0_13 = arith.constant 0 : index
    %c0_14 = arith.constant 0 : index
    %c0_15 = arith.constant 0 : index
    %36 = vector.load %arg9[%c0_13, %c0_14, %c0_15] : memref<4x32x1xf32, #tpu.memory_space<vmem>>, vector<4x32x1xf32>
    %37 = arith.mulf %32, %36 : vector<4x32x1xf32>
    %cst_16 = arith.constant dense<0.000000e+00> : vector<4x32xf32>
    %38 = vector.multi_reduction <add>, %35, %cst_16 [2] : vector<4x32x32xf32> to vector<4x32xf32>
    %39 = vector.shape_cast %38 : vector<4x32xf32> to vector<4x32x1xf32>
    %40 = arith.addf %37, %39 : vector<4x32x1xf32>
    %c0_17 = arith.constant 0 : index
    %c0_18 = arith.constant 0 : index
    %c0_19 = arith.constant 0 : index
    %41 = vector.load %arg9[%c0_17, %c0_18, %c0_19] : memref<4x32x1xf32, #tpu.memory_space<vmem>>, vector<4x32x1xf32>
    tpu.vector_store %arg9[%c0_17, %c0_18, %c0_19], %40 {strides = array<i32>} : memref<4x32x1xf32, #tpu.memory_space<vmem>>, vector<4x32x1xf32>,
    %cst_20 = arith.constant dense<0.000000e+00> : vector<4x32x8xf32>
    %42 = tpu.matmul %35, %24, %cst_20 {dimension_numbers = #tpu.dot_dimension_numbers<[2], [1], [1], [2], [0, 0, 0, 1, 1, 2], [0], [0]>} : vector<4x32x32xf32>, vector<4x32x8xf32>, vector<4x32x8xf32> -> vector<4x32x8xf32>
    %c0_21 = arith.constant 0 : index
    %c0_22 = arith.constant 0 : index
    %c0_23 = arith.constant 0 : index
    %43 = vector.load %arg10[%c0_21, %c0_22, %c0_23] : memref<4x32x8xf32, #tpu.memory_space<vmem>>, vector<4x32x8xf32>
    %44 = vector.broadcast %32 : vector<4x32x1xf32> to vector<4x32x8xf32>
    %45 = arith.mulf %44, %43 : vector<4x32x8xf32>
    %46 = arith.addf %45, %42 : vector<4x32x8xf32>
    %c0_24 = arith.constant 0 : index
    %c0_25 = arith.constant 0 : index
    %c0_26 = arith.constant 0 : index
    %47 = vector.load %arg10[%c0_24, %c0_25, %c0_26] : memref<4x32x8xf32, #tpu.memory_space<vmem>>, vector<4x32x8xf32>
    tpu.vector_store %arg10[%c0_24, %c0_25, %c0_26], %46 {strides = array<i32>} : memref<4x32x8xf32, #tpu.memory_space<vmem>>, vector<4x32x8xf32>,
    %c0_27 = arith.constant 0 : index
    %c0_28 = arith.constant 0 : index
    %c0_29 = arith.constant 0 : index
    %48 = vector.load %arg8[%c0_27, %c0_28, %c0_29] : memref<4x32x1xf32, #tpu.memory_space<vmem>>, vector<4x32x1xf32>
    tpu.vector_store %arg8[%c0_27, %c0_28, %c0_29], %30 {strides = array<i32>} : memref<4x32x1xf32, #tpu.memory_space<vmem>>, vector<4x32x1xf32>,
    %c1_i32 = arith.constant 1 : i32
    %49 = arith.cmpi eq, %arg2, %c1_i32 : i32
    %50 = arith.extui %49 : i1 to i32
    %c0_i32_30 = arith.constant 0 : i32
    %51 = arith.cmpi ne, %50, %c0_i32_30 : i32
    scf.if %51 {
      %c0_31 = arith.constant 0 : index
      %c0_32 = arith.constant 0 : index
      %c0_33 = arith.constant 0 : index
      %52 = vector.load %arg9[%c0_31, %c0_32, %c0_33] : memref<4x32x1xf32, #tpu.memory_space<vmem>>, vector<4x32x1xf32>
      %53 = tpu.reciprocal %52 : vector<4x32x1xf32> -> vector<4x32x1xf32>
      %c0_34 = arith.constant 0 : index
      %c0_35 = arith.constant 0 : index
      %c0_36 = arith.constant 0 : index
      %54 = vector.load %arg10[%c0_34, %c0_35, %c0_36] : memref<4x32x8xf32, #tpu.memory_space<vmem>>, vector<4x32x8xf32>
      %55 = vector.broadcast %53 : vector<4x32x1xf32> to vector<4x32x8xf32>
      %56 = arith.mulf %54, %55 : vector<4x32x8xf32>
      %57 = vector.extract_strided_slice %56 {offsets = [0, 0, 0], sizes = [1, 32, 8], strides = [1, 1, 1]} : vector<4x32x8xf32> to vector<1x32x8xf32>
      %58 = vector.shape_cast %57 : vector<1x32x8xf32> to vector<32x8xf32>
      %59 = vector.extract_strided_slice %56 {offsets = [1, 0, 0], sizes = [1, 32, 8], strides = [1, 1, 1]} : vector<4x32x8xf32> to vector<1x32x8xf32>
      %60 = vector.shape_cast %59 : vector<1x32x8xf32> to vector<32x8xf32>
      %61 = vector.extract_strided_slice %56 {offsets = [2, 0, 0], sizes = [1, 32, 8], strides = [1, 1, 1]} : vector<4x32x8xf32> to vector<1x32x8xf32>
      %62 = vector.shape_cast %61 : vector<1x32x8xf32> to vector<32x8xf32>
      %63 = vector.extract_strided_slice %56 {offsets = [3, 0, 0], sizes = [1, 32, 8], strides = [1, 1, 1]} : vector<4x32x8xf32> to vector<1x32x8xf32>
      %64 = vector.shape_cast %63 : vector<1x32x8xf32> to vector<32x8xf32>
      %65 = tpu.concatenate %58, %60, %62, %64 in 1 : vector<32x8xf32>, vector<32x8xf32>, vector<32x8xf32>, vector<32x8xf32> -> vector<32x32xf32>
      %c0_37 = arith.constant 0 : index
      %c0_38 = arith.constant 0 : index
      %c0_39 = arith.constant 0 : index
      %66 = vector.load %arg6[%c0_37, %c0_38, %c0_39] : memref<1x32x32xf32, #tpu.memory_space<vmem>>, vector<1x32x32xf32>
      %67 = vector.shape_cast %66 : vector<1x32x32xf32> to vector<32x32xf32>
      %68 = vector.shape_cast %65 : vector<32x32xf32> to vector<1x32x32xf32>
      tpu.vector_store %arg6[%c0_37, %c0_38, %c0_39], %68 {strides = array<i32>} : memref<1x32x32xf32, #tpu.memory_space<vmem>>, vector<1x32x32xf32>,
    } else {
    }
    return
  }
  func.func @transform_0(%arg0: i32, %arg1: i32, %arg2: i32) -> (i32, i32, i32) {
    %c0_i32 = arith.constant 0 : i32
    %c0_i32_0 = arith.constant 0 : i32
    return %arg0, %arg1, %c0_i32 : i32, i32, i32
  }
  func.func @transform_1(%arg0: i32, %arg1: i32, %arg2: i32) -> (i32, i32, i32) {
    %c0_i32 = arith.constant 0 : i32
    %c0_i32_0 = arith.constant 0 : i32
    return %arg0, %arg2, %c0_i32 : i32, i32, i32
  }
  func.func @transform_2(%arg0: i32, %arg1: i32, %arg2: i32) -> (i32, i32, i32) {
    %c0_i32 = arith.constant 0 : i32
    %c0_i32_0 = arith.constant 0 : i32
    return %arg0, %arg2, %c0_i32 : i32, i32, i32
  }
  func.func @transform_3(%arg0: i32, %arg1: i32, %arg2: i32) -> (i32, i32, i32) {
    %c0_i32 = arith.constant 0 : i32
    %c0_i32_0 = arith.constant 0 : i32
    return %arg0, %arg1, %c0_i32 : i32, i32, i32
  }
}

module attributes {stable_mosaic.version = 11 : i64} {
  func.func @_proj_mlp_kernel(%arg0: i32, %arg1: memref<64x32xf32, #tpu.memory_space<vmem>>, %arg2: memref<64x32xf32, #tpu.memory_space<vmem>>, %arg3: memref<32x32xf32, #tpu.memory_space<vmem>>, %arg4: memref<1x32xf32, #tpu.memory_space<vmem>>, %arg5: memref<1x32xf32, #tpu.memory_space<vmem>>, %arg6: memref<1x32xf32, #tpu.memory_space<vmem>>, %arg7: memref<32x64xf32, #tpu.memory_space<vmem>>, %arg8: memref<1x64xf32, #tpu.memory_space<vmem>>, %arg9: memref<64x32xf32, #tpu.memory_space<vmem>>, %arg10: memref<1x32xf32, #tpu.memory_space<vmem>>, %arg11: memref<64x32xf32, #tpu.memory_space<vmem>>) attributes {dimension_semantics = [#tpu.dimension_semantics<parallel>], iteration_bounds = array<i64: 2>, scalar_prefetch = 0 : i64, scratch_operands = 0 : i64, tpu.core_type = #tpu.core_type<tc>, window_params = [{transform_indices = @transform_0, window_bounds = array<i64: 64, 32>}, {transform_indices = @transform_1, window_bounds = array<i64: 64, 32>}, {pipeline_mode = #tpu.pipeline_mode<synchronous>, transform_indices = @transform_2, window_bounds = array<i64: 32, 32>}, {pipeline_mode = #tpu.pipeline_mode<synchronous>, transform_indices = @transform_3, window_bounds = array<i64: 1, 32>}, {pipeline_mode = #tpu.pipeline_mode<synchronous>, transform_indices = @transform_4, window_bounds = array<i64: 1, 32>}, {pipeline_mode = #tpu.pipeline_mode<synchronous>, transform_indices = @transform_5, window_bounds = array<i64: 1, 32>}, {pipeline_mode = #tpu.pipeline_mode<synchronous>, transform_indices = @transform_6, window_bounds = array<i64: 32, 64>}, {pipeline_mode = #tpu.pipeline_mode<synchronous>, transform_indices = @transform_7, window_bounds = array<i64: 1, 64>}, {pipeline_mode = #tpu.pipeline_mode<synchronous>, transform_indices = @transform_8, window_bounds = array<i64: 64, 32>}, {pipeline_mode = #tpu.pipeline_mode<synchronous>, transform_indices = @transform_9, window_bounds = array<i64: 1, 32>}, {transform_indices = @transform_10, window_bounds = array<i64: 64, 32>}]} {
    %c0 = arith.constant 0 : index
    %c0_0 = arith.constant 0 : index
    %0 = vector.load %arg1[%c0, %c0_0] : memref<64x32xf32, #tpu.memory_space<vmem>>, vector<64x32xf32>
    %c0_1 = arith.constant 0 : index
    %c0_2 = arith.constant 0 : index
    %1 = vector.load %arg2[%c0_1, %c0_2] : memref<64x32xf32, #tpu.memory_space<vmem>>, vector<64x32xf32>
    %c0_3 = arith.constant 0 : index
    %c0_4 = arith.constant 0 : index
    %2 = vector.load %arg3[%c0_3, %c0_4] : memref<32x32xf32, #tpu.memory_space<vmem>>, vector<32x32xf32>
    %cst = arith.constant dense<0.000000e+00> : vector<64x32xf32>
    %3 = tpu.matmul %1, %2, %cst {dimension_numbers = #tpu.dot_dimension_numbers<[1], [0], [0], [1], [0, 0, 1, 1], [], []>} : vector<64x32xf32>, vector<32x32xf32>, vector<64x32xf32> -> vector<64x32xf32>
    %c0_5 = arith.constant 0 : index
    %c0_6 = arith.constant 0 : index
    %4 = vector.load %arg4[%c0_5, %c0_6] : memref<1x32xf32, #tpu.memory_space<vmem>>, vector<1x32xf32>
    %5 = vector.shape_cast %4 : vector<1x32xf32> to vector<32xf32>
    %6 = vector.shape_cast %5 : vector<32xf32> to vector<1x32xf32>
    %7 = vector.broadcast %6 : vector<1x32xf32> to vector<64x32xf32>
    %8 = arith.addf %3, %7 : vector<64x32xf32>
    %9 = arith.addf %0, %8 : vector<64x32xf32>
    %c0_7 = arith.constant 0 : index
    %c0_8 = arith.constant 0 : index
    %10 = vector.load %arg5[%c0_7, %c0_8] : memref<1x32xf32, #tpu.memory_space<vmem>>, vector<1x32xf32>
    %11 = vector.shape_cast %10 : vector<1x32xf32> to vector<32xf32>
    %c0_9 = arith.constant 0 : index
    %c0_10 = arith.constant 0 : index
    %12 = vector.load %arg6[%c0_9, %c0_10] : memref<1x32xf32, #tpu.memory_space<vmem>>, vector<1x32xf32>
    %13 = vector.shape_cast %12 : vector<1x32xf32> to vector<32xf32>
    %cst_11 = arith.constant dense<0.000000e+00> : vector<64xf32>
    %14 = vector.multi_reduction <add>, %9, %cst_11 [1] : vector<64x32xf32> to vector<64xf32>
    %15 = vector.shape_cast %14 : vector<64xf32> to vector<64x1xf32>
    %cst_12 = arith.constant 3.200000e+01 : f32
    %16 = vector.broadcast %cst_12 : f32 to vector<64x1xf32>
    %17 = arith.divf %15, %16 : vector<64x1xf32>
    %18 = vector.broadcast %17 : vector<64x1xf32> to vector<64x32xf32>
    %19 = arith.subf %9, %18 : vector<64x32xf32>
    %20 = arith.mulf %19, %19 : vector<64x32xf32>
    %cst_13 = arith.constant dense<0.000000e+00> : vector<64xf32>
    %21 = vector.multi_reduction <add>, %20, %cst_13 [1] : vector<64x32xf32> to vector<64xf32>
    %22 = vector.shape_cast %21 : vector<64xf32> to vector<64x1xf32>
    %cst_14 = arith.constant 3.200000e+01 : f32
    %23 = vector.broadcast %cst_14 : f32 to vector<64x1xf32>
    %24 = arith.divf %22, %23 : vector<64x1xf32>
    %25 = vector.broadcast %17 : vector<64x1xf32> to vector<64x32xf32>
    %26 = arith.subf %9, %25 : vector<64x32xf32>
    %cst_15 = arith.constant 9.99999974E-6 : f32
    %27 = vector.broadcast %cst_15 : f32 to vector<64x1xf32>
    %28 = arith.addf %24, %27 : vector<64x1xf32>
    %29 = math.rsqrt %28 : vector<64x1xf32>
    %30 = vector.broadcast %29 : vector<64x1xf32> to vector<64x32xf32>
    %31 = arith.mulf %26, %30 : vector<64x32xf32>
    %32 = vector.shape_cast %11 : vector<32xf32> to vector<1x32xf32>
    %33 = vector.broadcast %32 : vector<1x32xf32> to vector<64x32xf32>
    %34 = arith.mulf %31, %33 : vector<64x32xf32>
    %35 = vector.shape_cast %13 : vector<32xf32> to vector<1x32xf32>
    %36 = vector.broadcast %35 : vector<1x32xf32> to vector<64x32xf32>
    %37 = arith.addf %34, %36 : vector<64x32xf32>
    %c0_16 = arith.constant 0 : index
    %c0_17 = arith.constant 0 : index
    %38 = vector.load %arg7[%c0_16, %c0_17] : memref<32x64xf32, #tpu.memory_space<vmem>>, vector<32x64xf32>
    %cst_18 = arith.constant dense<0.000000e+00> : vector<64x64xf32>
    %39 = tpu.matmul %37, %38, %cst_18 {dimension_numbers = #tpu.dot_dimension_numbers<[1], [0], [0], [1], [0, 0, 1, 1], [], []>} : vector<64x32xf32>, vector<32x64xf32>, vector<64x64xf32> -> vector<64x64xf32>
    %c0_19 = arith.constant 0 : index
    %c0_20 = arith.constant 0 : index
    %40 = vector.load %arg8[%c0_19, %c0_20] : memref<1x64xf32, #tpu.memory_space<vmem>>, vector<1x64xf32>
    %41 = vector.shape_cast %40 : vector<1x64xf32> to vector<64xf32>
    %42 = vector.shape_cast %41 : vector<64xf32> to vector<1x64xf32>
    %43 = vector.broadcast %42 : vector<1x64xf32> to vector<64x64xf32>
    %44 = arith.addf %39, %43 : vector<64x64xf32>
    %cst_21 = arith.constant 5.000000e-01 : f32
    %45 = vector.broadcast %cst_21 : f32 to vector<64x64xf32>
    %46 = arith.mulf %45, %44 : vector<64x64xf32>
    %cst_22 = arith.constant 0.707106769 : f32
    %47 = vector.broadcast %cst_22 : f32 to vector<64x64xf32>
    %48 = arith.mulf %44, %47 : vector<64x64xf32>
    %49 = math.erf %48 : vector<64x64xf32>
    %cst_23 = arith.constant 1.000000e+00 : f32
    %50 = vector.broadcast %cst_23 : f32 to vector<64x64xf32>
    %51 = arith.addf %50, %49 : vector<64x64xf32>
    %52 = arith.mulf %46, %51 : vector<64x64xf32>
    %c0_24 = arith.constant 0 : index
    %c0_25 = arith.constant 0 : index
    %53 = vector.load %arg9[%c0_24, %c0_25] : memref<64x32xf32, #tpu.memory_space<vmem>>, vector<64x32xf32>
    %cst_26 = arith.constant dense<0.000000e+00> : vector<64x32xf32>
    %54 = tpu.matmul %52, %53, %cst_26 {dimension_numbers = #tpu.dot_dimension_numbers<[1], [0], [0], [1], [0, 0, 1, 1], [], []>} : vector<64x64xf32>, vector<64x32xf32>, vector<64x32xf32> -> vector<64x32xf32>
    %c0_27 = arith.constant 0 : index
    %c0_28 = arith.constant 0 : index
    %55 = vector.load %arg10[%c0_27, %c0_28] : memref<1x32xf32, #tpu.memory_space<vmem>>, vector<1x32xf32>
    %56 = vector.shape_cast %55 : vector<1x32xf32> to vector<32xf32>
    %57 = vector.shape_cast %56 : vector<32xf32> to vector<1x32xf32>
    %58 = vector.broadcast %57 : vector<1x32xf32> to vector<64x32xf32>
    %59 = arith.addf %54, %58 : vector<64x32xf32>
    %60 = arith.addf %9, %59 : vector<64x32xf32>
    %c0_29 = arith.constant 0 : index
    %c0_30 = arith.constant 0 : index
    %61 = vector.load %arg11[%c0_29, %c0_30] : memref<64x32xf32, #tpu.memory_space<vmem>>, vector<64x32xf32>
    tpu.vector_store %arg11[%c0_29, %c0_30], %60 {strides = array<i32>} : memref<64x32xf32, #tpu.memory_space<vmem>>, vector<64x32xf32>,
    return
  }
  func.func @transform_0(%arg0: i32) -> (i32, i32) {
    %c0_i32 = arith.constant 0 : i32
    %c0_i32_0 = arith.constant 0 : i32
    return %arg0, %c0_i32 : i32, i32
  }
  func.func @transform_1(%arg0: i32) -> (i32, i32) {
    %c0_i32 = arith.constant 0 : i32
    %c0_i32_0 = arith.constant 0 : i32
    return %arg0, %c0_i32 : i32, i32
  }
  func.func @transform_2(%arg0: i32) -> (i32, i32) {
    %c0_i32 = arith.constant 0 : i32
    %c0_i32_0 = arith.constant 0 : i32
    %c0_i32_1 = arith.constant 0 : i32
    return %c0_i32, %c0_i32_0 : i32, i32
  }
  func.func @transform_3(%arg0: i32) -> (i32, i32) {
    %c0_i32 = arith.constant 0 : i32
    %c0_i32_0 = arith.constant 0 : i32
    %c0_i32_1 = arith.constant 0 : i32
    return %c0_i32, %c0_i32_0 : i32, i32
  }
  func.func @transform_4(%arg0: i32) -> (i32, i32) {
    %c0_i32 = arith.constant 0 : i32
    %c0_i32_0 = arith.constant 0 : i32
    %c0_i32_1 = arith.constant 0 : i32
    return %c0_i32, %c0_i32_0 : i32, i32
  }
  func.func @transform_5(%arg0: i32) -> (i32, i32) {
    %c0_i32 = arith.constant 0 : i32
    %c0_i32_0 = arith.constant 0 : i32
    %c0_i32_1 = arith.constant 0 : i32
    return %c0_i32, %c0_i32_0 : i32, i32
  }
  func.func @transform_6(%arg0: i32) -> (i32, i32) {
    %c0_i32 = arith.constant 0 : i32
    %c0_i32_0 = arith.constant 0 : i32
    %c0_i32_1 = arith.constant 0 : i32
    return %c0_i32, %c0_i32_0 : i32, i32
  }
  func.func @transform_7(%arg0: i32) -> (i32, i32) {
    %c0_i32 = arith.constant 0 : i32
    %c0_i32_0 = arith.constant 0 : i32
    %c0_i32_1 = arith.constant 0 : i32
    return %c0_i32, %c0_i32_0 : i32, i32
  }
  func.func @transform_8(%arg0: i32) -> (i32, i32) {
    %c0_i32 = arith.constant 0 : i32
    %c0_i32_0 = arith.constant 0 : i32
    %c0_i32_1 = arith.constant 0 : i32
    return %c0_i32, %c0_i32_0 : i32, i32
  }
  func.func @transform_9(%arg0: i32) -> (i32, i32) {
    %c0_i32 = arith.constant 0 : i32
    %c0_i32_0 = arith.constant 0 : i32
    %c0_i32_1 = arith.constant 0 : i32
    return %c0_i32, %c0_i32_0 : i32, i32
  }
  func.func @transform_10(%arg0: i32) -> (i32, i32) {
    %c0_i32 = arith.constant 0 : i32
    %c0_i32_0 = arith.constant 0 : i32
    return %arg0, %c0_i32 : i32, i32
  }
}

module attributes {stable_mosaic.version = 11 : i64} {
  func.func @_ln_qkv_kernel(%arg0: i32, %arg1: memref<64x32xf32, #tpu.memory_space<vmem>>, %arg2: memref<1x32xf32, #tpu.memory_space<vmem>>, %arg3: memref<1x32xf32, #tpu.memory_space<vmem>>, %arg4: memref<32x96xf32, #tpu.memory_space<vmem>>, %arg5: memref<1x96xf32, #tpu.memory_space<vmem>>, %arg6: memref<64x32xf32, #tpu.memory_space<vmem>>, %arg7: memref<64x32xf32, #tpu.memory_space<vmem>>, %arg8: memref<64x32xf32, #tpu.memory_space<vmem>>) attributes {dimension_semantics = [#tpu.dimension_semantics<parallel>], iteration_bounds = array<i64: 2>, scalar_prefetch = 0 : i64, scratch_operands = 0 : i64, tpu.core_type = #tpu.core_type<tc>, window_params = [{transform_indices = @transform_0, window_bounds = array<i64: 64, 32>}, {pipeline_mode = #tpu.pipeline_mode<synchronous>, transform_indices = @transform_1, window_bounds = array<i64: 1, 32>}, {pipeline_mode = #tpu.pipeline_mode<synchronous>, transform_indices = @transform_2, window_bounds = array<i64: 1, 32>}, {pipeline_mode = #tpu.pipeline_mode<synchronous>, transform_indices = @transform_3, window_bounds = array<i64: 32, 96>}, {pipeline_mode = #tpu.pipeline_mode<synchronous>, transform_indices = @transform_4, window_bounds = array<i64: 1, 96>}, {transform_indices = @transform_5, window_bounds = array<i64: 64, 32>}, {transform_indices = @transform_6, window_bounds = array<i64: 64, 32>}, {transform_indices = @transform_7, window_bounds = array<i64: 64, 32>}]} {
    %c0 = arith.constant 0 : index
    %c0_0 = arith.constant 0 : index
    %0 = vector.load %arg1[%c0, %c0_0] : memref<64x32xf32, #tpu.memory_space<vmem>>, vector<64x32xf32>
    %c0_1 = arith.constant 0 : index
    %c0_2 = arith.constant 0 : index
    %1 = vector.load %arg2[%c0_1, %c0_2] : memref<1x32xf32, #tpu.memory_space<vmem>>, vector<1x32xf32>
    %2 = vector.shape_cast %1 : vector<1x32xf32> to vector<32xf32>
    %c0_3 = arith.constant 0 : index
    %c0_4 = arith.constant 0 : index
    %3 = vector.load %arg3[%c0_3, %c0_4] : memref<1x32xf32, #tpu.memory_space<vmem>>, vector<1x32xf32>
    %4 = vector.shape_cast %3 : vector<1x32xf32> to vector<32xf32>
    %cst = arith.constant dense<0.000000e+00> : vector<64xf32>
    %5 = vector.multi_reduction <add>, %0, %cst [1] : vector<64x32xf32> to vector<64xf32>
    %6 = vector.shape_cast %5 : vector<64xf32> to vector<64x1xf32>
    %cst_5 = arith.constant 3.200000e+01 : f32
    %7 = vector.broadcast %cst_5 : f32 to vector<64x1xf32>
    %8 = arith.divf %6, %7 : vector<64x1xf32>
    %9 = vector.broadcast %8 : vector<64x1xf32> to vector<64x32xf32>
    %10 = arith.subf %0, %9 : vector<64x32xf32>
    %11 = arith.mulf %10, %10 : vector<64x32xf32>
    %cst_6 = arith.constant dense<0.000000e+00> : vector<64xf32>
    %12 = vector.multi_reduction <add>, %11, %cst_6 [1] : vector<64x32xf32> to vector<64xf32>
    %13 = vector.shape_cast %12 : vector<64xf32> to vector<64x1xf32>
    %cst_7 = arith.constant 3.200000e+01 : f32
    %14 = vector.broadcast %cst_7 : f32 to vector<64x1xf32>
    %15 = arith.divf %13, %14 : vector<64x1xf32>
    %16 = vector.broadcast %8 : vector<64x1xf32> to vector<64x32xf32>
    %17 = arith.subf %0, %16 : vector<64x32xf32>
    %cst_8 = arith.constant 9.99999974E-6 : f32
    %18 = vector.broadcast %cst_8 : f32 to vector<64x1xf32>
    %19 = arith.addf %15, %18 : vector<64x1xf32>
    %20 = math.rsqrt %19 : vector<64x1xf32>
    %21 = vector.broadcast %20 : vector<64x1xf32> to vector<64x32xf32>
    %22 = arith.mulf %17, %21 : vector<64x32xf32>
    %23 = vector.shape_cast %2 : vector<32xf32> to vector<1x32xf32>
    %24 = vector.broadcast %23 : vector<1x32xf32> to vector<64x32xf32>
    %25 = arith.mulf %22, %24 : vector<64x32xf32>
    %26 = vector.shape_cast %4 : vector<32xf32> to vector<1x32xf32>
    %27 = vector.broadcast %26 : vector<1x32xf32> to vector<64x32xf32>
    %28 = arith.addf %25, %27 : vector<64x32xf32>
    %c0_9 = arith.constant 0 : index
    %c0_10 = arith.constant 0 : index
    %29 = vector.load %arg4[%c0_9, %c0_10] : memref<32x96xf32, #tpu.memory_space<vmem>>, vector<32x96xf32>
    %cst_11 = arith.constant dense<0.000000e+00> : vector<64x96xf32>
    %30 = tpu.matmul %28, %29, %cst_11 {dimension_numbers = #tpu.dot_dimension_numbers<[1], [0], [0], [1], [0, 0, 1, 1], [], []>} : vector<64x32xf32>, vector<32x96xf32>, vector<64x96xf32> -> vector<64x96xf32>
    %c0_12 = arith.constant 0 : index
    %c0_13 = arith.constant 0 : index
    %31 = vector.load %arg5[%c0_12, %c0_13] : memref<1x96xf32, #tpu.memory_space<vmem>>, vector<1x96xf32>
    %32 = vector.shape_cast %31 : vector<1x96xf32> to vector<96xf32>
    %33 = vector.shape_cast %32 : vector<96xf32> to vector<1x96xf32>
    %34 = vector.broadcast %33 : vector<1x96xf32> to vector<64x96xf32>
    %35 = arith.addf %30, %34 : vector<64x96xf32>
    %36 = vector.extract_strided_slice %35 {offsets = [0, 0], sizes = [64, 32], strides = [1, 1]} : vector<64x96xf32> to vector<64x32xf32>
    %c0_14 = arith.constant 0 : index
    %c0_15 = arith.constant 0 : index
    %37 = vector.load %arg6[%c0_14, %c0_15] : memref<64x32xf32, #tpu.memory_space<vmem>>, vector<64x32xf32>
    tpu.vector_store %arg6[%c0_14, %c0_15], %36 {strides = array<i32>} : memref<64x32xf32, #tpu.memory_space<vmem>>, vector<64x32xf32>,
    %38 = vector.extract_strided_slice %35 {offsets = [0, 32], sizes = [64, 32], strides = [1, 1]} : vector<64x96xf32> to vector<64x32xf32>
    %c0_16 = arith.constant 0 : index
    %c0_17 = arith.constant 0 : index
    %39 = vector.load %arg7[%c0_16, %c0_17] : memref<64x32xf32, #tpu.memory_space<vmem>>, vector<64x32xf32>
    tpu.vector_store %arg7[%c0_16, %c0_17], %38 {strides = array<i32>} : memref<64x32xf32, #tpu.memory_space<vmem>>, vector<64x32xf32>,
    %40 = vector.extract_strided_slice %35 {offsets = [0, 64], sizes = [64, 32], strides = [1, 1]} : vector<64x96xf32> to vector<64x32xf32>
    %c0_18 = arith.constant 0 : index
    %c0_19 = arith.constant 0 : index
    %41 = vector.load %arg8[%c0_18, %c0_19] : memref<64x32xf32, #tpu.memory_space<vmem>>, vector<64x32xf32>
    tpu.vector_store %arg8[%c0_18, %c0_19], %40 {strides = array<i32>} : memref<64x32xf32, #tpu.memory_space<vmem>>, vector<64x32xf32>,
    return
  }
  func.func @transform_0(%arg0: i32) -> (i32, i32) {
    %c0_i32 = arith.constant 0 : i32
    %c0_i32_0 = arith.constant 0 : i32
    return %arg0, %c0_i32 : i32, i32
  }
  func.func @transform_1(%arg0: i32) -> (i32, i32) {
    %c0_i32 = arith.constant 0 : i32
    %c0_i32_0 = arith.constant 0 : i32
    %c0_i32_1 = arith.constant 0 : i32
    return %c0_i32, %c0_i32_0 : i32, i32
  }
  func.func @transform_2(%arg0: i32) -> (i32, i32) {
    %c0_i32 = arith.constant 0 : i32
    %c0_i32_0 = arith.constant 0 : i32
    %c0_i32_1 = arith.constant 0 : i32
    return %c0_i32, %c0_i32_0 : i32, i32
  }
  func.func @transform_3(%arg0: i32) -> (i32, i32) {
    %c0_i32 = arith.constant 0 : i32
    %c0_i32_0 = arith.constant 0 : i32
    %c0_i32_1 = arith.constant 0 : i32
    return %c0_i32, %c0_i32_0 : i32, i32
  }
  func.func @transform_4(%arg0: i32) -> (i32, i32) {
    %c0_i32 = arith.constant 0 : i32
    %c0_i32_0 = arith.constant 0 : i32
    %c0_i32_1 = arith.constant 0 : i32
    return %c0_i32, %c0_i32_0 : i32, i32
  }
  func.func @transform_5(%arg0: i32) -> (i32, i32) {
    %c0_i32 = arith.constant 0 : i32
    %c0_i32_0 = arith.constant 0 : i32
    return %arg0, %c0_i32 : i32, i32
  }
  func.func @transform_6(%arg0: i32) -> (i32, i32) {
    %c0_i32 = arith.constant 0 : i32
    %c0_i32_0 = arith.constant 0 : i32
    return %arg0, %c0_i32 : i32, i32
  }
  func.func @transform_7(%arg0: i32) -> (i32, i32) {
    %c0_i32 = arith.constant 0 : i32
    %c0_i32_0 = arith.constant 0 : i32
    return %arg0, %c0_i32 : i32, i32
  }
}

module attributes {stable_mosaic.version = 11 : i64} {
  func.func @_proj_mlp_kernel(%arg0: i32, %arg1: memref<64x32xf32, #tpu.memory_space<vmem>>, %arg2: memref<64x32xf32, #tpu.memory_space<vmem>>, %arg3: memref<32x32xf32, #tpu.memory_space<vmem>>, %arg4: memref<1x32xf32, #tpu.memory_space<vmem>>, %arg5: memref<1x32xf32, #tpu.memory_space<vmem>>, %arg6: memref<1x32xf32, #tpu.memory_space<vmem>>, %arg7: memref<32x64xf32, #tpu.memory_space<vmem>>, %arg8: memref<1x64xf32, #tpu.memory_space<vmem>>, %arg9: memref<64x32xf32, #tpu.memory_space<vmem>>, %arg10: memref<1x32xf32, #tpu.memory_space<vmem>>, %arg11: memref<64x32xf32, #tpu.memory_space<vmem>>) attributes {dimension_semantics = [#tpu.dimension_semantics<parallel>], iteration_bounds = array<i64: 2>, scalar_prefetch = 0 : i64, scratch_operands = 0 : i64, tpu.core_type = #tpu.core_type<tc>, window_params = [{transform_indices = @transform_0, window_bounds = array<i64: 64, 32>}, {transform_indices = @transform_1, window_bounds = array<i64: 64, 32>}, {pipeline_mode = #tpu.pipeline_mode<synchronous>, transform_indices = @transform_2, window_bounds = array<i64: 32, 32>}, {pipeline_mode = #tpu.pipeline_mode<synchronous>, transform_indices = @transform_3, window_bounds = array<i64: 1, 32>}, {pipeline_mode = #tpu.pipeline_mode<synchronous>, transform_indices = @transform_4, window_bounds = array<i64: 1, 32>}, {pipeline_mode = #tpu.pipeline_mode<synchronous>, transform_indices = @transform_5, window_bounds = array<i64: 1, 32>}, {pipeline_mode = #tpu.pipeline_mode<synchronous>, transform_indices = @transform_6, window_bounds = array<i64: 32, 64>}, {pipeline_mode = #tpu.pipeline_mode<synchronous>, transform_indices = @transform_7, window_bounds = array<i64: 1, 64>}, {pipeline_mode = #tpu.pipeline_mode<synchronous>, transform_indices = @transform_8, window_bounds = array<i64: 64, 32>}, {pipeline_mode = #tpu.pipeline_mode<synchronous>, transform_indices = @transform_9, window_bounds = array<i64: 1, 32>}, {transform_indices = @transform_10, window_bounds = array<i64: 64, 32>}]} {
    %c0 = arith.constant 0 : index
    %c0_0 = arith.constant 0 : index
    %0 = vector.load %arg1[%c0, %c0_0] : memref<64x32xf32, #tpu.memory_space<vmem>>, vector<64x32xf32>
    %c0_1 = arith.constant 0 : index
    %c0_2 = arith.constant 0 : index
    %1 = vector.load %arg2[%c0_1, %c0_2] : memref<64x32xf32, #tpu.memory_space<vmem>>, vector<64x32xf32>
    %c0_3 = arith.constant 0 : index
    %c0_4 = arith.constant 0 : index
    %2 = vector.load %arg3[%c0_3, %c0_4] : memref<32x32xf32, #tpu.memory_space<vmem>>, vector<32x32xf32>
    %cst = arith.constant dense<0.000000e+00> : vector<64x32xf32>
    %3 = tpu.matmul %1, %2, %cst {dimension_numbers = #tpu.dot_dimension_numbers<[1], [0], [0], [1], [0, 0, 1, 1], [], []>} : vector<64x32xf32>, vector<32x32xf32>, vector<64x32xf32> -> vector<64x32xf32>
    %c0_5 = arith.constant 0 : index
    %c0_6 = arith.constant 0 : index
    %4 = vector.load %arg4[%c0_5, %c0_6] : memref<1x32xf32, #tpu.memory_space<vmem>>, vector<1x32xf32>
    %5 = vector.shape_cast %4 : vector<1x32xf32> to vector<32xf32>
    %6 = vector.shape_cast %5 : vector<32xf32> to vector<1x32xf32>
    %7 = vector.broadcast %6 : vector<1x32xf32> to vector<64x32xf32>
    %8 = arith.addf %3, %7 : vector<64x32xf32>
    %9 = arith.addf %0, %8 : vector<64x32xf32>
    %c0_7 = arith.constant 0 : index
    %c0_8 = arith.constant 0 : index
    %10 = vector.load %arg5[%c0_7, %c0_8] : memref<1x32xf32, #tpu.memory_space<vmem>>, vector<1x32xf32>
    %11 = vector.shape_cast %10 : vector<1x32xf32> to vector<32xf32>
    %c0_9 = arith.constant 0 : index
    %c0_10 = arith.constant 0 : index
    %12 = vector.load %arg6[%c0_9, %c0_10] : memref<1x32xf32, #tpu.memory_space<vmem>>, vector<1x32xf32>
    %13 = vector.shape_cast %12 : vector<1x32xf32> to vector<32xf32>
    %cst_11 = arith.constant dense<0.000000e+00> : vector<64xf32>
    %14 = vector.multi_reduction <add>, %9, %cst_11 [1] : vector<64x32xf32> to vector<64xf32>
    %15 = vector.shape_cast %14 : vector<64xf32> to vector<64x1xf32>
    %cst_12 = arith.constant 3.200000e+01 : f32
    %16 = vector.broadcast %cst_12 : f32 to vector<64x1xf32>
    %17 = arith.divf %15, %16 : vector<64x1xf32>
    %18 = vector.broadcast %17 : vector<64x1xf32> to vector<64x32xf32>
    %19 = arith.subf %9, %18 : vector<64x32xf32>
    %20 = arith.mulf %19, %19 : vector<64x32xf32>
    %cst_13 = arith.constant dense<0.000000e+00> : vector<64xf32>
    %21 = vector.multi_reduction <add>, %20, %cst_13 [1] : vector<64x32xf32> to vector<64xf32>
    %22 = vector.shape_cast %21 : vector<64xf32> to vector<64x1xf32>
    %cst_14 = arith.constant 3.200000e+01 : f32
    %23 = vector.broadcast %cst_14 : f32 to vector<64x1xf32>
    %24 = arith.divf %22, %23 : vector<64x1xf32>
    %25 = vector.broadcast %17 : vector<64x1xf32> to vector<64x32xf32>
    %26 = arith.subf %9, %25 : vector<64x32xf32>
    %cst_15 = arith.constant 9.99999974E-6 : f32
    %27 = vector.broadcast %cst_15 : f32 to vector<64x1xf32>
    %28 = arith.addf %24, %27 : vector<64x1xf32>
    %29 = math.rsqrt %28 : vector<64x1xf32>
    %30 = vector.broadcast %29 : vector<64x1xf32> to vector<64x32xf32>
    %31 = arith.mulf %26, %30 : vector<64x32xf32>
    %32 = vector.shape_cast %11 : vector<32xf32> to vector<1x32xf32>
    %33 = vector.broadcast %32 : vector<1x32xf32> to vector<64x32xf32>
    %34 = arith.mulf %31, %33 : vector<64x32xf32>
    %35 = vector.shape_cast %13 : vector<32xf32> to vector<1x32xf32>
    %36 = vector.broadcast %35 : vector<1x32xf32> to vector<64x32xf32>
    %37 = arith.addf %34, %36 : vector<64x32xf32>
    %c0_16 = arith.constant 0 : index
    %c0_17 = arith.constant 0 : index
    %38 = vector.load %arg7[%c0_16, %c0_17] : memref<32x64xf32, #tpu.memory_space<vmem>>, vector<32x64xf32>
    %cst_18 = arith.constant dense<0.000000e+00> : vector<64x64xf32>
    %39 = tpu.matmul %37, %38, %cst_18 {dimension_numbers = #tpu.dot_dimension_numbers<[1], [0], [0], [1], [0, 0, 1, 1], [], []>} : vector<64x32xf32>, vector<32x64xf32>, vector<64x64xf32> -> vector<64x64xf32>
    %c0_19 = arith.constant 0 : index
    %c0_20 = arith.constant 0 : index
    %40 = vector.load %arg8[%c0_19, %c0_20] : memref<1x64xf32, #tpu.memory_space<vmem>>, vector<1x64xf32>
    %41 = vector.shape_cast %40 : vector<1x64xf32> to vector<64xf32>
    %42 = vector.shape_cast %41 : vector<64xf32> to vector<1x64xf32>
    %43 = vector.broadcast %42 : vector<1x64xf32> to vector<64x64xf32>
    %44 = arith.addf %39, %43 : vector<64x64xf32>
    %cst_21 = arith.constant 5.000000e-01 : f32
    %45 = vector.broadcast %cst_21 : f32 to vector<64x64xf32>
    %46 = arith.mulf %45, %44 : vector<64x64xf32>
    %cst_22 = arith.constant 0.707106769 : f32
    %47 = vector.broadcast %cst_22 : f32 to vector<64x64xf32>
    %48 = arith.mulf %44, %47 : vector<64x64xf32>
    %49 = math.erf %48 : vector<64x64xf32>
    %cst_23 = arith.constant 1.000000e+00 : f32
    %50 = vector.broadcast %cst_23 : f32 to vector<64x64xf32>
    %51 = arith.addf %50, %49 : vector<64x64xf32>
    %52 = arith.mulf %46, %51 : vector<64x64xf32>
    %c0_24 = arith.constant 0 : index
    %c0_25 = arith.constant 0 : index
    %53 = vector.load %arg9[%c0_24, %c0_25] : memref<64x32xf32, #tpu.memory_space<vmem>>, vector<64x32xf32>
    %cst_26 = arith.constant dense<0.000000e+00> : vector<64x32xf32>
    %54 = tpu.matmul %52, %53, %cst_26 {dimension_numbers = #tpu.dot_dimension_numbers<[1], [0], [0], [1], [0, 0, 1, 1], [], []>} : vector<64x64xf32>, vector<64x32xf32>, vector<64x32xf32> -> vector<64x32xf32>
    %c0_27 = arith.constant 0 : index
    %c0_28 = arith.constant 0 : index
    %55 = vector.load %arg10[%c0_27, %c0_28] : memref<1x32xf32, #tpu.memory_space<vmem>>, vector<1x32xf32>
    %56 = vector.shape_cast %55 : vector<1x32xf32> to vector<32xf32>
    %57 = vector.shape_cast %56 : vector<32xf32> to vector<1x32xf32>
    %58 = vector.broadcast %57 : vector<1x32xf32> to vector<64x32xf32>
    %59 = arith.addf %54, %58 : vector<64x32xf32>
    %60 = arith.addf %9, %59 : vector<64x32xf32>
    %c0_29 = arith.constant 0 : index
    %c0_30 = arith.constant 0 : index
    %61 = vector.load %arg11[%c0_29, %c0_30] : memref<64x32xf32, #tpu.memory_space<vmem>>, vector<64x32xf32>
    tpu.vector_store %arg11[%c0_29, %c0_30], %60 {strides = array<i32>} : memref<64x32xf32, #tpu.memory_space<vmem>>, vector<64x32xf32>,
    return
  }
  func.func @transform_0(%arg0: i32) -> (i32, i32) {
    %c0_i32 = arith.constant 0 : i32
    %c0_i32_0 = arith.constant 0 : i32
    return %arg0, %c0_i32 : i32, i32
  }
  func.func @transform_1(%arg0: i32) -> (i32, i32) {
    %c0_i32 = arith.constant 0 : i32
    %c0_i32_0 = arith.constant 0 : i32
    return %arg0, %c0_i32 : i32, i32
  }
  func.func @transform_2(%arg0: i32) -> (i32, i32) {
    %c0_i32 = arith.constant 0 : i32
    %c0_i32_0 = arith.constant 0 : i32
    %c0_i32_1 = arith.constant 0 : i32
    return %c0_i32, %c0_i32_0 : i32, i32
  }
  func.func @transform_3(%arg0: i32) -> (i32, i32) {
    %c0_i32 = arith.constant 0 : i32
    %c0_i32_0 = arith.constant 0 : i32
    %c0_i32_1 = arith.constant 0 : i32
    return %c0_i32, %c0_i32_0 : i32, i32
  }
  func.func @transform_4(%arg0: i32) -> (i32, i32) {
    %c0_i32 = arith.constant 0 : i32
    %c0_i32_0 = arith.constant 0 : i32
    %c0_i32_1 = arith.constant 0 : i32
    return %c0_i32, %c0_i32_0 : i32, i32
  }
  func.func @transform_5(%arg0: i32) -> (i32, i32) {
    %c0_i32 = arith.constant 0 : i32
    %c0_i32_0 = arith.constant 0 : i32
    %c0_i32_1 = arith.constant 0 : i32
    return %c0_i32, %c0_i32_0 : i32, i32
  }
  func.func @transform_6(%arg0: i32) -> (i32, i32) {
    %c0_i32 = arith.constant 0 : i32
    %c0_i32_0 = arith.constant 0 : i32
    %c0_i32_1 = arith.constant 0 : i32
    return %c0_i32, %c0_i32_0 : i32, i32
  }
  func.func @transform_7(%arg0: i32) -> (i32, i32) {
    %c0_i32 = arith.constant 0 : i32
    %c0_i32_0 = arith.constant 0 : i32
    %c0_i32_1 = arith.constant 0 : i32
    return %c0_i32, %c0_i32_0 : i32, i32
  }
  func.func @transform_8(%arg0: i32) -> (i32, i32) {
    %c0_i32 = arith.constant 0 : i32
    %c0_i32_0 = arith.constant 0 : i32
    %c0_i32_1 = arith.constant 0 : i32
    return %c0_i32, %c0_i32_0 : i32, i32
  }
  func.func @transform_9(%arg0: i32) -> (i32, i32) {
    %c0_i32 = arith.constant 0 : i32
    %c0_i32_0 = arith.constant 0 : i32
    %c0_i32_1 = arith.constant 0 : i32
    return %c0_i32, %c0_i32_0 : i32, i32
  }
  func.func @transform_10(%arg0: i32) -> (i32, i32) {
    %c0_i32 = arith.constant 0 : i32
    %c0_i32_0 = arith.constant 0 : i32
    return %arg0, %c0_i32 : i32, i32
  }
}

module attributes {stable_mosaic.version = 11 : i64} {
  func.func @_flash_attn_kernel(%arg0: i32, %arg1: i32, %arg2: i32, %arg3: memref<1x32x32xf32, #tpu.memory_space<vmem>>, %arg4: memref<1x32x32xf32, #tpu.memory_space<vmem>>, %arg5: memref<1x32x32xf32, #tpu.memory_space<vmem>>, %arg6: memref<1x32x32xf32, #tpu.memory_space<vmem>>, %arg7: memref<4x32x8xf32, #tpu.memory_space<vmem>>, %arg8: memref<4x32x1xf32, #tpu.memory_space<vmem>>, %arg9: memref<4x32x1xf32, #tpu.memory_space<vmem>>, %arg10: memref<4x32x8xf32, #tpu.memory_space<vmem>>) attributes {dimension_semantics = [#tpu.dimension_semantics<parallel>, #tpu.dimension_semantics<parallel>, #tpu.dimension_semantics<arbitrary>], iteration_bounds = array<i64: 2, 2, 2>, scalar_prefetch = 0 : i64, scratch_operands = 4 : i64, tpu.core_type = #tpu.core_type<tc>, window_params = [{transform_indices = @transform_0, window_bounds = array<i64: 1, 32, 32>}, {transform_indices = @transform_1, window_bounds = array<i64: 1, 32, 32>}, {transform_indices = @transform_2, window_bounds = array<i64: 1, 32, 32>}, {transform_indices = @transform_3, window_bounds = array<i64: 1, 32, 32>}]} {
    %c0_i32 = arith.constant 0 : i32
    %0 = arith.cmpi eq, %arg2, %c0_i32 : i32
    %1 = arith.extui %0 : i1 to i32
    %c0_i32_0 = arith.constant 0 : i32
    %2 = arith.cmpi ne, %1, %c0_i32_0 : i32
    scf.if %2 {
      %cst_31 = arith.constant 0xFF800000 : f32
      %52 = vector.broadcast %cst_31 : f32 to vector<4x32x1xf32>
      %c0_32 = arith.constant 0 : index
      %c0_33 = arith.constant 0 : index
      %c0_34 = arith.constant 0 : index
      %53 = vector.load %arg8[%c0_32, %c0_33, %c0_34] : memref<4x32x1xf32, #tpu.memory_space<vmem>>, vector<4x32x1xf32>
      tpu.vector_store %arg8[%c0_32, %c0_33, %c0_34], %52 {strides = array<i32>} : memref<4x32x1xf32, #tpu.memory_space<vmem>>, vector<4x32x1xf32>,
      %cst_35 = arith.constant 0.000000e+00 : f32
      %54 = vector.broadcast %cst_35 : f32 to vector<4x32x1xf32>
      %c0_36 = arith.constant 0 : index
      %c0_37 = arith.constant 0 : index
      %c0_38 = arith.constant 0 : index
      %55 = vector.load %arg9[%c0_36, %c0_37, %c0_38] : memref<4x32x1xf32, #tpu.memory_space<vmem>>, vector<4x32x1xf32>
      tpu.vector_store %arg9[%c0_36, %c0_37, %c0_38], %54 {strides = array<i32>} : memref<4x32x1xf32, #tpu.memory_space<vmem>>, vector<4x32x1xf32>,
      %cst_39 = arith.constant 0.000000e+00 : f32
      %56 = vector.broadcast %cst_39 : f32 to vector<4x32x8xf32>
      %c0_40 = arith.constant 0 : index
      %c0_41 = arith.constant 0 : index
      %c0_42 = arith.constant 0 : index
      %57 = vector.load %arg10[%c0_40, %c0_41, %c0_42] : memref<4x32x8xf32, #tpu.memory_space<vmem>>, vector<4x32x8xf32>
      tpu.vector_store %arg10[%c0_40, %c0_41, %c0_42], %56 {strides = array<i32>} : memref<4x32x8xf32, #tpu.memory_space<vmem>>, vector<4x32x8xf32>,
      %c0_43 = arith.constant 0 : index
      %c0_44 = arith.constant 0 : index
      %c0_45 = arith.constant 0 : index
      %58 = vector.load %arg3[%c0_43, %c0_44, %c0_45] : memref<1x32x32xf32, #tpu.memory_space<vmem>>, vector<1x32x32xf32>
      %59 = vector.shape_cast %58 : vector<1x32x32xf32> to vector<32x32xf32>
      %60 = vector.extract_strided_slice %59 {offsets = [0, 0], sizes = [32, 8], strides = [1, 1]} : vector<32x32xf32> to vector<32x8xf32>
      %61 = vector.extract_strided_slice %59 {offsets = [0, 8], sizes = [32, 8], strides = [1, 1]} : vector<32x32xf32> to vector<32x8xf32>
      %62 = vector.extract_strided_slice %59 {offsets = [0, 16], sizes = [32, 8], strides = [1, 1]} : vector<32x32xf32> to vector<32x8xf32>
      %63 = vector.extract_strided_slice %59 {offsets = [0, 24], sizes = [32, 8], strides = [1, 1]} : vector<32x32xf32> to vector<32x8xf32>
      %64 = vector.shape_cast %60 : vector<32x8xf32> to vector<1x32x8xf32>
      %65 = vector.shape_cast %61 : vector<32x8xf32> to vector<1x32x8xf32>
      %66 = vector.shape_cast %62 : vector<32x8xf32> to vector<1x32x8xf32>
      %67 = vector.shape_cast %63 : vector<32x8xf32> to vector<1x32x8xf32>
      %68 = tpu.concatenate %64, %65, %66, %67 in 0 : vector<1x32x8xf32>, vector<1x32x8xf32>, vector<1x32x8xf32>, vector<1x32x8xf32> -> vector<4x32x8xf32>
      %c0_46 = arith.constant 0 : index
      %c0_47 = arith.constant 0 : index
      %c0_48 = arith.constant 0 : index
      %69 = vector.load %arg7[%c0_46, %c0_47, %c0_48] : memref<4x32x8xf32, #tpu.memory_space<vmem>>, vector<4x32x8xf32>
      tpu.vector_store %arg7[%c0_46, %c0_47, %c0_48], %68 {strides = array<i32>} : memref<4x32x8xf32, #tpu.memory_space<vmem>>, vector<4x32x8xf32>,
    } else {
    }
    %c0 = arith.constant 0 : index
    %c0_1 = arith.constant 0 : index
    %c0_2 = arith.constant 0 : index
    %3 = vector.load %arg4[%c0, %c0_1, %c0_2] : memref<1x32x32xf32, #tpu.memory_space<vmem>>, vector<1x32x32xf32>
    %4 = vector.shape_cast %3 : vector<1x32x32xf32> to vector<32x32xf32>
    %5 = vector.extract_strided_slice %4 {offsets = [0, 0], sizes = [32, 8], strides = [1, 1]} : vector<32x32xf32> to vector<32x8xf32>
    %6 = vector.extract_strided_slice %4 {offsets = [0, 8], sizes = [32, 8], strides = [1, 1]} : vector<32x32xf32> to vector<32x8xf32>
    %7 = vector.extract_strided_slice %4 {offsets = [0, 16], sizes = [32, 8], strides = [1, 1]} : vector<32x32xf32> to vector<32x8xf32>
    %8 = vector.extract_strided_slice %4 {offsets = [0, 24], sizes = [32, 8], strides = [1, 1]} : vector<32x32xf32> to vector<32x8xf32>
    %9 = vector.shape_cast %5 : vector<32x8xf32> to vector<1x32x8xf32>
    %10 = vector.shape_cast %6 : vector<32x8xf32> to vector<1x32x8xf32>
    %11 = vector.shape_cast %7 : vector<32x8xf32> to vector<1x32x8xf32>
    %12 = vector.shape_cast %8 : vector<32x8xf32> to vector<1x32x8xf32>
    %13 = tpu.concatenate %9, %10, %11, %12 in 0 : vector<1x32x8xf32>, vector<1x32x8xf32>, vector<1x32x8xf32>, vector<1x32x8xf32> -> vector<4x32x8xf32>
    %c0_3 = arith.constant 0 : index
    %c0_4 = arith.constant 0 : index
    %c0_5 = arith.constant 0 : index
    %14 = vector.load %arg5[%c0_3, %c0_4, %c0_5] : memref<1x32x32xf32, #tpu.memory_space<vmem>>, vector<1x32x32xf32>
    %15 = vector.shape_cast %14 : vector<1x32x32xf32> to vector<32x32xf32>
    %16 = vector.extract_strided_slice %15 {offsets = [0, 0], sizes = [32, 8], strides = [1, 1]} : vector<32x32xf32> to vector<32x8xf32>
    %17 = vector.extract_strided_slice %15 {offsets = [0, 8], sizes = [32, 8], strides = [1, 1]} : vector<32x32xf32> to vector<32x8xf32>
    %18 = vector.extract_strided_slice %15 {offsets = [0, 16], sizes = [32, 8], strides = [1, 1]} : vector<32x32xf32> to vector<32x8xf32>
    %19 = vector.extract_strided_slice %15 {offsets = [0, 24], sizes = [32, 8], strides = [1, 1]} : vector<32x32xf32> to vector<32x8xf32>
    %20 = vector.shape_cast %16 : vector<32x8xf32> to vector<1x32x8xf32>
    %21 = vector.shape_cast %17 : vector<32x8xf32> to vector<1x32x8xf32>
    %22 = vector.shape_cast %18 : vector<32x8xf32> to vector<1x32x8xf32>
    %23 = vector.shape_cast %19 : vector<32x8xf32> to vector<1x32x8xf32>
    %24 = tpu.concatenate %20, %21, %22, %23 in 0 : vector<1x32x8xf32>, vector<1x32x8xf32>, vector<1x32x8xf32>, vector<1x32x8xf32> -> vector<4x32x8xf32>
    %c0_6 = arith.constant 0 : index
    %c0_7 = arith.constant 0 : index
    %c0_8 = arith.constant 0 : index
    %25 = vector.load %arg7[%c0_6, %c0_7, %c0_8] : memref<4x32x8xf32, #tpu.memory_space<vmem>>, vector<4x32x8xf32>
    %cst = arith.constant dense<0.000000e+00> : vector<4x32x32xf32>
    %26 = tpu.matmul %25, %13, %cst {dimension_numbers = #tpu.dot_dimension_numbers<[2], [2], [1], [1], [0, 0, 0, 1, 1, 1], [0], [0]>} : vector<4x32x8xf32>, vector<4x32x8xf32>, vector<4x32x32xf32> -> vector<4x32x32xf32>
    %c0_9 = arith.constant 0 : index
    %c0_10 = arith.constant 0 : index
    %c0_11 = arith.constant 0 : index
    %27 = vector.load %arg8[%c0_9, %c0_10, %c0_11] : memref<4x32x1xf32, #tpu.memory_space<vmem>>, vector<4x32x1xf32>
    %cst_12 = arith.constant dense<0xFF800000> : vector<4x32xf32>
    %28 = vector.multi_reduction <maximumf>, %26, %cst_12 [2] : vector<4x32x32xf32> to vector<4x32xf32>
    %29 = vector.shape_cast %28 : vector<4x32xf32> to vector<4x32x1xf32>
    %30 = arith.maximumf %27, %29 : vector<4x32x1xf32>
    %31 = arith.subf %27, %30 : vector<4x32x1xf32>
    %32 = math.exp %31 : vector<4x32x1xf32>
    %33 = vector.broadcast %30 : vector<4x32x1xf32> to vector<4x32x32xf32>
    %34 = arith.subf %26, %33 : vector<4x32x32xf32>
    %35 = math.exp %34 : vector<4x32x32xf32>
    %c0_13 = arith.constant 0 : index
    %c0_14 = arith.constant 0 : index
    %c0_15 = arith.constant 0 : index
    %36 = vector.load %arg9[%c0_13, %c0_14, %c0_15] : memref<4x32x1xf32, #tpu.memory_space<vmem>>, vector<4x32x1xf32>
    %37 = arith.mulf %32, %36 : vector<4x32x1xf32>
    %cst_16 = arith.constant dense<0.000000e+00> : vector<4x32xf32>
    %38 = vector.multi_reduction <add>, %35, %cst_16 [2] : vector<4x32x32xf32> to vector<4x32xf32>
    %39 = vector.shape_cast %38 : vector<4x32xf32> to vector<4x32x1xf32>
    %40 = arith.addf %37, %39 : vector<4x32x1xf32>
    %c0_17 = arith.constant 0 : index
    %c0_18 = arith.constant 0 : index
    %c0_19 = arith.constant 0 : index
    %41 = vector.load %arg9[%c0_17, %c0_18, %c0_19] : memref<4x32x1xf32, #tpu.memory_space<vmem>>, vector<4x32x1xf32>
    tpu.vector_store %arg9[%c0_17, %c0_18, %c0_19], %40 {strides = array<i32>} : memref<4x32x1xf32, #tpu.memory_space<vmem>>, vector<4x32x1xf32>,
    %cst_20 = arith.constant dense<0.000000e+00> : vector<4x32x8xf32>
    %42 = tpu.matmul %35, %24, %cst_20 {dimension_numbers = #tpu.dot_dimension_numbers<[2], [1], [1], [2], [0, 0, 0, 1, 1, 2], [0], [0]>} : vector<4x32x32xf32>, vector<4x32x8xf32>, vector<4x32x8xf32> -> vector<4x32x8xf32>
    %c0_21 = arith.constant 0 : index
    %c0_22 = arith.constant 0 : index
    %c0_23 = arith.constant 0 : index
    %43 = vector.load %arg10[%c0_21, %c0_22, %c0_23] : memref<4x32x8xf32, #tpu.memory_space<vmem>>, vector<4x32x8xf32>
    %44 = vector.broadcast %32 : vector<4x32x1xf32> to vector<4x32x8xf32>
    %45 = arith.mulf %44, %43 : vector<4x32x8xf32>
    %46 = arith.addf %45, %42 : vector<4x32x8xf32>
    %c0_24 = arith.constant 0 : index
    %c0_25 = arith.constant 0 : index
    %c0_26 = arith.constant 0 : index
    %47 = vector.load %arg10[%c0_24, %c0_25, %c0_26] : memref<4x32x8xf32, #tpu.memory_space<vmem>>, vector<4x32x8xf32>
    tpu.vector_store %arg10[%c0_24, %c0_25, %c0_26], %46 {strides = array<i32>} : memref<4x32x8xf32, #tpu.memory_space<vmem>>, vector<4x32x8xf32>,
    %c0_27 = arith.constant 0 : index
    %c0_28 = arith.constant 0 : index
    %c0_29 = arith.constant 0 : index
    %48 = vector.load %arg8[%c0_27, %c0_28, %c0_29] : memref<4x32x1xf32, #tpu.memory_space<vmem>>, vector<4x32x1xf32>
    tpu.vector_store %arg8[%c0_27, %c0_28, %c0_29], %30 {strides = array<i32>} : memref<4x32x1xf32, #tpu.memory_space<vmem>>, vector<4x32x1xf32>,
    %c1_i32 = arith.constant 1 : i32
    %49 = arith.cmpi eq, %arg2, %c1_i32 : i32
    %50 = arith.extui %49 : i1 to i32
    %c0_i32_30 = arith.constant 0 : i32
    %51 = arith.cmpi ne, %50, %c0_i32_30 : i32
    scf.if %51 {
      %c0_31 = arith.constant 0 : index
      %c0_32 = arith.constant 0 : index
      %c0_33 = arith.constant 0 : index
      %52 = vector.load %arg9[%c0_31, %c0_32, %c0_33] : memref<4x32x1xf32, #tpu.memory_space<vmem>>, vector<4x32x1xf32>
      %53 = tpu.reciprocal %52 : vector<4x32x1xf32> -> vector<4x32x1xf32>
      %c0_34 = arith.constant 0 : index
      %c0_35 = arith.constant 0 : index
      %c0_36 = arith.constant 0 : index
      %54 = vector.load %arg10[%c0_34, %c0_35, %c0_36] : memref<4x32x8xf32, #tpu.memory_space<vmem>>, vector<4x32x8xf32>
      %55 = vector.broadcast %53 : vector<4x32x1xf32> to vector<4x32x8xf32>
      %56 = arith.mulf %54, %55 : vector<4x32x8xf32>
      %57 = vector.extract_strided_slice %56 {offsets = [0, 0, 0], sizes = [1, 32, 8], strides = [1, 1, 1]} : vector<4x32x8xf32> to vector<1x32x8xf32>
      %58 = vector.shape_cast %57 : vector<1x32x8xf32> to vector<32x8xf32>
      %59 = vector.extract_strided_slice %56 {offsets = [1, 0, 0], sizes = [1, 32, 8], strides = [1, 1, 1]} : vector<4x32x8xf32> to vector<1x32x8xf32>
      %60 = vector.shape_cast %59 : vector<1x32x8xf32> to vector<32x8xf32>
      %61 = vector.extract_strided_slice %56 {offsets = [2, 0, 0], sizes = [1, 32, 8], strides = [1, 1, 1]} : vector<4x32x8xf32> to vector<1x32x8xf32>
      %62 = vector.shape_cast %61 : vector<1x32x8xf32> to vector<32x8xf32>
      %63 = vector.extract_strided_slice %56 {offsets = [3, 0, 0], sizes = [1, 32, 8], strides = [1, 1, 1]} : vector<4x32x8xf32> to vector<1x32x8xf32>
      %64 = vector.shape_cast %63 : vector<1x32x8xf32> to vector<32x8xf32>
      %65 = tpu.concatenate %58, %60, %62, %64 in 1 : vector<32x8xf32>, vector<32x8xf32>, vector<32x8xf32>, vector<32x8xf32> -> vector<32x32xf32>
      %c0_37 = arith.constant 0 : index
      %c0_38 = arith.constant 0 : index
      %c0_39 = arith.constant 0 : index
      %66 = vector.load %arg6[%c0_37, %c0_38, %c0_39] : memref<1x32x32xf32, #tpu.memory_space<vmem>>, vector<1x32x32xf32>
      %67 = vector.shape_cast %66 : vector<1x32x32xf32> to vector<32x32xf32>
      %68 = vector.shape_cast %65 : vector<32x32xf32> to vector<1x32x32xf32>
      tpu.vector_store %arg6[%c0_37, %c0_38, %c0_39], %68 {strides = array<i32>} : memref<1x32x32xf32, #tpu.memory_space<vmem>>, vector<1x32x32xf32>,
    } else {
    }
    return
  }
  func.func @transform_0(%arg0: i32, %arg1: i32, %arg2: i32) -> (i32, i32, i32) {
    %c0_i32 = arith.constant 0 : i32
    %c0_i32_0 = arith.constant 0 : i32
    return %arg0, %arg1, %c0_i32 : i32, i32, i32
  }
  func.func @transform_1(%arg0: i32, %arg1: i32, %arg2: i32) -> (i32, i32, i32) {
    %c0_i32 = arith.constant 0 : i32
    %c0_i32_0 = arith.constant 0 : i32
    return %arg0, %arg2, %c0_i32 : i32, i32, i32
  }
  func.func @transform_2(%arg0: i32, %arg1: i32, %arg2: i32) -> (i32, i32, i32) {
    %c0_i32 = arith.constant 0 : i32
    %c0_i32_0 = arith.constant 0 : i32
    return %arg0, %arg2, %c0_i32 : i32, i32, i32
  }
  func.func @transform_3(%arg0: i32, %arg1: i32, %arg2: i32) -> (i32, i32, i32) {
    %c0_i32 = arith.constant 0 : i32
    %c0_i32_0 = arith.constant 0 : i32
    return %arg0, %arg1, %c0_i32 : i32, i32, i32
  }
}

</mosaic_0001>

<bundles_post_ra>
// kernel: transformer_encoder_block.3
= control target key start
LH: loop header
LB: loop body
LE: loop exit
PB: predicated region body
PF: predicated region fallthrough
CT: control target
= control target key end

     0   :  { %s943_s24 = smov 0   ;;  %s1109_s0 = inlined_call_operand.vmem [shape: f32[128,32], index: 0, kind: input, shape index: {}]   ;;  %s1110_s1 = inlined_call_operand.vmem [shape: f32[1,32], index: 1, kind: input, shape index: {}]   ;;  %s1111_s2 = inlined_call_operand.vmem [shape: f32[1,32], index: 2, kind: input, shape index: {}]   ;;  %s1112_s3 = inlined_call_operand.vmem [shape: f32[32,96], index: 3, kind: input, shape index: {}]   ;;  %s1113_s4 = inlined_call_operand.vmem [shape: f32[1,96], index: 4, kind: input, shape index: {}]   ;;  %s1114_s5 = inlined_call_operand.vmem [shape: f32[128,32], index: 5, kind: output, shape index: {0}]   ;;  %s1115_s6 = inlined_call_operand.vmem [shape: f32[128,32], index: 6, kind: output, shape index: {1}]   ;;  %s1116_s7 = inlined_call_operand.vmem [shape: f32[128,32], index: 7, kind: output, shape index: {2}]  }
   0x1 LB: > { %s797_s25 = sadd.s32 4294967295, %s899_s24   ;;  %p801_p0 = scmp.ge.s32.totalorder %s899_s24, 1  ;;  %s899_s24 = sphi %s943_s24, %s18_s24  }
   0x2   : > { %p243_p1 = scmp.lt.s32.totalorder %s899_s24, 3 }
   0x4   : > { %p244_p2 = pnand %p801_p0, %p243_p1 }
   0x5   : > { %s802_s26 = sshll.u32 (!%p244_p2), %s797_s25, 3  ;;  %vm319_vm0 = vcmask (!%p244_p2), 261120   ;;  %v453_v56 = vld [vmem:[%s1112_s3] sm:$0xff] (!%p244_p2)  ;;  %v454_v57 = vld [vmem:[%s1112_s3 + $0x8] sm:$0xff] (!%p244_p2)  ;;  %v455_v59 = vld [vmem:[%s1112_s3 + $0x10] sm:$0xff] (!%p244_p2)  ;;  %s902_s28 = smov (!%p244_p2), 64  }
   0x6   : > { %247 = sbr.rel (%p244_p2) target bundleno = 697 (0x2b9), region = 40  ;;  %p286_p3 = scmp.lt.s32.totalorder (!%p244_p2), %s802_s26, 15  ;;  %v855_v58 = vpack.c.bf16 (!%p244_p2), %v454_v57, %v453_v56  ;;  %v456_v60 = vld [vmem:[%s1112_s3 + $0x18] sm:$0xff] (!%p244_p2) }
   0x7   : > { %v859_v61 = vpack.c.bf16 (!%p244_p2), %v456_v60, %v455_v59 }
   0x8   : > { %856 = vmatprep.subr.bf16.mxu0 (!%p244_p2), %v855_v58  ;;  %863 = vmatprep.subr.bf16.mxu1 (!%p244_p2), %v855_v58 }
   0x9   : > { %858 = vmatpush3.bf16.msra.mxu0 (!%p244_p2), %v855_v58  ;;  %865 = vmatpush3.bf16.msra.mxu1 (!%p244_p2), %v855_v58 }
   0xa   : > { %860 = vmatprep.subr.bf16.mxu0 (!%p244_p2), %v859_v61  ;;  %864 = vmatprep.subr.bf16.mxu1 (!%p244_p2), %v859_v61 }
   0xd   : > { %s1118_s26 = smov (!%p286_p3, %s802_s26), 15  ;;  %862 = vmatpush3.bf16.msra.mxu0 %v859_v61  ;;  %866 = vmatpush3.bf16.msra.mxu1 %v859_v61 }
   0xe   : > { %s951_s27 = sshll.u32 %s1118_s26, 3  ;;  %s901_s26 = smov 96  }
   0xf   : > { %s289_s30 = scalar_lea.vmem %s1109_s0, %s951_s27  ;;  %s1046_s25 = scalar_lea.vmem %s1114_s5, %s951_s27 }
  0x10   : > { %v309_v0 = vld [vmem:[%s289_s30] sm:$0xff]  ;;  %v310_v1 = vld [vmem:[%s289_s30 + $0x8] sm:$0xff]  ;;  %v311_v8 = vld [vmem:[%s289_s30 + $0x10] sm:$0xff]  ;;  %s1076_s8 = scalar_lea.vmem %s1115_s6, %s951_s27  ;;  %s307_s11 = scalar_lea.vmem %s1116_s7, %s951_s27 }
  0x11   : > { %v313_v2 = vld [vmem:[%s289_s30 + $0x20] sm:$0xff]  ;;  %v320_v3 = vsel %vm319_vm0, %v309_v0, 0.0  ;;  %v323_v4 = vsel %vm319_vm0, %v310_v1, 0.0  ;;  %v314_v5 = vld [vmem:[%s289_s30 + $0x28] sm:$0xff]  ;;  %v315_v9 = vld [vmem:[%s289_s30 + $0x30] sm:$0xff]  ;;  %v326_v10 = vsel %vm319_vm0, %v311_v8, 0.0 }
  0x12   : > { %321 = vadd.xlane.f32.xlu0 %v320_v3  ;;  %324 = vadd.xlane.f32.xlu1 %v323_v4  ;;  %v332_v6 = vsel %vm319_vm0, %v313_v2, 0.0  ;;  %v335_v7 = vsel %vm319_vm0, %v314_v5, 0.0  ;;  %v338_v11 = vsel %vm319_vm0, %v315_v9, 0.0  ;;  %v312_v12 = vld [vmem:[%s289_s30 + $0x18] sm:$0xff] }
  0x13   : > { %v316_v13 = vld [vmem:[%s289_s30 + $0x38] sm:$0xff]  ;;  %v329_v14 = vsel %vm319_vm0, %v312_v12, 0.0 }
  0x14   : > { %v341_v15 = vsel %vm319_vm0, %v316_v13, 0.0 }
  0x16   : > { %333 = vadd.xlane.f32.xlu0 %v332_v6  ;;  %336 = vadd.xlane.f32.xlu1 %v335_v7 }
  0x1a   : > { %327 = vadd.xlane.f32.xlu0 %v326_v10  ;;  %339 = vadd.xlane.f32.xlu1 %v338_v11 }
  0x1e   : > { %330 = vadd.xlane.f32.xlu0 %v329_v14  ;;  %342 = vadd.xlane.f32.xlu1 %v341_v15 }
  0x9f   : > { %v322_v16 = vpop.xlane.xlu0 %321  ;;  %v325_v17 = vpop.xlane.xlu1 %324 }
  0xa0   : > { %v345_v18 = vmul.f32 0.03125, %v322_v16  ;;  %v346_v19 = vmul.f32 0.03125, %v325_v17 }
  0xa2   : > { %v965_v20 = vsub.f32 %v309_v0, %v345_v18  ;;  %v967_v21 = vsub.f32 %v310_v1, %v346_v19 }
  0xa3   : > { %v334_v22 = vpop.xlane.xlu0 %333  ;;  %v337_v23 = vpop.xlane.xlu1 %336 }
  0xa4   : > { %v349_v24 = vmul.f32 0.03125, %v334_v22  ;;  %v350_v25 = vmul.f32 0.03125, %v337_v23  ;;  %v361_v26 = vmul.f32 %v965_v20, %v965_v20  ;;  %v362_v27 = vmul.f32 %v967_v21, %v967_v21  ;;  %v810_v22 = vld [vmem:[%s1110_s1] ss:$0 sm:$0xff] }
  0xa6   : > { %v973_v28 = vsub.f32 %v313_v2, %v349_v24  ;;  %v975_v29 = vsub.f32 %v314_v5, %v350_v25  ;;  %v369_v30 = vsel %vm319_vm0, %v361_v26, 0.0  ;;  %v372_v33 = vsel %vm319_vm0, %v362_v27, 0.0  ;;  %v811_v26 = vld [vmem:[%s1111_s2] ss:$0 sm:$0xff] }
  0xa7   : > { %370 = vadd.xlane.f32.xlu0 %v369_v30  ;;  %v328_v31 = vpop.xlane.xlu0 %327  ;;  %v340_v32 = vpop.xlane.xlu1 %339 }
  0xa8   : > { %v347_v34 = vmul.f32 0.03125, %v328_v31  ;;  %v351_v35 = vmul.f32 0.03125, %v340_v32  ;;  %v365_v36 = vmul.f32 %v973_v28, %v973_v28  ;;  %v366_v37 = vmul.f32 %v975_v29, %v975_v29 }
  0xaa   : > { %v983_v38 = vsub.f32 %v311_v8, %v347_v34  ;;  %v985_v39 = vsub.f32 %v315_v9, %v351_v35  ;;  %v381_v40 = vsel %vm319_vm0, %v365_v36, 0.0  ;;  %v384_v43 = vsel %vm319_vm0, %v366_v37, 0.0 }
  0xab   : > { %373 = vadd.xlane.f32.xlu0 %v372_v33  ;;  %382 = vadd.xlane.f32.xlu1 %v381_v40  ;;  %v331_v41 = vpop.xlane.xlu0 %330  ;;  %v343_v42 = vpop.xlane.xlu1 %342 }
  0xac   : > { %v348_v44 = vmul.f32 0.03125, %v331_v41  ;;  %v352_v45 = vmul.f32 0.03125, %v343_v42  ;;  %v363_v46 = vmul.f32 %v983_v38, %v983_v38  ;;  %v367_v47 = vmul.f32 %v985_v39, %v985_v39 }
  0xae   : > { %v993_v48 = vsub.f32 %v312_v12, %v348_v44  ;;  %v995_v49 = vsub.f32 %v316_v13, %v352_v45  ;;  %v375_v50 = vsel %vm319_vm0, %v363_v46, 0.0  ;;  %v387_v51 = vsel %vm319_vm0, %v367_v47, 0.0 }
  0xaf   : > { %385 = vadd.xlane.f32.xlu1 %v384_v43  ;;  %376 = vadd.xlane.f32.xlu0 %v375_v50 }
  0xb0   : > { %v364_v52 = vmul.f32 %v993_v48, %v993_v48  ;;  %v368_v53 = vmul.f32 %v995_v49, %v995_v49 }
  0xb2   : > { %v378_v54 = vsel %vm319_vm0, %v364_v52, 0.0  ;;  %v390_v55 = vsel %vm319_vm0, %v368_v53, 0.0 }
  0xb3   : > { %388 = vadd.xlane.f32.xlu1 %v387_v51  ;;  %379 = vadd.xlane.f32.xlu0 %v378_v54 }
  0xb7   : > { %391 = vadd.xlane.f32.xlu1 %v390_v55 }
 0x134   : > { %v371_v62 = vpop.xlane.xlu0 %370 }
 0x135   : > { %v393_v63 = vmul.f32 0.03125, %v371_v62 }
 0x137   : > { %v401_v0 = vadd.f32 1e-05, %v393_v63 }
 0x138   : > { %v383_v1 = vpop.xlane.xlu1 %382  ;;  %v374_v2 = vpop.xlane.xlu0 %373 }
 0x139   : > { %877 = vrsqrt.f32 %v401_v0  ;;  %v397_v3 = vmul.f32 0.03125, %v383_v1  ;;  %v394_v4 = vmul.f32 0.03125, %v374_v2 }
 0x13b   : > { %v405_v5 = vadd.f32 1e-05, %v397_v3  ;;  %v402_v6 = vadd.f32 1e-05, %v394_v4 }
 0x13c   : > { %v386_v7 = vpop.xlane.xlu1 %385  ;;  %v377_v8 = vpop.xlane.xlu0 %376 }
 0x13d   : > { %879 = vrsqrt.f32 %v405_v5  ;;  %v398_v9 = vmul.f32 0.03125, %v386_v7  ;;  %v395_v10 = vmul.f32 0.03125, %v377_v8 }
 0x13e   : > { %881 = vrsqrt.f32 %v402_v6 }
 0x13f   : > { %v406_v11 = vadd.f32 1e-05, %v398_v9  ;;  %v403_v12 = vadd.f32 1e-05, %v395_v10 }
 0x140   : > { %v389_v13 = vpop.xlane.xlu1 %388  ;;  %v380_v14 = vpop.xlane.xlu0 %379 }
 0x141   : > { %883 = vrsqrt.f32 %v406_v11  ;;  %v399_v15 = vmul.f32 0.03125, %v389_v13  ;;  %v396_v16 = vmul.f32 0.03125, %v380_v14 }
 0x142   : > { %885 = vrsqrt.f32 %v403_v12 }
 0x143   : > { %v878_v17 = vpop.eup %877  ;;  %v407_v18 = vadd.f32 1e-05, %v399_v15  ;;  %v404_v19 = vadd.f32 1e-05, %v396_v16 }
 0x144   : > { %v392_v23 = vpop.xlane.xlu1 %391  ;;  %v417_v24 = vmul.f32 %v878_v17, %v965_v20 }
 0x145   : > { %887 = vrsqrt.f32 %v407_v18  ;;  %v400_v25 = vmul.f32 0.03125, %v392_v23 }
 0x146   : > { %889 = vrsqrt.f32 %v404_v19  ;;  %v431_v27 = vmul.f32 %v810_v22, %v417_v24 }
 0x147   : > { %v880_v30 = vpop.eup %879  ;;  %v408_v31 = vadd.f32 1e-05, %v400_v25 }
 0x148   : > { %v882_v32 = vpop.eup %881  ;;  %v445_v33 = vadd.f32 %v811_v26, %v431_v27  ;;  %v421_v34 = vmul.f32 %v880_v30, %v973_v28 }
 0x149   : > { %891 = vrsqrt.f32 %v408_v31  ;;  %v418_v35 = vmul.f32 %v882_v32, %v967_v21 }
 0x14a   : > { %843 = vmatprep.mubr.msk.f32.mxu0 %vm319_vm0, %v445_v33  ;;  %v435_v20 = vmul.f32 %v810_v22, %v421_v34 }
 0x14b   : > { %v884_v36 = vpop.eup %883  ;;  %v432_v37 = vmul.f32 %v810_v22, %v418_v35 }
 0x14c   : > { %v886_v40 = vpop.eup %885  ;;  %v449_v41 = vadd.f32 %v811_v26, %v435_v20  ;;  %v422_v42 = vmul.f32 %v884_v36, %v975_v29 }
 0x14d   : > { %v446_v43 = vadd.f32 %v811_v26, %v432_v37  ;;  %v419_v44 = vmul.f32 %v886_v40, %v983_v38 }
 0x14e   : > { %849 = vmatprep.mubr.msk.f32.mxu1 %vm319_vm0, %v449_v41  ;;  %v436_v45 = vmul.f32 %v810_v22, %v422_v42 }
 0x14f   : > { %v888_v46 = vpop.eup %887  ;;  %844 = vmatmul.mubr.msk.f32.vlgmr.msra.gmra.mrb[0].mxu0 %vm319_vm0, %v446_v43  ;;  %v433_v28 = vmul.f32 %v810_v22, %v419_v44 }
 0x150   : > { %v890_v21 = vpop.eup %889  ;;  %v450_v47 = vadd.f32 %v811_v26, %v436_v45  ;;  %v423_v50 = vmul.f32 %v888_v46, %v985_v39 }
 0x151   : > { %v447_v51 = vadd.f32 %v811_v26, %v433_v28  ;;  %v420_v52 = vmul.f32 %v890_v21, %v993_v48  ;;  %v812_v48 = vld [vmem:[%s1113_s4] ss:$0 sm:$0xff] }
 0x152   : > { %850 = vmatmul.mubr.msk.f32.vlgmr.msra.gmra.mrb[0].mxu1 %vm319_vm0, %v450_v47  ;;  %v437_v29 = vmul.f32 %v810_v22, %v423_v50 }
 0x153   : > { %v892_v53 = vpop.eup %891  ;;  %846 = vmatprep.mubr.msk.f32.mxu0 %vm319_vm0, %v447_v51  ;;  %v434_v38 = vmul.f32 %v810_v22, %v420_v52 }
 0x154   : > { %v451_v54 = vadd.f32 %v811_v26, %v437_v29  ;;  %v424_v55 = vmul.f32 %v892_v53, %v995_v49 }
 0x155   : > { %v448_v56 = vadd.f32 %v811_v26, %v434_v38 }
 0x156   : > { %852 = vmatprep.mubr.msk.f32.mxu1 %vm319_vm0, %v451_v54  ;;  %v438_v57 = vmul.f32 %v810_v22, %v424_v55 }
 0x157   : > { %847 = vmatmul.mubr.msk.f32.gmra.mrb[2].mxu0 %vm319_vm0, %v448_v56 }
 0x158   : > { %v452_v39 = vadd.f32 %v811_v26, %v438_v57 }
 0x15a   : > { %853 = vmatmul.mubr.msk.f32.gmra.mrb[2].mxu1 %vm319_vm0, %v452_v39 }
 0x222   : > { %v845_v49 = vpop.f32.mrb[0].mxu0 }
 0x223   : > { %v560_v58 = vadd.f32 %v845_v49, %v812_v48  ;;  %v554_v59 = vpop.f32.mrb[1].mxu0 }
 0x224   : > { %v555_v60 = vadd.f32 %v812_v48, %v554_v59 }
 0x225   : > { %594 = vst.msk [vmem:[%s1046_s25 + $0x8] sm:$0xff] %vm319_vm0, %v560_v58  ;;  %611 = vrot.lane.b32.xlu1 %v560_v58, %s901_s26  ;;  %v851_v61 = vpop.f32.mrb[0].mxu1 }
 0x226   : > { %593 = vst.msk [vmem:[%s1046_s25] sm:$0xff] %vm319_vm0, %v555_v60  ;;  %v580_v62 = vadd.f32 %v851_v61, %v812_v48  ;;  %609 = vrot.lane.b32.xlu0 %v555_v60, %s901_s26  ;;  %v574_v63 = vpop.f32.mrb[1].mxu1 }
 0x227   : > { %v575_v0 = vadd.f32 %v812_v48, %v574_v63 }
 0x228   : > { %598 = vst.msk [vmem:[%s1046_s25 + $0x28] sm:$0xff] %vm319_vm0, %v580_v62 }
 0x229   : > { %597 = vst.msk [vmem:[%s1046_s25 + $0x20] sm:$0xff] %vm319_vm0, %v575_v0  ;;  %619 = vrot.lane.b32.xlu1 %v580_v62, %s901_s26 }
 0x22a   : > { %617 = vrot.lane.b32.xlu0 %v575_v0, %s901_s26  ;;  %v848_v1 = vpop.f32.mrb[2].mxu0 }
 0x22b   : > { %v570_v2 = vadd.f32 %v848_v1, %v812_v48  ;;  %v564_v3 = vpop.f32.mrb[3].mxu0 }
 0x22c   : > { %v565_v4 = vadd.f32 %v812_v48, %v564_v3 }
 0x22d   : > { %596 = vst.msk [vmem:[%s1046_s25 + $0x18] sm:$0xff] %vm319_vm0, %v570_v2  ;;  %643 = vrot.lane.b32.xlu1 %v560_v58, %s902_s28  ;;  %v854_v5 = vpop.f32.mrb[2].mxu1 }
 0x22e   : > { %595 = vst.msk [vmem:[%s1046_s25 + $0x10] sm:$0xff] %vm319_vm0, %v565_v4  ;;  %v590_v6 = vadd.f32 %v854_v5, %v812_v48  ;;  %641 = vrot.lane.b32.xlu0 %v555_v60, %s902_s28  ;;  %v584_v7 = vpop.f32.mrb[3].mxu1 }
 0x22f   : > { %v585_v8 = vadd.f32 %v812_v48, %v584_v7 }
 0x230   : > { %600 = vst.msk [vmem:[%s1046_s25 + $0x38] sm:$0xff] %vm319_vm0, %v590_v6 }
 0x231   : > { %599 = vst.msk [vmem:[%s1046_s25 + $0x30] sm:$0xff] %vm319_vm0, %v585_v8  ;;  %651 = vrot.lane.b32.xlu1 %v580_v62, %s902_s28 }
 0x232   : > { %649 = vrot.lane.b32.xlu0 %v575_v0, %s902_s28 }
 0x235   : > { %615 = vrot.lane.b32.xlu1 %v570_v2, %s901_s26 }
 0x236   : > { %621 = vrot.lane.b32.xlu0 %v585_v8, %s901_s26 }
 0x239   : > { %623 = vrot.lane.b32.xlu1 %v590_v6, %s901_s26 }
 0x23a   : > { %645 = vrot.lane.b32.xlu0 %v565_v4, %s902_s28 }
 0x23d   : > { %647 = vrot.lane.b32.xlu1 %v570_v2, %s902_s28 }
 0x23e   : > { %653 = vrot.lane.b32.xlu0 %v585_v8, %s902_s28 }
 0x241   : > { %613 = vrot.lane.b32.xlu1 %v565_v4, %s901_s26 }
 0x245   : > { %655 = vrot.lane.b32.xlu1 %v590_v6, %s902_s28 }
 0x297   : > { %v612_v9 = vpop.permute.xlu1 %611 }
 0x298   : > { %634 = vst.msk [vmem:[%s1076_s8 + $0x8] sm:$0xff] %vm319_vm0, %v612_v9  ;;  %v610_v10 = vpop.permute.xlu0 %609 }
 0x299   : > { %633 = vst.msk [vmem:[%s1076_s8] sm:$0xff] %vm319_vm0, %v610_v10 }
 0x29b   : > { %v620_v11 = vpop.permute.xlu1 %619 }
 0x29c   : > { %638 = vst.msk [vmem:[%s1076_s8 + $0x28] sm:$0xff] %vm319_vm0, %v620_v11  ;;  %v618_v12 = vpop.permute.xlu0 %617 }
 0x29d   : > { %637 = vst.msk [vmem:[%s1076_s8 + $0x20] sm:$0xff] %vm319_vm0, %v618_v12 }
 0x29f   : > { %v644_v13 = vpop.permute.xlu1 %643 }
 0x2a0   : > { %666 = vst.msk [vmem:[%s307_s11 + $0x8] sm:$0xff] %vm319_vm0, %v644_v13  ;;  %v642_v14 = vpop.permute.xlu0 %641 }
 0x2a1   : > { %665 = vst.msk [vmem:[%s307_s11] sm:$0xff] %vm319_vm0, %v642_v14 }
 0x2a3   : > { %v652_v15 = vpop.permute.xlu1 %651 }
 0x2a4   : > { %670 = vst.msk [vmem:[%s307_s11 + $0x28] sm:$0xff] %vm319_vm0, %v652_v15  ;;  %v650_v16 = vpop.permute.xlu0 %649 }
 0x2a5   : > { %669 = vst.msk [vmem:[%s307_s11 + $0x20] sm:$0xff] %vm319_vm0, %v650_v16 }
 0x2a7   : > { %v616_v17 = vpop.permute.xlu1 %615 }
 0x2a8   : > { %636 = vst.msk [vmem:[%s1076_s8 + $0x18] sm:$0xff] %vm319_vm0, %v616_v17  ;;  %v622_v18 = vpop.permute.xlu0 %621 }
 0x2a9   : > { %639 = vst.msk [vmem:[%s1076_s8 + $0x30] sm:$0xff] %vm319_vm0, %v622_v18 }
 0x2ab   : > { %v624_v19 = vpop.permute.xlu1 %623 }
 0x2ac   : > { %640 = vst.msk [vmem:[%s1076_s8 + $0x38] sm:$0xff] %vm319_vm0, %v624_v19  ;;  %v646_v22 = vpop.permute.xlu0 %645 }
 0x2ad   : > { %667 = vst.msk [vmem:[%s307_s11 + $0x10] sm:$0xff] %vm319_vm0, %v646_v22 }
 0x2af   : > { %v648_v23 = vpop.permute.xlu1 %647 }
 0x2b0   : > { %668 = vst.msk [vmem:[%s307_s11 + $0x18] sm:$0xff] %vm319_vm0, %v648_v23  ;;  %v654_v24 = vpop.permute.xlu0 %653 }
 0x2b1   : > { %671 = vst.msk [vmem:[%s307_s11 + $0x30] sm:$0xff] %vm319_vm0, %v654_v24 }
 0x2b3   : > { %v614_v25 = vpop.permute.xlu1 %613 }
 0x2b4   : > { %635 = vst.msk [vmem:[%s1076_s8 + $0x10] sm:$0xff] %vm319_vm0, %v614_v25 }
 0x2b7   : > { %v656_v26 = vpop.permute.xlu1 %655 }
 0x2b8   : > { %672 = vst.msk [vmem:[%s307_s11 + $0x38] sm:$0xff] %vm319_vm0, %v656_v26 }
 0x2b9 PF: > { %s18_s24 = sadd.s32 1, %s899_s24  }
 0x2ba   : > { %p15_p4 = scmp.ge.s32.totalorder %s18_s24, 4  }
 0x2bc   :  { %17 = sbr.rel (!%p15_p4) target bundleno = 1 (0x1), region = 94 }

// kernel: transformer_encoder_block.5
= control target key start
LH: loop header
LB: loop body
LE: loop exit
PB: predicated region body
PF: predicated region fallthrough
CT: control target
= control target key end

     0   :  { %s1387_s13 = smov 0   ;;  %s1613_s0 = inlined_call_operand.vmem [shape: f32[128,32], index: 0, kind: input, shape index: {}]   ;;  %s1614_s1 = inlined_call_operand.vmem [shape: f32[128,32], index: 1, kind: input, shape index: {}]   ;;  %s1615_s2 = inlined_call_operand.vmem [shape: f32[32,32], index: 2, kind: input, shape index: {}]   ;;  %s1616_s3 = inlined_call_operand.vmem [shape: f32[1,32], index: 3, kind: input, shape index: {}]   ;;  %s1617_s4 = inlined_call_operand.vmem [shape: f32[1,32], index: 4, kind: input, shape index: {}]   ;;  %s1618_s5 = inlined_call_operand.vmem [shape: f32[1,32], index: 5, kind: input, shape index: {}]   ;;  %s1619_s6 = inlined_call_operand.vmem [shape: f32[32,64], index: 6, kind: input, shape index: {}]   ;;  %s1620_s7 = inlined_call_operand.vmem [shape: f32[1,64], index: 7, kind: input, shape index: {}]   ;;  %s1621_s8 = inlined_call_operand.vmem [shape: f32[64,32], index: 8, kind: input, shape index: {}]   ;;  %s1622_s9 = inlined_call_operand.vmem [shape: f32[1,32], index: 9, kind: input, shape index: {}]   ;;  %s1623_s10 = inlined_call_operand.vmem [shape: f32[128,32], index: 10, kind: output, shape index: {}]  }
   0x1 LB: > { %s1094_s14 = sadd.s32 4294967295, %s1330_s13   ;;  %p1098_p0 = scmp.ge.s32.totalorder %s1330_s13, 1  ;;  %s1330_s13 = sphi %s1387_s13, %s20_s13  }
   0x2   : > { %p324_p1 = scmp.lt.s32.totalorder %s1330_s13, 3 }
   0x4   : > { %p325_p2 = pnand %p1098_p0, %p324_p1 }
   0x5   : > { %v401_v0 = vld [vmem:[%s1615_s2] sm:$0xff] (!%p325_p2)  ;;  %v402_v1 = vld [vmem:[%s1615_s2 + $0x8] sm:$0xff] (!%p325_p2)  ;;  %v403_v2 = vld [vmem:[%s1615_s2 + $0x10] sm:$0xff] (!%p325_p2)  ;;  %s1099_s21 = sshll.u32 (!%p325_p2), %s1094_s14, 3  ;;  %vm412_vm0 = vcmask (!%p325_p2), 261120   ;;  %vm880_vm1 = vcmask (!%p325_p2), 523264  }
   0x6   : > { %328 = sbr.rel (%p325_p2) target bundleno = 1015 (0x3f7), region = 60  ;;  %v1244_v3 = vpack.c.bf16 (!%p325_p2), %v402_v1, %v401_v0  ;;  %v404_v4 = vld [vmem:[%s1615_s2 + $0x18] sm:$0xff] (!%p325_p2)  ;;  %p368_p3 = scmp.lt.s32.totalorder (!%p325_p2), %s1099_s21, 15  ;;  %v1105_v14 = vld [vmem:[%s1616_s3] ss:$0 sm:$0xff] (!%p325_p2) }
   0x7   : > { %v1248_v5 = vpack.c.bf16 (!%p325_p2), %v404_v4, %v403_v2 }
   0x8   : > { %1245 = vmatprep.subr.bf16.mxu0 (!%p325_p2), %v1244_v3 }
   0x9   : > { %1247 = vmatpush3.bf16.msra.mxu0 (!%p325_p2), %v1244_v3 }
   0xa   : > { %1249 = vmatprep.subr.bf16.mxu0 (!%p325_p2), %v1248_v5 }
   0xd   : > { %s1625_s21 = smov (!%p368_p3, %s1099_s21), 15  ;;  %1251 = vmatpush3.bf16.msra.mxu0 %v1248_v5 }
   0xe   : > { %s1407_s24 = sshll.u32 %s1625_s21, 3 }
   0xf   : > { %s377_s27 = scalar_lea.vmem %s1614_s1, %s1407_s24  ;;  %s1425_s30 = scalar_lea.vmem %s1613_s0, %s1407_s24 }
  0x10   : > { %v393_v6 = vld [vmem:[%s377_s27] sm:$0xff]  ;;  %v394_v7 = vld [vmem:[%s377_s27 + $0x8] sm:$0xff]  ;;  %v395_v8 = vld [vmem:[%s377_s27 + $0x10] sm:$0xff]  ;;  %s383_s11 = scalar_lea.vmem %s1623_s10, %s1407_s24 }
  0x11   : > { %1184 = vmatprep.mubr.msk.f32.mxu0 %vm412_vm0, %v393_v6  ;;  %v396_v9 = vld [vmem:[%s377_s27 + $0x18] sm:$0xff]  ;;  %v397_v10 = vld [vmem:[%s377_s27 + $0x20] sm:$0xff]  ;;  %v398_v11 = vld [vmem:[%s377_s27 + $0x28] sm:$0xff] }
  0x12   : > { %1185 = vmatmul.mubr.msk.f32.vlgmr.msra.gmra.mrb[0].mxu0 %vm412_vm0, %v394_v7  ;;  %v399_v12 = vld [vmem:[%s377_s27 + $0x30] sm:$0xff]  ;;  %v400_v13 = vld [vmem:[%s377_s27 + $0x38] sm:$0xff]  ;;  %v386_v15 = vld [vmem:[%s1425_s30 + $0x8] sm:$0xff] }
  0x13   : > { %1187 = vmatprep.mubr.msk.f32.mxu0 %vm412_vm0, %v395_v8  ;;  %v385_v18 = vld [vmem:[%s1425_s30] sm:$0xff]  ;;  %v388_v23 = vld [vmem:[%s1425_s30 + $0x18] sm:$0xff]  ;;  %v387_v26 = vld [vmem:[%s1425_s30 + $0x10] sm:$0xff] }
  0x14   : > { %v390_v32 = vld [vmem:[%s1425_s30 + $0x28] sm:$0xff]  ;;  %v389_v35 = vld [vmem:[%s1425_s30 + $0x20] sm:$0xff]  ;;  %v392_v42 = vld [vmem:[%s1425_s30 + $0x38] sm:$0xff] }
  0x15   : > { %v391_v45 = vld [vmem:[%s1425_s30 + $0x30] sm:$0xff] }
  0x16   : > { %1188 = vmatmul.mubr.msk.f32.gmra.mrb[2].mxu0 %vm412_vm0, %v396_v9 }
  0x17   : > { %1190 = vmatprep.mubr.msk.f32.mxu0 %vm412_vm0, %v397_v10 }
  0x1a   : > { %1191 = vmatmul.mubr.msk.f32.gmra.mrb[4].mxu0 %vm412_vm0, %v398_v11 }
  0x1b   : > { %1193 = vmatprep.mubr.msk.f32.mxu0 %vm412_vm0, %v399_v12 }
  0x1e   : > { %1194 = vmatmul.mubr.msk.f32.gmra.mrb[6].mxu0 %vm412_vm0, %v400_v13 }
  0xe5   : > { %v1186_v16 = vpop.f32.mrb[0].mxu0 }
  0xe6   : > { %v509_v17 = vadd.f32 %v1186_v16, %v1105_v14  ;;  %v503_v19 = vpop.f32.mrb[1].mxu0 }
  0xe7   : > { %v504_v20 = vadd.f32 %v1105_v14, %v503_v19 }
  0xe8   : > { %v1432_v21 = vadd.f32 %v509_v17, %v386_v15 }
  0xe9   : > { %v1434_v22 = vadd.f32 %v504_v20, %v385_v18  ;;  %v1189_v24 = vpop.f32.mrb[2].mxu0 }
  0xea   : > { %v519_v25 = vadd.f32 %v1189_v24, %v1105_v14  ;;  %v513_v27 = vpop.f32.mrb[3].mxu0  ;;  %v555_v39 = vsel %vm412_vm0, %v1432_v21, 0.0 }
  0xeb   : > { %v514_v28 = vadd.f32 %v1105_v14, %v513_v27  ;;  %v552_v29 = vsel %vm412_vm0, %v1434_v22, 0.0 }
  0xec   : > { %v1440_v30 = vadd.f32 %v519_v25, %v388_v23  ;;  %553 = vadd.xlane.f32.xlu0 %v552_v29 }
  0xed   : > { %v1442_v31 = vadd.f32 %v514_v28, %v387_v26  ;;  %v1192_v33 = vpop.f32.mrb[4].mxu0 }
  0xee   : > { %v529_v34 = vadd.f32 %v1192_v33, %v1105_v14  ;;  %v523_v36 = vpop.f32.mrb[5].mxu0  ;;  %v561_v48 = vsel %vm412_vm0, %v1440_v30, 0.0 }
  0xef   : > { %v524_v37 = vadd.f32 %v1105_v14, %v523_v36  ;;  %v558_v38 = vsel %vm412_vm0, %v1442_v31, 0.0  ;;  %v686_v36 = vld [vmem:[%s1619_s6 + $0x8] sm:$0xff] }
  0xf0   : > { %v1450_v40 = vadd.f32 %v529_v34, %v390_v32  ;;  %559 = vadd.xlane.f32.xlu1 %v558_v38  ;;  %556 = vadd.xlane.f32.xlu0 %v555_v39  ;;  %v687_v38 = vld [vmem:[%s1619_s6 + $0x10] sm:$0xff]  ;;  %v688_v39 = vld [vmem:[%s1619_s6 + $0x18] sm:$0xff] }
  0xf1   : > { %v1452_v41 = vadd.f32 %v524_v37, %v389_v35  ;;  %v1195_v43 = vpop.f32.mrb[6].mxu0  ;;  %v685_v35 = vld [vmem:[%s1619_s6] sm:$0xff] }
  0xf2   : > { %v539_v44 = vadd.f32 %v1195_v43, %v1105_v14  ;;  %v533_v46 = vpop.f32.mrb[7].mxu0  ;;  %v567_v52 = vsel %vm412_vm0, %v1450_v40, 0.0  ;;  %v1252_v37 = vpack.c.bf16 %v686_v36, %v685_v35 }
  0xf3   : > { %v534_v47 = vadd.f32 %v1105_v14, %v533_v46  ;;  %v564_v49 = vsel %vm412_vm0, %v1452_v41, 0.0 }
  0xf4   : > { %v1460_v50 = vadd.f32 %v539_v44, %v392_v42  ;;  %562 = vadd.xlane.f32.xlu1 %v561_v48  ;;  %565 = vadd.xlane.f32.xlu0 %v564_v49  ;;  %v1256_v42 = vpack.c.bf16 %v688_v39, %v687_v38 }
  0xf5   : > { %v1462_v51 = vadd.f32 %v534_v47, %v391_v45  ;;  %1253 = vmatprep.subr.bf16.mxu1 %v1252_v37 }
  0xf6   : > { %v573_v54 = vsel %vm412_vm0, %v1460_v50, 0.0  ;;  %1255 = vmatpush3.bf16.msra.mxu1 %v1252_v37 }
  0xf7   : > { %v570_v53 = vsel %vm412_vm0, %v1462_v51, 0.0  ;;  %1257 = vmatprep.subr.bf16.mxu1 %v1256_v42 }
  0xf8   : > { %568 = vadd.xlane.f32.xlu1 %v567_v52  ;;  %571 = vadd.xlane.f32.xlu0 %v570_v53 }
  0xfa   : > { %1259 = vmatpush3.bf16.msra.mxu1 %v1256_v42 }
  0xfc   : > { %574 = vadd.xlane.f32.xlu1 %v573_v54 }
 0x179   : > { %v554_v55 = vpop.xlane.xlu0 %553 }
 0x17a   : > { %v577_v56 = vmul.f32 0.03125, %v554_v55 }
 0x17c   : > { %v1471_v57 = vsub.f32 %v1434_v22, %v577_v56 }
 0x17d   : > { %v560_v58 = vpop.xlane.xlu1 %559  ;;  %v557_v59 = vpop.xlane.xlu0 %556 }
 0x17e   : > { %v579_v60 = vmul.f32 0.03125, %v560_v58  ;;  %v578_v61 = vmul.f32 0.03125, %v557_v59  ;;  %v593_v62 = vmul.f32 %v1471_v57, %v1471_v57 }
 0x180   : > { %v1476_v63 = vsub.f32 %v1442_v31, %v579_v60  ;;  %v1479_v0 = vsub.f32 %v1432_v21, %v578_v61  ;;  %v601_v1 = vsel %vm412_vm0, %v593_v62, 0.0 }
 0x181   : > { %v563_v2 = vpop.xlane.xlu1 %562  ;;  %602 = vadd.xlane.f32.xlu0 %v601_v1  ;;  %v566_v3 = vpop.xlane.xlu0 %565 }
 0x182   : > { %v580_v4 = vmul.f32 0.03125, %v563_v2  ;;  %v581_v5 = vmul.f32 0.03125, %v566_v3  ;;  %v595_v6 = vmul.f32 %v1476_v63, %v1476_v63  ;;  %v594_v7 = vmul.f32 %v1479_v0, %v1479_v0 }
 0x184   : > { %v1487_v8 = vsub.f32 %v1440_v30, %v580_v4  ;;  %v1490_v9 = vsub.f32 %v1452_v41, %v581_v5  ;;  %v607_v10 = vsel %vm412_vm0, %v595_v6, 0.0  ;;  %v604_v11 = vsel %vm412_vm0, %v594_v7, 0.0  ;;  %v1114_v6 = vld [vmem:[%s1617_s4] ss:$0 sm:$0xff] }
 0x185   : > { %v569_v12 = vpop.xlane.xlu1 %568  ;;  %608 = vadd.xlane.f32.xlu0 %v607_v10  ;;  %605 = vadd.xlane.f32.xlu1 %v604_v11  ;;  %v572_v13 = vpop.xlane.xlu0 %571 }
 0x186   : > { %v582_v14 = vmul.f32 0.03125, %v569_v12  ;;  %v583_v15 = vmul.f32 0.03125, %v572_v13  ;;  %v596_v16 = vmul.f32 %v1487_v8, %v1487_v8  ;;  %v597_v17 = vmul.f32 %v1490_v9, %v1490_v9  ;;  %v1115_v12 = vld [vmem:[%s1618_s5] ss:$0 sm:$0xff] }
 0x188   : > { %v1499_v18 = vsub.f32 %v1450_v40, %v582_v14  ;;  %v1502_v19 = vsub.f32 %v1462_v51, %v583_v15  ;;  %v610_v20 = vsel %vm412_vm0, %v596_v16, 0.0  ;;  %v613_v23 = vsel %vm412_vm0, %v597_v17, 0.0 }
 0x189   : > { %v575_v24 = vpop.xlane.xlu1 %574  ;;  %611 = vadd.xlane.f32.xlu1 %v610_v20  ;;  %614 = vadd.xlane.f32.xlu0 %v613_v23 }
 0x18a   : > { %v584_v25 = vmul.f32 0.03125, %v575_v24  ;;  %v598_v26 = vmul.f32 %v1499_v18, %v1499_v18  ;;  %v599_v27 = vmul.f32 %v1502_v19, %v1502_v19 }
 0x18c   : > { %v1511_v28 = vsub.f32 %v1460_v50, %v584_v25  ;;  %v616_v29 = vsel %vm412_vm0, %v598_v26, 0.0  ;;  %v619_v32 = vsel %vm412_vm0, %v599_v27, 0.0 }
 0x18d   : > { %617 = vadd.xlane.f32.xlu1 %v616_v29  ;;  %620 = vadd.xlane.f32.xlu0 %v619_v32 }
 0x18e   : > { %v600_v33 = vmul.f32 %v1511_v28, %v1511_v28 }
 0x190   : > { %v622_v34 = vsel %vm412_vm0, %v600_v33, 0.0 }
 0x191   : > { %623 = vadd.xlane.f32.xlu1 %v622_v34 }
 0x20e   : > { %v603_v43 = vpop.xlane.xlu0 %602 }
 0x20f   : > { %v625_v44 = vmul.f32 0.03125, %v603_v43 }
 0x211   : > { %v633_v45 = vadd.f32 1e-05, %v625_v44 }
 0x212   : > { %v606_v46 = vpop.xlane.xlu1 %605  ;;  %v609_v47 = vpop.xlane.xlu0 %608 }
 0x213   : > { %1292 = vrsqrt.f32 %v633_v45  ;;  %v626_v48 = vmul.f32 0.03125, %v606_v46  ;;  %v627_v49 = vmul.f32 0.03125, %v609_v47  ;;  %v866_v47 = vld [vmem:[%s1621_s8 + $0x8] sm:$0xff] }
 0x215   : > { %v634_v52 = vadd.f32 1e-05, %v626_v48  ;;  %v635_v53 = vadd.f32 1e-05, %v627_v49  ;;  %v868_v49 = vld [vmem:[%s1621_s8 + $0x18] sm:$0xff] }
 0x216   : > { %v612_v54 = vpop.xlane.xlu1 %611  ;;  %v615_v55 = vpop.xlane.xlu0 %614 }
 0x217   : > { %1294 = vrsqrt.f32 %v634_v52  ;;  %v628_v56 = vmul.f32 0.03125, %v612_v54  ;;  %v629_v58 = vmul.f32 0.03125, %v615_v55  ;;  %v870_v54 = vld [vmem:[%s1621_s8 + $0x28] sm:$0xff] }
 0x218   : > { %1296 = vrsqrt.f32 %v635_v53  ;;  %v869_v53 = vld [vmem:[%s1621_s8 + $0x20] sm:$0xff] }
 0x219   : > { %v636_v59 = vadd.f32 1e-05, %v628_v56  ;;  %v637_v60 = vadd.f32 1e-05, %v629_v58  ;;  %v1268_v55 = vpack.c.bf16 %v870_v54, %v869_v53  ;;  %v871_v56 = vld [vmem:[%s1621_s8 + $0x30] sm:$0xff]  ;;  %v872_v58 = vld [vmem:[%s1621_s8 + $0x38] sm:$0xff] }
 0x21a   : > { %v618_v61 = vpop.xlane.xlu1 %617  ;;  %v621_v62 = vpop.xlane.xlu0 %620 }
 0x21b   : > { %1298 = vrsqrt.f32 %v636_v59  ;;  %v630_v1 = vmul.f32 0.03125, %v618_v61  ;;  %v631_v2 = vmul.f32 0.03125, %v621_v62  ;;  %v1272_v59 = vpack.c.bf16 %v872_v58, %v871_v56 }
 0x21c   : > { %1300 = vrsqrt.f32 %v637_v60  ;;  %v1116_v60 = vld [vmem:[%s1620_s7] ss:$0 sm:$0xff] }
 0x21d   : > { %v1293_v3 = vpop.eup %1292  ;;  %v638_v4 = vadd.f32 1e-05, %v630_v1  ;;  %v639_v5 = vadd.f32 1e-05, %v631_v2 }
 0x21e   : > { %v624_v7 = vpop.xlane.xlu1 %623  ;;  %v649_v10 = vmul.f32 %v1293_v3, %v1471_v57 }
 0x21f   : > { %1302 = vrsqrt.f32 %v638_v4  ;;  %v632_v11 = vmul.f32 0.03125, %v624_v7 }
 0x220   : > { %1304 = vrsqrt.f32 %v639_v5  ;;  %v663_v13 = vmul.f32 %v1114_v6, %v649_v10 }
 0x221   : > { %v1295_v14 = vpop.eup %1294  ;;  %v640_v15 = vadd.f32 1e-05, %v632_v11 }
 0x222   : > { %v1297_v16 = vpop.eup %1296  ;;  %v677_v17 = vadd.f32 %v1115_v12, %v663_v13  ;;  %v650_v20 = vmul.f32 %v1295_v14, %v1479_v0 }
 0x223   : > { %1306 = vrsqrt.f32 %v640_v15  ;;  %v651_v23 = vmul.f32 %v1297_v16, %v1476_v63 }
 0x224   : > { %1204 = vmatprep.mubr.msk.f32.mxu1 %vm412_vm0, %v677_v17  ;;  %v664_v57 = vmul.f32 %v1114_v6, %v650_v20 }
 0x225   : > { %v1299_v24 = vpop.eup %1298  ;;  %v665_v25 = vmul.f32 %v1114_v6, %v651_v23 }
 0x226   : > { %v1301_v26 = vpop.eup %1300  ;;  %v678_v27 = vadd.f32 %v1115_v12, %v664_v57  ;;  %v652_v29 = vmul.f32 %v1299_v24, %v1487_v8 }
 0x227   : > { %v679_v32 = vadd.f32 %v1115_v12, %v665_v25  ;;  %v653_v33 = vmul.f32 %v1301_v26, %v1490_v9 }
 0x228   : > { %1205 = vmatmul.mubr.msk.f32.vlgmr.msra.gmra.mrb[0].mxu1 %vm412_vm0, %v678_v27  ;;  %v666_v34 = vmul.f32 %v1114_v6, %v652_v29 }
 0x229   : > { %v1303_v35 = vpop.eup %1302  ;;  %1207 = vmatprep.mubr.msk.f32.mxu1 %vm412_vm0, %v679_v32  ;;  %v667_v0 = vmul.f32 %v1114_v6, %v653_v33 }
 0x22a   : > { %v1305_v63 = vpop.eup %1304  ;;  %v680_v36 = vadd.f32 %v1115_v12, %v666_v34  ;;  %v654_v37 = vmul.f32 %v1303_v35, %v1499_v18 }
 0x22b   : > { %v681_v38 = vadd.f32 %v1115_v12, %v667_v0  ;;  %v655_v39 = vmul.f32 %v1305_v63, %v1502_v19  ;;  %v865_v19 = vld [vmem:[%s1621_s8] sm:$0xff] }
 0x22c   : > { %1208 = vmatmul.mubr.msk.f32.gmra.mrb[2].mxu1 %vm412_vm0, %v680_v36  ;;  %v668_v8 = vmul.f32 %v1114_v6, %v654_v37  ;;  %v1260_v48 = vpack.c.bf16 %v866_v47, %v865_v19 }
 0x22d   : > { %v1307_v42 = vpop.eup %1306  ;;  %1210 = vmatprep.mubr.msk.f32.mxu1 %vm412_vm0, %v681_v38  ;;  %v669_v9 = vmul.f32 %v1114_v6, %v655_v39 }
 0x22e   : > { %v682_v43 = vadd.f32 %v1115_v12, %v668_v8  ;;  %v656_v44 = vmul.f32 %v1307_v42, %v1511_v28  ;;  %1261 = vmatprep.subr.bf16.mxu0 %v1260_v48  ;;  %1276 = vmatprep.subr.bf16.mxu1 %v1260_v48  ;;  %v867_v28 = vld [vmem:[%s1621_s8 + $0x10] sm:$0xff] }
 0x22f   : > { %v683_v45 = vadd.f32 %v1115_v12, %v669_v9  ;;  %1263 = vmatpush3.bf16.msra.mxu0 %v1260_v48  ;;  %1280 = vmatpush3.bf16.msra.mxu1 %v1260_v48  ;;  %v1264_v52 = vpack.c.bf16 %v868_v49, %v867_v28 }
 0x230   : > { %1211 = vmatmul.mubr.msk.f32.gmra.mrb[4].mxu1 %vm412_vm0, %v682_v43  ;;  %v670_v46 = vmul.f32 %v1114_v6, %v656_v44 }
 0x231   : > { %1213 = vmatprep.mubr.msk.f32.mxu1 %vm412_vm0, %v683_v45  ;;  %1265 = vmatprep.subr.bf16.mxu0 %v1264_v52 }
 0x232   : > { %v684_v18 = vadd.f32 %v1115_v12, %v670_v46  ;;  %1277 = vmatprep.subr.bf16.mxu1 %v1264_v52 }
 0x233   : > { %1267 = vmatpush3.bf16.msra.mxu0 %v1264_v52  ;;  %1281 = vmatpush3.bf16.msra.mxu1 %v1264_v52 }
 0x234   : > { %1214 = vmatmul.mubr.msk.f32.gmra.mrb[6].mxu1 %vm412_vm0, %v684_v18  ;;  %1269 = vmatprep.subr.bf16.mxu0 %v1268_v55 }
 0x235   : > { %1278 = vmatprep.subr.bf16.mxu1 %v1268_v55 }
 0x237   : > { %1271 = vmatpush3.bf16.msra.mxu0 %v1268_v55  ;;  %1282 = vmatpush3.bf16.msra.mxu1 %v1268_v55 }
 0x238   : > { %1273 = vmatprep.subr.bf16.mxu0 %v1272_v59  ;;  %1279 = vmatprep.subr.bf16.mxu1 %v1272_v59 }
 0x23b   : > { %1275 = vmatpush3.bf16.msra.mxu0 %v1272_v59  ;;  %1283 = vmatpush3.bf16.msra.mxu1 %v1272_v59 }
 0x2fb   : > { %v1206_v61 = vpop.f32.mrb[0].mxu1 }
 0x2fc   : > { %v792_v62 = vadd.f32 %v1206_v61, %v1116_v60  ;;  %v786_v1 = vpop.f32.mrb[1].mxu1  ;;  %v1125_v61 = vld [vmem:[%s1622_s9] ss:$0 sm:$0xff] }
 0x2fd   : > { %v787_v2 = vadd.f32 %v1116_v60, %v786_v1 }
 0x2fe   : > { %v834_v3 = vmul.f32 0.70710677, %v792_v62  ;;  %v826_v0 = vmul.f32 0.5, %v792_v62 }
 0x2ff   : > { %v833_v4 = vmul.f32 0.70710677, %v787_v2  ;;  %v1209_v5 = vpop.f32.mrb[2].mxu1  ;;  %v825_v34 = vmul.f32 0.5, %v787_v2 }
 0x300   : > { %1308 = verf.f32 %v834_v3  ;;  %v802_v6 = vadd.f32 %v1209_v5, %v1116_v60  ;;  %v796_v7 = vpop.f32.mrb[3].mxu1 }
 0x301   : > { %1310 = verf.f32 %v833_v4  ;;  %v797_v10 = vadd.f32 %v1116_v60, %v796_v7 }
 0x302   : > { %v836_v11 = vmul.f32 0.70710677, %v802_v6  ;;  %v828_v9 = vmul.f32 0.5, %v802_v6 }
 0x303   : > { %v835_v12 = vmul.f32 0.70710677, %v797_v10  ;;  %v1212_v13 = vpop.f32.mrb[4].mxu1  ;;  %v827_v8 = vmul.f32 0.5, %v797_v10 }
 0x304   : > { %1312 = verf.f32 %v836_v11  ;;  %v812_v14 = vadd.f32 %v1212_v13, %v1116_v60  ;;  %v806_v15 = vpop.f32.mrb[5].mxu1 }
 0x305   : > { %1314 = verf.f32 %v835_v12  ;;  %v807_v16 = vadd.f32 %v1116_v60, %v806_v15 }
 0x306   : > { %v838_v17 = vmul.f32 0.70710677, %v812_v14  ;;  %v830_v48 = vmul.f32 0.5, %v812_v14 }
 0x307   : > { %v837_v20 = vmul.f32 0.70710677, %v807_v16  ;;  %v1215_v23 = vpop.f32.mrb[6].mxu1  ;;  %v829_v19 = vmul.f32 0.5, %v807_v16 }
 0x308   : > { %1316 = verf.f32 %v838_v17  ;;  %v822_v57 = vadd.f32 %v1215_v23, %v1116_v60  ;;  %v816_v24 = vpop.f32.mrb[7].mxu1 }
 0x309   : > { %1318 = verf.f32 %v837_v20  ;;  %v817_v25 = vadd.f32 %v1116_v60, %v816_v24 }
 0x30a   : > { %v1309_v26 = vpop.eup %1308  ;;  %v840_v27 = vmul.f32 0.70710677, %v822_v57  ;;  %v832_v58 = vmul.f32 0.5, %v822_v57 }
 0x30b   : > { %v1311_v29 = vpop.eup %1310  ;;  %v850_v32 = vadd.f32 1.0, %v1309_v26  ;;  %v839_v33 = vmul.f32 0.70710677, %v817_v25  ;;  %v831_v55 = vmul.f32 0.5, %v817_v25 }
 0x30c   : > { %v849_v35 = vadd.f32 1.0, %v1311_v29  ;;  %1320 = verf.f32 %v840_v27 }
 0x30d   : > { %1322 = verf.f32 %v839_v33  ;;  %v858_v38 = vmul.f32 %v850_v32, %v826_v0 }
 0x30e   : > { %v1313_v63 = vpop.eup %1312  ;;  %v857_v36 = vmul.f32 %v849_v35, %v825_v34 }
 0x30f   : > { %v1315_v37 = vpop.eup %1314  ;;  %v852_v39 = vadd.f32 1.0, %v1313_v63 }
 0x310   : > { %v851_v42 = vadd.f32 1.0, %v1315_v37  ;;  %1232 = vmatprep.mubr.msk.f32.mxu0 %vm880_vm1, %v857_v36 }
 0x311   : > { %1233 = vmatmul.mubr.msk.f32.vlgmr.msra.gmra.mrb[8].mxu0 %vm880_vm1, %v858_v38  ;;  %v860_v46 = vmul.f32 %v852_v39, %v828_v9 }
 0x312   : > { %v1317_v43 = vpop.eup %1316  ;;  %v859_v44 = vmul.f32 %v851_v42, %v827_v8 }
 0x313   : > { %v1319_v45 = vpop.eup %1318  ;;  %v854_v18 = vadd.f32 1.0, %v1317_v43 }
 0x314   : > { %v853_v47 = vadd.f32 1.0, %v1319_v45  ;;  %1235 = vmatprep.mubr.msk.f32.mxu0 %vm880_vm1, %v859_v44 }
 0x315   : > { %1236 = vmatmul.mubr.msk.f32.gmra.mrb[10].mxu0 %vm880_vm1, %v860_v46  ;;  %v862_v53 = vmul.f32 %v854_v18, %v830_v48 }
 0x316   : > { %v1321_v28 = vpop.eup %1320  ;;  %v861_v49 = vmul.f32 %v853_v47, %v829_v19 }
 0x317   : > { %v1323_v52 = vpop.eup %1322  ;;  %v856_v54 = vadd.f32 1.0, %v1321_v28 }
 0x318   : > { %v855_v56 = vadd.f32 1.0, %v1323_v52  ;;  %1238 = vmatprep.mubr.msk.f32.mxu1 %vm880_vm1, %v861_v49 }
 0x319   : > { %1239 = vmatmul.mubr.msk.f32.vlgmr.msra.gmra.mrb[8].mxu1 %vm880_vm1, %v862_v53  ;;  %v864_v60 = vmul.f32 %v856_v54, %v832_v58 }
 0x31a   : > { %v863_v59 = vmul.f32 %v855_v56, %v831_v55 }
 0x31c   : > { %1241 = vmatprep.mubr.msk.f32.mxu1 %vm880_vm1, %v863_v59 }
 0x31d   : > { %1242 = vmatmul.mubr.msk.f32.gmra.mrb[10].mxu1 %vm880_vm1, %v864_v60 }
 0x3e4   : > { %v1234_v62 = vpop.f32.mrb[8].mxu0 }
 0x3e5   : > { %v977_v1 = vadd.f32 %v1234_v62, %v1125_v61  ;;  %v971_v2 = vpop.f32.mrb[9].mxu0 }
 0x3e6   : > { %v972_v3 = vadd.f32 %v1125_v61, %v971_v2 }
 0x3e7   : > { %v1011_v4 = vadd.f32 %v977_v1, %v1432_v21 }
 0x3e8   : > { %v1010_v5 = vadd.f32 %v972_v3, %v1434_v22  ;;  %v1237_v6 = vpop.f32.mrb[10].mxu0 }
 0x3e9   : > { %1019 = vst.msk [vmem:[%s383_s11 + $0x8] sm:$0xff] %vm412_vm0, %v1011_v4  ;;  %v987_v7 = vadd.f32 %v1237_v6, %v1125_v61  ;;  %v981_v10 = vpop.f32.mrb[11].mxu0 }
 0x3ea   : > { %1018 = vst.msk [vmem:[%s383_s11] sm:$0xff] %vm412_vm0, %v1010_v5  ;;  %v982_v11 = vadd.f32 %v1125_v61, %v981_v10 }
 0x3eb   : > { %v1013_v12 = vadd.f32 %v987_v7, %v1440_v30 }
 0x3ec   : > { %v1012_v13 = vadd.f32 %v982_v11, %v1442_v31  ;;  %v1240_v14 = vpop.f32.mrb[8].mxu1 }
 0x3ed   : > { %1021 = vst.msk [vmem:[%s383_s11 + $0x18] sm:$0xff] %vm412_vm0, %v1013_v12  ;;  %v997_v15 = vadd.f32 %v1240_v14, %v1125_v61  ;;  %v991_v16 = vpop.f32.mrb[9].mxu1 }
 0x3ee   : > { %1020 = vst.msk [vmem:[%s383_s11 + $0x10] sm:$0xff] %vm412_vm0, %v1012_v13  ;;  %v992_v21 = vadd.f32 %v1125_v61, %v991_v16 }
 0x3ef   : > { %v1015_v22 = vadd.f32 %v997_v15, %v1450_v40 }
 0x3f0   : > { %v1014_v17 = vadd.f32 %v992_v21, %v1452_v41  ;;  %v1243_v20 = vpop.f32.mrb[10].mxu1 }
 0x3f1   : > { %1023 = vst.msk [vmem:[%s383_s11 + $0x28] sm:$0xff] %vm412_vm0, %v1015_v22  ;;  %v1007_v23 = vadd.f32 %v1243_v20, %v1125_v61  ;;  %v1001_v57 = vpop.f32.mrb[11].mxu1 }
 0x3f2   : > { %1022 = vst.msk [vmem:[%s383_s11 + $0x20] sm:$0xff] %vm412_vm0, %v1014_v17  ;;  %v1002_v30 = vadd.f32 %v1125_v61, %v1001_v57 }
 0x3f3   : > { %v1017_v31 = vadd.f32 %v1007_v23, %v1460_v50 }
 0x3f4   : > { %v1016_v24 = vadd.f32 %v1002_v30, %v1462_v51 }
 0x3f5   : > { %1025 = vst.msk [vmem:[%s383_s11 + $0x38] sm:$0xff] %vm412_vm0, %v1017_v31 }
 0x3f6   : > { %1024 = vst.msk [vmem:[%s383_s11 + $0x30] sm:$0xff] %vm412_vm0, %v1016_v24 }
 0x3f7 PF: > { %s20_s13 = sadd.s32 1, %s1330_s13  }
 0x3f8   : > { %p17_p4 = scmp.ge.s32.totalorder %s20_s13, 4  }
 0x3fa   :  { %19 = sbr.rel (!%p17_p4) target bundleno = 1 (0x1), region = 93 }

// kernel: transformer_encoder_block.4
= control target key start
LH: loop header
LB: loop body
LE: loop exit
PB: predicated region body
PF: predicated region fallthrough
CT: control target
= control target key end

     0   :  { %s2823_s12 = smov 0   ;;  %s2825_s13 = smov 0   ;;  %s3535_s0 = inlined_call_operand.vmem [shape: f32[2,64,32], index: 0, kind: input, shape index: {}]   ;;  %s3536_s1 = inlined_call_operand.vmem [shape: f32[2,64,32], index: 1, kind: input, shape index: {}]   ;;  %s3537_s2 = inlined_call_operand.vmem [shape: f32[2,64,32], index: 2, kind: input, shape index: {}]   ;;  %s3538_s3 = inlined_call_operand.vmem [shape: f32[2,64,32], index: 3, kind: output, shape index: {}]  }
   0x1   :  { %s2827_s14 = smov 0   ;;  %s2829_s15 = smov 0  }
   0x2   :  { %s2831_s16 = smov 0   ;;  %s2833_s17 = smov 0  }
   0x3   :  { %s2835_s18 = smov 0  }
   0x4 LB: > { %s25_s19 = sadd.s32 1, %s2776_s15  ;;  %s28_s20 = sadd.s32 1, %s2780_s16  ;;  %s2788_s18 = sphi %s2835_s18, %s13_s18   ;;  %s2784_s17 = sphi %s2833_s17, %s3546_s17   ;;  %s2780_s16 = sphi %s2831_s16, %s3545_s16   ;;  %s2776_s15 = sphi %s2829_s15, %s3544_s15   ;;  %s2772_s14 = sphi %s2827_s14, %s3543_s14   ;;  %s2768_s13 = sphi %s2825_s13, %s3542_s13   ;;  %s2764_s12 = sphi %s2823_s12, %s3541_s12  }
   0x5   : > { %p26_p0 = scmp.ge.s32.totalorder %s25_s19, 2  ;;  %p2184_p1 = scmp.ge.s32.totalorder %s2788_s18, 1 }
   0x6   : > { %p199_p2 = scmp.lt.s32.totalorder %s2788_s18, 9  ;;  %s32_s21 = sadd.s32 1, %s2784_s17 }
   0x7   : > { %s3548_s19 = smov (%p26_p0, %s25_s19), 0  ;;  %s3550_s20 = smov (!%p26_p0, %s28_s20), %s2780_s16 }
   0x8   : > { %p200_p3 = pnand %p2184_p1, %p199_p2  ;;  %p30_p4 = scmp.ge.s32.totalorder %s3550_s20, 2 }
   0x9   : > { %s2185_s22 = sshll.u32 (!%p200_p3), %s2768_s13, 2  ;;  %p250_p6 = scmp.lt.s32.totalorder (!%p200_p3), %s2772_s14, 1 }
   0xa   : > { %s3552_s20 = smov (%p30_p4, %s3550_s20), 0  ;;  %s3554_s21 = smov (!%p30_p4, %s32_s21), %s2784_s17 }
   0xb   : > { %p34_p5 = scmp.ge.s32.totalorder %s3554_s21, 2  ;;  %203 = sbr.rel (%p200_p3) target bundleno = 1301 (0x515), region = 32 }
   0xc   : > { %p252_p7 = scmp.lt.s32.totalorder (!%p200_p3), %s2185_s22, 7  ;;  %s2188_s23 = sshll.u32 (!%p200_p3), %s2764_s12, 2 }
   0xd   : > { %s3556_s21 = smov (%p34_p5, %s3554_s21), 0  ;;  %p262_p8 = scmp.lt.s32.totalorder (!%p200_p3), %s2188_s23, 7 }
   0xe   : > { %p2197_p9 = scmp.ne.s32.totalorder (!%p200_p3), %s2764_s12, 0 }
  0x12   : > { %s3558_s14 = smov (!%p250_p6, %s2772_s14), 1  ;;  %s3560_s22 = smov (!%p252_p7, %s2185_s22), 7 }
  0x13   : > { %s2186_s24 = sshll.u32 %s3558_s14, 3  ;;  %s3562_s23 = smov (!%p262_p8, %s2188_s23), 7  ;;  %vm293_vm0 = vcmask (!%p2197_p9), 7168   ;;  %vm326_vm1 = vcmask (!%p2197_p9), 64512   ;;  %v2791_v1 = vmov (!%p2197_p9), -inf   ;;  %v2792_v2 = vmov (!%p2197_p9), 0.0  }
  0x14   : > { %s255_s25 = sadd.s32 %s2186_s24, %s3560_s22  ;;  %s265_s6 = sadd.s32 %s2186_s24, %s3562_s23  ;;  %294 = vst.msk [vmem:[#allocation3] sm:$0xff] (!%p2197_p9), %vm293_vm0, %v2791_v1  ;;  %295 = vst.msk [vmem:[#allocation3 + $0x8] sm:$0xff] (!%p2197_p9), %vm293_vm0, %v2791_v1 }
  0x15   : > { %s2187_s26 = sshll.u32 %s255_s25, 3  ;;  %s2190_s7 = sshll.u32 %s265_s6, 3  ;;  %296 = vst.msk [vmem:[#allocation3 + $0x10] sm:$0xff] (!%p2197_p9), %vm293_vm0, %v2791_v1  ;;  %297 = vst.msk [vmem:[#allocation3 + $0x18] sm:$0xff] (!%p2197_p9), %vm293_vm0, %v2791_v1 }
  0x16   : > { %s2871_s29 = scalar_lea.vmem %s3535_s0, %s2187_s26  ;;  %s2876_s5 = scalar_lea.vmem %s3538_s3, %s2187_s26  ;;  %298 = vst.msk [vmem:[#allocation3 + $0x20] sm:$0xff] (!%p2197_p9), %vm293_vm0, %v2791_v1  ;;  %299 = vst.msk [vmem:[#allocation3 + $0x28] sm:$0xff] (!%p2197_p9), %vm293_vm0, %v2791_v1 }
  0x17   : > { %s2881_s10 = scalar_lea.vmem %s3536_s1, %s2190_s7  ;;  %s2886_s14 = scalar_lea.vmem %s3537_s2, %s2190_s7  ;;  %v2890_v0 = vld [vmem:[%s2871_s29 + $0x10] sm:$0xff] (!%p2197_p9)  ;;  %300 = vst.msk [vmem:[#allocation3 + $0x30] sm:$0xff] (!%p2197_p9), %vm293_vm0, %v2791_v1  ;;  %301 = vst.msk [vmem:[#allocation3 + $0x38] sm:$0xff] (!%p2197_p9), %vm293_vm0, %v2791_v1  ;;  %v343_v3 = vld [vmem:[%s2871_s29] sm:$0xff] (!%p2197_p9) }
  0x18   : > { %292 = sbr.rel (%p2197_p9) target bundleno = 161 (0xa1), region = 36  ;;  %s2790_s22 = smov (!%p2197_p9), 120   ;;  %302 = vst.msk [vmem:[#allocation3 + $0x40] sm:$0xff] (!%p2197_p9), %vm293_vm0, %v2791_v1  ;;  %303 = vst.msk [vmem:[#allocation3 + $0x48] sm:$0xff] (!%p2197_p9), %vm293_vm0, %v2791_v1  ;;  %v346_v4 = vld [vmem:[%s2871_s29 + $0x18] sm:$0xff] (!%p2197_p9)  ;;  %v344_v5 = vld [vmem:[%s2871_s29 + $0x8] sm:$0xff] (!%p2197_p9) }
  0x19   : > { %355 = vrot.lane.b32.xlu1 (!%p2197_p9), %v2890_v0, %s2790_s22  ;;  %304 = vst.msk [vmem:[#allocation3 + $0x50] sm:$0xff] (!%p2197_p9), %vm293_vm0, %v2791_v1  ;;  %305 = vst.msk [vmem:[#allocation3 + $0x58] sm:$0xff] (!%p2197_p9), %vm293_vm0, %v2791_v1  ;;  %351 = vrot.lane.b32.xlu0 (!%p2197_p9), %v343_v3, %s2790_s22  ;;  %s2793_s23 = smov (!%p2197_p9), 112   ;;  %s2794_s24 = smov (!%p2197_p9), 104  }
  0x1a   : > { %306 = vst.msk [vmem:[#allocation3 + $0x60] sm:$0xff] (!%p2197_p9), %vm293_vm0, %v2791_v1  ;;  %307 = vst.msk [vmem:[#allocation3 + $0x68] sm:$0xff] (!%p2197_p9), %vm293_vm0, %v2791_v1 }
  0x1b   : > { %308 = vst.msk [vmem:[#allocation3 + $0x70] sm:$0xff] (!%p2197_p9), %vm293_vm0, %v2791_v1  ;;  %309 = vst.msk [vmem:[#allocation3 + $0x78] sm:$0xff] (!%p2197_p9), %vm293_vm0, %v2791_v1 }
  0x1c   : > { %310 = vst.msk [vmem:[#allocation4] sm:$0xff] (!%p2197_p9), %vm293_vm0, %v2792_v2  ;;  %311 = vst.msk [vmem:[#allocation4 + $0x8] sm:$0xff] (!%p2197_p9), %vm293_vm0, %v2792_v2 }
  0x1d   : > { %312 = vst.msk [vmem:[#allocation4 + $0x10] sm:$0xff] (!%p2197_p9), %vm293_vm0, %v2792_v2  ;;  %313 = vst.msk [vmem:[#allocation4 + $0x18] sm:$0xff] (!%p2197_p9), %vm293_vm0, %v2792_v2  ;;  %357 = vrot.lane.b32.xlu1 (!%p2197_p9), %v346_v4, %s2790_s22  ;;  %353 = vrot.lane.b32.xlu0 (!%p2197_p9), %v344_v5, %s2790_s22 }
  0x1e   : > { %314 = vst.msk [vmem:[#allocation4 + $0x20] sm:$0xff] (!%p2197_p9), %vm293_vm0, %v2792_v2  ;;  %315 = vst.msk [vmem:[#allocation4 + $0x28] sm:$0xff] (!%p2197_p9), %vm293_vm0, %v2792_v2 }
  0x1f   : > { %316 = vst.msk [vmem:[#allocation4 + $0x30] sm:$0xff] %vm293_vm0, %v2792_v2  ;;  %317 = vst.msk [vmem:[#allocation4 + $0x38] sm:$0xff] %vm293_vm0, %v2792_v2 }
  0x20   : > { %318 = vst.msk [vmem:[#allocation4 + $0x40] sm:$0xff] %vm293_vm0, %v2792_v2  ;;  %319 = vst.msk [vmem:[#allocation4 + $0x48] sm:$0xff] %vm293_vm0, %v2792_v2 }
  0x21   : > { %320 = vst.msk [vmem:[#allocation4 + $0x50] sm:$0xff] %vm293_vm0, %v2792_v2  ;;  %321 = vst.msk [vmem:[#allocation4 + $0x58] sm:$0xff] %vm293_vm0, %v2792_v2  ;;  %365 = vrot.lane.b32.xlu1 %v344_v5, %s2793_s23  ;;  %363 = vrot.lane.b32.xlu0 %v343_v3, %s2793_s23 }
  0x22   : > { %322 = vst.msk [vmem:[#allocation4 + $0x60] sm:$0xff] %vm293_vm0, %v2792_v2  ;;  %323 = vst.msk [vmem:[#allocation4 + $0x68] sm:$0xff] %vm293_vm0, %v2792_v2 }
  0x23   : > { %324 = vst.msk [vmem:[#allocation4 + $0x70] sm:$0xff] %vm293_vm0, %v2792_v2  ;;  %325 = vst.msk [vmem:[#allocation4 + $0x78] sm:$0xff] %vm293_vm0, %v2792_v2 }
  0x24   : > { %327 = vst.msk [vmem:[#allocation5] sm:$0xff] %vm326_vm1, %v2792_v2  ;;  %328 = vst.msk [vmem:[#allocation5 + $0x8] sm:$0xff] %vm326_vm1, %v2792_v2 }
  0x25   : > { %329 = vst.msk [vmem:[#allocation5 + $0x10] sm:$0xff] %vm326_vm1, %v2792_v2  ;;  %330 = vst.msk [vmem:[#allocation5 + $0x18] sm:$0xff] %vm326_vm1, %v2792_v2  ;;  %369 = vrot.lane.b32.xlu1 %v346_v4, %s2793_s23  ;;  %367 = vrot.lane.b32.xlu0 %v2890_v0, %s2793_s23 }
  0x26   : > { %331 = vst.msk [vmem:[#allocation5 + $0x20] sm:$0xff] %vm326_vm1, %v2792_v2  ;;  %332 = vst.msk [vmem:[#allocation5 + $0x28] sm:$0xff] %vm326_vm1, %v2792_v2 }
  0x27   : > { %333 = vst.msk [vmem:[#allocation5 + $0x30] sm:$0xff] %vm326_vm1, %v2792_v2  ;;  %334 = vst.msk [vmem:[#allocation5 + $0x38] sm:$0xff] %vm326_vm1, %v2792_v2 }
  0x28   : > { %335 = vst.msk [vmem:[#allocation5 + $0x40] sm:$0xff] %vm326_vm1, %v2792_v2  ;;  %336 = vst.msk [vmem:[#allocation5 + $0x48] sm:$0xff] %vm326_vm1, %v2792_v2 }
  0x29   : > { %337 = vst.msk [vmem:[#allocation5 + $0x50] sm:$0xff] %vm326_vm1, %v2792_v2  ;;  %338 = vst.msk [vmem:[#allocation5 + $0x58] sm:$0xff] %vm326_vm1, %v2792_v2  ;;  %377 = vrot.lane.b32.xlu1 %v344_v5, %s2794_s24  ;;  %375 = vrot.lane.b32.xlu0 %v343_v3, %s2794_s24 }
  0x2a   : > { %339 = vst.msk [vmem:[#allocation5 + $0x60] sm:$0xff] %vm326_vm1, %v2792_v2  ;;  %340 = vst.msk [vmem:[#allocation5 + $0x68] sm:$0xff] %vm326_vm1, %v2792_v2 }
  0x2b   : > { %341 = vst.msk [vmem:[#allocation5 + $0x70] sm:$0xff] %vm326_vm1, %v2792_v2  ;;  %342 = vst.msk [vmem:[#allocation5 + $0x78] sm:$0xff] %vm326_vm1, %v2792_v2 }
  0x2c   : > { %389 = vst.msk [vmem:[#allocation2 + $0x10] sm:$0xff] %vm326_vm1, %v2890_v0  ;;  %387 = vst.msk [vmem:[#allocation2] sm:$0xff] %vm326_vm1, %v343_v3 }
  0x2d   : > { %390 = vst.msk [vmem:[#allocation2 + $0x18] sm:$0xff] %vm326_vm1, %v346_v4  ;;  %388 = vst.msk [vmem:[#allocation2 + $0x8] sm:$0xff] %vm326_vm1, %v344_v5  ;;  %381 = vrot.lane.b32.xlu1 %v346_v4, %s2794_s24  ;;  %379 = vrot.lane.b32.xlu0 %v2890_v0, %s2794_s24 }
  0x8b   : > { %v356_v6 = vpop.permute.xlu1 %355  ;;  %v352_v7 = vpop.permute.xlu0 %351 }
  0x8c   : > { %393 = vst.msk [vmem:[#allocation2 + $0x30] sm:$0xff] %vm326_vm1, %v356_v6  ;;  %391 = vst.msk [vmem:[#allocation2 + $0x20] sm:$0xff] %vm326_vm1, %v352_v7 }
  0x8f   : > { %v358_v8 = vpop.permute.xlu1 %357  ;;  %v354_v9 = vpop.permute.xlu0 %353 }
  0x90   : > { %394 = vst.msk [vmem:[#allocation2 + $0x38] sm:$0xff] %vm326_vm1, %v358_v8  ;;  %392 = vst.msk [vmem:[#allocation2 + $0x28] sm:$0xff] %vm326_vm1, %v354_v9 }
  0x93   : > { %v366_v10 = vpop.permute.xlu1 %365  ;;  %v364_v11 = vpop.permute.xlu0 %363 }
  0x94   : > { %396 = vst.msk [vmem:[#allocation2 + $0x48] sm:$0xff] %vm326_vm1, %v366_v10  ;;  %395 = vst.msk [vmem:[#allocation2 + $0x40] sm:$0xff] %vm326_vm1, %v364_v11 }
  0x97   : > { %v370_v12 = vpop.permute.xlu1 %369  ;;  %v368_v13 = vpop.permute.xlu0 %367 }
  0x98   : > { %398 = vst.msk [vmem:[#allocation2 + $0x58] sm:$0xff] %vm326_vm1, %v370_v12  ;;  %397 = vst.msk [vmem:[#allocation2 + $0x50] sm:$0xff] %vm326_vm1, %v368_v13 }
  0x9b   : > { %v378_v14 = vpop.permute.xlu1 %377  ;;  %v376_v15 = vpop.permute.xlu0 %375 }
  0x9c   : > { %400 = vst.msk [vmem:[#allocation2 + $0x68] sm:$0xff] %vm326_vm1, %v378_v14  ;;  %399 = vst.msk [vmem:[#allocation2 + $0x60] sm:$0xff] %vm326_vm1, %v376_v15 }
  0x9f   : > { %v382_v16 = vpop.permute.xlu1 %381  ;;  %v380_v17 = vpop.permute.xlu0 %379 }
  0xa0   : > { %402 = vst.msk [vmem:[#allocation2 + $0x78] sm:$0xff] %vm326_vm1, %v382_v16  ;;  %401 = vst.msk [vmem:[#allocation2 + $0x70] sm:$0xff] %vm326_vm1, %v380_v17 }
  0xa1 PF: > { %v403_v18 = vld [vmem:[%s2881_s10] sm:$0xff]  ;;  %v404_v19 = vld [vmem:[%s2881_s10 + $0x8] sm:$0xff]  ;;  %v405_v20 = vld [vmem:[%s2881_s10 + $0x10] sm:$0xff]  ;;  %vm495_vm2 = vcmask 64512   ;;  %s2795_s25 = smov 112   ;;  %s2796_s26 = smov 120  }
  0xa2   : > { %v2584_v21 = vpack.i.bf16 %v404_v19, %v403_v18  ;;  %v406_v22 = vld [vmem:[%s2881_s10 + $0x18] sm:$0xff]  ;;  %v2425_v23 = vpack.c.bf16 %v404_v19, %v403_v18  ;;  %vm2973_vm3 = vmpackc.low %vm495_vm2, %vm495_vm2  ;;  %v479_v25 = vld [vmem:[#allocation2] sm:$0xff]  ;;  %s2797_s27 = smov 104   ;;  %vm932_vm4 = vcmask 261120   ;;  %v2798_v11 = vmov 0   ;;  %p2246_p10 = scmp.ne.s32.totalorder %s2764_s12, 1 }
  0xa3   : > { %v2431_v26 = vpack.c.bf16 %v406_v22, %v405_v20  ;;  %2321 = vmatprep.mubr.msk.f32.mxu0 %vm495_vm2, %v479_v25  ;;  %v2579_v27 = vpack.i.bf16 %v406_v22, %v405_v20  ;;  %v483_v28 = vld [vmem:[#allocation2 + $0x20] sm:$0xff]  ;;  %v480_v29 = vld [vmem:[#allocation2 + $0x8] sm:$0xff]  ;;  %v481_v30 = vld [vmem:[#allocation2 + $0x10] sm:$0xff]  ;;  %2604 = vset.pattern.permute.xlu1 %v2798_v11  ;;  %vm1269_vm5 = vcmask 7168   ;;  %s2800_s12 = smov (!%p2246_p10), 8   ;;  %s2801_s28 = smov (!%p2246_p10), 16  }
  0xa4   : > { %2585 = vrot.lane.b32.xlu1 %v2584_v21, %s2795_s25  ;;  %2575 = vrot.lane.b32.xlu0 %v2584_v21, %s2796_s26  ;;  %v482_v31 = vld [vmem:[#allocation2 + $0x18] sm:$0xff]  ;;  %v487_v32 = vld [vmem:[#allocation2 + $0x40] sm:$0xff]  ;;  %v484_v56 = vld [vmem:[#allocation2 + $0x28] sm:$0xff]  ;;  %s2802_s29 = smov (!%p2246_p10), 24   ;;  %vm2034_vm6 = vcmask (!%p2246_p10), 130048   ;;  %vm2039_vm7 = vcmask (!%p2246_p10), 195584  }
  0xa5   : > { %2427 = vmatprep.subr.msk.bf16.mxu0 %vm2973_vm3, %v2425_v23  ;;  %2335 = vmatprep.mubr.msk.f32.mxu1 %vm495_vm2, %v483_v28  ;;  %v488_v57 = vld [vmem:[#allocation2 + $0x48] sm:$0xff]  ;;  %v485_v59 = vld [vmem:[#allocation2 + $0x30] sm:$0xff]  ;;  %v486_v61 = vld [vmem:[#allocation2 + $0x38] sm:$0xff] }
  0xa6   : > { %2430 = vmatpush3.bf16.xpose.msk.msra.mxu0 %vm2973_vm3, %v2425_v23  ;;  %v489_v60 = vld [vmem:[#allocation2 + $0x50] sm:$0xff]  ;;  %v490_v62 = vld [vmem:[#allocation2 + $0x58] sm:$0xff]  ;;  %v491_v63 = vld [vmem:[#allocation2 + $0x60] sm:$0xff]  ;;  %2605 = vset.pattern.permute.xlu0 %v2798_v11 }
  0xa7   : > { %2433 = vmatprep.subr.msk.bf16.mxu0 %vm2973_vm3, %v2431_v26  ;;  %v492_v0 = vld [vmem:[#allocation2 + $0x68] sm:$0xff]  ;;  %v493_v1 = vld [vmem:[#allocation2 + $0x70] sm:$0xff]  ;;  %v494_v2 = vld [vmem:[#allocation2 + $0x78] sm:$0xff] }
  0xa8   : > { %2580 = vrot.lane.b32.xlu0 %v2579_v27, %s2796_s26  ;;  %2590 = vrot.lane.b32.xlu1 %v2584_v21, %s2797_s27 }
  0xac   : > { %2595 = vrot.lane.b32.xlu0 %v2579_v27, %s2795_s25  ;;  %2600 = vrot.lane.b32.xlu1 %v2579_v27, %s2797_s27 }
  0xae   : > { %2436 = vmatpush3.bf16.xpose.msk.msra.mxu0 %vm2973_vm3, %v2431_v26 }
  0xb5   : > { %2322 = vmatmul.mubr.msk.f32.vlgmr.msra.gmra.mrb[0].mxu0 %vm495_vm2, %v480_v29 }
  0xb6   : > { %2324 = vmatprep.mubr.msk.f32.mxu0 %vm495_vm2, %v481_v30 }
  0xb9   : > { %2325 = vmatmul.mubr.msk.f32.gmra.mrb[2].mxu0 %vm495_vm2, %v482_v31 }
  0xba   : > { %2349 = vmatprep.mubr.msk.f32.mxu0 %vm495_vm2, %v487_v32 }
 0x116   : > { %v2586_v33 = vpop.permute.xlu1 %2585  ;;  %v2576_v34 = vpop.permute.xlu0 %2575 }
 0x117   : > { %v2588_v35 = vunpack.i.h.bf16 %v2586_v33  ;;  %v2587_v36 = vunpack.i.l.bf16 %v2586_v33  ;;  %v2578_v37 = vunpack.i.h.bf16 %v2576_v34  ;;  %v2577_v38 = vunpack.i.l.bf16 %v2576_v34 }
 0x119   : > { %v2449_v39 = vpack.c.bf16 %v2588_v35, %v2587_v36  ;;  %v2437_v40 = vpack.c.bf16 %v2578_v37, %v2577_v38  ;;  %v3093_v35 = vld [vmem:[#allocation3 + $0x8] sm:$0xff] }
 0x11a   : > { %v2581_v41 = vpop.permute.xlu0 %2580  ;;  %v2591_v42 = vpop.permute.xlu1 %2590 }
 0x11b   : > { %v2583_v43 = vunpack.i.h.bf16 %v2581_v41  ;;  %v2582_v44 = vunpack.i.l.bf16 %v2581_v41  ;;  %2439 = vmatprep.subr.msk.bf16.mxu1 %vm2973_vm3, %v2437_v40  ;;  %2451 = vmatprep.subr.msk.bf16.mxu0 %vm2973_vm3, %v2449_v39  ;;  %v2593_v46 = vunpack.i.h.bf16 %v2591_v42  ;;  %v2592_v47 = vunpack.i.l.bf16 %v2591_v42  ;;  %v435_v42 = vld [vmem:[%s2886_s14] sm:$0xff] }
 0x11c   : > { %2442 = vmatpush3.bf16.xpose.msk.msra.mxu1 %vm2973_vm3, %v2437_v40  ;;  %2454 = vmatpush3.bf16.xpose.msk.msra.mxu0 %vm2973_vm3, %v2449_v39  ;;  %v3100_v39 = vld [vmem:[#allocation3] sm:$0xff]  ;;  %v3102_v40 = vld [vmem:[#allocation3 + $0x18] sm:$0xff] }
 0x11d   : > { %v2443_v45 = vpack.c.bf16 %v2583_v43, %v2582_v44  ;;  %v2461_v52 = vpack.c.bf16 %v2593_v46, %v2592_v47  ;;  %v436_v43 = vld [vmem:[%s2886_s14 + $0x8] sm:$0xff] }
 0x11e   : > { %v2596_v48 = vpop.permute.xlu0 %2595  ;;  %v2601_v53 = vpop.permute.xlu1 %2600  ;;  %v3110_v46 = vpack.i.bf16 %v436_v43, %v435_v42 }
 0x11f   : > { %v2598_v49 = vunpack.i.h.bf16 %v2596_v48  ;;  %v2597_v50 = vunpack.i.l.bf16 %v2596_v48  ;;  %2445 = vmatprep.subr.msk.bf16.mxu1 %vm2973_vm3, %v2443_v45  ;;  %v2603_v54 = vunpack.i.h.bf16 %v2601_v53  ;;  %v2602_v55 = vunpack.i.l.bf16 %v2601_v53 }
 0x121   : > { %v2455_v51 = vpack.c.bf16 %v2598_v49, %v2597_v50  ;;  %v2467_v58 = vpack.c.bf16 %v2603_v54, %v2602_v55  ;;  %v3118_v49 = vld [vmem:[#allocation3 + $0x10] sm:$0xff]  ;;  %v2473_v55 = vpack.c.bf16 %v436_v43, %v435_v42 }
 0x123   : > { %2457 = vmatprep.subr.msk.bf16.mxu0 %vm2973_vm3, %v2455_v51 }
 0x124   : > { %2448 = vmatpush3.bf16.xpose.msk.msra.mxu1 %vm2973_vm3, %v2443_v45  ;;  %2460 = vmatpush3.bf16.xpose.msk.msra.mxu0 %vm2973_vm3, %v2455_v51 }
 0x125   : > { %2463 = vmatprep.subr.msk.bf16.mxu1 %vm2973_vm3, %v2461_v52  ;;  %2474 = vmatprep.subr.bf16.mxu0 %v2473_v55 }
 0x12b   : > { %2336 = vmatmul.mubr.msk.f32.vlgmr.msra.gmra.mrb[0].mxu1 %vm495_vm2, %v484_v56  ;;  %2350 = vmatmul.mubr.msk.f32.vlgmr.msra.gmra.mrb[4].mxu0 %vm495_vm2, %v488_v57  ;;  %v437_v56 = vld [vmem:[%s2886_s14 + $0x10] sm:$0xff]  ;;  %v438_v57 = vld [vmem:[%s2886_s14 + $0x18] sm:$0xff] }
 0x12c   : > { %2466 = vmatpush3.bf16.xpose.msk.msra.mxu1 %vm2973_vm3, %v2461_v52  ;;  %2338 = vmatprep.mubr.msk.f32.mxu1 %vm495_vm2, %v485_v59  ;;  %v3141_v59 = vpack.i.bf16 %v438_v57, %v437_v56 }
 0x12d   : > { %2469 = vmatprep.subr.msk.bf16.mxu1 %vm2973_vm3, %v2467_v58  ;;  %2352 = vmatprep.mubr.msk.f32.mxu0 %vm495_vm2, %v489_v60  ;;  %v3143_v60 = vld [vmem:[#allocation3 + $0x28] sm:$0xff] }
 0x12e   : > { %2476 = vmatpush3.bf16.msra.mxu0 %v2473_v55 }
 0x12f   : > { %2339 = vmatmul.mubr.msk.f32.gmra.mrb[2].mxu1 %vm495_vm2, %v486_v61  ;;  %2353 = vmatmul.mubr.msk.f32.gmra.mrb[6].mxu0 %vm495_vm2, %v490_v62  ;;  %v3145_v61 = vld [vmem:[#allocation3 + $0x48] sm:$0xff] }
 0x130   : > { %2363 = vmatprep.mubr.msk.f32.mxu1 %vm495_vm2, %v491_v63 }
 0x134   : > { %2472 = vmatpush3.bf16.xpose.msk.msra.mxu1 %vm2973_vm3, %v2467_v58  ;;  %v2477_v58 = vpack.c.bf16 %v438_v57, %v437_v56 }
 0x136   : > { %2478 = vmatprep.subr.bf16.mxu0 %v2477_v58 }
 0x137   : > { %2480 = vmatpush3.bf16.msra.mxu0 %v2477_v58  ;;  %v3223_v58 = vld [vmem:[#allocation3 + $0x70] sm:$0xff] }
 0x13b   : > { %2364 = vmatmul.mubr.msk.f32.vlgmr.msra.gmra.mrb[4].mxu1 %vm495_vm2, %v492_v0 }
 0x13c   : > { %2366 = vmatprep.mubr.msk.f32.mxu1 %vm495_vm2, %v493_v1 }
 0x13f   : > { %2367 = vmatmul.mubr.msk.f32.gmra.mrb[6].mxu1 %vm495_vm2, %v494_v2  ;;  %v3153_v2 = vld [vmem:[#allocation3 + $0x20] sm:$0xff] }
 0x188   : > { %v3031_v3 = vpop.f32.mrb[0].mxu0 }
 0x189   : > { %v936_v4 = vsel %vm932_vm4, %v3031_v3, -inf  ;;  %v3035_v5 = vpop.f32.mrb[1].mxu0 }
 0x18a   : > { %937 = vmax.xlane.f32.xlu0 %v936_v4  ;;  %v933_v6 = vsel %vm932_vm4, %v3035_v5, -inf  ;;  %v3155_v4 = vld [vmem:[#allocation3 + $0x38] sm:$0xff] }
 0x18c   : > { %v3039_v7 = vpop.f32.mrb[2].mxu0 }
 0x18d   : > { %v942_v8 = vsel %vm932_vm4, %v3039_v7, -inf  ;;  %v3043_v9 = vpop.f32.mrb[3].mxu0 }
 0x18e   : > { %934 = vmax.xlane.f32.xlu0 %v933_v6  ;;  %943 = vmax.xlane.f32.xlu1 %v942_v8  ;;  %v939_v10 = vsel %vm932_vm4, %v3043_v9, -inf }
 0x192   : > { %940 = vmax.xlane.f32.xlu1 %v939_v10 }
 0x1fe   : > { %v3047_v12 = vpop.f32.mrb[0].mxu1  ;;  %v3049_v13 = vpop.f32.mrb[4].mxu0 }
 0x1ff   : > { %v3051_v14 = vpop.f32.mrb[5].mxu0  ;;  %v948_v15 = vsel %vm932_vm4, %v3047_v12, -inf  ;;  %v960_v16 = vsel %vm932_vm4, %v3049_v13, -inf  ;;  %v3057_v17 = vpop.f32.mrb[1].mxu1 }
 0x200   : > { %949 = vmax.xlane.f32.xlu0 %v948_v15  ;;  %961 = vmax.xlane.f32.xlu1 %v960_v16  ;;  %v945_v18 = vsel %vm932_vm4, %v3057_v17, -inf  ;;  %v957_v25 = vsel %vm932_vm4, %v3051_v14, -inf  ;;  %v3168_v15 = vld [vmem:[#allocation3 + $0x40] sm:$0xff]  ;;  %v3170_v16 = vld [vmem:[#allocation3 + $0x30] sm:$0xff] }
 0x202   : > { %v3061_v19 = vpop.f32.mrb[2].mxu1  ;;  %v3063_v20 = vpop.f32.mrb[6].mxu0 }
 0x203   : > { %v954_v21 = vsel %vm932_vm4, %v3061_v19, -inf  ;;  %v3067_v22 = vpop.f32.mrb[3].mxu1  ;;  %v3069_v23 = vpop.f32.mrb[7].mxu0  ;;  %v966_v26 = vsel %vm932_vm4, %v3063_v20, -inf }
 0x204   : > { %946 = vmax.xlane.f32.xlu1 %v945_v18  ;;  %955 = vmax.xlane.f32.xlu0 %v954_v21  ;;  %v951_v24 = vsel %vm932_vm4, %v3067_v22, -inf  ;;  %v963_v27 = vsel %vm932_vm4, %v3069_v23, -inf }
 0x208   : > { %958 = vmax.xlane.f32.xlu1 %v957_v25  ;;  %952 = vmax.xlane.f32.xlu0 %v951_v24 }
 0x20c   : > { %967 = vmax.xlane.f32.xlu1 %v966_v26  ;;  %v3183_v26 = vld [vmem:[#allocation3 + $0x58] sm:$0xff] }
 0x20e   : > { %v3079_v28 = vpop.f32.mrb[4].mxu1 }
 0x20f   : > { %v972_v29 = vsel %vm932_vm4, %v3079_v28, -inf  ;;  %v3083_v30 = vpop.f32.mrb[5].mxu1 }
 0x210   : > { %973 = vmax.xlane.f32.xlu0 %v972_v29  ;;  %964 = vmax.xlane.f32.xlu1 %v963_v27  ;;  %v969_v31 = vsel %vm932_vm4, %v3083_v30, -inf }
 0x212   : > { %v3087_v32 = vpop.f32.mrb[6].mxu1 }
 0x213   : > { %v3089_v33 = vpop.f32.mrb[7].mxu1  ;;  %v978_v38 = vsel %vm932_vm4, %v3087_v32, -inf }
 0x214   : > { %970 = vmax.xlane.f32.xlu0 %v969_v31  ;;  %v975_v34 = vsel %vm932_vm4, %v3089_v33, -inf  ;;  %v3194_v31 = vld [vmem:[#allocation3 + $0x68] sm:$0xff] }
 0x217   : > { %v938_v36 = vpop.xlane.xlu0 %937 }
 0x218   : > { %976 = vmax.xlane.f32.xlu0 %v975_v34  ;;  %v3096_v37 = vmax.f32 %v3093_v35, %v938_v36  ;;  %v3196_v34 = vld [vmem:[#allocation3 + $0x50] sm:$0xff] }
 0x21a   : > { %v998_v41 = vsub.f32 %v3093_v35, %v3096_v37  ;;  %1819 = vst.msk [vmem:[#allocation3 + $0x8] sm:$0xff] %vm1269_vm5, %v3096_v37 }
 0x21b   : > { %v935_v44 = vpop.xlane.xlu0 %934  ;;  %v944_v45 = vpop.xlane.xlu1 %943 }
 0x21c   : > { %979 = vmax.xlane.f32.xlu0 %v978_v38  ;;  %v3113_v47 = vmax.f32 %v3100_v39, %v935_v44  ;;  %v3116_v48 = vmax.f32 %v3102_v40, %v944_v45  ;;  %v3209_v44 = vld [vmem:[#allocation3 + $0x60] sm:$0xff] }
 0x21e   : > { %v997_v50 = vsub.f32 %v3100_v39, %v3113_v47  ;;  %1818 = vst.msk [vmem:[#allocation3] sm:$0xff] %vm1269_vm5, %v3113_v47  ;;  %v1000_v51 = vsub.f32 %v3102_v40, %v3116_v48  ;;  %1821 = vst.msk [vmem:[#allocation3 + $0x18] sm:$0xff] %vm1269_vm5, %v3116_v48 }
 0x21f   : > { %v941_v52 = vpop.xlane.xlu1 %940 }
 0x220   : > { %v3129_v53 = vmax.f32 %v3118_v49, %v941_v52 }
 0x221   : > { %1052 = vperm.xlu1 %2604, %v3096_v37  }
 0x222   : > { %v999_v54 = vsub.f32 %v3118_v49, %v3129_v53  ;;  %1820 = vst.msk [vmem:[#allocation3 + $0x10] sm:$0xff] %vm1269_vm5, %v3129_v53  ;;  %v1019_v49 = vmul.f32 1.442695, %v1000_v51 }
 0x225   : > { %1047 = vperm.xlu1 %2604, %v3113_v47  }
 0x229   : > { %1062 = vperm.xlu1 %2604, %v3116_v48  }
 0x22d   : > { %1057 = vperm.xlu1 %2604, %v3129_v53  }
 0x28d   : > { %v950_v62 = vpop.xlane.xlu0 %949  ;;  %v962_v63 = vpop.xlane.xlu1 %961 }
 0x28e   : > { %v3148_v0 = vmax.f32 %v3143_v60, %v950_v62  ;;  %v3151_v1 = vmax.f32 %v3145_v61, %v962_v63 }
 0x290   : > { %1823 = vst.msk [vmem:[#allocation3 + $0x28] sm:$0xff] %vm1269_vm5, %v3148_v0  ;;  %1827 = vst.msk [vmem:[#allocation3 + $0x48] sm:$0xff] %vm1269_vm5, %v3151_v1  ;;  %1072 = vperm.xlu1 %2604, %v3148_v0   ;;  %v1002_v53 = vsub.f32 %v3143_v60, %v3148_v0 }
 0x291   : > { %v947_v6 = vpop.xlane.xlu1 %946  ;;  %v956_v8 = vpop.xlane.xlu0 %955 }
 0x292   : > { %v3163_v10 = vmax.f32 %v3153_v2, %v947_v6  ;;  %v3166_v11 = vmax.f32 %v3155_v4, %v956_v8 }
 0x294   : > { %1822 = vst.msk [vmem:[#allocation3 + $0x20] sm:$0xff] %vm1269_vm5, %v3163_v10  ;;  %1067 = vperm.xlu0 %2605, %v3163_v10   ;;  %1825 = vst.msk [vmem:[#allocation3 + $0x38] sm:$0xff] %vm1269_vm5, %v3166_v11  ;;  %v1004_v48 = vsub.f32 %v3155_v4, %v3166_v11 }
 0x295   : > { %v959_v18 = vpop.xlane.xlu1 %958  ;;  %v953_v21 = vpop.xlane.xlu0 %952 }
 0x296   : > { %v3178_v24 = vmax.f32 %v3168_v15, %v959_v18  ;;  %v3181_v25 = vmax.f32 %v3170_v16, %v953_v21  ;;  %v1027_v0 = vmul.f32 1.442695, %v1004_v48 }
 0x298   : > { %1826 = vst.msk [vmem:[#allocation3 + $0x40] sm:$0xff] %vm1269_vm5, %v3178_v24  ;;  %1092 = vperm.xlu0 %2605, %v3151_v1   ;;  %1087 = vperm.xlu1 %2604, %v3178_v24   ;;  %1824 = vst.msk [vmem:[#allocation3 + $0x30] sm:$0xff] %vm1269_vm5, %v3181_v25  ;;  %v1003_v37 = vsub.f32 %v3170_v16, %v3181_v25 }
 0x299   : > { %v968_v27 = vpop.xlane.xlu1 %967 }
 0x29a   : > { %v3192_v29 = vmax.f32 %v3183_v26, %v968_v27  ;;  %v3234_v27 = vld [vmem:[#allocation3 + $0x78] sm:$0xff] }
 0x29c   : > { %1829 = vst.msk [vmem:[#allocation3 + $0x58] sm:$0xff] %vm1269_vm5, %v3192_v29  ;;  %2607 = vrot.lane.b32.xlu0 %v3110_v46, %s2796_s26  ;;  %1082 = vperm.xlu1 %2604, %v3166_v11  }
 0x29d   : > { %v974_v36 = vpop.xlane.xlu0 %973  ;;  %v965_v38 = vpop.xlane.xlu1 %964 }
 0x29e   : > { %v3204_v42 = vmax.f32 %v3194_v31, %v974_v36  ;;  %v3207_v43 = vmax.f32 %v3196_v34, %v965_v38  ;;  %v1015_v38 = vmul.f32 1.442695, %v998_v41 }
 0x2a0   : > { %v1010_v45 = vsub.f32 %v3194_v31, %v3204_v42  ;;  %1831 = vst.msk [vmem:[#allocation3 + $0x68] sm:$0xff] %vm1269_vm5, %v3204_v42  ;;  %1828 = vst.msk [vmem:[#allocation3 + $0x50] sm:$0xff] %vm1269_vm5, %v3207_v43  ;;  %1077 = vperm.xlu1 %2604, %v3181_v25   ;;  %1097 = vperm.xlu0 %2605, %v3207_v43  }
 0x2a1   : > { %v971_v52 = vpop.xlane.xlu0 %970  ;;  %v1053_v55 = vpop.permute.xlu1 %1052 }
 0x2a2   : > { %v3220_v56 = vmax.f32 %v3209_v44, %v971_v52  ;;  %v1126_v57 = vsub.f32 %v3031_v3, %v1053_v55  ;;  %v1001_v52 = vsub.f32 %v3153_v2, %v3163_v10 }
 0x2a4   : > { %v1009_v62 = vsub.f32 %v3209_v44, %v3220_v56  ;;  %1830 = vst.msk [vmem:[#allocation3 + $0x60] sm:$0xff] %vm1269_vm5, %v3220_v56  ;;  %1112 = vperm.xlu1 %2604, %v3204_v42   ;;  %v1143_v21 = vmul.f32 1.442695, %v1126_v57  ;;  %v1021_v35 = vmul.f32 1.442695, %v1001_v52 }
 0x2a5   : > { %v977_v63 = vpop.xlane.xlu0 %976  ;;  %v1048_v6 = vpop.permute.xlu1 %1047 }
 0x2a6   : > { %v3231_v8 = vmax.f32 %v3223_v58, %v977_v63  ;;  %v1125_v18 = vsub.f32 %v3035_v5, %v1048_v6 }
 0x2a8   : > { %v1011_v3 = vsub.f32 %v3223_v58, %v3231_v8  ;;  %1832 = vst.msk [vmem:[#allocation3 + $0x70] sm:$0xff] %vm1269_vm5, %v3231_v8  ;;  %v1141_v36 = vmul.f32 1.442695, %v1125_v18  ;;  %1107 = vperm.xlu1 %2604, %v3220_v56  }
 0x2a9   : > { %v980_v5 = vpop.xlane.xlu0 %979  ;;  %v1063_v55 = vpop.permute.xlu1 %1062 }
 0x2aa   : > { %2636 = vpow2.f32 %v1141_v36  ;;  %v3247_v57 = vmax.f32 %v3234_v27, %v980_v5  ;;  %v1128_v63 = vsub.f32 %v3039_v7, %v1063_v55  ;;  %v1013_v7 = vmul.f32 1.442695, %v997_v50 }
 0x2ab   : > { %2638 = vpow2.f32 %v1143_v21  ;;  %v1005_v21 = vsub.f32 %v3168_v15, %v3178_v24  ;;  %v1025_v36 = vmul.f32 1.442695, %v1003_v37  ;;  %v1007_v50 = vsub.f32 %v3196_v34, %v3207_v43 }
 0x2ac   : > { %v1012_v6 = vsub.f32 %v3234_v27, %v3247_v57  ;;  %1833 = vst.msk [vmem:[#allocation3 + $0x78] sm:$0xff] %vm1269_vm5, %v3247_v57  ;;  %1117 = vperm.xlu1 %2604, %v3231_v8   ;;  %1122 = vperm.xlu0 %2605, %v3247_v57   ;;  %2640 = vpow2.f32 %v1015_v38  ;;  %v1147_v10 = vmul.f32 1.442695, %v1128_v63  ;;  %v1008_v43 = vsub.f32 %v3183_v26, %v3192_v29 }
 0x2ad   : > { %v1058_v41 = vpop.permute.xlu1 %1057  ;;  %2642 = vpow2.f32 %v1021_v35  ;;  %v1029_v47 = vmul.f32 1.442695, %v1005_v21  ;;  %v1037_v63 = vmul.f32 1.442695, %v1009_v62 }
 0x2ae   : > { %v1127_v2 = vsub.f32 %v3043_v9, %v1058_v41  ;;  %v1017_v9 = vmul.f32 1.442695, %v999_v54  ;;  %v1033_v54 = vmul.f32 1.442695, %v1007_v50  ;;  %v1039_v41 = vmul.f32 1.442695, %v1010_v45 }
 0x2b0   : > { %v1145_v18 = vmul.f32 1.442695, %v1127_v2  ;;  %1102 = vperm.xlu1 %2604, %v3192_v29   ;;  %2617 = vrot.lane.b32.xlu0 %v3110_v46, %s2795_s25 }
 0x2b2   : > { %2644 = vpow2.f32 %v1145_v18 }
 0x2b3   : > { %2646 = vpow2.f32 %v1147_v10 }
 0x2b4   : > { %v2637_v16 = vpop.eup %2636  ;;  %2648 = vpow2.f32 %v1013_v7  ;;  %2612 = vrot.lane.b32.xlu1 %v3141_v59, %s2796_s26  ;;  %2627 = vrot.lane.b32.xlu0 %v3141_v59, %s2795_s25 }
 0x2b5   : > { %v2639_v39 = vpop.eup %2638  ;;  %2650 = vpow2.f32 %v1025_v36  ;;  %2377 = vmatprep.mubr.msk.f32.mxu0 %vm932_vm4, %v2637_v16  ;;  %v1205_v55 = vsel %vm932_vm4, %v2637_v16, 0.0 }
 0x2b6   : > { %2378 = vmatmul.mubr.msk.f32.vlgmr.msra.gmra.mrb[8].mxu0 %vm932_vm4, %v2639_v39  ;;  %v3278_v15 = vpop.eup %2640  ;;  %2652 = vpow2.f32 %v1017_v9  ;;  %v1208_v35 = vsel %vm932_vm4, %v2639_v39, 0.0 }
 0x2b7   : > { %2654 = vpow2.f32 %v1029_v47  ;;  %v3288_v24 = vpop.eup %2642 }
 0x2b8   : > { %2622 = vrot.lane.b32.xlu1 %v3110_v46, %s2797_s27  ;;  %1697 = vperm.xlu0 %2605, %v3278_v15   ;;  %2656 = vpow2.f32 %v1019_v49  ;;  %v1023_v46 = vmul.f32 1.442695, %v1002_v53 }
 0x2b9   : > { %2658 = vpow2.f32 %v1033_v54 }
 0x2ba   : > { %2660 = vpow2.f32 %v1023_v46 }
 0x2bb   : > { %2662 = vpow2.f32 %v1027_v0 }
 0x2bc   : > { %v3290_v25 = vpop.eup %2644  ;;  %2632 = vrot.lane.b32.xlu1 %v3141_v59, %s2797_s27  ;;  %1712 = vperm.xlu0 %2605, %v3288_v24   ;;  %v1006_v59 = vsub.f32 %v3145_v61, %v3151_v1  ;;  %v1035_v61 = vmul.f32 1.442695, %v1008_v43 }
 0x2bd   : > { %v3295_v40 = vpop.eup %2646  ;;  %2380 = vmatprep.mubr.msk.f32.mxu0 %vm932_vm4, %v3290_v25 }
 0x2be   : > { %v3301_v51 = vpop.eup %2648  ;;  %2381 = vmatmul.mubr.msk.f32.gmra.mrb[10].mxu0 %vm932_vm4, %v3295_v40  ;;  %v1031_v34 = vmul.f32 1.442695, %v1006_v59 }
 0x2bf   : > { %v3305_v60 = vpop.eup %2650 }
 0x2c0   : > { %1692 = vperm.xlu1 %2604, %v3301_v51   ;;  %1722 = vperm.xlu0 %2605, %v3305_v60   ;;  %v3311_v4 = vpop.eup %2652  ;;  %2664 = vpow2.f32 %v1031_v34 }
 0x2c1   : > { %v3313_v11 = vpop.eup %2654  ;;  %2666 = vpow2.f32 %v1035_v61 }
 0x2c2   : > { %v3319_v38 = vpop.eup %2656  ;;  %2668 = vpow2.f32 %v1037_v63 }
 0x2c3   : > { %v3321_v52 = vpop.eup %2658  ;;  %2670 = vpow2.f32 %v1039_v41 }
 0x2c4   : > { %1702 = vperm.xlu1 %2604, %v3311_v4   ;;  %1732 = vperm.xlu0 %2605, %v3313_v11   ;;  %v3325_v1 = vpop.eup %2660 }
 0x2c5   : > { %v3328_v5 = vpop.eup %2662 }
 0x2c8   : > { %1707 = vperm.xlu1 %2604, %v3319_v38   ;;  %1742 = vperm.xlu0 %2605, %v3321_v52  }
 0x2ca   : > { %v3331_v26 = vpop.eup %2664 }
 0x2cb   : > { %v3334_v29 = vpop.eup %2666 }
 0x2cc   : > { %1717 = vperm.xlu1 %2604, %v3325_v1   ;;  %v3342_v37 = vpop.eup %2668 }
 0x2cd   : > { %v3348_v2 = vpop.eup %2670 }
 0x2d0   : > { %1727 = vperm.xlu1 %2604, %v3328_v5  }
 0x2d4   : > { %1737 = vperm.xlu1 %2604, %v3331_v26  }
 0x2d8   : > { %1747 = vperm.xlu1 %2604, %v3334_v29  }
 0x2e7   : > { %1206 = vadd.xlane.f32.xlu0 %v1205_v55 }
 0x2fc   : > { %1209 = vadd.xlane.f32.xlu1 %v1208_v35 }
 0x2fd   : > { %1752 = vperm.xlu0 %2605, %v3342_v37  }
 0x30d   : > { %1757 = vperm.xlu1 %2604, %v3348_v2  }
 0x30f   : > { %v1073_v10 = vpop.permute.xlu1 %1072 }
 0x310   : > { %v1130_v44 = vsub.f32 %v3047_v12, %v1073_v10  ;;  %v1214_v12 = vsel %vm932_vm4, %v3295_v40, 0.0 }
 0x312   : > { %v1151_v56 = vmul.f32 1.442695, %v1130_v44 }
 0x313   : > { %v1068_v62 = vpop.permute.xlu0 %1067 }
 0x314   : > { %v1129_v7 = vsub.f32 %v3057_v17, %v1068_v62  ;;  %2672 = vpow2.f32 %v1151_v56 }
 0x316   : > { %v1149_v18 = vmul.f32 1.442695, %v1129_v7 }
 0x317   : > { %v1093_v21 = vpop.permute.xlu0 %1092  ;;  %v1088_v36 = vpop.permute.xlu1 %1087 }
 0x318   : > { %2674 = vpow2.f32 %v1149_v18  ;;  %v1134_v31 = vsub.f32 %v3049_v13, %v1093_v21  ;;  %v1133_v42 = vsub.f32 %v3051_v14, %v1088_v36  ;;  %v1211_v13 = vsel %vm932_vm4, %v3290_v25, 0.0 }
 0x31a   : > { %v1159_v45 = vmul.f32 1.442695, %v1134_v31  ;;  %v1157_v16 = vmul.f32 1.442695, %v1133_v42 }
 0x31b   : > { %v2608_v9 = vpop.permute.xlu0 %2607  ;;  %v1083_v39 = vpop.permute.xlu1 %1082 }
 0x31c   : > { %2676 = vpow2.f32 %v1159_v45  ;;  %v2610_v47 = vunpack.i.h.bf16 %v2608_v9  ;;  %v2609_v50 = vunpack.i.l.bf16 %v2608_v9  ;;  %v1132_v17 = vsub.f32 %v3061_v19, %v1083_v39  ;;  %1215 = vadd.xlane.f32.xlu0 %v1214_v12 }
 0x31d   : > { %2678 = vpow2.f32 %v1157_v16 }
 0x31e   : > { %v2481_v49 = vpack.c.bf16 %v2610_v47, %v2609_v50  ;;  %v1155_v53 = vmul.f32 1.442695, %v1132_v17  ;;  %v3360_v14 = vpop.eup %2672 }
 0x31f   : > { %v1078_v54 = vpop.permute.xlu1 %1077  ;;  %v1220_v19 = vsel %vm932_vm4, %v3360_v14, 0.0  ;;  %v1098_v59 = vpop.permute.xlu0 %1097 }
 0x320   : > { %2680 = vpow2.f32 %v1155_v53  ;;  %1212 = vadd.xlane.f32.xlu0 %v1211_v13  ;;  %2482 = vmatprep.subr.bf16.mxu1 %v2481_v49  ;;  %v1131_v48 = vsub.f32 %v3067_v22, %v1078_v54  ;;  %v1135_v61 = vsub.f32 %v3069_v23, %v1098_v59 }
 0x321   : > { %2484 = vmatpush3.bf16.msra.mxu1 %v2481_v49 }
 0x322   : > { %v2675_v40 = vpop.eup %2674  ;;  %v1153_v55 = vmul.f32 1.442695, %v1131_v48  ;;  %v1161_v44 = vmul.f32 1.442695, %v1135_v61 }
 0x323   : > { %2391 = vmatprep.mubr.msk.f32.mxu1 %vm932_vm4, %v2675_v40  ;;  %v1113_v46 = vpop.permute.xlu1 %1112  ;;  %v1217_v21 = vsel %vm932_vm4, %v2675_v40, 0.0 }
 0x324   : > { %1221 = vadd.xlane.f32.xlu0 %v1220_v19  ;;  %2682 = vpow2.f32 %v1153_v55  ;;  %v1138_v56 = vsub.f32 %v3079_v28, %v1113_v46 }
 0x325   : > { %2684 = vpow2.f32 %v1161_v44 }
 0x326   : > { %v3366_v0 = vpop.eup %2676  ;;  %v1167_v42 = vmul.f32 1.442695, %v1138_v56 }
 0x327   : > { %v2679_v25 = vpop.eup %2678  ;;  %v1108_v34 = vpop.permute.xlu1 %1107  ;;  %v1232_v43 = vsel %vm932_vm4, %v3366_v0, 0.0 }
 0x328   : > { %2405 = vmatprep.mubr.msk.f32.mxu0 %vm932_vm4, %v2679_v25  ;;  %1233 = vadd.xlane.f32.xlu0 %v1232_v43  ;;  %v1137_v35 = vsub.f32 %v3083_v30, %v1108_v34 }
 0x32a   : > { %v3372_v63 = vpop.eup %2680  ;;  %v1165_v62 = vmul.f32 1.442695, %v1137_v35 }
 0x32b   : > { %v1123_v22 = vpop.permute.xlu0 %1122  ;;  %v1118_v41 = vpop.permute.xlu1 %1117  ;;  %v1226_v10 = vsel %vm932_vm4, %v3372_v63, 0.0 }
 0x32c   : > { %1227 = vadd.xlane.f32.xlu0 %v1226_v10  ;;  %v1139_v23 = vsub.f32 %v3089_v33, %v1118_v41  ;;  %v1140_v45 = vsub.f32 %v3087_v32, %v1123_v22  ;;  %2686 = vpow2.f32 %v1165_v62  ;;  %v1229_v33 = vsel %vm932_vm4, %v2679_v25, 0.0 }
 0x32e   : > { %v1169_v28 = vmul.f32 1.442695, %v1139_v23  ;;  %v1171_v53 = vmul.f32 1.442695, %v1140_v45  ;;  %v1043_v23 = vmul.f32 1.442695, %v1012_v6 }
 0x32f   : > { %v2618_v7 = vpop.permute.xlu0 %2617  ;;  %v1103_v18 = vpop.permute.xlu1 %1102 }
 0x330   : > { %v2620_v36 = vunpack.i.h.bf16 %v2618_v7  ;;  %v2619_v30 = vunpack.i.l.bf16 %v2618_v7  ;;  %v1136_v31 = vsub.f32 %v3063_v20, %v1103_v18  ;;  %v2683_v20 = vpop.eup %2682  ;;  %v1041_v7 = vmul.f32 1.442695, %v1011_v3  ;;  %v1173_v3 = vld [vmem:[#allocation4] sm:$0xff] }
 0x331   : > { %1218 = vadd.xlane.f32.xlu1 %v1217_v21  ;;  %v1223_v19 = vsel %vm932_vm4, %v2683_v20, 0.0  ;;  %v2685_v48 = vpop.eup %2684  ;;  %v1189_v45 = vmul.f32 %v3301_v51, %v1173_v3 }
 0x332   : > { %v2489_v16 = vpack.c.bf16 %v2620_v36, %v2619_v30  ;;  %v1163_v9 = vmul.f32 1.442695, %v1136_v31  ;;  %v1235_v55 = vsel %vm932_vm4, %v2685_v48, 0.0 }
 0x333   : > { %v2628_v39 = vpop.permute.xlu0 %2627  ;;  %v2613_v12 = vpop.permute.xlu1 %2612 }
 0x334   : > { %2688 = vpow2.f32 %v1163_v9  ;;  %v2630_v47 = vunpack.i.h.bf16 %v2628_v39  ;;  %v2629_v50 = vunpack.i.l.bf16 %v2628_v39  ;;  %v2615_v17 = vunpack.i.h.bf16 %v2613_v12  ;;  %2490 = vmatprep.subr.bf16.mxu0 %v2489_v16 }
 0x335   : > { %v2614_v49 = vunpack.i.l.bf16 %v2613_v12  ;;  %2492 = vmatpush3.bf16.msra.mxu0 %v2489_v16  ;;  %1230 = vadd.xlane.f32.xlu1 %v1229_v33  ;;  %2690 = vpow2.f32 %v1167_v42  ;;  %v1675_v12 = vld [vmem:[#allocation5 + $0x8] sm:$0xff] }
 0x336   : > { %v2493_v32 = vpack.c.bf16 %v2630_v47, %v2629_v50  ;;  %2692 = vpow2.f32 %v1169_v28  ;;  %v2687_v61 = vpop.eup %2686  ;;  %v1174_v47 = vld [vmem:[#allocation4 + $0x8] sm:$0xff]  ;;  %v1674_v50 = vld [vmem:[#allocation5] sm:$0xff] }
 0x337   : > { %v2485_v54 = vpack.c.bf16 %v2615_v17, %v2614_v49  ;;  %v2623_v13 = vpop.permute.xlu1 %2622  ;;  %2694 = vpow2.f32 %v1171_v53  ;;  %v1698_v21 = vpop.permute.xlu0 %1697  ;;  %v1190_v49 = vmul.f32 %v3278_v15, %v1174_v47 }
 0x338   : > { %v2625_v40 = vunpack.i.h.bf16 %v2623_v13  ;;  %v2624_v46 = vunpack.i.l.bf16 %v2623_v13  ;;  %2494 = vmatprep.subr.bf16.mxu0 %v2493_v32  ;;  %2696 = vpow2.f32 %v1043_v23  ;;  %v1771_v17 = vmul.f32 %v1698_v21, %v1675_v12  ;;  %v1182_v23 = vld [vmem:[#allocation4 + $0x48] sm:$0xff]  ;;  %v1181_v12 = vld [vmem:[#allocation4 + $0x40] sm:$0xff] }
 0x339   : > { %2486 = vmatprep.subr.bf16.mxu1 %v2485_v54  ;;  %2496 = vmatpush3.bf16.msra.mxu0 %v2493_v32  ;;  %2698 = vpow2.f32 %v1041_v7 }
 0x33a   : > { %v2497_v59 = vpack.c.bf16 %v2625_v40, %v2624_v46  ;;  %1224 = vadd.xlane.f32.xlu1 %v1223_v19  ;;  %2488 = vmatpush3.bf16.msra.mxu1 %v2485_v54  ;;  %v1677_v46 = vld [vmem:[#allocation5 + $0x18] sm:$0xff]  ;;  %v1676_v19 = vld [vmem:[#allocation5 + $0x10] sm:$0xff] }
 0x33b   : > { %v2633_v25 = vpop.permute.xlu1 %2632  ;;  %v3414_v30 = vpop.permute.xlu0 %1712 }
 0x33c   : > { %v2635_v34 = vunpack.i.h.bf16 %v2633_v25  ;;  %v2634_v43 = vunpack.i.l.bf16 %v2633_v25  ;;  %2406 = vmatmul.mubr.msk.f32.vlgmr.msra.gmra.mrb[12].mxu0 %vm932_vm4, %v3366_v0  ;;  %2498 = vmatprep.subr.bf16.mxu1 %v2497_v59 }
 0x33d   : > { %2392 = vmatmul.mubr.msk.f32.vlgmr.msra.gmra.mrb[8].mxu1 %vm932_vm4, %v3360_v14  ;;  %2408 = vmatprep.mubr.msk.f32.mxu0 %vm932_vm4, %v2685_v48  ;;  %v1241_v14 = vsel %vm932_vm4, %v2687_v61, 0.0 }
 0x33e   : > { %v2689_v35 = vpop.eup %2688  ;;  %v2501_v22 = vpack.c.bf16 %v2635_v34, %v2634_v43  ;;  %1236 = vadd.xlane.f32.xlu1 %v1235_v55  ;;  %2394 = vmatprep.mubr.msk.f32.mxu1 %vm932_vm4, %v2683_v20  ;;  %v1176_v55 = vld [vmem:[#allocation4 + $0x18] sm:$0xff] }
 0x33f   : > { %2500 = vmatpush3.bf16.msra.mxu1 %v2497_v59  ;;  %v1238_v41 = vsel %vm932_vm4, %v2689_v35, 0.0  ;;  %v2691_v10 = vpop.eup %2690  ;;  %v1693_v27 = vpop.permute.xlu1 %1692 }
 0x340   : > { %2409 = vmatmul.mubr.msk.f32.gmra.mrb[14].mxu0 %vm932_vm4, %v2689_v35  ;;  %1239 = vadd.xlane.f32.xlu0 %v1238_v41  ;;  %v2693_v0 = vpop.eup %2692  ;;  %v1244_v44 = vsel %vm932_vm4, %v2691_v10, 0.0  ;;  %v3417_v57 = vpop.permute.xlu0 %1722  ;;  %v1770_v20 = vmul.f32 %v1693_v27, %v1674_v50  ;;  %v1192_v35 = vmul.f32 %v3319_v38, %v1176_v55  ;;  %v1175_v41 = vld [vmem:[#allocation4 + $0x10] sm:$0xff]  ;;  %v1198_v38 = vmul.f32 %v3331_v26, %v1182_v23  ;;  %v1180_v27 = vld [vmem:[#allocation4 + $0x38] sm:$0xff] }
 0x341   : > { %2395 = vmatmul.mubr.msk.f32.gmra.mrb[10].mxu1 %vm932_vm4, %v3372_v63  ;;  %2502 = vmatprep.subr.bf16.mxu1 %v2501_v22  ;;  %v2695_v56 = vpop.eup %2694  ;;  %v1247_v62 = vsel %vm932_vm4, %v2693_v0, 0.0  ;;  %v1197_v26 = vmul.f32 %v3313_v11, %v1181_v12 }
 0x342   : > { %1242 = vadd.xlane.f32.xlu1 %v1241_v14  ;;  %2419 = vmatprep.mubr.msk.f32.mxu1 %vm932_vm4, %v2687_v61  ;;  %v1250_v63 = vsel %vm932_vm4, %v2695_v56, 0.0  ;;  %v3409_v18 = vpop.eup %2696  ;;  %v1191_v14 = vmul.f32 %v3311_v4, %v1175_v41  ;;  %v1196_v4 = vmul.f32 %v3328_v5, %v1180_v27 }
 0x343   : > { %2504 = vmatpush3.bf16.msra.mxu1 %v2501_v22  ;;  %v3412_v36 = vpop.eup %2698  ;;  %v1703_v6 = vpop.permute.xlu1 %1702 }
 0x344   : > { %1245 = vadd.xlane.f32.xlu0 %v1244_v44  ;;  %v3419_v31 = vpop.permute.xlu0 %1732  ;;  %v1772_v59 = vmul.f32 %v1703_v6, %v1676_v19  ;;  %v1178_v44 = vld [vmem:[#allocation4 + $0x28] sm:$0xff] }
 0x345   : > { %v1186_v19 = vld [vmem:[#allocation4 + $0x68] sm:$0xff] }
 0x346   : > { %2420 = vmatmul.mubr.msk.f32.vlgmr.msra.gmra.mrb[12].mxu1 %vm932_vm4, %v2691_v10  ;;  %1248 = vadd.xlane.f32.xlu1 %v1247_v62  ;;  %v1194_v62 = vmul.f32 %v3325_v1, %v1178_v44  ;;  %v1678_v44 = vld [vmem:[#allocation5 + $0x20] sm:$0xff] }
 0x347   : > { %2422 = vmatprep.mubr.msk.f32.mxu1 %vm932_vm4, %v2693_v0  ;;  %v1708_v58 = vpop.permute.xlu1 %1707 }
 0x348   : > { %1251 = vadd.xlane.f32.xlu0 %v1250_v63  ;;  %v3421_v8 = vpop.permute.xlu0 %1742  ;;  %v1773_v48 = vmul.f32 %v1708_v58, %v1677_v46 }
 0x34a   : > { %2423 = vmatmul.mubr.msk.f32.gmra.mrb[14].mxu1 %vm932_vm4, %v2695_v56 }
 0x34b   : > { %v3423_v42 = vpop.permute.xlu1 %1717 }
 0x34f   : > { %v3427_v28 = vpop.permute.xlu1 %1727 }
 0x353   : > { %v3429_v39 = vpop.permute.xlu1 %1737 }
 0x357   : > { %1767 = vperm.xlu1 %2604, %v3409_v18   ;;  %v3431_v33 = vpop.permute.xlu1 %1747 }
 0x35e   : > { %1762 = vperm.xlu0 %2605, %v3412_v36  }
 0x374   : > { %v1207_v16 = vpop.xlane.xlu0 %1206 }
 0x375   : > { %v1253_v9 = vadd.f32 %v1207_v16, %v1189_v45  ;;  %v1177_v16 = vld [vmem:[#allocation4 + $0x20] sm:$0xff] }
 0x376   : > { %v1193_v1 = vmul.f32 %v3288_v24, %v1177_v16 }
 0x377   : > { %1270 = vst.msk [vmem:[#allocation4] sm:$0xff] %vm1269_vm5, %v1253_v9 }
 0x37c   : > { %v3439_v61 = vpop.permute.xlu0 %1752 }
 0x389   : > { %v2379_v53 = vpop.f32.mrb[8].mxu0  ;;  %v1210_v32 = vpop.xlane.xlu1 %1209 }
 0x38a   : > { %v1787_v51 = vadd.f32 %v2379_v53, %v1771_v17  ;;  %v1254_v54 = vadd.f32 %v1210_v32, %v1190_v49  ;;  %v1364_v13 = vpop.f32.mrb[9].mxu0  ;;  %v1179_v49 = vld [vmem:[#allocation4 + $0x30] sm:$0xff] }
 0x38b   : > { %v1786_v40 = vadd.f32 %v1770_v20, %v1364_v13  ;;  %v1195_v5 = vmul.f32 %v3305_v60, %v1179_v49  ;;  %v1183_v53 = vld [vmem:[#allocation4 + $0x50] sm:$0xff]  ;;  %v1185_v13 = vld [vmem:[#allocation4 + $0x60] sm:$0xff] }
 0x38c   : > { %1803 = vst.msk [vmem:[#allocation5 + $0x8] sm:$0xff] %vm495_vm2, %v1787_v51  ;;  %v1184_v51 = vld [vmem:[#allocation4 + $0x58] sm:$0xff]  ;;  %v1199_v24 = vmul.f32 %v3321_v52, %v1183_v53  ;;  %v1201_v60 = vmul.f32 %v3342_v37, %v1185_v13 }
 0x38d   : > { %1271 = vst.msk [vmem:[#allocation4 + $0x8] sm:$0xff] %vm1269_vm5, %v1254_v54  ;;  %v3450_v3 = vpop.permute.xlu1 %1757  ;;  %v1200_v11 = vmul.f32 %v3334_v29, %v1184_v51  ;;  %v1688_v51 = vld [vmem:[#allocation5 + $0x70] sm:$0xff] }
 0x38e   : > { %1802 = vst.msk [vmem:[#allocation5] sm:$0xff] %vm495_vm2, %v1786_v40 }
 0x391   : > { %v2382_v25 = vpop.f32.mrb[10].mxu0 }
 0x392   : > { %v1789_v34 = vadd.f32 %v2382_v25, %v1773_v48  ;;  %v1374_v15 = vpop.f32.mrb[11].mxu0  ;;  %v1187_v25 = vld [vmem:[#allocation4 + $0x70] sm:$0xff] }
 0x393   : > { %v1788_v43 = vadd.f32 %v1772_v59, %v1374_v15  ;;  %v1202_v15 = vmul.f32 %v3348_v2, %v1186_v19  ;;  %v1203_v29 = vmul.f32 %v3412_v36, %v1187_v25  ;;  %v1683_v2 = vld [vmem:[#allocation5 + $0x48] sm:$0xff] }
 0x394   : > { %1805 = vst.msk [vmem:[#allocation5 + $0x18] sm:$0xff] %vm495_vm2, %v1789_v34 }
 0x395   : > { %1804 = vst.msk [vmem:[#allocation5 + $0x10] sm:$0xff] %vm495_vm2, %v1788_v43  ;;  %v1188_v43 = vld [vmem:[#allocation4 + $0x78] sm:$0xff] }
 0x396   : > { %v1204_v37 = vmul.f32 %v3409_v18, %v1188_v43  ;;  %v1774_v18 = vmul.f32 %v3414_v30, %v1678_v44 }
 0x3a9   : > { %v1216_v22 = vpop.xlane.xlu0 %1215 }
 0x3aa   : > { %v1256_v10 = vadd.f32 %v1216_v22, %v1192_v35 }
 0x3ac   : > { %1273 = vst.msk [vmem:[#allocation4 + $0x18] sm:$0xff] %vm1269_vm5, %v1256_v10 }
 0x3ad   : > { %v1213_v0 = vpop.xlane.xlu0 %1212 }
 0x3ae   : > { %v1255_v56 = vadd.f32 %v1213_v0, %v1191_v14  ;;  %v1682_v14 = vld [vmem:[#allocation5 + $0x40] sm:$0xff]  ;;  %v1679_v0 = vld [vmem:[#allocation5 + $0x28] sm:$0xff] }
 0x3af   : > { %v1778_v36 = vmul.f32 %v3419_v31, %v1682_v14 }
 0x3b0   : > { %1272 = vst.msk [vmem:[#allocation4 + $0x10] sm:$0xff] %vm1269_vm5, %v1255_v56  ;;  %v1779_v56 = vmul.f32 %v3429_v39, %v1683_v2 }
 0x3b1   : > { %v1222_v63 = vpop.xlane.xlu0 %1221 }
 0x3b2   : > { %v1258_v7 = vadd.f32 %v1222_v63, %v1194_v62  ;;  %v1775_v62 = vmul.f32 %v3423_v42, %v1679_v0  ;;  %v1685_v63 = vld [vmem:[#allocation5 + $0x58] sm:$0xff] }
 0x3b4   : > { %1275 = vst.msk [vmem:[#allocation4 + $0x28] sm:$0xff] %vm1269_vm5, %v1258_v7  ;;  %v1684_v7 = vld [vmem:[#allocation5 + $0x50] sm:$0xff] }
 0x3b5   : > { %v1234_v21 = vpop.xlane.xlu0 %1233  ;;  %v1780_v42 = vmul.f32 %v3421_v8, %v1684_v7 }
 0x3b6   : > { %v1262_v6 = vadd.f32 %v1234_v21, %v1198_v38  ;;  %v1681_v38 = vld [vmem:[#allocation5 + $0x38] sm:$0xff] }
 0x3b7   : > { %v1777_v39 = vmul.f32 %v3427_v28, %v1681_v38  ;;  %v1840_v38 = vld [vmem:[#allocation4 + $0x10] sm:$0xff] (!%p2246_p10) }
 0x3b8   : > { %1279 = vst.msk [vmem:[#allocation4 + $0x48] sm:$0xff] %vm1269_vm5, %v1262_v6 }
 0x3b9   : > { %v1228_v58 = vpop.xlane.xlu0 %1227 }
 0x3ba   : > { %v1260_v45 = vadd.f32 %v1228_v58, %v1196_v4  ;;  %v1680_v4 = vld [vmem:[#allocation5 + $0x30] sm:$0xff] }
 0x3bc   : > { %1277 = vst.msk [vmem:[#allocation4 + $0x38] sm:$0xff] %vm1269_vm5, %v1260_v45 }
 0x3be   : > { %v1219_v9 = vpop.xlane.xlu1 %1218 }
 0x3bf   : > { %v1257_v47 = vadd.f32 %v1219_v9, %v1193_v1  ;;  %v1781_v1 = vmul.f32 %v3431_v33, %v1685_v63  ;;  %v1776_v9 = vmul.f32 %v3417_v57, %v1680_v4  ;;  %v1687_v33 = vld [vmem:[#allocation5 + $0x68] sm:$0xff]  ;;  %v1838_v63 = vld [vmem:[#allocation4] sm:$0xff] (!%p2246_p10) }
 0x3c0   : > { %v1783_v28 = vmul.f32 %v3450_v3, %v1687_v33 }
 0x3c1   : > { %1274 = vst.msk [vmem:[#allocation4 + $0x20] sm:$0xff] %vm1269_vm5, %v1257_v47 }
 0x3c2   : > { %v1231_v50 = vpop.xlane.xlu1 %1230 }
 0x3c3   : > { %v1261_v17 = vadd.f32 %v1231_v50, %v1197_v26  ;;  %v1845_v25 = vld [vmem:[#allocation4 + $0x38] sm:$0xff] (!%p2246_p10) }
 0x3c5   : > { %1278 = vst.msk [vmem:[#allocation4 + $0x40] sm:$0xff] %vm1269_vm5, %v1261_v17 }
 0x3c7   : > { %v1225_v20 = vpop.xlane.xlu1 %1224 }
 0x3c8   : > { %v1259_v32 = vadd.f32 %v1225_v20, %v1195_v5  ;;  %v1686_v5 = vld [vmem:[#allocation5 + $0x60] sm:$0xff]  ;;  %v1689_v20 = vld [vmem:[#allocation5 + $0x78] sm:$0xff] }
 0x3c9   : > { %v1782_v57 = vmul.f32 %v3439_v61, %v1686_v5 }
 0x3ca   : > { %1276 = vst.msk [vmem:[#allocation4 + $0x30] sm:$0xff] %vm1269_vm5, %v1259_v32 }
 0x3cb   : > { %v1237_v54 = vpop.xlane.xlu1 %1236 }
 0x3cc   : > { %v1263_v40 = vadd.f32 %v1237_v54, %v1199_v24  ;;  %v1846_v43 = vld [vmem:[#allocation4 + $0x40] sm:$0xff] (!%p2246_p10) }
 0x3cd   : > { %v1240_v46 = vpop.xlane.xlu0 %1239 }
 0x3ce   : > { %1280 = vst.msk [vmem:[#allocation4 + $0x50] sm:$0xff] %vm1269_vm5, %v1263_v40  ;;  %v1264_v48 = vadd.f32 %v1240_v46, %v1200_v11 }
 0x3cf   : > { %v1243_v59 = vpop.xlane.xlu1 %1242 }
 0x3d0   : > { %1281 = vst.msk [vmem:[#allocation4 + $0x58] sm:$0xff] %vm1269_vm5, %v1264_v48  ;;  %v1265_v34 = vadd.f32 %v1243_v59, %v1201_v60  ;;  %v1842_v59 = vld [vmem:[#allocation4 + $0x20] sm:$0xff] (!%p2246_p10) }
 0x3d1   : > { %v1246_v52 = vpop.xlane.xlu0 %1245  ;;  %v1844_v61 = vld [vmem:[#allocation4 + $0x30] sm:$0xff] (!%p2246_p10) }
 0x3d2   : > { %1282 = vst.msk [vmem:[#allocation4 + $0x60] sm:$0xff] %vm1269_vm5, %v1265_v34  ;;  %v1266_v55 = vadd.f32 %v1246_v52, %v1202_v15  ;;  %v2799_v34 = vmov (!%p2246_p10), 0   ;;  %2702 = vrcp.f32 (!%p2246_p10), %v1844_v61  ;;  %v1843_v15 = vld [vmem:[#allocation4 + $0x28] sm:$0xff] (!%p2246_p10) }
 0x3d3   : > { %v1249_v35 = vpop.xlane.xlu1 %1248  ;;  %2701 = vset.pattern.permute.xlu1 (!%p2246_p10), %v2799_v34  ;;  %2700 = vset.pattern.permute.xlu0 (!%p2246_p10), %v2799_v34  ;;  %2704 = vrcp.f32 (!%p2246_p10), %v1842_v59  ;;  %v1847_v52 = vld [vmem:[#allocation4 + $0x48] sm:$0xff] (!%p2246_p10) }
 0x3d4   : > { %1283 = vst.msk [vmem:[#allocation4 + $0x68] sm:$0xff] %vm1269_vm5, %v1266_v55  ;;  %v1267_v22 = vadd.f32 %v1249_v35, %v1203_v29  ;;  %2706 = vrcp.f32 (!%p2246_p10), %v1845_v25 }
 0x3d5   : > { %v1252_v41 = vpop.xlane.xlu0 %1251  ;;  %2708 = vrcp.f32 (!%p2246_p10), %v1843_v15  ;;  %v1848_v29 = vld [vmem:[#allocation4 + $0x50] sm:$0xff] (!%p2246_p10) }
 0x3d6   : > { %1284 = vst.msk [vmem:[#allocation4 + $0x70] sm:$0xff] %vm1269_vm5, %v1267_v22  ;;  %v1268_v10 = vadd.f32 %v1252_v41, %v1204_v37  ;;  %2710 = vrcp.f32 (!%p2246_p10), %v1847_v52 }
 0x3d7   : > { %v1768_v53 = vpop.permute.xlu1 %1767  ;;  %2712 = vrcp.f32 (!%p2246_p10), %v1846_v43  ;;  %v1849_v55 = vld [vmem:[#allocation4 + $0x58] sm:$0xff] (!%p2246_p10) }
 0x3d8   : > { %1285 = vst.msk [vmem:[#allocation4 + $0x78] sm:$0xff] %vm1269_vm5, %v1268_v10  ;;  %v1785_v11 = vmul.f32 %v1768_v53, %v1689_v20  ;;  %2714 = vrcp.f32 (!%p2246_p10), %v1849_v55 }
 0x3d9   : > { %2716 = vrcp.f32 (!%p2246_p10), %v1848_v29  ;;  %v1850_v10 = vld [vmem:[#allocation4 + $0x60] sm:$0xff] (!%p2246_p10) }
 0x3db   : > { %v1851_v37 = vld [vmem:[#allocation4 + $0x68] sm:$0xff] (!%p2246_p10) }
 0x3dc   : > { %v2703_v35 = vpop.eup (!%p2246_p10), %2702  ;;  %2718 = vrcp.f32 (!%p2246_p10), %v1851_v37 }
 0x3dd   : > { %v1763_v24 = vpop.permute.xlu0 %1762  ;;  %v2705_v22 = vpop.eup (!%p2246_p10), %2704  ;;  %1918 = vperm.xlu1 (!%p2246_p10), %2701, %v2703_v35   ;;  %2720 = vrcp.f32 (!%p2246_p10), %v1850_v10  ;;  %v1852_v44 = vld [vmem:[#allocation4 + $0x70] sm:$0xff] (!%p2246_p10) }
 0x3de   : > { %v1784_v46 = vmul.f32 %v1763_v24, %v1688_v51  ;;  %v2707_v41 = vpop.eup (!%p2246_p10), %2706  ;;  %1908 = vperm.xlu0 (!%p2246_p10), %2700, %v2705_v22  }
 0x3df   : > { %v2709_v2 = vpop.eup (!%p2246_p10), %2708  ;;  %v1853_v14 = vld [vmem:[#allocation4 + $0x78] sm:$0xff] (!%p2246_p10) }
 0x3e0   : > { %v2711_v0 = vpop.eup (!%p2246_p10), %2710  ;;  %2722 = vrcp.f32 (!%p2246_p10), %v1853_v14 }
 0x3e1   : > { %1923 = vperm.xlu1 (!%p2246_p10), %2701, %v2707_v41   ;;  %2724 = vrcp.f32 (!%p2246_p10), %v1852_v44 }
 0x3e2   : > { %1913 = vperm.xlu0 (!%p2246_p10), %2700, %v2709_v2   ;;  %v1870_v2 = vld [vmem:[#allocation5] sm:$0xff] (!%p2246_p10) }
 0x3e5   : > { %1933 = vperm.xlu1 (!%p2246_p10), %2701, %v2711_v0  }
 0x40f   : > { %v2407_v23 = vpop.f32.mrb[12].mxu0 }
 0x410   : > { %v2393_v21 = vpop.f32.mrb[8].mxu1  ;;  %v1795_v27 = vadd.f32 %v2407_v23, %v1779_v56  ;;  %v1558_v6 = vpop.f32.mrb[13].mxu0 }
 0x411   : > { %v1791_v58 = vadd.f32 %v2393_v21, %v1775_v62  ;;  %v1461_v45 = vpop.f32.mrb[9].mxu1  ;;  %v1794_v16 = vadd.f32 %v1778_v36, %v1558_v6  ;;  %v2713_v56 = vpop.eup (!%p2246_p10), %2712  ;;  %v1839_v36 = vld [vmem:[#allocation4 + $0x8] sm:$0xff] (!%p2246_p10) }
 0x412   : > { %1811 = vst.msk [vmem:[#allocation5 + $0x48] sm:$0xff] %vm495_vm2, %v1795_v27  ;;  %v1790_v31 = vadd.f32 %v1774_v18, %v1461_v45  ;;  %v2715_v62 = vpop.eup (!%p2246_p10), %2714  ;;  %1928 = vperm.xlu0 (!%p2246_p10), %2700, %v2713_v56   ;;  %2726 = vrcp.f32 (!%p2246_p10), %v1839_v36  ;;  %v1841_v18 = vld [vmem:[#allocation4 + $0x18] sm:$0xff] (!%p2246_p10)  ;;  %v1871_v56 = vld [vmem:[#allocation5 + $0x8] sm:$0xff] (!%p2246_p10)  ;;  %v1872_v36 = vld [vmem:[#allocation5 + $0x10] sm:$0xff] (!%p2246_p10) }
 0x413   : > { %1807 = vst.msk [vmem:[#allocation5 + $0x28] sm:$0xff] %vm495_vm2, %v1791_v58  ;;  %1810 = vst.msk [vmem:[#allocation5 + $0x40] sm:$0xff] %vm495_vm2, %v1794_v16  ;;  %v2410_v30 = vpop.f32.mrb[14].mxu0  ;;  %v2717_v23 = vpop.eup (!%p2246_p10), %2716  ;;  %1943 = vperm.xlu1 (!%p2246_p10), %2701, %v2715_v62   ;;  %2728 = vrcp.f32 (!%p2246_p10), %v1838_v63 }
 0x414   : > { %1806 = vst.msk [vmem:[#allocation5 + $0x20] sm:$0xff] %vm495_vm2, %v1790_v31  ;;  %v2396_v12 = vpop.f32.mrb[10].mxu1  ;;  %v1797_v47 = vadd.f32 %v2410_v30, %v1781_v1  ;;  %v1568_v26 = vpop.f32.mrb[15].mxu0  ;;  %2730 = vrcp.f32 (!%p2246_p10), %v1841_v18 }
 0x415   : > { %v1793_v50 = vadd.f32 %v2396_v12, %v1777_v39  ;;  %v1471_v17 = vpop.f32.mrb[11].mxu1  ;;  %v1796_v49 = vadd.f32 %v1780_v42, %v1568_v26  ;;  %v2719_v7 = vpop.eup (!%p2246_p10), %2718  ;;  %2732 = vrcp.f32 (!%p2246_p10), %v1840_v38 }
 0x416   : > { %1813 = vst.msk [vmem:[#allocation5 + $0x58] sm:$0xff] %vm495_vm2, %v1797_v47  ;;  %v1792_v8 = vadd.f32 %v1776_v9, %v1471_v17  ;;  %1938 = vperm.xlu0 (!%p2246_p10), %2700, %v2717_v23   ;;  %v2721_v21 = vpop.eup (!%p2246_p10), %2720 }
 0x417   : > { %1809 = vst.msk [vmem:[#allocation5 + $0x38] sm:$0xff] %vm495_vm2, %v1793_v50  ;;  %1812 = vst.msk [vmem:[#allocation5 + $0x50] sm:$0xff] %vm495_vm2, %v1796_v49  ;;  %1953 = vperm.xlu1 (!%p2246_p10), %2701, %v2719_v7   ;;  %v2723_v27 = vpop.eup (!%p2246_p10), %2722 }
 0x418   : > { %1808 = vst.msk [vmem:[#allocation5 + $0x30] sm:$0xff] %vm495_vm2, %v1792_v8  ;;  %v2725_v6 = vpop.eup (!%p2246_p10), %2724 }
 0x419   : > { %v2421_v32 = vpop.f32.mrb[12].mxu1 }
 0x41a   : > { %v1799_v54 = vadd.f32 %v2421_v32, %v1783_v28  ;;  %v1655_v13 = vpop.f32.mrb[13].mxu1  ;;  %1948 = vperm.xlu0 (!%p2246_p10), %2700, %v2721_v21   ;;  %v1875_v9 = vld [vmem:[#allocation5 + $0x28] sm:$0xff] (!%p2246_p10)  ;;  %v1878_v17 = vld [vmem:[#allocation5 + $0x40] sm:$0xff] (!%p2246_p10) }
 0x41b   : > { %v1798_v40 = vadd.f32 %v1782_v57, %v1655_v13  ;;  %1837 = sbr.rel (%p2246_p10) target bundleno = 1301 (0x515), region = 40  ;;  %1963 = vperm.xlu1 (!%p2246_p10), %2701, %v2723_v27   ;;  %v1874_v1 = vld [vmem:[#allocation5 + $0x20] sm:$0xff] (!%p2246_p10)  ;;  %v1879_v57 = vld [vmem:[#allocation5 + $0x48] sm:$0xff] (!%p2246_p10)  ;;  %v1873_v27 = vld [vmem:[#allocation5 + $0x18] sm:$0xff] (!%p2246_p10) }
 0x41c   : > { %1815 = vst.msk [vmem:[#allocation5 + $0x68] sm:$0xff] %vm495_vm2, %v1799_v54  ;;  %v2727_v4 = vpop.eup (!%p2246_p10), %2726 }
 0x41d   : > { %1814 = vst.msk [vmem:[#allocation5 + $0x60] sm:$0xff] %vm495_vm2, %v1798_v40  ;;  %v2424_v19 = vpop.f32.mrb[14].mxu1  ;;  %v2729_v58 = vpop.eup (!%p2246_p10), %2728  ;;  %v1881_v54 = vld [vmem:[#allocation5 + $0x58] sm:$0xff] (!%p2246_p10) }
 0x41e   : > { %v1801_v3 = vadd.f32 %v2424_v19, %v1785_v11  ;;  %v1665_v48 = vpop.f32.mrb[15].mxu1  ;;  %1958 = vperm.xlu0 (!%p2246_p10), %2700, %v2725_v6   ;;  %v2731_v45 = vpop.eup (!%p2246_p10), %2730  ;;  %v1877_v50 = vld [vmem:[#allocation5 + $0x38] sm:$0xff] (!%p2246_p10)  ;;  %v1880_v20 = vld [vmem:[#allocation5 + $0x50] sm:$0xff] (!%p2246_p10) }
 0x41f   : > { %v1800_v60 = vadd.f32 %v1784_v46, %v1665_v48  ;;  %1893 = vperm.xlu1 (!%p2246_p10), %2701, %v2727_v4   ;;  %v2733_v16 = vpop.eup (!%p2246_p10), %2732  ;;  %v1876_v42 = vld [vmem:[#allocation5 + $0x30] sm:$0xff] (!%p2246_p10) }
 0x420   : > { %1817 = vst.msk [vmem:[#allocation5 + $0x78] sm:$0xff] %vm495_vm2, %v1801_v3 }
 0x421   : > { %1816 = vst.msk [vmem:[#allocation5 + $0x70] sm:$0xff] %vm495_vm2, %v1800_v60 }
 0x422   : > { %1888 = vperm.xlu0 %2700, %v2729_v58  }
 0x423   : > { %1903 = vperm.xlu1 %2701, %v2731_v45   ;;  %v1883_v3 = vld [vmem:[#allocation5 + $0x68] sm:$0xff] }
 0x424   : > { %v1882_v13 = vld [vmem:[#allocation5 + $0x60] sm:$0xff] }
 0x426   : > { %1898 = vperm.xlu0 %2700, %v2733_v16  }
 0x427   : > { %v1885_v25 = vld [vmem:[#allocation5 + $0x78] sm:$0xff] }
 0x428   : > { %v1884_v48 = vld [vmem:[#allocation5 + $0x70] sm:$0xff] }
 0x45c   : > { %v1919_v31 = vpop.permute.xlu1 %1918 }
 0x45d   : > { %v1909_v39 = vpop.permute.xlu0 %1908  ;;  %v1972_v12 = vmul.f32 %v1919_v31, %v1876_v42 }
 0x45e   : > { %v1970_v30 = vmul.f32 %v1909_v39, %v1874_v1 }
 0x460   : > { %1986 = vrot.lane.b32.xlu0 %v1970_v30, %s2800_s12  ;;  %v1924_v47 = vpop.permute.xlu1 %1923 }
 0x461   : > { %v1914_v26 = vpop.permute.xlu0 %1913  ;;  %v1973_v8 = vmul.f32 %v1924_v47, %v1877_v50 }
 0x462   : > { %v1971_v33 = vmul.f32 %v1914_v26, %v1875_v9 }
 0x464   : > { %1988 = vrot.lane.b32.xlu1 %v1971_v33, %s2800_s12  ;;  %1990 = vrot.lane.b32.xlu0 %v1972_v12, %s2800_s12  ;;  %v1934_v49 = vpop.permute.xlu1 %1933 }
 0x465   : > { %v1975_v51 = vmul.f32 %v1934_v49, %v1879_v57 }
 0x468   : > { %1992 = vrot.lane.b32.xlu1 %v1973_v8, %s2800_s12 }
 0x46c   : > { %2004 = vrot.lane.b32.xlu1 %v1975_v51, %s2801_s28 }
 0x491   : > { %v1929_v5 = vpop.permute.xlu0 %1928 }
 0x492   : > { %v1974_v28 = vmul.f32 %v1929_v5, %v1878_v17  ;;  %v1944_v53 = vpop.permute.xlu1 %1943 }
 0x493   : > { %v1977_v46 = vmul.f32 %v1944_v53, %v1881_v54 }
 0x494   : > { %2002 = vrot.lane.b32.xlu0 %v1974_v28, %s2801_s28 }
 0x495   : > { %v1939_v32 = vpop.permute.xlu0 %1938  ;;  %2008 = vrot.lane.b32.xlu1 %v1977_v46, %s2801_s28 }
 0x496   : > { %v1976_v24 = vmul.f32 %v1939_v32, %v1880_v20  ;;  %v1954_v40 = vpop.permute.xlu1 %1953 }
 0x497   : > { %v1979_v61 = vmul.f32 %v1954_v40, %v1883_v3 }
 0x498   : > { %2006 = vrot.lane.b32.xlu0 %v1976_v24, %s2801_s28 }
 0x499   : > { %v1949_v11 = vpop.permute.xlu0 %1948  ;;  %2020 = vrot.lane.b32.xlu1 %v1979_v61, %s2802_s29 }
 0x49a   : > { %v1978_v19 = vmul.f32 %v1949_v11, %v1882_v13  ;;  %v1964_v34 = vpop.permute.xlu1 %1963 }
 0x49b   : > { %v1981_v15 = vmul.f32 %v1964_v34, %v1885_v25 }
 0x49c   : > { %2018 = vrot.lane.b32.xlu0 %v1978_v19, %s2802_s29 }
 0x49d   : > { %v1959_v60 = vpop.permute.xlu0 %1958  ;;  %2024 = vrot.lane.b32.xlu1 %v1981_v15, %s2802_s29 }
 0x49e   : > { %v1980_v59 = vmul.f32 %v1959_v60, %v1884_v48  ;;  %v1894_v43 = vpop.permute.xlu1 %1893 }
 0x49f   : > { %v1967_v7 = vmul.f32 %v1894_v43, %v1871_v56 }
 0x4a0   : > { %2022 = vrot.lane.b32.xlu0 %v1980_v59, %s2802_s29 }
 0x4a1   : > { %v1889_v52 = vpop.permute.xlu0 %1888 }
 0x4a2   : > { %v1904_v29 = vpop.permute.xlu1 %1903  ;;  %v1966_v44 = vmul.f32 %v1889_v52, %v1870_v2 }
 0x4a3   : > { %v1969_v31 = vmul.f32 %v1904_v29, %v1873_v27 }
 0x4a5   : > { %v1899_v55 = vpop.permute.xlu0 %1898 }
 0x4a6   : > { %v1968_v38 = vmul.f32 %v1899_v55, %v1872_v36 }
 0x4d2   : > { %v1987_v35 = vpop.permute.xlu0 %1986 }
 0x4d3   : > { %v2030_v62 = vsel %vm495_vm2, %v1966_v44, %v1987_v35 }
 0x4d6   : > { %v1989_v22 = vpop.permute.xlu1 %1988  ;;  %v1991_v37 = vpop.permute.xlu0 %1990 }
 0x4d7   : > { %v2031_v6 = vsel %vm495_vm2, %v1967_v7, %v1989_v22  ;;  %v2032_v4 = vsel %vm495_vm2, %v1968_v38, %v1991_v37 }
 0x4da   : > { %v1993_v41 = vpop.permute.xlu1 %1992 }
 0x4db   : > { %v2033_v30 = vsel %vm495_vm2, %v1969_v31, %v1993_v41 }
 0x4de   : > { %v2005_v14 = vpop.permute.xlu1 %2004 }
 0x4df   : > { %v2036_v58 = vsel %vm2034_vm6, %v2031_v6, %v2005_v14 }
 0x506   : > { %v2003_v10 = vpop.permute.xlu0 %2002 }
 0x507   : > { %v2035_v63 = vsel %vm2034_vm6, %v2030_v62, %v2003_v10  ;;  %v2009_v23 = vpop.permute.xlu1 %2008 }
 0x508   : > { %v2038_v9 = vsel %vm2034_vm6, %v2033_v30, %v2009_v23 }
 0x50a   : > { %v2007_v0 = vpop.permute.xlu0 %2006 }
 0x50b   : > { %v2037_v45 = vsel %vm2034_vm6, %v2032_v4, %v2007_v0  ;;  %v2021_v16 = vpop.permute.xlu1 %2020 }
 0x50c   : > { %v2041_v42 = vsel %vm2039_vm7, %v2036_v58, %v2021_v16 }
 0x50d   : > { %2045 = vst.msk [vmem:[%s2876_s5 + $0x8] sm:$0xff] %vm932_vm4, %v2041_v42 }
 0x50e   : > { %v2019_v18 = vpop.permute.xlu0 %2018 }
 0x50f   : > { %v2040_v21 = vsel %vm2039_vm7, %v2035_v63, %v2019_v18  ;;  %v2025_v12 = vpop.permute.xlu1 %2024 }
 0x510   : > { %2044 = vst.msk [vmem:[%s2876_s5] sm:$0xff] %vm932_vm4, %v2040_v21  ;;  %v2043_v47 = vsel %vm2039_vm7, %v2038_v9, %v2025_v12 }
 0x511   : > { %2047 = vst.msk [vmem:[%s2876_s5 + $0x18] sm:$0xff] %vm932_vm4, %v2043_v47 }
 0x512   : > { %v2023_v1 = vpop.permute.xlu0 %2022 }
 0x513   : > { %v2042_v39 = vsel %vm2039_vm7, %v2037_v45, %v2023_v1 }
 0x514   : > { %2046 = vst.msk [vmem:[%s2876_s5 + $0x10] sm:$0xff] %vm932_vm4, %v2042_v39 }
 0x515 PF: > { %s13_s18 = sadd.s32 1, %s2788_s18   ;;  %s3541_s12 = smov %s2776_s15 }
 0x516   : > { %p10_p11 = scmp.ge.s32.totalorder %s13_s18, 10   ;;  %s3542_s13 = smov %s2780_s16 }
 0x517   : > { %s3543_s14 = smov %s2784_s17  ;;  %s3544_s15 = smov %s3548_s19 }
 0x518   : > { %s3545_s16 = smov %s3552_s20  ;;  %s3546_s17 = smov %s3556_s21 }
 0x519   :  { %12 = sbr.rel (!%p10_p11) target bundleno = 4 (0x4), region = 76 }

// kernel: transformer_encoder_block.3
= control target key start
LH: loop header
LB: loop body
LE: loop exit
PB: predicated region body
PF: predicated region fallthrough
CT: control target
= control target key end

     0   :  { %s943_s24 = smov 0   ;;  %s1109_s0 = inlined_call_operand.vmem [shape: f32[128,32], index: 0, kind: input, shape index: {}]   ;;  %s1110_s1 = inlined_call_operand.vmem [shape: f32[1,32], index: 1, kind: input, shape index: {}]   ;;  %s1111_s2 = inlined_call_operand.vmem [shape: f32[1,32], index: 2, kind: input, shape index: {}]   ;;  %s1112_s3 = inlined_call_operand.vmem [shape: f32[32,96], index: 3, kind: input, shape index: {}]   ;;  %s1113_s4 = inlined_call_operand.vmem [shape: f32[1,96], index: 4, kind: input, shape index: {}]   ;;  %s1114_s5 = inlined_call_operand.vmem [shape: f32[128,32], index: 5, kind: output, shape index: {0}]   ;;  %s1115_s6 = inlined_call_operand.vmem [shape: f32[128,32], index: 6, kind: output, shape index: {1}]   ;;  %s1116_s7 = inlined_call_operand.vmem [shape: f32[128,32], index: 7, kind: output, shape index: {2}]  }
   0x1 LB: > { %s797_s25 = sadd.s32 4294967295, %s899_s24   ;;  %p801_p0 = scmp.ge.s32.totalorder %s899_s24, 1  ;;  %s899_s24 = sphi %s943_s24, %s18_s24  }
   0x2   : > { %p243_p1 = scmp.lt.s32.totalorder %s899_s24, 3 }
   0x4   : > { %p244_p2 = pnand %p801_p0, %p243_p1 }
   0x5   : > { %s802_s26 = sshll.u32 (!%p244_p2), %s797_s25, 3  ;;  %vm319_vm0 = vcmask (!%p244_p2), 261120   ;;  %v453_v56 = vld [vmem:[%s1112_s3] sm:$0xff] (!%p244_p2)  ;;  %v454_v57 = vld [vmem:[%s1112_s3 + $0x8] sm:$0xff] (!%p244_p2)  ;;  %v455_v59 = vld [vmem:[%s1112_s3 + $0x10] sm:$0xff] (!%p244_p2)  ;;  %s902_s28 = smov (!%p244_p2), 64  }
   0x6   : > { %247 = sbr.rel (%p244_p2) target bundleno = 697 (0x2b9), region = 40  ;;  %p286_p3 = scmp.lt.s32.totalorder (!%p244_p2), %s802_s26, 15  ;;  %v855_v58 = vpack.c.bf16 (!%p244_p2), %v454_v57, %v453_v56  ;;  %v456_v60 = vld [vmem:[%s1112_s3 + $0x18] sm:$0xff] (!%p244_p2) }
   0x7   : > { %v859_v61 = vpack.c.bf16 (!%p244_p2), %v456_v60, %v455_v59 }
   0x8   : > { %856 = vmatprep.subr.bf16.mxu0 (!%p244_p2), %v855_v58  ;;  %863 = vmatprep.subr.bf16.mxu1 (!%p244_p2), %v855_v58 }
   0x9   : > { %858 = vmatpush3.bf16.msra.mxu0 (!%p244_p2), %v855_v58  ;;  %865 = vmatpush3.bf16.msra.mxu1 (!%p244_p2), %v855_v58 }
   0xa   : > { %860 = vmatprep.subr.bf16.mxu0 (!%p244_p2), %v859_v61  ;;  %864 = vmatprep.subr.bf16.mxu1 (!%p244_p2), %v859_v61 }
   0xd   : > { %s1118_s26 = smov (!%p286_p3, %s802_s26), 15  ;;  %862 = vmatpush3.bf16.msra.mxu0 %v859_v61  ;;  %866 = vmatpush3.bf16.msra.mxu1 %v859_v61 }
   0xe   : > { %s951_s27 = sshll.u32 %s1118_s26, 3  ;;  %s901_s26 = smov 96  }
   0xf   : > { %s289_s30 = scalar_lea.vmem %s1109_s0, %s951_s27  ;;  %s1046_s25 = scalar_lea.vmem %s1114_s5, %s951_s27 }
  0x10   : > { %v309_v0 = vld [vmem:[%s289_s30] sm:$0xff]  ;;  %v310_v1 = vld [vmem:[%s289_s30 + $0x8] sm:$0xff]  ;;  %v311_v8 = vld [vmem:[%s289_s30 + $0x10] sm:$0xff]  ;;  %s1076_s8 = scalar_lea.vmem %s1115_s6, %s951_s27  ;;  %s307_s11 = scalar_lea.vmem %s1116_s7, %s951_s27 }
  0x11   : > { %v313_v2 = vld [vmem:[%s289_s30 + $0x20] sm:$0xff]  ;;  %v320_v3 = vsel %vm319_vm0, %v309_v0, 0.0  ;;  %v323_v4 = vsel %vm319_vm0, %v310_v1, 0.0  ;;  %v314_v5 = vld [vmem:[%s289_s30 + $0x28] sm:$0xff]  ;;  %v315_v9 = vld [vmem:[%s289_s30 + $0x30] sm:$0xff]  ;;  %v326_v10 = vsel %vm319_vm0, %v311_v8, 0.0 }
  0x12   : > { %321 = vadd.xlane.f32.xlu0 %v320_v3  ;;  %324 = vadd.xlane.f32.xlu1 %v323_v4  ;;  %v332_v6 = vsel %vm319_vm0, %v313_v2, 0.0  ;;  %v335_v7 = vsel %vm319_vm0, %v314_v5, 0.0  ;;  %v338_v11 = vsel %vm319_vm0, %v315_v9, 0.0  ;;  %v312_v12 = vld [vmem:[%s289_s30 + $0x18] sm:$0xff] }
  0x13   : > { %v316_v13 = vld [vmem:[%s289_s30 + $0x38] sm:$0xff]  ;;  %v329_v14 = vsel %vm319_vm0, %v312_v12, 0.0 }
  0x14   : > { %v341_v15 = vsel %vm319_vm0, %v316_v13, 0.0 }
  0x16   : > { %333 = vadd.xlane.f32.xlu0 %v332_v6  ;;  %336 = vadd.xlane.f32.xlu1 %v335_v7 }
  0x1a   : > { %327 = vadd.xlane.f32.xlu0 %v326_v10  ;;  %339 = vadd.xlane.f32.xlu1 %v338_v11 }
  0x1e   : > { %330 = vadd.xlane.f32.xlu0 %v329_v14  ;;  %342 = vadd.xlane.f32.xlu1 %v341_v15 }
  0x9f   : > { %v322_v16 = vpop.xlane.xlu0 %321  ;;  %v325_v17 = vpop.xlane.xlu1 %324 }
  0xa0   : > { %v345_v18 = vmul.f32 0.03125, %v322_v16  ;;  %v346_v19 = vmul.f32 0.03125, %v325_v17 }
  0xa2   : > { %v965_v20 = vsub.f32 %v309_v0, %v345_v18  ;;  %v967_v21 = vsub.f32 %v310_v1, %v346_v19 }
  0xa3   : > { %v334_v22 = vpop.xlane.xlu0 %333  ;;  %v337_v23 = vpop.xlane.xlu1 %336 }
  0xa4   : > { %v349_v24 = vmul.f32 0.03125, %v334_v22  ;;  %v350_v25 = vmul.f32 0.03125, %v337_v23  ;;  %v361_v26 = vmul.f32 %v965_v20, %v965_v20  ;;  %v362_v27 = vmul.f32 %v967_v21, %v967_v21  ;;  %v810_v22 = vld [vmem:[%s1110_s1] ss:$0 sm:$0xff] }
  0xa6   : > { %v973_v28 = vsub.f32 %v313_v2, %v349_v24  ;;  %v975_v29 = vsub.f32 %v314_v5, %v350_v25  ;;  %v369_v30 = vsel %vm319_vm0, %v361_v26, 0.0  ;;  %v372_v33 = vsel %vm319_vm0, %v362_v27, 0.0  ;;  %v811_v26 = vld [vmem:[%s1111_s2] ss:$0 sm:$0xff] }
  0xa7   : > { %370 = vadd.xlane.f32.xlu0 %v369_v30  ;;  %v328_v31 = vpop.xlane.xlu0 %327  ;;  %v340_v32 = vpop.xlane.xlu1 %339 }
  0xa8   : > { %v347_v34 = vmul.f32 0.03125, %v328_v31  ;;  %v351_v35 = vmul.f32 0.03125, %v340_v32  ;;  %v365_v36 = vmul.f32 %v973_v28, %v973_v28  ;;  %v366_v37 = vmul.f32 %v975_v29, %v975_v29 }
  0xaa   : > { %v983_v38 = vsub.f32 %v311_v8, %v347_v34  ;;  %v985_v39 = vsub.f32 %v315_v9, %v351_v35  ;;  %v381_v40 = vsel %vm319_vm0, %v365_v36, 0.0  ;;  %v384_v43 = vsel %vm319_vm0, %v366_v37, 0.0 }
  0xab   : > { %373 = vadd.xlane.f32.xlu0 %v372_v33  ;;  %382 = vadd.xlane.f32.xlu1 %v381_v40  ;;  %v331_v41 = vpop.xlane.xlu0 %330  ;;  %v343_v42 = vpop.xlane.xlu1 %342 }
  0xac   : > { %v348_v44 = vmul.f32 0.03125, %v331_v41  ;;  %v352_v45 = vmul.f32 0.03125, %v343_v42  ;;  %v363_v46 = vmul.f32 %v983_v38, %v983_v38  ;;  %v367_v47 = vmul.f32 %v985_v39, %v985_v39 }
  0xae   : > { %v993_v48 = vsub.f32 %v312_v12, %v348_v44  ;;  %v995_v49 = vsub.f32 %v316_v13, %v352_v45  ;;  %v375_v50 = vsel %vm319_vm0, %v363_v46, 0.0  ;;  %v387_v51 = vsel %vm319_vm0, %v367_v47, 0.0 }
  0xaf   : > { %385 = vadd.xlane.f32.xlu1 %v384_v43  ;;  %376 = vadd.xlane.f32.xlu0 %v375_v50 }
  0xb0   : > { %v364_v52 = vmul.f32 %v993_v48, %v993_v48  ;;  %v368_v53 = vmul.f32 %v995_v49, %v995_v49 }
  0xb2   : > { %v378_v54 = vsel %vm319_vm0, %v364_v52, 0.0  ;;  %v390_v55 = vsel %vm319_vm0, %v368_v53, 0.0 }
  0xb3   : > { %388 = vadd.xlane.f32.xlu1 %v387_v51  ;;  %379 = vadd.xlane.f32.xlu0 %v378_v54 }
  0xb7   : > { %391 = vadd.xlane.f32.xlu1 %v390_v55 }
 0x134   : > { %v371_v62 = vpop.xlane.xlu0 %370 }
 0x135   : > { %v393_v63 = vmul.f32 0.03125, %v371_v62 }
 0x137   : > { %v401_v0 = vadd.f32 1e-05, %v393_v63 }
 0x138   : > { %v383_v1 = vpop.xlane.xlu1 %382  ;;  %v374_v2 = vpop.xlane.xlu0 %373 }
 0x139   : > { %877 = vrsqrt.f32 %v401_v0  ;;  %v397_v3 = vmul.f32 0.03125, %v383_v1  ;;  %v394_v4 = vmul.f32 0.03125, %v374_v2 }
 0x13b   : > { %v405_v5 = vadd.f32 1e-05, %v397_v3  ;;  %v402_v6 = vadd.f32 1e-05, %v394_v4 }
 0x13c   : > { %v386_v7 = vpop.xlane.xlu1 %385  ;;  %v377_v8 = vpop.xlane.xlu0 %376 }
 0x13d   : > { %879 = vrsqrt.f32 %v405_v5  ;;  %v398_v9 = vmul.f32 0.03125, %v386_v7  ;;  %v395_v10 = vmul.f32 0.03125, %v377_v8 }
 0x13e   : > { %881 = vrsqrt.f32 %v402_v6 }
 0x13f   : > { %v406_v11 = vadd.f32 1e-05, %v398_v9  ;;  %v403_v12 = vadd.f32 1e-05, %v395_v10 }
 0x140   : > { %v389_v13 = vpop.xlane.xlu1 %388  ;;  %v380_v14 = vpop.xlane.xlu0 %379 }
 0x141   : > { %883 = vrsqrt.f32 %v406_v11  ;;  %v399_v15 = vmul.f32 0.03125, %v389_v13  ;;  %v396_v16 = vmul.f32 0.03125, %v380_v14 }
 0x142   : > { %885 = vrsqrt.f32 %v403_v12 }
 0x143   : > { %v878_v17 = vpop.eup %877  ;;  %v407_v18 = vadd.f32 1e-05, %v399_v15  ;;  %v404_v19 = vadd.f32 1e-05, %v396_v16 }
 0x144   : > { %v392_v23 = vpop.xlane.xlu1 %391  ;;  %v417_v24 = vmul.f32 %v878_v17, %v965_v20 }
 0x145   : > { %887 = vrsqrt.f32 %v407_v18  ;;  %v400_v25 = vmul.f32 0.03125, %v392_v23 }
 0x146   : > { %889 = vrsqrt.f32 %v404_v19  ;;  %v431_v27 = vmul.f32 %v810_v22, %v417_v24 }
 0x147   : > { %v880_v30 = vpop.eup %879  ;;  %v408_v31 = vadd.f32 1e-05, %v400_v25 }
 0x148   : > { %v882_v32 = vpop.eup %881  ;;  %v445_v33 = vadd.f32 %v811_v26, %v431_v27  ;;  %v421_v34 = vmul.f32 %v880_v30, %v973_v28 }
 0x149   : > { %891 = vrsqrt.f32 %v408_v31  ;;  %v418_v35 = vmul.f32 %v882_v32, %v967_v21 }
 0x14a   : > { %843 = vmatprep.mubr.msk.f32.mxu0 %vm319_vm0, %v445_v33  ;;  %v435_v20 = vmul.f32 %v810_v22, %v421_v34 }
 0x14b   : > { %v884_v36 = vpop.eup %883  ;;  %v432_v37 = vmul.f32 %v810_v22, %v418_v35 }
 0x14c   : > { %v886_v40 = vpop.eup %885  ;;  %v449_v41 = vadd.f32 %v811_v26, %v435_v20  ;;  %v422_v42 = vmul.f32 %v884_v36, %v975_v29 }
 0x14d   : > { %v446_v43 = vadd.f32 %v811_v26, %v432_v37  ;;  %v419_v44 = vmul.f32 %v886_v40, %v983_v38 }
 0x14e   : > { %849 = vmatprep.mubr.msk.f32.mxu1 %vm319_vm0, %v449_v41  ;;  %v436_v45 = vmul.f32 %v810_v22, %v422_v42 }
 0x14f   : > { %v888_v46 = vpop.eup %887  ;;  %844 = vmatmul.mubr.msk.f32.vlgmr.msra.gmra.mrb[0].mxu0 %vm319_vm0, %v446_v43  ;;  %v433_v28 = vmul.f32 %v810_v22, %v419_v44 }
 0x150   : > { %v890_v21 = vpop.eup %889  ;;  %v450_v47 = vadd.f32 %v811_v26, %v436_v45  ;;  %v423_v50 = vmul.f32 %v888_v46, %v985_v39 }
 0x151   : > { %v447_v51 = vadd.f32 %v811_v26, %v433_v28  ;;  %v420_v52 = vmul.f32 %v890_v21, %v993_v48  ;;  %v812_v48 = vld [vmem:[%s1113_s4] ss:$0 sm:$0xff] }
 0x152   : > { %850 = vmatmul.mubr.msk.f32.vlgmr.msra.gmra.mrb[0].mxu1 %vm319_vm0, %v450_v47  ;;  %v437_v29 = vmul.f32 %v810_v22, %v423_v50 }
 0x153   : > { %v892_v53 = vpop.eup %891  ;;  %846 = vmatprep.mubr.msk.f32.mxu0 %vm319_vm0, %v447_v51  ;;  %v434_v38 = vmul.f32 %v810_v22, %v420_v52 }
 0x154   : > { %v451_v54 = vadd.f32 %v811_v26, %v437_v29  ;;  %v424_v55 = vmul.f32 %v892_v53, %v995_v49 }
 0x155   : > { %v448_v56 = vadd.f32 %v811_v26, %v434_v38 }
 0x156   : > { %852 = vmatprep.mubr.msk.f32.mxu1 %vm319_vm0, %v451_v54  ;;  %v438_v57 = vmul.f32 %v810_v22, %v424_v55 }
 0x157   : > { %847 = vmatmul.mubr.msk.f32.gmra.mrb[2].mxu0 %vm319_vm0, %v448_v56 }
 0x158   : > { %v452_v39 = vadd.f32 %v811_v26, %v438_v57 }
 0x15a   : > { %853 = vmatmul.mubr.msk.f32.gmra.mrb[2].mxu1 %vm319_vm0, %v452_v39 }
 0x222   : > { %v845_v49 = vpop.f32.mrb[0].mxu0 }
 0x223   : > { %v560_v58 = vadd.f32 %v845_v49, %v812_v48  ;;  %v554_v59 = vpop.f32.mrb[1].mxu0 }
 0x224   : > { %v555_v60 = vadd.f32 %v812_v48, %v554_v59 }
 0x225   : > { %594 = vst.msk [vmem:[%s1046_s25 + $0x8] sm:$0xff] %vm319_vm0, %v560_v58  ;;  %611 = vrot.lane.b32.xlu1 %v560_v58, %s901_s26  ;;  %v851_v61 = vpop.f32.mrb[0].mxu1 }
 0x226   : > { %593 = vst.msk [vmem:[%s1046_s25] sm:$0xff] %vm319_vm0, %v555_v60  ;;  %v580_v62 = vadd.f32 %v851_v61, %v812_v48  ;;  %609 = vrot.lane.b32.xlu0 %v555_v60, %s901_s26  ;;  %v574_v63 = vpop.f32.mrb[1].mxu1 }
 0x227   : > { %v575_v0 = vadd.f32 %v812_v48, %v574_v63 }
 0x228   : > { %598 = vst.msk [vmem:[%s1046_s25 + $0x28] sm:$0xff] %vm319_vm0, %v580_v62 }
 0x229   : > { %597 = vst.msk [vmem:[%s1046_s25 + $0x20] sm:$0xff] %vm319_vm0, %v575_v0  ;;  %619 = vrot.lane.b32.xlu1 %v580_v62, %s901_s26 }
 0x22a   : > { %617 = vrot.lane.b32.xlu0 %v575_v0, %s901_s26  ;;  %v848_v1 = vpop.f32.mrb[2].mxu0 }
 0x22b   : > { %v570_v2 = vadd.f32 %v848_v1, %v812_v48  ;;  %v564_v3 = vpop.f32.mrb[3].mxu0 }
 0x22c   : > { %v565_v4 = vadd.f32 %v812_v48, %v564_v3 }
 0x22d   : > { %596 = vst.msk [vmem:[%s1046_s25 + $0x18] sm:$0xff] %vm319_vm0, %v570_v2  ;;  %643 = vrot.lane.b32.xlu1 %v560_v58, %s902_s28  ;;  %v854_v5 = vpop.f32.mrb[2].mxu1 }
 0x22e   : > { %595 = vst.msk [vmem:[%s1046_s25 + $0x10] sm:$0xff] %vm319_vm0, %v565_v4  ;;  %v590_v6 = vadd.f32 %v854_v5, %v812_v48  ;;  %641 = vrot.lane.b32.xlu0 %v555_v60, %s902_s28  ;;  %v584_v7 = vpop.f32.mrb[3].mxu1 }
 0x22f   : > { %v585_v8 = vadd.f32 %v812_v48, %v584_v7 }
 0x230   : > { %600 = vst.msk [vmem:[%s1046_s25 + $0x38] sm:$0xff] %vm319_vm0, %v590_v6 }
 0x231   : > { %599 = vst.msk [vmem:[%s1046_s25 + $0x30] sm:$0xff] %vm319_vm0, %v585_v8  ;;  %651 = vrot.lane.b32.xlu1 %v580_v62, %s902_s28 }
 0x232   : > { %649 = vrot.lane.b32.xlu0 %v575_v0, %s902_s28 }
 0x235   : > { %615 = vrot.lane.b32.xlu1 %v570_v2, %s901_s26 }
 0x236   : > { %621 = vrot.lane.b32.xlu0 %v585_v8, %s901_s26 }
 0x239   : > { %623 = vrot.lane.b32.xlu1 %v590_v6, %s901_s26 }
 0x23a   : > { %645 = vrot.lane.b32.xlu0 %v565_v4, %s902_s28 }
 0x23d   : > { %647 = vrot.lane.b32.xlu1 %v570_v2, %s902_s28 }
 0x23e   : > { %653 = vrot.lane.b32.xlu0 %v585_v8, %s902_s28 }
 0x241   : > { %613 = vrot.lane.b32.xlu1 %v565_v4, %s901_s26 }
 0x245   : > { %655 = vrot.lane.b32.xlu1 %v590_v6, %s902_s28 }
 0x297   : > { %v612_v9 = vpop.permute.xlu1 %611 }
 0x298   : > { %634 = vst.msk [vmem:[%s1076_s8 + $0x8] sm:$0xff] %vm319_vm0, %v612_v9  ;;  %v610_v10 = vpop.permute.xlu0 %609 }
 0x299   : > { %633 = vst.msk [vmem:[%s1076_s8] sm:$0xff] %vm319_vm0, %v610_v10 }
 0x29b   : > { %v620_v11 = vpop.permute.xlu1 %619 }
 0x29c   : > { %638 = vst.msk [vmem:[%s1076_s8 + $0x28] sm:$0xff] %vm319_vm0, %v620_v11  ;;  %v618_v12 = vpop.permute.xlu0 %617 }
 0x29d   : > { %637 = vst.msk [vmem:[%s1076_s8 + $0x20] sm:$0xff] %vm319_vm0, %v618_v12 }
 0x29f   : > { %v644_v13 = vpop.permute.xlu1 %643 }
 0x2a0   : > { %666 = vst.msk [vmem:[%s307_s11 + $0x8] sm:$0xff] %vm319_vm0, %v644_v13  ;;  %v642_v14 = vpop.permute.xlu0 %641 }
 0x2a1   : > { %665 = vst.msk [vmem:[%s307_s11] sm:$0xff] %vm319_vm0, %v642_v14 }
 0x2a3   : > { %v652_v15 = vpop.permute.xlu1 %651 }
 0x2a4   : > { %670 = vst.msk [vmem:[%s307_s11 + $0x28] sm:$0xff] %vm319_vm0, %v652_v15  ;;  %v650_v16 = vpop.permute.xlu0 %649 }
 0x2a5   : > { %669 = vst.msk [vmem:[%s307_s11 + $0x20] sm:$0xff] %vm319_vm0, %v650_v16 }
 0x2a7   : > { %v616_v17 = vpop.permute.xlu1 %615 }
 0x2a8   : > { %636 = vst.msk [vmem:[%s1076_s8 + $0x18] sm:$0xff] %vm319_vm0, %v616_v17  ;;  %v622_v18 = vpop.permute.xlu0 %621 }
 0x2a9   : > { %639 = vst.msk [vmem:[%s1076_s8 + $0x30] sm:$0xff] %vm319_vm0, %v622_v18 }
 0x2ab   : > { %v624_v19 = vpop.permute.xlu1 %623 }
 0x2ac   : > { %640 = vst.msk [vmem:[%s1076_s8 + $0x38] sm:$0xff] %vm319_vm0, %v624_v19  ;;  %v646_v22 = vpop.permute.xlu0 %645 }
 0x2ad   : > { %667 = vst.msk [vmem:[%s307_s11 + $0x10] sm:$0xff] %vm319_vm0, %v646_v22 }
 0x2af   : > { %v648_v23 = vpop.permute.xlu1 %647 }
 0x2b0   : > { %668 = vst.msk [vmem:[%s307_s11 + $0x18] sm:$0xff] %vm319_vm0, %v648_v23  ;;  %v654_v24 = vpop.permute.xlu0 %653 }
 0x2b1   : > { %671 = vst.msk [vmem:[%s307_s11 + $0x30] sm:$0xff] %vm319_vm0, %v654_v24 }
 0x2b3   : > { %v614_v25 = vpop.permute.xlu1 %613 }
 0x2b4   : > { %635 = vst.msk [vmem:[%s1076_s8 + $0x10] sm:$0xff] %vm319_vm0, %v614_v25 }
 0x2b7   : > { %v656_v26 = vpop.permute.xlu1 %655 }
 0x2b8   : > { %672 = vst.msk [vmem:[%s307_s11 + $0x38] sm:$0xff] %vm319_vm0, %v656_v26 }
 0x2b9 PF: > { %s18_s24 = sadd.s32 1, %s899_s24  }
 0x2ba   : > { %p15_p4 = scmp.ge.s32.totalorder %s18_s24, 4  }
 0x2bc   :  { %17 = sbr.rel (!%p15_p4) target bundleno = 1 (0x1), region = 94 }

// kernel: transformer_encoder_block.5
= control target key start
LH: loop header
LB: loop body
LE: loop exit
PB: predicated region body
PF: predicated region fallthrough
CT: control target
= control target key end

     0   :  { %s1387_s13 = smov 0   ;;  %s1613_s0 = inlined_call_operand.vmem [shape: f32[128,32], index: 0, kind: input, shape index: {}]   ;;  %s1614_s1 = inlined_call_operand.vmem [shape: f32[128,32], index: 1, kind: input, shape index: {}]   ;;  %s1615_s2 = inlined_call_operand.vmem [shape: f32[32,32], index: 2, kind: input, shape index: {}]   ;;  %s1616_s3 = inlined_call_operand.vmem [shape: f32[1,32], index: 3, kind: input, shape index: {}]   ;;  %s1617_s4 = inlined_call_operand.vmem [shape: f32[1,32], index: 4, kind: input, shape index: {}]   ;;  %s1618_s5 = inlined_call_operand.vmem [shape: f32[1,32], index: 5, kind: input, shape index: {}]   ;;  %s1619_s6 = inlined_call_operand.vmem [shape: f32[32,64], index: 6, kind: input, shape index: {}]   ;;  %s1620_s7 = inlined_call_operand.vmem [shape: f32[1,64], index: 7, kind: input, shape index: {}]   ;;  %s1621_s8 = inlined_call_operand.vmem [shape: f32[64,32], index: 8, kind: input, shape index: {}]   ;;  %s1622_s9 = inlined_call_operand.vmem [shape: f32[1,32], index: 9, kind: input, shape index: {}]   ;;  %s1623_s10 = inlined_call_operand.vmem [shape: f32[128,32], index: 10, kind: output, shape index: {}]  }
   0x1 LB: > { %s1094_s14 = sadd.s32 4294967295, %s1330_s13   ;;  %p1098_p0 = scmp.ge.s32.totalorder %s1330_s13, 1  ;;  %s1330_s13 = sphi %s1387_s13, %s20_s13  }
   0x2   : > { %p324_p1 = scmp.lt.s32.totalorder %s1330_s13, 3 }
   0x4   : > { %p325_p2 = pnand %p1098_p0, %p324_p1 }
   0x5   : > { %v401_v0 = vld [vmem:[%s1615_s2] sm:$0xff] (!%p325_p2)  ;;  %v402_v1 = vld [vmem:[%s1615_s2 + $0x8] sm:$0xff] (!%p325_p2)  ;;  %v403_v2 = vld [vmem:[%s1615_s2 + $0x10] sm:$0xff] (!%p325_p2)  ;;  %s1099_s21 = sshll.u32 (!%p325_p2), %s1094_s14, 3  ;;  %vm412_vm0 = vcmask (!%p325_p2), 261120   ;;  %vm880_vm1 = vcmask (!%p325_p2), 523264  }
   0x6   : > { %328 = sbr.rel (%p325_p2) target bundleno = 1015 (0x3f7), region = 60  ;;  %v1244_v3 = vpack.c.bf16 (!%p325_p2), %v402_v1, %v401_v0  ;;  %v404_v4 = vld [vmem:[%s1615_s2 + $0x18] sm:$0xff] (!%p325_p2)  ;;  %p368_p3 = scmp.lt.s32.totalorder (!%p325_p2), %s1099_s21, 15  ;;  %v1105_v14 = vld [vmem:[%s1616_s3] ss:$0 sm:$0xff] (!%p325_p2) }
   0x7   : > { %v1248_v5 = vpack.c.bf16 (!%p325_p2), %v404_v4, %v403_v2 }
   0x8   : > { %1245 = vmatprep.subr.bf16.mxu0 (!%p325_p2), %v1244_v3 }
   0x9   : > { %1247 = vmatpush3.bf16.msra.mxu0 (!%p325_p2), %v1244_v3 }
   0xa   : > { %1249 = vmatprep.subr.bf16.mxu0 (!%p325_p2), %v1248_v5 }
   0xd   : > { %s1625_s21 = smov (!%p368_p3, %s1099_s21), 15  ;;  %1251 = vmatpush3.bf16.msra.mxu0 %v1248_v5 }
   0xe   : > { %s1407_s24 = sshll.u32 %s1625_s21, 3 }
   0xf   : > { %s377_s27 = scalar_lea.vmem %s1614_s1, %s1407_s24  ;;  %s1425_s30 = scalar_lea.vmem %s1613_s0, %s1407_s24 }
  0x10   : > { %v393_v6 = vld [vmem:[%s377_s27] sm:$0xff]  ;;  %v394_v7 = vld [vmem:[%s377_s27 + $0x8] sm:$0xff]  ;;  %v395_v8 = vld [vmem:[%s377_s27 + $0x10] sm:$0xff]  ;;  %s383_s11 = scalar_lea.vmem %s1623_s10, %s1407_s24 }
  0x11   : > { %1184 = vmatprep.mubr.msk.f32.mxu0 %vm412_vm0, %v393_v6  ;;  %v396_v9 = vld [vmem:[%s377_s27 + $0x18] sm:$0xff]  ;;  %v397_v10 = vld [vmem:[%s377_s27 + $0x20] sm:$0xff]  ;;  %v398_v11 = vld [vmem:[%s377_s27 + $0x28] sm:$0xff] }
  0x12   : > { %1185 = vmatmul.mubr.msk.f32.vlgmr.msra.gmra.mrb[0].mxu0 %vm412_vm0, %v394_v7  ;;  %v399_v12 = vld [vmem:[%s377_s27 + $0x30] sm:$0xff]  ;;  %v400_v13 = vld [vmem:[%s377_s27 + $0x38] sm:$0xff]  ;;  %v386_v15 = vld [vmem:[%s1425_s30 + $0x8] sm:$0xff] }
  0x13   : > { %1187 = vmatprep.mubr.msk.f32.mxu0 %vm412_vm0, %v395_v8  ;;  %v385_v18 = vld [vmem:[%s1425_s30] sm:$0xff]  ;;  %v388_v23 = vld [vmem:[%s1425_s30 + $0x18] sm:$0xff]  ;;  %v387_v26 = vld [vmem:[%s1425_s30 + $0x10] sm:$0xff] }
  0x14   : > { %v390_v32 = vld [vmem:[%s1425_s30 + $0x28] sm:$0xff]  ;;  %v389_v35 = vld [vmem:[%s1425_s30 + $0x20] sm:$0xff]  ;;  %v392_v42 = vld [vmem:[%s1425_s30 + $0x38] sm:$0xff] }
  0x15   : > { %v391_v45 = vld [vmem:[%s1425_s30 + $0x30] sm:$0xff] }
  0x16   : > { %1188 = vmatmul.mubr.msk.f32.gmra.mrb[2].mxu0 %vm412_vm0, %v396_v9 }
  0x17   : > { %1190 = vmatprep.mubr.msk.f32.mxu0 %vm412_vm0, %v397_v10 }
  0x1a   : > { %1191 = vmatmul.mubr.msk.f32.gmra.mrb[4].mxu0 %vm412_vm0, %v398_v11 }
  0x1b   : > { %1193 = vmatprep.mubr.msk.f32.mxu0 %vm412_vm0, %v399_v12 }
  0x1e   : > { %1194 = vmatmul.mubr.msk.f32.gmra.mrb[6].mxu0 %vm412_vm0, %v400_v13 }
  0xe5   : > { %v1186_v16 = vpop.f32.mrb[0].mxu0 }
  0xe6   : > { %v509_v17 = vadd.f32 %v1186_v16, %v1105_v14  ;;  %v503_v19 = vpop.f32.mrb[1].mxu0 }
  0xe7   : > { %v504_v20 = vadd.f32 %v1105_v14, %v503_v19 }
  0xe8   : > { %v1432_v21 = vadd.f32 %v509_v17, %v386_v15 }
  0xe9   : > { %v1434_v22 = vadd.f32 %v504_v20, %v385_v18  ;;  %v1189_v24 = vpop.f32.mrb[2].mxu0 }
  0xea   : > { %v519_v25 = vadd.f32 %v1189_v24, %v1105_v14  ;;  %v513_v27 = vpop.f32.mrb[3].mxu0  ;;  %v555_v39 = vsel %vm412_vm0, %v1432_v21, 0.0 }
  0xeb   : > { %v514_v28 = vadd.f32 %v1105_v14, %v513_v27  ;;  %v552_v29 = vsel %vm412_vm0, %v1434_v22, 0.0 }
  0xec   : > { %v1440_v30 = vadd.f32 %v519_v25, %v388_v23  ;;  %553 = vadd.xlane.f32.xlu0 %v552_v29 }
  0xed   : > { %v1442_v31 = vadd.f32 %v514_v28, %v387_v26  ;;  %v1192_v33 = vpop.f32.mrb[4].mxu0 }
  0xee   : > { %v529_v34 = vadd.f32 %v1192_v33, %v1105_v14  ;;  %v523_v36 = vpop.f32.mrb[5].mxu0  ;;  %v561_v48 = vsel %vm412_vm0, %v1440_v30, 0.0 }
  0xef   : > { %v524_v37 = vadd.f32 %v1105_v14, %v523_v36  ;;  %v558_v38 = vsel %vm412_vm0, %v1442_v31, 0.0  ;;  %v686_v36 = vld [vmem:[%s1619_s6 + $0x8] sm:$0xff] }
  0xf0   : > { %v1450_v40 = vadd.f32 %v529_v34, %v390_v32  ;;  %559 = vadd.xlane.f32.xlu1 %v558_v38  ;;  %556 = vadd.xlane.f32.xlu0 %v555_v39  ;;  %v687_v38 = vld [vmem:[%s1619_s6 + $0x10] sm:$0xff]  ;;  %v688_v39 = vld [vmem:[%s1619_s6 + $0x18] sm:$0xff] }
  0xf1   : > { %v1452_v41 = vadd.f32 %v524_v37, %v389_v35  ;;  %v1195_v43 = vpop.f32.mrb[6].mxu0  ;;  %v685_v35 = vld [vmem:[%s1619_s6] sm:$0xff] }
  0xf2   : > { %v539_v44 = vadd.f32 %v1195_v43, %v1105_v14  ;;  %v533_v46 = vpop.f32.mrb[7].mxu0  ;;  %v567_v52 = vsel %vm412_vm0, %v1450_v40, 0.0  ;;  %v1252_v37 = vpack.c.bf16 %v686_v36, %v685_v35 }
  0xf3   : > { %v534_v47 = vadd.f32 %v1105_v14, %v533_v46  ;;  %v564_v49 = vsel %vm412_vm0, %v1452_v41, 0.0 }
  0xf4   : > { %v1460_v50 = vadd.f32 %v539_v44, %v392_v42  ;;  %562 = vadd.xlane.f32.xlu1 %v561_v48  ;;  %565 = vadd.xlane.f32.xlu0 %v564_v49  ;;  %v1256_v42 = vpack.c.bf16 %v688_v39, %v687_v38 }
  0xf5   : > { %v1462_v51 = vadd.f32 %v534_v47, %v391_v45  ;;  %1253 = vmatprep.subr.bf16.mxu1 %v1252_v37 }
  0xf6   : > { %v573_v54 = vsel %vm412_vm0, %v1460_v50, 0.0  ;;  %1255 = vmatpush3.bf16.msra.mxu1 %v1252_v37 }
  0xf7   : > { %v570_v53 = vsel %vm412_vm0, %v1462_v51, 0.0  ;;  %1257 = vmatprep.subr.bf16.mxu1 %v1256_v42 }
  0xf8   : > { %568 = vadd.xlane.f32.xlu1 %v567_v52  ;;  %571 = vadd.xlane.f32.xlu0 %v570_v53 }
  0xfa   : > { %1259 = vmatpush3.bf16.msra.mxu1 %v1256_v42 }
  0xfc   : > { %574 = vadd.xlane.f32.xlu1 %v573_v54 }
 0x179   : > { %v554_v55 = vpop.xlane.xlu0 %553 }
 0x17a   : > { %v577_v56 = vmul.f32 0.03125, %v554_v55 }
 0x17c   : > { %v1471_v57 = vsub.f32 %v1434_v22, %v577_v56 }
 0x17d   : > { %v560_v58 = vpop.xlane.xlu1 %559  ;;  %v557_v59 = vpop.xlane.xlu0 %556 }
 0x17e   : > { %v579_v60 = vmul.f32 0.03125, %v560_v58  ;;  %v578_v61 = vmul.f32 0.03125, %v557_v59  ;;  %v593_v62 = vmul.f32 %v1471_v57, %v1471_v57 }
 0x180   : > { %v1476_v63 = vsub.f32 %v1442_v31, %v579_v60  ;;  %v1479_v0 = vsub.f32 %v1432_v21, %v578_v61  ;;  %v601_v1 = vsel %vm412_vm0, %v593_v62, 0.0 }
 0x181   : > { %v563_v2 = vpop.xlane.xlu1 %562  ;;  %602 = vadd.xlane.f32.xlu0 %v601_v1  ;;  %v566_v3 = vpop.xlane.xlu0 %565 }
 0x182   : > { %v580_v4 = vmul.f32 0.03125, %v563_v2  ;;  %v581_v5 = vmul.f32 0.03125, %v566_v3  ;;  %v595_v6 = vmul.f32 %v1476_v63, %v1476_v63  ;;  %v594_v7 = vmul.f32 %v1479_v0, %v1479_v0 }
 0x184   : > { %v1487_v8 = vsub.f32 %v1440_v30, %v580_v4  ;;  %v1490_v9 = vsub.f32 %v1452_v41, %v581_v5  ;;  %v607_v10 = vsel %vm412_vm0, %v595_v6, 0.0  ;;  %v604_v11 = vsel %vm412_vm0, %v594_v7, 0.0  ;;  %v1114_v6 = vld [vmem:[%s1617_s4] ss:$0 sm:$0xff] }
 0x185   : > { %v569_v12 = vpop.xlane.xlu1 %568  ;;  %608 = vadd.xlane.f32.xlu0 %v607_v10  ;;  %605 = vadd.xlane.f32.xlu1 %v604_v11  ;;  %v572_v13 = vpop.xlane.xlu0 %571 }
 0x186   : > { %v582_v14 = vmul.f32 0.03125, %v569_v12  ;;  %v583_v15 = vmul.f32 0.03125, %v572_v13  ;;  %v596_v16 = vmul.f32 %v1487_v8, %v1487_v8  ;;  %v597_v17 = vmul.f32 %v1490_v9, %v1490_v9  ;;  %v1115_v12 = vld [vmem:[%s1618_s5] ss:$0 sm:$0xff] }
 0x188   : > { %v1499_v18 = vsub.f32 %v1450_v40, %v582_v14  ;;  %v1502_v19 = vsub.f32 %v1462_v51, %v583_v15  ;;  %v610_v20 = vsel %vm412_vm0, %v596_v16, 0.0  ;;  %v613_v23 = vsel %vm412_vm0, %v597_v17, 0.0 }
 0x189   : > { %v575_v24 = vpop.xlane.xlu1 %574  ;;  %611 = vadd.xlane.f32.xlu1 %v610_v20  ;;  %614 = vadd.xlane.f32.xlu0 %v613_v23 }
 0x18a   : > { %v584_v25 = vmul.f32 0.03125, %v575_v24  ;;  %v598_v26 = vmul.f32 %v1499_v18, %v1499_v18  ;;  %v599_v27 = vmul.f32 %v1502_v19, %v1502_v19 }
 0x18c   : > { %v1511_v28 = vsub.f32 %v1460_v50, %v584_v25  ;;  %v616_v29 = vsel %vm412_vm0, %v598_v26, 0.0  ;;  %v619_v32 = vsel %vm412_vm0, %v599_v27, 0.0 }
 0x18d   : > { %617 = vadd.xlane.f32.xlu1 %v616_v29  ;;  %620 = vadd.xlane.f32.xlu0 %v619_v32 }
 0x18e   : > { %v600_v33 = vmul.f32 %v1511_v28, %v1511_v28 }
 0x190   : > { %v622_v34 = vsel %vm412_vm0, %v600_v33, 0.0 }
 0x191   : > { %623 = vadd.xlane.f32.xlu1 %v622_v34 }
 0x20e   : > { %v603_v43 = vpop.xlane.xlu0 %602 }
 0x20f   : > { %v625_v44 = vmul.f32 0.03125, %v603_v43 }
 0x211   : > { %v633_v45 = vadd.f32 1e-05, %v625_v44 }
 0x212   : > { %v606_v46 = vpop.xlane.xlu1 %605  ;;  %v609_v47 = vpop.xlane.xlu0 %608 }
 0x213   : > { %1292 = vrsqrt.f32 %v633_v45  ;;  %v626_v48 = vmul.f32 0.03125, %v606_v46  ;;  %v627_v49 = vmul.f32 0.03125, %v609_v47  ;;  %v866_v47 = vld [vmem:[%s1621_s8 + $0x8] sm:$0xff] }
 0x215   : > { %v634_v52 = vadd.f32 1e-05, %v626_v48  ;;  %v635_v53 = vadd.f32 1e-05, %v627_v49  ;;  %v868_v49 = vld [vmem:[%s1621_s8 + $0x18] sm:$0xff] }
 0x216   : > { %v612_v54 = vpop.xlane.xlu1 %611  ;;  %v615_v55 = vpop.xlane.xlu0 %614 }
 0x217   : > { %1294 = vrsqrt.f32 %v634_v52  ;;  %v628_v56 = vmul.f32 0.03125, %v612_v54  ;;  %v629_v58 = vmul.f32 0.03125, %v615_v55  ;;  %v870_v54 = vld [vmem:[%s1621_s8 + $0x28] sm:$0xff] }
 0x218   : > { %1296 = vrsqrt.f32 %v635_v53  ;;  %v869_v53 = vld [vmem:[%s1621_s8 + $0x20] sm:$0xff] }
 0x219   : > { %v636_v59 = vadd.f32 1e-05, %v628_v56  ;;  %v637_v60 = vadd.f32 1e-05, %v629_v58  ;;  %v1268_v55 = vpack.c.bf16 %v870_v54, %v869_v53  ;;  %v871_v56 = vld [vmem:[%s1621_s8 + $0x30] sm:$0xff]  ;;  %v872_v58 = vld [vmem:[%s1621_s8 + $0x38] sm:$0xff] }
 0x21a   : > { %v618_v61 = vpop.xlane.xlu1 %617  ;;  %v621_v62 = vpop.xlane.xlu0 %620 }
 0x21b   : > { %1298 = vrsqrt.f32 %v636_v59  ;;  %v630_v1 = vmul.f32 0.03125, %v618_v61  ;;  %v631_v2 = vmul.f32 0.03125, %v621_v62  ;;  %v1272_v59 = vpack.c.bf16 %v872_v58, %v871_v56 }
 0x21c   : > { %1300 = vrsqrt.f32 %v637_v60  ;;  %v1116_v60 = vld [vmem:[%s1620_s7] ss:$0 sm:$0xff] }
 0x21d   : > { %v1293_v3 = vpop.eup %1292  ;;  %v638_v4 = vadd.f32 1e-05, %v630_v1  ;;  %v639_v5 = vadd.f32 1e-05, %v631_v2 }
 0x21e   : > { %v624_v7 = vpop.xlane.xlu1 %623  ;;  %v649_v10 = vmul.f32 %v1293_v3, %v1471_v57 }
 0x21f   : > { %1302 = vrsqrt.f32 %v638_v4  ;;  %v632_v11 = vmul.f32 0.03125, %v624_v7 }
 0x220   : > { %1304 = vrsqrt.f32 %v639_v5  ;;  %v663_v13 = vmul.f32 %v1114_v6, %v649_v10 }
 0x221   : > { %v1295_v14 = vpop.eup %1294  ;;  %v640_v15 = vadd.f32 1e-05, %v632_v11 }
 0x222   : > { %v1297_v16 = vpop.eup %1296  ;;  %v677_v17 = vadd.f32 %v1115_v12, %v663_v13  ;;  %v650_v20 = vmul.f32 %v1295_v14, %v1479_v0 }
 0x223   : > { %1306 = vrsqrt.f32 %v640_v15  ;;  %v651_v23 = vmul.f32 %v1297_v16, %v1476_v63 }
 0x224   : > { %1204 = vmatprep.mubr.msk.f32.mxu1 %vm412_vm0, %v677_v17  ;;  %v664_v57 = vmul.f32 %v1114_v6, %v650_v20 }
 0x225   : > { %v1299_v24 = vpop.eup %1298  ;;  %v665_v25 = vmul.f32 %v1114_v6, %v651_v23 }
 0x226   : > { %v1301_v26 = vpop.eup %1300  ;;  %v678_v27 = vadd.f32 %v1115_v12, %v664_v57  ;;  %v652_v29 = vmul.f32 %v1299_v24, %v1487_v8 }
 0x227   : > { %v679_v32 = vadd.f32 %v1115_v12, %v665_v25  ;;  %v653_v33 = vmul.f32 %v1301_v26, %v1490_v9 }
 0x228   : > { %1205 = vmatmul.mubr.msk.f32.vlgmr.msra.gmra.mrb[0].mxu1 %vm412_vm0, %v678_v27  ;;  %v666_v34 = vmul.f32 %v1114_v6, %v652_v29 }
 0x229   : > { %v1303_v35 = vpop.eup %1302  ;;  %1207 = vmatprep.mubr.msk.f32.mxu1 %vm412_vm0, %v679_v32  ;;  %v667_v0 = vmul.f32 %v1114_v6, %v653_v33 }
 0x22a   : > { %v1305_v63 = vpop.eup %1304  ;;  %v680_v36 = vadd.f32 %v1115_v12, %v666_v34  ;;  %v654_v37 = vmul.f32 %v1303_v35, %v1499_v18 }
 0x22b   : > { %v681_v38 = vadd.f32 %v1115_v12, %v667_v0  ;;  %v655_v39 = vmul.f32 %v1305_v63, %v1502_v19  ;;  %v865_v19 = vld [vmem:[%s1621_s8] sm:$0xff] }
 0x22c   : > { %1208 = vmatmul.mubr.msk.f32.gmra.mrb[2].mxu1 %vm412_vm0, %v680_v36  ;;  %v668_v8 = vmul.f32 %v1114_v6, %v654_v37  ;;  %v1260_v48 = vpack.c.bf16 %v866_v47, %v865_v19 }
 0x22d   : > { %v1307_v42 = vpop.eup %1306  ;;  %1210 = vmatprep.mubr.msk.f32.mxu1 %vm412_vm0, %v681_v38  ;;  %v669_v9 = vmul.f32 %v1114_v6, %v655_v39 }
 0x22e   : > { %v682_v43 = vadd.f32 %v1115_v12, %v668_v8  ;;  %v656_v44 = vmul.f32 %v1307_v42, %v1511_v28  ;;  %1261 = vmatprep.subr.bf16.mxu0 %v1260_v48  ;;  %1276 = vmatprep.subr.bf16.mxu1 %v1260_v48  ;;  %v867_v28 = vld [vmem:[%s1621_s8 + $0x10] sm:$0xff] }
 0x22f   : > { %v683_v45 = vadd.f32 %v1115_v12, %v669_v9  ;;  %1263 = vmatpush3.bf16.msra.mxu0 %v1260_v48  ;;  %1280 = vmatpush3.bf16.msra.mxu1 %v1260_v48  ;;  %v1264_v52 = vpack.c.bf16 %v868_v49, %v867_v28 }
 0x230   : > { %1211 = vmatmul.mubr.msk.f32.gmra.mrb[4].mxu1 %vm412_vm0, %v682_v43  ;;  %v670_v46 = vmul.f32 %v1114_v6, %v656_v44 }
 0x231   : > { %1213 = vmatprep.mubr.msk.f32.mxu1 %vm412_vm0, %v683_v45  ;;  %1265 = vmatprep.subr.bf16.mxu0 %v1264_v52 }
 0x232   : > { %v684_v18 = vadd.f32 %v1115_v12, %v670_v46  ;;  %1277 = vmatprep.subr.bf16.mxu1 %v1264_v52 }
 0x233   : > { %1267 = vmatpush3.bf16.msra.mxu0 %v1264_v52  ;;  %1281 = vmatpush3.bf16.msra.mxu1 %v1264_v52 }
 0x234   : > { %1214 = vmatmul.mubr.msk.f32.gmra.mrb[6].mxu1 %vm412_vm0, %v684_v18  ;;  %1269 = vmatprep.subr.bf16.mxu0 %v1268_v55 }
 0x235   : > { %1278 = vmatprep.subr.bf16.mxu1 %v1268_v55 }
 0x237   : > { %1271 = vmatpush3.bf16.msra.mxu0 %v1268_v55  ;;  %1282 = vmatpush3.bf16.msra.mxu1 %v1268_v55 }
 0x238   : > { %1273 = vmatprep.subr.bf16.mxu0 %v1272_v59  ;;  %1279 = vmatprep.subr.bf16.mxu1 %v1272_v59 }
 0x23b   : > { %1275 = vmatpush3.bf16.msra.mxu0 %v1272_v59  ;;  %1283 = vmatpush3.bf16.msra.mxu1 %v1272_v59 }
 0x2fb   : > { %v1206_v61 = vpop.f32.mrb[0].mxu1 }
 0x2fc   : > { %v792_v62 = vadd.f32 %v1206_v61, %v1116_v60  ;;  %v786_v1 = vpop.f32.mrb[1].mxu1  ;;  %v1125_v61 = vld [vmem:[%s1622_s9] ss:$0 sm:$0xff] }
 0x2fd   : > { %v787_v2 = vadd.f32 %v1116_v60, %v786_v1 }
 0x2fe   : > { %v834_v3 = vmul.f32 0.70710677, %v792_v62  ;;  %v826_v0 = vmul.f32 0.5, %v792_v62 }
 0x2ff   : > { %v833_v4 = vmul.f32 0.70710677, %v787_v2  ;;  %v1209_v5 = vpop.f32.mrb[2].mxu1  ;;  %v825_v34 = vmul.f32 0.5, %v787_v2 }
 0x300   : > { %1308 = verf.f32 %v834_v3  ;;  %v802_v6 = vadd.f32 %v1209_v5, %v1116_v60  ;;  %v796_v7 = vpop.f32.mrb[3].mxu1 }
 0x301   : > { %1310 = verf.f32 %v833_v4  ;;  %v797_v10 = vadd.f32 %v1116_v60, %v796_v7 }
 0x302   : > { %v836_v11 = vmul.f32 0.70710677, %v802_v6  ;;  %v828_v9 = vmul.f32 0.5, %v802_v6 }
 0x303   : > { %v835_v12 = vmul.f32 0.70710677, %v797_v10  ;;  %v1212_v13 = vpop.f32.mrb[4].mxu1  ;;  %v827_v8 = vmul.f32 0.5, %v797_v10 }
 0x304   : > { %1312 = verf.f32 %v836_v11  ;;  %v812_v14 = vadd.f32 %v1212_v13, %v1116_v60  ;;  %v806_v15 = vpop.f32.mrb[5].mxu1 }
 0x305   : > { %1314 = verf.f32 %v835_v12  ;;  %v807_v16 = vadd.f32 %v1116_v60, %v806_v15 }
 0x306   : > { %v838_v17 = vmul.f32 0.70710677, %v812_v14  ;;  %v830_v48 = vmul.f32 0.5, %v812_v14 }
 0x307   : > { %v837_v20 = vmul.f32 0.70710677, %v807_v16  ;;  %v1215_v23 = vpop.f32.mrb[6].mxu1  ;;  %v829_v19 = vmul.f32 0.5, %v807_v16 }
 0x308   : > { %1316 = verf.f32 %v838_v17  ;;  %v822_v57 = vadd.f32 %v1215_v23, %v1116_v60  ;;  %v816_v24 = vpop.f32.mrb[7].mxu1 }
 0x309   : > { %1318 = verf.f32 %v837_v20  ;;  %v817_v25 = vadd.f32 %v1116_v60, %v816_v24 }
 0x30a   : > { %v1309_v26 = vpop.eup %1308  ;;  %v840_v27 = vmul.f32 0.70710677, %v822_v57  ;;  %v832_v58 = vmul.f32 0.5, %v822_v57 }
 0x30b   : > { %v1311_v29 = vpop.eup %1310  ;;  %v850_v32 = vadd.f32 1.0, %v1309_v26  ;;  %v839_v33 = vmul.f32 0.70710677, %v817_v25  ;;  %v831_v55 = vmul.f32 0.5, %v817_v25 }
 0x30c   : > { %v849_v35 = vadd.f32 1.0, %v1311_v29  ;;  %1320 = verf.f32 %v840_v27 }
 0x30d   : > { %1322 = verf.f32 %v839_v33  ;;  %v858_v38 = vmul.f32 %v850_v32, %v826_v0 }
 0x30e   : > { %v1313_v63 = vpop.eup %1312  ;;  %v857_v36 = vmul.f32 %v849_v35, %v825_v34 }
 0x30f   : > { %v1315_v37 = vpop.eup %1314  ;;  %v852_v39 = vadd.f32 1.0, %v1313_v63 }
 0x310   : > { %v851_v42 = vadd.f32 1.0, %v1315_v37  ;;  %1232 = vmatprep.mubr.msk.f32.mxu0 %vm880_vm1, %v857_v36 }
 0x311   : > { %1233 = vmatmul.mubr.msk.f32.vlgmr.msra.gmra.mrb[8].mxu0 %vm880_vm1, %v858_v38  ;;  %v860_v46 = vmul.f32 %v852_v39, %v828_v9 }
 0x312   : > { %v1317_v43 = vpop.eup %1316  ;;  %v859_v44 = vmul.f32 %v851_v42, %v827_v8 }
 0x313   : > { %v1319_v45 = vpop.eup %1318  ;;  %v854_v18 = vadd.f32 1.0, %v1317_v43 }
 0x314   : > { %v853_v47 = vadd.f32 1.0, %v1319_v45  ;;  %1235 = vmatprep.mubr.msk.f32.mxu0 %vm880_vm1, %v859_v44 }
 0x315   : > { %1236 = vmatmul.mubr.msk.f32.gmra.mrb[10].mxu0 %vm880_vm1, %v860_v46  ;;  %v862_v53 = vmul.f32 %v854_v18, %v830_v48 }
 0x316   : > { %v1321_v28 = vpop.eup %1320  ;;  %v861_v49 = vmul.f32 %v853_v47, %v829_v19 }
 0x317   : > { %v1323_v52 = vpop.eup %1322  ;;  %v856_v54 = vadd.f32 1.0, %v1321_v28 }
 0x318   : > { %v855_v56 = vadd.f32 1.0, %v1323_v52  ;;  %1238 = vmatprep.mubr.msk.f32.mxu1 %vm880_vm1, %v861_v49 }
 0x319   : > { %1239 = vmatmul.mubr.msk.f32.vlgmr.msra.gmra.mrb[8].mxu1 %vm880_vm1, %v862_v53  ;;  %v864_v60 = vmul.f32 %v856_v54, %v832_v58 }
 0x31a   : > { %v863_v59 = vmul.f32 %v855_v56, %v831_v55 }
 0x31c   : > { %1241 = vmatprep.mubr.msk.f32.mxu1 %vm880_vm1, %v863_v59 }
 0x31d   : > { %1242 = vmatmul.mubr.msk.f32.gmra.mrb[10].mxu1 %vm880_vm1, %v864_v60 }
 0x3e4   : > { %v1234_v62 = vpop.f32.mrb[8].mxu0 }
 0x3e5   : > { %v977_v1 = vadd.f32 %v1234_v62, %v1125_v61  ;;  %v971_v2 = vpop.f32.mrb[9].mxu0 }
 0x3e6   : > { %v972_v3 = vadd.f32 %v1125_v61, %v971_v2 }
 0x3e7   : > { %v1011_v4 = vadd.f32 %v977_v1, %v1432_v21 }
 0x3e8   : > { %v1010_v5 = vadd.f32 %v972_v3, %v1434_v22  ;;  %v1237_v6 = vpop.f32.mrb[10].mxu0 }
 0x3e9   : > { %1019 = vst.msk [vmem:[%s383_s11 + $0x8] sm:$0xff] %vm412_vm0, %v1011_v4  ;;  %v987_v7 = vadd.f32 %v1237_v6, %v1125_v61  ;;  %v981_v10 = vpop.f32.mrb[11].mxu0 }
 0x3ea   : > { %1018 = vst.msk [vmem:[%s383_s11] sm:$0xff] %vm412_vm0, %v1010_v5  ;;  %v982_v11 = vadd.f32 %v1125_v61, %v981_v10 }
 0x3eb   : > { %v1013_v12 = vadd.f32 %v987_v7, %v1440_v30 }
 0x3ec   : > { %v1012_v13 = vadd.f32 %v982_v11, %v1442_v31  ;;  %v1240_v14 = vpop.f32.mrb[8].mxu1 }
 0x3ed   : > { %1021 = vst.msk [vmem:[%s383_s11 + $0x18] sm:$0xff] %vm412_vm0, %v1013_v12  ;;  %v997_v15 = vadd.f32 %v1240_v14, %v1125_v61  ;;  %v991_v16 = vpop.f32.mrb[9].mxu1 }
 0x3ee   : > { %1020 = vst.msk [vmem:[%s383_s11 + $0x10] sm:$0xff] %vm412_vm0, %v1012_v13  ;;  %v992_v21 = vadd.f32 %v1125_v61, %v991_v16 }
 0x3ef   : > { %v1015_v22 = vadd.f32 %v997_v15, %v1450_v40 }
 0x3f0   : > { %v1014_v17 = vadd.f32 %v992_v21, %v1452_v41  ;;  %v1243_v20 = vpop.f32.mrb[10].mxu1 }
 0x3f1   : > { %1023 = vst.msk [vmem:[%s383_s11 + $0x28] sm:$0xff] %vm412_vm0, %v1015_v22  ;;  %v1007_v23 = vadd.f32 %v1243_v20, %v1125_v61  ;;  %v1001_v57 = vpop.f32.mrb[11].mxu1 }
 0x3f2   : > { %1022 = vst.msk [vmem:[%s383_s11 + $0x20] sm:$0xff] %vm412_vm0, %v1014_v17  ;;  %v1002_v30 = vadd.f32 %v1125_v61, %v1001_v57 }
 0x3f3   : > { %v1017_v31 = vadd.f32 %v1007_v23, %v1460_v50 }
 0x3f4   : > { %v1016_v24 = vadd.f32 %v1002_v30, %v1462_v51 }
 0x3f5   : > { %1025 = vst.msk [vmem:[%s383_s11 + $0x38] sm:$0xff] %vm412_vm0, %v1017_v31 }
 0x3f6   : > { %1024 = vst.msk [vmem:[%s383_s11 + $0x30] sm:$0xff] %vm412_vm0, %v1016_v24 }
 0x3f7 PF: > { %s20_s13 = sadd.s32 1, %s1330_s13  }
 0x3f8   : > { %p17_p4 = scmp.ge.s32.totalorder %s20_s13, 4  }
 0x3fa   :  { %19 = sbr.rel (!%p17_p4) target bundleno = 1 (0x1), region = 93 }

// kernel: transformer_encoder_block.4
= control target key start
LH: loop header
LB: loop body
LE: loop exit
PB: predicated region body
PF: predicated region fallthrough
CT: control target
= control target key end

     0   :  { %s2823_s12 = smov 0   ;;  %s2825_s13 = smov 0   ;;  %s3535_s0 = inlined_call_operand.vmem [shape: f32[2,64,32], index: 0, kind: input, shape index: {}]   ;;  %s3536_s1 = inlined_call_operand.vmem [shape: f32[2,64,32], index: 1, kind: input, shape index: {}]   ;;  %s3537_s2 = inlined_call_operand.vmem [shape: f32[2,64,32], index: 2, kind: input, shape index: {}]   ;;  %s3538_s3 = inlined_call_operand.vmem [shape: f32[2,64,32], index: 3, kind: output, shape index: {}]  }
   0x1   :  { %s2827_s14 = smov 0   ;;  %s2829_s15 = smov 0  }
   0x2   :  { %s2831_s16 = smov 0   ;;  %s2833_s17 = smov 0  }
   0x3   :  { %s2835_s18 = smov 0  }
   0x4 LB: > { %s25_s19 = sadd.s32 1, %s2776_s15  ;;  %s28_s20 = sadd.s32 1, %s2780_s16  ;;  %s2788_s18 = sphi %s2835_s18, %s13_s18   ;;  %s2784_s17 = sphi %s2833_s17, %s3546_s17   ;;  %s2780_s16 = sphi %s2831_s16, %s3545_s16   ;;  %s2776_s15 = sphi %s2829_s15, %s3544_s15   ;;  %s2772_s14 = sphi %s2827_s14, %s3543_s14   ;;  %s2768_s13 = sphi %s2825_s13, %s3542_s13   ;;  %s2764_s12 = sphi %s2823_s12, %s3541_s12  }
   0x5   : > { %p26_p0 = scmp.ge.s32.totalorder %s25_s19, 2  ;;  %p2184_p1 = scmp.ge.s32.totalorder %s2788_s18, 1 }
   0x6   : > { %p199_p2 = scmp.lt.s32.totalorder %s2788_s18, 9  ;;  %s32_s21 = sadd.s32 1, %s2784_s17 }
   0x7   : > { %s3548_s19 = smov (%p26_p0, %s25_s19), 0  ;;  %s3550_s20 = smov (!%p26_p0, %s28_s20), %s2780_s16 }
   0x8   : > { %p200_p3 = pnand %p2184_p1, %p199_p2  ;;  %p30_p4 = scmp.ge.s32.totalorder %s3550_s20, 2 }
   0x9   : > { %s2185_s22 = sshll.u32 (!%p200_p3), %s2768_s13, 2  ;;  %p250_p6 = scmp.lt.s32.totalorder (!%p200_p3), %s2772_s14, 1 }
   0xa   : > { %s3552_s20 = smov (%p30_p4, %s3550_s20), 0  ;;  %s3554_s21 = smov (!%p30_p4, %s32_s21), %s2784_s17 }
   0xb   : > { %p34_p5 = scmp.ge.s32.totalorder %s3554_s21, 2  ;;  %203 = sbr.rel (%p200_p3) target bundleno = 1301 (0x515), region = 32 }
   0xc   : > { %p252_p7 = scmp.lt.s32.totalorder (!%p200_p3), %s2185_s22, 7  ;;  %s2188_s23 = sshll.u32 (!%p200_p3), %s2764_s12, 2 }
   0xd   : > { %s3556_s21 = smov (%p34_p5, %s3554_s21), 0  ;;  %p262_p8 = scmp.lt.s32.totalorder (!%p200_p3), %s2188_s23, 7 }
   0xe   : > { %p2197_p9 = scmp.ne.s32.totalorder (!%p200_p3), %s2764_s12, 0 }
  0x12   : > { %s3558_s14 = smov (!%p250_p6, %s2772_s14), 1  ;;  %s3560_s22 = smov (!%p252_p7, %s2185_s22), 7 }
  0x13   : > { %s2186_s24 = sshll.u32 %s3558_s14, 3  ;;  %s3562_s23 = smov (!%p262_p8, %s2188_s23), 7  ;;  %vm293_vm0 = vcmask (!%p2197_p9), 7168   ;;  %vm326_vm1 = vcmask (!%p2197_p9), 64512   ;;  %v2791_v1 = vmov (!%p2197_p9), -inf   ;;  %v2792_v2 = vmov (!%p2197_p9), 0.0  }
  0x14   : > { %s255_s25 = sadd.s32 %s2186_s24, %s3560_s22  ;;  %s265_s6 = sadd.s32 %s2186_s24, %s3562_s23  ;;  %294 = vst.msk [vmem:[#allocation3] sm:$0xff] (!%p2197_p9), %vm293_vm0, %v2791_v1  ;;  %295 = vst.msk [vmem:[#allocation3 + $0x8] sm:$0xff] (!%p2197_p9), %vm293_vm0, %v2791_v1 }
  0x15   : > { %s2187_s26 = sshll.u32 %s255_s25, 3  ;;  %s2190_s7 = sshll.u32 %s265_s6, 3  ;;  %296 = vst.msk [vmem:[#allocation3 + $0x10] sm:$0xff] (!%p2197_p9), %vm293_vm0, %v2791_v1  ;;  %297 = vst.msk [vmem:[#allocation3 + $0x18] sm:$0xff] (!%p2197_p9), %vm293_vm0, %v2791_v1 }
  0x16   : > { %s2871_s29 = scalar_lea.vmem %s3535_s0, %s2187_s26  ;;  %s2876_s5 = scalar_lea.vmem %s3538_s3, %s2187_s26  ;;  %298 = vst.msk [vmem:[#allocation3 + $0x20] sm:$0xff] (!%p2197_p9), %vm293_vm0, %v2791_v1  ;;  %299 = vst.msk [vmem:[#allocation3 + $0x28] sm:$0xff] (!%p2197_p9), %vm293_vm0, %v2791_v1 }
  0x17   : > { %s2881_s10 = scalar_lea.vmem %s3536_s1, %s2190_s7  ;;  %s2886_s14 = scalar_lea.vmem %s3537_s2, %s2190_s7  ;;  %v2890_v0 = vld [vmem:[%s2871_s29 + $0x10] sm:$0xff] (!%p2197_p9)  ;;  %300 = vst.msk [vmem:[#allocation3 + $0x30] sm:$0xff] (!%p2197_p9), %vm293_vm0, %v2791_v1  ;;  %301 = vst.msk [vmem:[#allocation3 + $0x38] sm:$0xff] (!%p2197_p9), %vm293_vm0, %v2791_v1  ;;  %v343_v3 = vld [vmem:[%s2871_s29] sm:$0xff] (!%p2197_p9) }
  0x18   : > { %292 = sbr.rel (%p2197_p9) target bundleno = 161 (0xa1), region = 36  ;;  %s2790_s22 = smov (!%p2197_p9), 120   ;;  %302 = vst.msk [vmem:[#allocation3 + $0x40] sm:$0xff] (!%p2197_p9), %vm293_vm0, %v2791_v1  ;;  %303 = vst.msk [vmem:[#allocation3 + $0x48] sm:$0xff] (!%p2197_p9), %vm293_vm0, %v2791_v1  ;;  %v346_v4 = vld [vmem:[%s2871_s29 + $0x18] sm:$0xff] (!%p2197_p9)  ;;  %v344_v5 = vld [vmem:[%s2871_s29 + $0x8] sm:$0xff] (!%p2197_p9) }
  0x19   : > { %355 = vrot.lane.b32.xlu1 (!%p2197_p9), %v2890_v0, %s2790_s22  ;;  %304 = vst.msk [vmem:[#allocation3 + $0x50] sm:$0xff] (!%p2197_p9), %vm293_vm0, %v2791_v1  ;;  %305 = vst.msk [vmem:[#allocation3 + $0x58] sm:$0xff] (!%p2197_p9), %vm293_vm0, %v2791_v1  ;;  %351 = vrot.lane.b32.xlu0 (!%p2197_p9), %v343_v3, %s2790_s22  ;;  %s2793_s23 = smov (!%p2197_p9), 112   ;;  %s2794_s24 = smov (!%p2197_p9), 104  }
  0x1a   : > { %306 = vst.msk [vmem:[#allocation3 + $0x60] sm:$0xff] (!%p2197_p9), %vm293_vm0, %v2791_v1  ;;  %307 = vst.msk [vmem:[#allocation3 + $0x68] sm:$0xff] (!%p2197_p9), %vm293_vm0, %v2791_v1 }
  0x1b   : > { %308 = vst.msk [vmem:[#allocation3 + $0x70] sm:$0xff] (!%p2197_p9), %vm293_vm0, %v2791_v1  ;;  %309 = vst.msk [vmem:[#allocation3 + $0x78] sm:$0xff] (!%p2197_p9), %vm293_vm0, %v2791_v1 }
  0x1c   : > { %310 = vst.msk [vmem:[#allocation4] sm:$0xff] (!%p2197_p9), %vm293_vm0, %v2792_v2  ;;  %311 = vst.msk [vmem:[#allocation4 + $0x8] sm:$0xff] (!%p2197_p9), %vm293_vm0, %v2792_v2 }
  0x1d   : > { %312 = vst.msk [vmem:[#allocation4 + $0x10] sm:$0xff] (!%p2197_p9), %vm293_vm0, %v2792_v2  ;;  %313 = vst.msk [vmem:[#allocation4 + $0x18] sm:$0xff] (!%p2197_p9), %vm293_vm0, %v2792_v2  ;;  %357 = vrot.lane.b32.xlu1 (!%p2197_p9), %v346_v4, %s2790_s22  ;;  %353 = vrot.lane.b32.xlu0 (!%p2197_p9), %v344_v5, %s2790_s22 }
  0x1e   : > { %314 = vst.msk [vmem:[#allocation4 + $0x20] sm:$0xff] (!%p2197_p9), %vm293_vm0, %v2792_v2  ;;  %315 = vst.msk [vmem:[#allocation4 + $0x28] sm:$0xff] (!%p2197_p9), %vm293_vm0, %v2792_v2 }
  0x1f   : > { %316 = vst.msk [vmem:[#allocation4 + $0x30] sm:$0xff] %vm293_vm0, %v2792_v2  ;;  %317 = vst.msk [vmem:[#allocation4 + $0x38] sm:$0xff] %vm293_vm0, %v2792_v2 }
  0x20   : > { %318 = vst.msk [vmem:[#allocation4 + $0x40] sm:$0xff] %vm293_vm0, %v2792_v2  ;;  %319 = vst.msk [vmem:[#allocation4 + $0x48] sm:$0xff] %vm293_vm0, %v2792_v2 }
  0x21   : > { %320 = vst.msk [vmem:[#allocation4 + $0x50] sm:$0xff] %vm293_vm0, %v2792_v2  ;;  %321 = vst.msk [vmem:[#allocation4 + $0x58] sm:$0xff] %vm293_vm0, %v2792_v2  ;;  %365 = vrot.lane.b32.xlu1 %v344_v5, %s2793_s23  ;;  %363 = vrot.lane.b32.xlu0 %v343_v3, %s2793_s23 }
  0x22   : > { %322 = vst.msk [vmem:[#allocation4 + $0x60] sm:$0xff] %vm293_vm0, %v2792_v2  ;;  %323 = vst.msk [vmem:[#allocation4 + $0x68] sm:$0xff] %vm293_vm0, %v2792_v2 }
  0x23   : > { %324 = vst.msk [vmem:[#allocation4 + $0x70] sm:$0xff] %vm293_vm0, %v2792_v2  ;;  %325 = vst.msk [vmem:[#allocation4 + $0x78] sm:$0xff] %vm293_vm0, %v2792_v2 }
  0x24   : > { %327 = vst.msk [vmem:[#allocation5] sm:$0xff] %vm326_vm1, %v2792_v2  ;;  %328 = vst.msk [vmem:[#allocation5 + $0x8] sm:$0xff] %vm326_vm1, %v2792_v2 }
  0x25   : > { %329 = vst.msk [vmem:[#allocation5 + $0x10] sm:$0xff] %vm326_vm1, %v2792_v2  ;;  %330 = vst.msk [vmem:[#allocation5 + $0x18] sm:$0xff] %vm326_vm1, %v2792_v2  ;;  %369 = vrot.lane.b32.xlu1 %v346_v4, %s2793_s23  ;;  %367 = vrot.lane.b32.xlu0 %v2890_v0, %s2793_s23 }
  0x26   : > { %331 = vst.msk [vmem:[#allocation5 + $0x20] sm:$0xff] %vm326_vm1, %v2792_v2  ;;  %332 = vst.msk [vmem:[#allocation5 + $0x28] sm:$0xff] %vm326_vm1, %v2792_v2 }
  0x27   : > { %333 = vst.msk [vmem:[#allocation5 + $0x30] sm:$0xff] %vm326_vm1, %v2792_v2  ;;  %334 = vst.msk [vmem:[#allocation5 + $0x38] sm:$0xff] %vm326_vm1, %v2792_v2 }
  0x28   : > { %335 = vst.msk [vmem:[#allocation5 + $0x40] sm:$0xff] %vm326_vm1, %v2792_v2  ;;  %336 = vst.msk [vmem:[#allocation5 + $0x48] sm:$0xff] %vm326_vm1, %v2792_v2 }
  0x29   : > { %337 = vst.msk [vmem:[#allocation5 + $0x50] sm:$0xff] %vm326_vm1, %v2792_v2  ;;  %338 = vst.msk [vmem:[#allocation5 + $0x58] sm:$0xff] %vm326_vm1, %v2792_v2  ;;  %377 = vrot.lane.b32.xlu1 %v344_v5, %s2794_s24  ;;  %375 = vrot.lane.b32.xlu0 %v343_v3, %s2794_s24 }
  0x2a   : > { %339 = vst.msk [vmem:[#allocation5 + $0x60] sm:$0xff] %vm326_vm1, %v2792_v2  ;;  %340 = vst.msk [vmem:[#allocation5 + $0x68] sm:$0xff] %vm326_vm1, %v2792_v2 }
  0x2b   : > { %341 = vst.msk [vmem:[#allocation5 + $0x70] sm:$0xff] %vm326_vm1, %v2792_v2  ;;  %342 = vst.msk [vmem:[#allocation5 + $0x78] sm:$0xff] %vm326_vm1, %v2792_v2 }
  0x2c   : > { %389 = vst.msk [vmem:[#allocation2 + $0x10] sm:$0xff] %vm326_vm1, %v2890_v0  ;;  %387 = vst.msk [vmem:[#allocation2] sm:$0xff] %vm326_vm1, %v343_v3 }
  0x2d   : > { %390 = vst.msk [vmem:[#allocation2 + $0x18] sm:$0xff] %vm326_vm1, %v346_v4  ;;  %388 = vst.msk [vmem:[#allocation2 + $0x8] sm:$0xff] %vm326_vm1, %v344_v5  ;;  %381 = vrot.lane.b32.xlu1 %v346_v4, %s2794_s24  ;;  %379 = vrot.lane.b32.xlu0 %v2890_v0, %s2794_s24 }
  0x8b   : > { %v356_v6 = vpop.permute.xlu1 %355  ;;  %v352_v7 = vpop.permute.xlu0 %351 }
  0x8c   : > { %393 = vst.msk [vmem:[#allocation2 + $0x30] sm:$0xff] %vm326_vm1, %v356_v6  ;;  %391 = vst.msk [vmem:[#allocation2 + $0x20] sm:$0xff] %vm326_vm1, %v352_v7 }
  0x8f   : > { %v358_v8 = vpop.permute.xlu1 %357  ;;  %v354_v9 = vpop.permute.xlu0 %353 }
  0x90   : > { %394 = vst.msk [vmem:[#allocation2 + $0x38] sm:$0xff] %vm326_vm1, %v358_v8  ;;  %392 = vst.msk [vmem:[#allocation2 + $0x28] sm:$0xff] %vm326_vm1, %v354_v9 }
  0x93   : > { %v366_v10 = vpop.permute.xlu1 %365  ;;  %v364_v11 = vpop.permute.xlu0 %363 }
  0x94   : > { %396 = vst.msk [vmem:[#allocation2 + $0x48] sm:$0xff] %vm326_vm1, %v366_v10  ;;  %395 = vst.msk [vmem:[#allocation2 + $0x40] sm:$0xff] %vm326_vm1, %v364_v11 }
  0x97   : > { %v370_v12 = vpop.permute.xlu1 %369  ;;  %v368_v13 = vpop.permute.xlu0 %367 }
  0x98   : > { %398 = vst.msk [vmem:[#allocation2 + $0x58] sm:$0xff] %vm326_vm1, %v370_v12  ;;  %397 = vst.msk [vmem:[#allocation2 + $0x50] sm:$0xff] %vm326_vm1, %v368_v13 }
  0x9b   : > { %v378_v14 = vpop.permute.xlu1 %377  ;;  %v376_v15 = vpop.permute.xlu0 %375 }
  0x9c   : > { %400 = vst.msk [vmem:[#allocation2 + $0x68] sm:$0xff] %vm326_vm1, %v378_v14  ;;  %399 = vst.msk [vmem:[#allocation2 + $0x60] sm:$0xff] %vm326_vm1, %v376_v15 }
  0x9f   : > { %v382_v16 = vpop.permute.xlu1 %381  ;;  %v380_v17 = vpop.permute.xlu0 %379 }
  0xa0   : > { %402 = vst.msk [vmem:[#allocation2 + $0x78] sm:$0xff] %vm326_vm1, %v382_v16  ;;  %401 = vst.msk [vmem:[#allocation2 + $0x70] sm:$0xff] %vm326_vm1, %v380_v17 }
  0xa1 PF: > { %v403_v18 = vld [vmem:[%s2881_s10] sm:$0xff]  ;;  %v404_v19 = vld [vmem:[%s2881_s10 + $0x8] sm:$0xff]  ;;  %v405_v20 = vld [vmem:[%s2881_s10 + $0x10] sm:$0xff]  ;;  %vm495_vm2 = vcmask 64512   ;;  %s2795_s25 = smov 112   ;;  %s2796_s26 = smov 120  }
  0xa2   : > { %v2584_v21 = vpack.i.bf16 %v404_v19, %v403_v18  ;;  %v406_v22 = vld [vmem:[%s2881_s10 + $0x18] sm:$0xff]  ;;  %v2425_v23 = vpack.c.bf16 %v404_v19, %v403_v18  ;;  %vm2973_vm3 = vmpackc.low %vm495_vm2, %vm495_vm2  ;;  %v479_v25 = vld [vmem:[#allocation2] sm:$0xff]  ;;  %s2797_s27 = smov 104   ;;  %vm932_vm4 = vcmask 261120   ;;  %v2798_v11 = vmov 0   ;;  %p2246_p10 = scmp.ne.s32.totalorder %s2764_s12, 1 }
  0xa3   : > { %v2431_v26 = vpack.c.bf16 %v406_v22, %v405_v20  ;;  %2321 = vmatprep.mubr.msk.f32.mxu0 %vm495_vm2, %v479_v25  ;;  %v2579_v27 = vpack.i.bf16 %v406_v22, %v405_v20  ;;  %v483_v28 = vld [vmem:[#allocation2 + $0x20] sm:$0xff]  ;;  %v480_v29 = vld [vmem:[#allocation2 + $0x8] sm:$0xff]  ;;  %v481_v30 = vld [vmem:[#allocation2 + $0x10] sm:$0xff]  ;;  %2604 = vset.pattern.permute.xlu1 %v2798_v11  ;;  %vm1269_vm5 = vcmask 7168   ;;  %s2800_s12 = smov (!%p2246_p10), 8   ;;  %s2801_s28 = smov (!%p2246_p10), 16  }
  0xa4   : > { %2585 = vrot.lane.b32.xlu1 %v2584_v21, %s2795_s25  ;;  %2575 = vrot.lane.b32.xlu0 %v2584_v21, %s2796_s26  ;;  %v482_v31 = vld [vmem:[#allocation2 + $0x18] sm:$0xff]  ;;  %v487_v32 = vld [vmem:[#allocation2 + $0x40] sm:$0xff]  ;;  %v484_v56 = vld [vmem:[#allocation2 + $0x28] sm:$0xff]  ;;  %s2802_s29 = smov (!%p2246_p10), 24   ;;  %vm2034_vm6 = vcmask (!%p2246_p10), 130048   ;;  %vm2039_vm7 = vcmask (!%p2246_p10), 195584  }
  0xa5   : > { %2427 = vmatprep.subr.msk.bf16.mxu0 %vm2973_vm3, %v2425_v23  ;;  %2335 = vmatprep.mubr.msk.f32.mxu1 %vm495_vm2, %v483_v28  ;;  %v488_v57 = vld [vmem:[#allocation2 + $0x48] sm:$0xff]  ;;  %v485_v59 = vld [vmem:[#allocation2 + $0x30] sm:$0xff]  ;;  %v486_v61 = vld [vmem:[#allocation2 + $0x38] sm:$0xff] }
  0xa6   : > { %2430 = vmatpush3.bf16.xpose.msk.msra.mxu0 %vm2973_vm3, %v2425_v23  ;;  %v489_v60 = vld [vmem:[#allocation2 + $0x50] sm:$0xff]  ;;  %v490_v62 = vld [vmem:[#allocation2 + $0x58] sm:$0xff]  ;;  %v491_v63 = vld [vmem:[#allocation2 + $0x60] sm:$0xff]  ;;  %2605 = vset.pattern.permute.xlu0 %v2798_v11 }
  0xa7   : > { %2433 = vmatprep.subr.msk.bf16.mxu0 %vm2973_vm3, %v2431_v26  ;;  %v492_v0 = vld [vmem:[#allocation2 + $0x68] sm:$0xff]  ;;  %v493_v1 = vld [vmem:[#allocation2 + $0x70] sm:$0xff]  ;;  %v494_v2 = vld [vmem:[#allocation2 + $0x78] sm:$0xff] }
  0xa8   : > { %2580 = vrot.lane.b32.xlu0 %v2579_v27, %s2796_s26  ;;  %2590 = vrot.lane.b32.xlu1 %v2584_v21, %s2797_s27 }
  0xac   : > { %2595 = vrot.lane.b32.xlu0 %v2579_v27, %s2795_s25  ;;  %2600 = vrot.lane.b32.xlu1 %v2579_v27, %s2797_s27 }
  0xae   : > { %2436 = vmatpush3.bf16.xpose.msk.msra.mxu0 %vm2973_vm3, %v2431_v26 }
  0xb5   : > { %2322 = vmatmul.mubr.msk.f32.vlgmr.msra.gmra.mrb[0].mxu0 %vm495_vm2, %v480_v29 }
  0xb6   : > { %2324 = vmatprep.mubr.msk.f32.mxu0 %vm495_vm2, %v481_v30 }
  0xb9   : > { %2325 = vmatmul.mubr.msk.f32.gmra.mrb[2].mxu0 %vm495_vm2, %v482_v31 }
  0xba   : > { %2349 = vmatprep.mubr.msk.f32.mxu0 %vm495_vm2, %v487_v32 }
 0x116   : > { %v2586_v33 = vpop.permute.xlu1 %2585  ;;  %v2576_v34 = vpop.permute.xlu0 %2575 }
 0x117   : > { %v2588_v35 = vunpack.i.h.bf16 %v2586_v33  ;;  %v2587_v36 = vunpack.i.l.bf16 %v2586_v33  ;;  %v2578_v37 = vunpack.i.h.bf16 %v2576_v34  ;;  %v2577_v38 = vunpack.i.l.bf16 %v2576_v34 }
 0x119   : > { %v2449_v39 = vpack.c.bf16 %v2588_v35, %v2587_v36  ;;  %v2437_v40 = vpack.c.bf16 %v2578_v37, %v2577_v38  ;;  %v3093_v35 = vld [vmem:[#allocation3 + $0x8] sm:$0xff] }
 0x11a   : > { %v2581_v41 = vpop.permute.xlu0 %2580  ;;  %v2591_v42 = vpop.permute.xlu1 %2590 }
 0x11b   : > { %v2583_v43 = vunpack.i.h.bf16 %v2581_v41  ;;  %v2582_v44 = vunpack.i.l.bf16 %v2581_v41  ;;  %2439 = vmatprep.subr.msk.bf16.mxu1 %vm2973_vm3, %v2437_v40  ;;  %2451 = vmatprep.subr.msk.bf16.mxu0 %vm2973_vm3, %v2449_v39  ;;  %v2593_v46 = vunpack.i.h.bf16 %v2591_v42  ;;  %v2592_v47 = vunpack.i.l.bf16 %v2591_v42  ;;  %v435_v42 = vld [vmem:[%s2886_s14] sm:$0xff] }
 0x11c   : > { %2442 = vmatpush3.bf16.xpose.msk.msra.mxu1 %vm2973_vm3, %v2437_v40  ;;  %2454 = vmatpush3.bf16.xpose.msk.msra.mxu0 %vm2973_vm3, %v2449_v39  ;;  %v3100_v39 = vld [vmem:[#allocation3] sm:$0xff]  ;;  %v3102_v40 = vld [vmem:[#allocation3 + $0x18] sm:$0xff] }
 0x11d   : > { %v2443_v45 = vpack.c.bf16 %v2583_v43, %v2582_v44  ;;  %v2461_v52 = vpack.c.bf16 %v2593_v46, %v2592_v47  ;;  %v436_v43 = vld [vmem:[%s2886_s14 + $0x8] sm:$0xff] }
 0x11e   : > { %v2596_v48 = vpop.permute.xlu0 %2595  ;;  %v2601_v53 = vpop.permute.xlu1 %2600  ;;  %v3110_v46 = vpack.i.bf16 %v436_v43, %v435_v42 }
 0x11f   : > { %v2598_v49 = vunpack.i.h.bf16 %v2596_v48  ;;  %v2597_v50 = vunpack.i.l.bf16 %v2596_v48  ;;  %2445 = vmatprep.subr.msk.bf16.mxu1 %vm2973_vm3, %v2443_v45  ;;  %v2603_v54 = vunpack.i.h.bf16 %v2601_v53  ;;  %v2602_v55 = vunpack.i.l.bf16 %v2601_v53 }
 0x121   : > { %v2455_v51 = vpack.c.bf16 %v2598_v49, %v2597_v50  ;;  %v2467_v58 = vpack.c.bf16 %v2603_v54, %v2602_v55  ;;  %v3118_v49 = vld [vmem:[#allocation3 + $0x10] sm:$0xff]  ;;  %v2473_v55 = vpack.c.bf16 %v436_v43, %v435_v42 }
 0x123   : > { %2457 = vmatprep.subr.msk.bf16.mxu0 %vm2973_vm3, %v2455_v51 }
 0x124   : > { %2448 = vmatpush3.bf16.xpose.msk.msra.mxu1 %vm2973_vm3, %v2443_v45  ;;  %2460 = vmatpush3.bf16.xpose.msk.msra.mxu0 %vm2973_vm3, %v2455_v51 }
 0x125   : > { %2463 = vmatprep.subr.msk.bf16.mxu1 %vm2973_vm3, %v2461_v52  ;;  %2474 = vmatprep.subr.bf16.mxu0 %v2473_v55 }
 0x12b   : > { %2336 = vmatmul.mubr.msk.f32.vlgmr.msra.gmra.mrb[0].mxu1 %vm495_vm2, %v484_v56  ;;  %2350 = vmatmul.mubr.msk.f32.vlgmr.msra.gmra.mrb[4].mxu0 %vm495_vm2, %v488_v57  ;;  %v437_v56 = vld [vmem:[%s2886_s14 + $0x10] sm:$0xff]  ;;  %v438_v57 = vld [vmem:[%s2886_s14 + $0x18] sm:$0xff] }
 0x12c   : > { %2466 = vmatpush3.bf16.xpose.msk.msra.mxu1 %vm2973_vm3, %v2461_v52  ;;  %2338 = vmatprep.mubr.msk.f32.mxu1 %vm495_vm2, %v485_v59  ;;  %v3141_v59 = vpack.i.bf16 %v438_v57, %v437_v56 }
 0x12d   : > { %2469 = vmatprep.subr.msk.bf16.mxu1 %vm2973_vm3, %v2467_v58  ;;  %2352 = vmatprep.mubr.msk.f32.mxu0 %vm495_vm2, %v489_v60  ;;  %v3143_v60 = vld [vmem:[#allocation3 + $0x28] sm:$0xff] }
 0x12e   : > { %2476 = vmatpush3.bf16.msra.mxu0 %v2473_v55 }
 0x12f   : > { %2339 = vmatmul.mubr.msk.f32.gmra.mrb[2].mxu1 %vm495_vm2, %v486_v61  ;;  %2353 = vmatmul.mubr.msk.f32.gmra.mrb[6].mxu0 %vm495_vm2, %v490_v62  ;;  %v3145_v61 = vld [vmem:[#allocation3 + $0x48] sm:$0xff] }
 0x130   : > { %2363 = vmatprep.mubr.msk.f32.mxu1 %vm495_vm2, %v491_v63 }
 0x134   : > { %2472 = vmatpush3.bf16.xpose.msk.msra.mxu1 %vm2973_vm3, %v2467_v58  ;;  %v2477_v58 = vpack.c.bf16 %v438_v57, %v437_v56 }
 0x136   : > { %2478 = vmatprep.subr.bf16.mxu0 %v2477_v58 }
 0x137   : > { %2480 = vmatpush3.bf16.msra.mxu0 %v2477_v58  ;;  %v3223_v58 = vld [vmem:[#allocation3 + $0x70] sm:$0xff] }
 0x13b   : > { %2364 = vmatmul.mubr.msk.f32.vlgmr.msra.gmra.mrb[4].mxu1 %vm495_vm2, %v492_v0 }
 0x13c   : > { %2366 = vmatprep.mubr.msk.f32.mxu1 %vm495_vm2, %v493_v1 }
 0x13f   : > { %2367 = vmatmul.mubr.msk.f32.gmra.mrb[6].mxu1 %vm495_vm2, %v494_v2  ;;  %v3153_v2 = vld [vmem:[#allocation3 + $0x20] sm:$0xff] }
 0x188   : > { %v3031_v3 = vpop.f32.mrb[0].mxu0 }
 0x189   : > { %v936_v4 = vsel %vm932_vm4, %v3031_v3, -inf  ;;  %v3035_v5 = vpop.f32.mrb[1].mxu0 }
 0x18a   : > { %937 = vmax.xlane.f32.xlu0 %v936_v4  ;;  %v933_v6 = vsel %vm932_vm4, %v3035_v5, -inf  ;;  %v3155_v4 = vld [vmem:[#allocation3 + $0x38] sm:$0xff] }
 0x18c   : > { %v3039_v7 = vpop.f32.mrb[2].mxu0 }
 0x18d   : > { %v942_v8 = vsel %vm932_vm4, %v3039_v7, -inf  ;;  %v3043_v9 = vpop.f32.mrb[3].mxu0 }
 0x18e   : > { %934 = vmax.xlane.f32.xlu0 %v933_v6  ;;  %943 = vmax.xlane.f32.xlu1 %v942_v8  ;;  %v939_v10 = vsel %vm932_vm4, %v3043_v9, -inf }
 0x192   : > { %940 = vmax.xlane.f32.xlu1 %v939_v10 }
 0x1fe   : > { %v3047_v12 = vpop.f32.mrb[0].mxu1  ;;  %v3049_v13 = vpop.f32.mrb[4].mxu0 }
 0x1ff   : > { %v3051_v14 = vpop.f32.mrb[5].mxu0  ;;  %v948_v15 = vsel %vm932_vm4, %v3047_v12, -inf  ;;  %v960_v16 = vsel %vm932_vm4, %v3049_v13, -inf  ;;  %v3057_v17 = vpop.f32.mrb[1].mxu1 }
 0x200   : > { %949 = vmax.xlane.f32.xlu0 %v948_v15  ;;  %961 = vmax.xlane.f32.xlu1 %v960_v16  ;;  %v945_v18 = vsel %vm932_vm4, %v3057_v17, -inf  ;;  %v957_v25 = vsel %vm932_vm4, %v3051_v14, -inf  ;;  %v3168_v15 = vld [vmem:[#allocation3 + $0x40] sm:$0xff]  ;;  %v3170_v16 = vld [vmem:[#allocation3 + $0x30] sm:$0xff] }
 0x202   : > { %v3061_v19 = vpop.f32.mrb[2].mxu1  ;;  %v3063_v20 = vpop.f32.mrb[6].mxu0 }
 0x203   : > { %v954_v21 = vsel %vm932_vm4, %v3061_v19, -inf  ;;  %v3067_v22 = vpop.f32.mrb[3].mxu1  ;;  %v3069_v23 = vpop.f32.mrb[7].mxu0  ;;  %v966_v26 = vsel %vm932_vm4, %v3063_v20, -inf }
 0x204   : > { %946 = vmax.xlane.f32.xlu1 %v945_v18  ;;  %955 = vmax.xlane.f32.xlu0 %v954_v21  ;;  %v951_v24 = vsel %vm932_vm4, %v3067_v22, -inf  ;;  %v963_v27 = vsel %vm932_vm4, %v3069_v23, -inf }
 0x208   : > { %958 = vmax.xlane.f32.xlu1 %v957_v25  ;;  %952 = vmax.xlane.f32.xlu0 %v951_v24 }
 0x20c   : > { %967 = vmax.xlane.f32.xlu1 %v966_v26  ;;  %v3183_v26 = vld [vmem:[#allocation3 + $0x58] sm:$0xff] }
 0x20e   : > { %v3079_v28 = vpop.f32.mrb[4].mxu1 }
 0x20f   : > { %v972_v29 = vsel %vm932_vm4, %v3079_v28, -inf  ;;  %v3083_v30 = vpop.f32.mrb[5].mxu1 }
 0x210   : > { %973 = vmax.xlane.f32.xlu0 %v972_v29  ;;  %964 = vmax.xlane.f32.xlu1 %v963_v27  ;;  %v969_v31 = vsel %vm932_vm4, %v3083_v30, -inf }
 0x212   : > { %v3087_v32 = vpop.f32.mrb[6].mxu1 }
 0x213   : > { %v3089_v33 = vpop.f32.mrb[7].mxu1  ;;  %v978_v38 = vsel %vm932_vm4, %v3087_v32, -inf }
 0x214   : > { %970 = vmax.xlane.f32.xlu0 %v969_v31  ;;  %v975_v34 = vsel %vm932_vm4, %v3089_v33, -inf  ;;  %v3194_v31 = vld [vmem:[#allocation3 + $0x68] sm:$0xff] }
 0x217   : > { %v938_v36 = vpop.xlane.xlu0 %937 }
 0x218   : > { %976 = vmax.xlane.f32.xlu0 %v975_v34  ;;  %v3096_v37 = vmax.f32 %v3093_v35, %v938_v36  ;;  %v3196_v34 = vld [vmem:[#allocation3 + $0x50] sm:$0xff] }
 0x21a   : > { %v998_v41 = vsub.f32 %v3093_v35, %v3096_v37  ;;  %1819 = vst.msk [vmem:[#allocation3 + $0x8] sm:$0xff] %vm1269_vm5, %v3096_v37 }
 0x21b   : > { %v935_v44 = vpop.xlane.xlu0 %934  ;;  %v944_v45 = vpop.xlane.xlu1 %943 }
 0x21c   : > { %979 = vmax.xlane.f32.xlu0 %v978_v38  ;;  %v3113_v47 = vmax.f32 %v3100_v39, %v935_v44  ;;  %v3116_v48 = vmax.f32 %v3102_v40, %v944_v45  ;;  %v3209_v44 = vld [vmem:[#allocation3 + $0x60] sm:$0xff] }
 0x21e   : > { %v997_v50 = vsub.f32 %v3100_v39, %v3113_v47  ;;  %1818 = vst.msk [vmem:[#allocation3] sm:$0xff] %vm1269_vm5, %v3113_v47  ;;  %v1000_v51 = vsub.f32 %v3102_v40, %v3116_v48  ;;  %1821 = vst.msk [vmem:[#allocation3 + $0x18] sm:$0xff] %vm1269_vm5, %v3116_v48 }
 0x21f   : > { %v941_v52 = vpop.xlane.xlu1 %940 }
 0x220   : > { %v3129_v53 = vmax.f32 %v3118_v49, %v941_v52 }
 0x221   : > { %1052 = vperm.xlu1 %2604, %v3096_v37  }
 0x222   : > { %v999_v54 = vsub.f32 %v3118_v49, %v3129_v53  ;;  %1820 = vst.msk [vmem:[#allocation3 + $0x10] sm:$0xff] %vm1269_vm5, %v3129_v53  ;;  %v1019_v49 = vmul.f32 1.442695, %v1000_v51 }
 0x225   : > { %1047 = vperm.xlu1 %2604, %v3113_v47  }
 0x229   : > { %1062 = vperm.xlu1 %2604, %v3116_v48  }
 0x22d   : > { %1057 = vperm.xlu1 %2604, %v3129_v53  }
 0x28d   : > { %v950_v62 = vpop.xlane.xlu0 %949  ;;  %v962_v63 = vpop.xlane.xlu1 %961 }
 0x28e   : > { %v3148_v0 = vmax.f32 %v3143_v60, %v950_v62  ;;  %v3151_v1 = vmax.f32 %v3145_v61, %v962_v63 }
 0x290   : > { %1823 = vst.msk [vmem:[#allocation3 + $0x28] sm:$0xff] %vm1269_vm5, %v3148_v0  ;;  %1827 = vst.msk [vmem:[#allocation3 + $0x48] sm:$0xff] %vm1269_vm5, %v3151_v1  ;;  %1072 = vperm.xlu1 %2604, %v3148_v0   ;;  %v1002_v53 = vsub.f32 %v3143_v60, %v3148_v0 }
 0x291   : > { %v947_v6 = vpop.xlane.xlu1 %946  ;;  %v956_v8 = vpop.xlane.xlu0 %955 }
 0x292   : > { %v3163_v10 = vmax.f32 %v3153_v2, %v947_v6  ;;  %v3166_v11 = vmax.f32 %v3155_v4, %v956_v8 }
 0x294   : > { %1822 = vst.msk [vmem:[#allocation3 + $0x20] sm:$0xff] %vm1269_vm5, %v3163_v10  ;;  %1067 = vperm.xlu0 %2605, %v3163_v10   ;;  %1825 = vst.msk [vmem:[#allocation3 + $0x38] sm:$0xff] %vm1269_vm5, %v3166_v11  ;;  %v1004_v48 = vsub.f32 %v3155_v4, %v3166_v11 }
 0x295   : > { %v959_v18 = vpop.xlane.xlu1 %958  ;;  %v953_v21 = vpop.xlane.xlu0 %952 }
 0x296   : > { %v3178_v24 = vmax.f32 %v3168_v15, %v959_v18  ;;  %v3181_v25 = vmax.f32 %v3170_v16, %v953_v21  ;;  %v1027_v0 = vmul.f32 1.442695, %v1004_v48 }
 0x298   : > { %1826 = vst.msk [vmem:[#allocation3 + $0x40] sm:$0xff] %vm1269_vm5, %v3178_v24  ;;  %1092 = vperm.xlu0 %2605, %v3151_v1   ;;  %1087 = vperm.xlu1 %2604, %v3178_v24   ;;  %1824 = vst.msk [vmem:[#allocation3 + $0x30] sm:$0xff] %vm1269_vm5, %v3181_v25  ;;  %v1003_v37 = vsub.f32 %v3170_v16, %v3181_v25 }
 0x299   : > { %v968_v27 = vpop.xlane.xlu1 %967 }
 0x29a   : > { %v3192_v29 = vmax.f32 %v3183_v26, %v968_v27  ;;  %v3234_v27 = vld [vmem:[#allocation3 + $0x78] sm:$0xff] }
 0x29c   : > { %1829 = vst.msk [vmem:[#allocation3 + $0x58] sm:$0xff] %vm1269_vm5, %v3192_v29  ;;  %2607 = vrot.lane.b32.xlu0 %v3110_v46, %s2796_s26  ;;  %1082 = vperm.xlu1 %2604, %v3166_v11  }
 0x29d   : > { %v974_v36 = vpop.xlane.xlu0 %973  ;;  %v965_v38 = vpop.xlane.xlu1 %964 }
 0x29e   : > { %v3204_v42 = vmax.f32 %v3194_v31, %v974_v36  ;;  %v3207_v43 = vmax.f32 %v3196_v34, %v965_v38  ;;  %v1015_v38 = vmul.f32 1.442695, %v998_v41 }
 0x2a0   : > { %v1010_v45 = vsub.f32 %v3194_v31, %v3204_v42  ;;  %1831 = vst.msk [vmem:[#allocation3 + $0x68] sm:$0xff] %vm1269_vm5, %v3204_v42  ;;  %1828 = vst.msk [vmem:[#allocation3 + $0x50] sm:$0xff] %vm1269_vm5, %v3207_v43  ;;  %1077 = vperm.xlu1 %2604, %v3181_v25   ;;  %1097 = vperm.xlu0 %2605, %v3207_v43  }
 0x2a1   : > { %v971_v52 = vpop.xlane.xlu0 %970  ;;  %v1053_v55 = vpop.permute.xlu1 %1052 }
 0x2a2   : > { %v3220_v56 = vmax.f32 %v3209_v44, %v971_v52  ;;  %v1126_v57 = vsub.f32 %v3031_v3, %v1053_v55  ;;  %v1001_v52 = vsub.f32 %v3153_v2, %v3163_v10 }
 0x2a4   : > { %v1009_v62 = vsub.f32 %v3209_v44, %v3220_v56  ;;  %1830 = vst.msk [vmem:[#allocation3 + $0x60] sm:$0xff] %vm1269_vm5, %v3220_v56  ;;  %1112 = vperm.xlu1 %2604, %v3204_v42   ;;  %v1143_v21 = vmul.f32 1.442695, %v1126_v57  ;;  %v1021_v35 = vmul.f32 1.442695, %v1001_v52 }
 0x2a5   : > { %v977_v63 = vpop.xlane.xlu0 %976  ;;  %v1048_v6 = vpop.permute.xlu1 %1047 }
 0x2a6   : > { %v3231_v8 = vmax.f32 %v3223_v58, %v977_v63  ;;  %v1125_v18 = vsub.f32 %v3035_v5, %v1048_v6 }
 0x2a8   : > { %v1011_v3 = vsub.f32 %v3223_v58, %v3231_v8  ;;  %1832 = vst.msk [vmem:[#allocation3 + $0x70] sm:$0xff] %vm1269_vm5, %v3231_v8  ;;  %v1141_v36 = vmul.f32 1.442695, %v1125_v18  ;;  %1107 = vperm.xlu1 %2604, %v3220_v56  }
 0x2a9   : > { %v980_v5 = vpop.xlane.xlu0 %979  ;;  %v1063_v55 = vpop.permute.xlu1 %1062 }
 0x2aa   : > { %2636 = vpow2.f32 %v1141_v36  ;;  %v3247_v57 = vmax.f32 %v3234_v27, %v980_v5  ;;  %v1128_v63 = vsub.f32 %v3039_v7, %v1063_v55  ;;  %v1013_v7 = vmul.f32 1.442695, %v997_v50 }
 0x2ab   : > { %2638 = vpow2.f32 %v1143_v21  ;;  %v1005_v21 = vsub.f32 %v3168_v15, %v3178_v24  ;;  %v1025_v36 = vmul.f32 1.442695, %v1003_v37  ;;  %v1007_v50 = vsub.f32 %v3196_v34, %v3207_v43 }
 0x2ac   : > { %v1012_v6 = vsub.f32 %v3234_v27, %v3247_v57  ;;  %1833 = vst.msk [vmem:[#allocation3 + $0x78] sm:$0xff] %vm1269_vm5, %v3247_v57  ;;  %1117 = vperm.xlu1 %2604, %v3231_v8   ;;  %1122 = vperm.xlu0 %2605, %v3247_v57   ;;  %2640 = vpow2.f32 %v1015_v38  ;;  %v1147_v10 = vmul.f32 1.442695, %v1128_v63  ;;  %v1008_v43 = vsub.f32 %v3183_v26, %v3192_v29 }
 0x2ad   : > { %v1058_v41 = vpop.permute.xlu1 %1057  ;;  %2642 = vpow2.f32 %v1021_v35  ;;  %v1029_v47 = vmul.f32 1.442695, %v1005_v21  ;;  %v1037_v63 = vmul.f32 1.442695, %v1009_v62 }
 0x2ae   : > { %v1127_v2 = vsub.f32 %v3043_v9, %v1058_v41  ;;  %v1017_v9 = vmul.f32 1.442695, %v999_v54  ;;  %v1033_v54 = vmul.f32 1.442695, %v1007_v50  ;;  %v1039_v41 = vmul.f32 1.442695, %v1010_v45 }
 0x2b0   : > { %v1145_v18 = vmul.f32 1.442695, %v1127_v2  ;;  %1102 = vperm.xlu1 %2604, %v3192_v29   ;;  %2617 = vrot.lane.b32.xlu0 %v3110_v46, %s2795_s25 }
 0x2b2   : > { %2644 = vpow2.f32 %v1145_v18 }
 0x2b3   : > { %2646 = vpow2.f32 %v1147_v10 }
 0x2b4   : > { %v2637_v16 = vpop.eup %2636  ;;  %2648 = vpow2.f32 %v1013_v7  ;;  %2612 = vrot.lane.b32.xlu1 %v3141_v59, %s2796_s26  ;;  %2627 = vrot.lane.b32.xlu0 %v3141_v59, %s2795_s25 }
 0x2b5   : > { %v2639_v39 = vpop.eup %2638  ;;  %2650 = vpow2.f32 %v1025_v36  ;;  %2377 = vmatprep.mubr.msk.f32.mxu0 %vm932_vm4, %v2637_v16  ;;  %v1205_v55 = vsel %vm932_vm4, %v2637_v16, 0.0 }
 0x2b6   : > { %2378 = vmatmul.mubr.msk.f32.vlgmr.msra.gmra.mrb[8].mxu0 %vm932_vm4, %v2639_v39  ;;  %v3278_v15 = vpop.eup %2640  ;;  %2652 = vpow2.f32 %v1017_v9  ;;  %v1208_v35 = vsel %vm932_vm4, %v2639_v39, 0.0 }
 0x2b7   : > { %2654 = vpow2.f32 %v1029_v47  ;;  %v3288_v24 = vpop.eup %2642 }
 0x2b8   : > { %2622 = vrot.lane.b32.xlu1 %v3110_v46, %s2797_s27  ;;  %1697 = vperm.xlu0 %2605, %v3278_v15   ;;  %2656 = vpow2.f32 %v1019_v49  ;;  %v1023_v46 = vmul.f32 1.442695, %v1002_v53 }
 0x2b9   : > { %2658 = vpow2.f32 %v1033_v54 }
 0x2ba   : > { %2660 = vpow2.f32 %v1023_v46 }
 0x2bb   : > { %2662 = vpow2.f32 %v1027_v0 }
 0x2bc   : > { %v3290_v25 = vpop.eup %2644  ;;  %2632 = vrot.lane.b32.xlu1 %v3141_v59, %s2797_s27  ;;  %1712 = vperm.xlu0 %2605, %v3288_v24   ;;  %v1006_v59 = vsub.f32 %v3145_v61, %v3151_v1  ;;  %v1035_v61 = vmul.f32 1.442695, %v1008_v43 }
 0x2bd   : > { %v3295_v40 = vpop.eup %2646  ;;  %2380 = vmatprep.mubr.msk.f32.mxu0 %vm932_vm4, %v3290_v25 }
 0x2be   : > { %v3301_v51 = vpop.eup %2648  ;;  %2381 = vmatmul.mubr.msk.f32.gmra.mrb[10].mxu0 %vm932_vm4, %v3295_v40  ;;  %v1031_v34 = vmul.f32 1.442695, %v1006_v59 }
 0x2bf   : > { %v3305_v60 = vpop.eup %2650 }
 0x2c0   : > { %1692 = vperm.xlu1 %2604, %v3301_v51   ;;  %1722 = vperm.xlu0 %2605, %v3305_v60   ;;  %v3311_v4 = vpop.eup %2652  ;;  %2664 = vpow2.f32 %v1031_v34 }
 0x2c1   : > { %v3313_v11 = vpop.eup %2654  ;;  %2666 = vpow2.f32 %v1035_v61 }
 0x2c2   : > { %v3319_v38 = vpop.eup %2656  ;;  %2668 = vpow2.f32 %v1037_v63 }
 0x2c3   : > { %v3321_v52 = vpop.eup %2658  ;;  %2670 = vpow2.f32 %v1039_v41 }
 0x2c4   : > { %1702 = vperm.xlu1 %2604, %v3311_v4   ;;  %1732 = vperm.xlu0 %2605, %v3313_v11   ;;  %v3325_v1 = vpop.eup %2660 }
 0x2c5   : > { %v3328_v5 = vpop.eup %2662 }
 0x2c8   : > { %1707 = vperm.xlu1 %2604, %v3319_v38   ;;  %1742 = vperm.xlu0 %2605, %v3321_v52  }
 0x2ca   : > { %v3331_v26 = vpop.eup %2664 }
 0x2cb   : > { %v3334_v29 = vpop.eup %2666 }
 0x2cc   : > { %1717 = vperm.xlu1 %2604, %v3325_v1   ;;  %v3342_v37 = vpop.eup %2668 }
 0x2cd   : > { %v3348_v2 = vpop.eup %2670 }
 0x2d0   : > { %1727 = vperm.xlu1 %2604, %v3328_v5  }
 0x2d4   : > { %1737 = vperm.xlu1 %2604, %v3331_v26  }
 0x2d8   : > { %1747 = vperm.xlu1 %2604, %v3334_v29  }
 0x2e7   : > { %1206 = vadd.xlane.f32.xlu0 %v1205_v55 }
 0x2fc   : > { %1209 = vadd.xlane.f32.xlu1 %v1208_v35 }
 0x2fd   : > { %1752 = vperm.xlu0 %2605, %v3342_v37  }
 0x30d   : > { %1757 = vperm.xlu1 %2604, %v3348_v2  }
 0x30f   : > { %v1073_v10 = vpop.permute.xlu1 %1072 }
 0x310   : > { %v1130_v44 = vsub.f32 %v3047_v12, %v1073_v10  ;;  %v1214_v12 = vsel %vm932_vm4, %v3295_v40, 0.0 }
 0x312   : > { %v1151_v56 = vmul.f32 1.442695, %v1130_v44 }
 0x313   : > { %v1068_v62 = vpop.permute.xlu0 %1067 }
 0x314   : > { %v1129_v7 = vsub.f32 %v3057_v17, %v1068_v62  ;;  %2672 = vpow2.f32 %v1151_v56 }
 0x316   : > { %v1149_v18 = vmul.f32 1.442695, %v1129_v7 }
 0x317   : > { %v1093_v21 = vpop.permute.xlu0 %1092  ;;  %v1088_v36 = vpop.permute.xlu1 %1087 }
 0x318   : > { %2674 = vpow2.f32 %v1149_v18  ;;  %v1134_v31 = vsub.f32 %v3049_v13, %v1093_v21  ;;  %v1133_v42 = vsub.f32 %v3051_v14, %v1088_v36  ;;  %v1211_v13 = vsel %vm932_vm4, %v3290_v25, 0.0 }
 0x31a   : > { %v1159_v45 = vmul.f32 1.442695, %v1134_v31  ;;  %v1157_v16 = vmul.f32 1.442695, %v1133_v42 }
 0x31b   : > { %v2608_v9 = vpop.permute.xlu0 %2607  ;;  %v1083_v39 = vpop.permute.xlu1 %1082 }
 0x31c   : > { %2676 = vpow2.f32 %v1159_v45  ;;  %v2610_v47 = vunpack.i.h.bf16 %v2608_v9  ;;  %v2609_v50 = vunpack.i.l.bf16 %v2608_v9  ;;  %v1132_v17 = vsub.f32 %v3061_v19, %v1083_v39  ;;  %1215 = vadd.xlane.f32.xlu0 %v1214_v12 }
 0x31d   : > { %2678 = vpow2.f32 %v1157_v16 }
 0x31e   : > { %v2481_v49 = vpack.c.bf16 %v2610_v47, %v2609_v50  ;;  %v1155_v53 = vmul.f32 1.442695, %v1132_v17  ;;  %v3360_v14 = vpop.eup %2672 }
 0x31f   : > { %v1078_v54 = vpop.permute.xlu1 %1077  ;;  %v1220_v19 = vsel %vm932_vm4, %v3360_v14, 0.0  ;;  %v1098_v59 = vpop.permute.xlu0 %1097 }
 0x320   : > { %2680 = vpow2.f32 %v1155_v53  ;;  %1212 = vadd.xlane.f32.xlu0 %v1211_v13  ;;  %2482 = vmatprep.subr.bf16.mxu1 %v2481_v49  ;;  %v1131_v48 = vsub.f32 %v3067_v22, %v1078_v54  ;;  %v1135_v61 = vsub.f32 %v3069_v23, %v1098_v59 }
 0x321   : > { %2484 = vmatpush3.bf16.msra.mxu1 %v2481_v49 }
 0x322   : > { %v2675_v40 = vpop.eup %2674  ;;  %v1153_v55 = vmul.f32 1.442695, %v1131_v48  ;;  %v1161_v44 = vmul.f32 1.442695, %v1135_v61 }
 0x323   : > { %2391 = vmatprep.mubr.msk.f32.mxu1 %vm932_vm4, %v2675_v40  ;;  %v1113_v46 = vpop.permute.xlu1 %1112  ;;  %v1217_v21 = vsel %vm932_vm4, %v2675_v40, 0.0 }
 0x324   : > { %1221 = vadd.xlane.f32.xlu0 %v1220_v19  ;;  %2682 = vpow2.f32 %v1153_v55  ;;  %v1138_v56 = vsub.f32 %v3079_v28, %v1113_v46 }
 0x325   : > { %2684 = vpow2.f32 %v1161_v44 }
 0x326   : > { %v3366_v0 = vpop.eup %2676  ;;  %v1167_v42 = vmul.f32 1.442695, %v1138_v56 }
 0x327   : > { %v2679_v25 = vpop.eup %2678  ;;  %v1108_v34 = vpop.permute.xlu1 %1107  ;;  %v1232_v43 = vsel %vm932_vm4, %v3366_v0, 0.0 }
 0x328   : > { %2405 = vmatprep.mubr.msk.f32.mxu0 %vm932_vm4, %v2679_v25  ;;  %1233 = vadd.xlane.f32.xlu0 %v1232_v43  ;;  %v1137_v35 = vsub.f32 %v3083_v30, %v1108_v34 }
 0x32a   : > { %v3372_v63 = vpop.eup %2680  ;;  %v1165_v62 = vmul.f32 1.442695, %v1137_v35 }
 0x32b   : > { %v1123_v22 = vpop.permute.xlu0 %1122  ;;  %v1118_v41 = vpop.permute.xlu1 %1117  ;;  %v1226_v10 = vsel %vm932_vm4, %v3372_v63, 0.0 }
 0x32c   : > { %1227 = vadd.xlane.f32.xlu0 %v1226_v10  ;;  %v1139_v23 = vsub.f32 %v3089_v33, %v1118_v41  ;;  %v1140_v45 = vsub.f32 %v3087_v32, %v1123_v22  ;;  %2686 = vpow2.f32 %v1165_v62  ;;  %v1229_v33 = vsel %vm932_vm4, %v2679_v25, 0.0 }
 0x32e   : > { %v1169_v28 = vmul.f32 1.442695, %v1139_v23  ;;  %v1171_v53 = vmul.f32 1.442695, %v1140_v45  ;;  %v1043_v23 = vmul.f32 1.442695, %v1012_v6 }
 0x32f   : > { %v2618_v7 = vpop.permute.xlu0 %2617  ;;  %v1103_v18 = vpop.permute.xlu1 %1102 }
 0x330   : > { %v2620_v36 = vunpack.i.h.bf16 %v2618_v7  ;;  %v2619_v30 = vunpack.i.l.bf16 %v2618_v7  ;;  %v1136_v31 = vsub.f32 %v3063_v20, %v1103_v18  ;;  %v2683_v20 = vpop.eup %2682  ;;  %v1041_v7 = vmul.f32 1.442695, %v1011_v3  ;;  %v1173_v3 = vld [vmem:[#allocation4] sm:$0xff] }
 0x331   : > { %1218 = vadd.xlane.f32.xlu1 %v1217_v21  ;;  %v1223_v19 = vsel %vm932_vm4, %v2683_v20, 0.0  ;;  %v2685_v48 = vpop.eup %2684  ;;  %v1189_v45 = vmul.f32 %v3301_v51, %v1173_v3 }
 0x332   : > { %v2489_v16 = vpack.c.bf16 %v2620_v36, %v2619_v30  ;;  %v1163_v9 = vmul.f32 1.442695, %v1136_v31  ;;  %v1235_v55 = vsel %vm932_vm4, %v2685_v48, 0.0 }
 0x333   : > { %v2628_v39 = vpop.permute.xlu0 %2627  ;;  %v2613_v12 = vpop.permute.xlu1 %2612 }
 0x334   : > { %2688 = vpow2.f32 %v1163_v9  ;;  %v2630_v47 = vunpack.i.h.bf16 %v2628_v39  ;;  %v2629_v50 = vunpack.i.l.bf16 %v2628_v39  ;;  %v2615_v17 = vunpack.i.h.bf16 %v2613_v12  ;;  %2490 = vmatprep.subr.bf16.mxu0 %v2489_v16 }
 0x335   : > { %v2614_v49 = vunpack.i.l.bf16 %v2613_v12  ;;  %2492 = vmatpush3.bf16.msra.mxu0 %v2489_v16  ;;  %1230 = vadd.xlane.f32.xlu1 %v1229_v33  ;;  %2690 = vpow2.f32 %v1167_v42  ;;  %v1675_v12 = vld [vmem:[#allocation5 + $0x8] sm:$0xff] }
 0x336   : > { %v2493_v32 = vpack.c.bf16 %v2630_v47, %v2629_v50  ;;  %2692 = vpow2.f32 %v1169_v28  ;;  %v2687_v61 = vpop.eup %2686  ;;  %v1174_v47 = vld [vmem:[#allocation4 + $0x8] sm:$0xff]  ;;  %v1674_v50 = vld [vmem:[#allocation5] sm:$0xff] }
 0x337   : > { %v2485_v54 = vpack.c.bf16 %v2615_v17, %v2614_v49  ;;  %v2623_v13 = vpop.permute.xlu1 %2622  ;;  %2694 = vpow2.f32 %v1171_v53  ;;  %v1698_v21 = vpop.permute.xlu0 %1697  ;;  %v1190_v49 = vmul.f32 %v3278_v15, %v1174_v47 }
 0x338   : > { %v2625_v40 = vunpack.i.h.bf16 %v2623_v13  ;;  %v2624_v46 = vunpack.i.l.bf16 %v2623_v13  ;;  %2494 = vmatprep.subr.bf16.mxu0 %v2493_v32  ;;  %2696 = vpow2.f32 %v1043_v23  ;;  %v1771_v17 = vmul.f32 %v1698_v21, %v1675_v12  ;;  %v1182_v23 = vld [vmem:[#allocation4 + $0x48] sm:$0xff]  ;;  %v1181_v12 = vld [vmem:[#allocation4 + $0x40] sm:$0xff] }
 0x339   : > { %2486 = vmatprep.subr.bf16.mxu1 %v2485_v54  ;;  %2496 = vmatpush3.bf16.msra.mxu0 %v2493_v32  ;;  %2698 = vpow2.f32 %v1041_v7 }
 0x33a   : > { %v2497_v59 = vpack.c.bf16 %v2625_v40, %v2624_v46  ;;  %1224 = vadd.xlane.f32.xlu1 %v1223_v19  ;;  %2488 = vmatpush3.bf16.msra.mxu1 %v2485_v54  ;;  %v1677_v46 = vld [vmem:[#allocation5 + $0x18] sm:$0xff]  ;;  %v1676_v19 = vld [vmem:[#allocation5 + $0x10] sm:$0xff] }
 0x33b   : > { %v2633_v25 = vpop.permute.xlu1 %2632  ;;  %v3414_v30 = vpop.permute.xlu0 %1712 }
 0x33c   : > { %v2635_v34 = vunpack.i.h.bf16 %v2633_v25  ;;  %v2634_v43 = vunpack.i.l.bf16 %v2633_v25  ;;  %2406 = vmatmul.mubr.msk.f32.vlgmr.msra.gmra.mrb[12].mxu0 %vm932_vm4, %v3366_v0  ;;  %2498 = vmatprep.subr.bf16.mxu1 %v2497_v59 }
 0x33d   : > { %2392 = vmatmul.mubr.msk.f32.vlgmr.msra.gmra.mrb[8].mxu1 %vm932_vm4, %v3360_v14  ;;  %2408 = vmatprep.mubr.msk.f32.mxu0 %vm932_vm4, %v2685_v48  ;;  %v1241_v14 = vsel %vm932_vm4, %v2687_v61, 0.0 }
 0x33e   : > { %v2689_v35 = vpop.eup %2688  ;;  %v2501_v22 = vpack.c.bf16 %v2635_v34, %v2634_v43  ;;  %1236 = vadd.xlane.f32.xlu1 %v1235_v55  ;;  %2394 = vmatprep.mubr.msk.f32.mxu1 %vm932_vm4, %v2683_v20  ;;  %v1176_v55 = vld [vmem:[#allocation4 + $0x18] sm:$0xff] }
 0x33f   : > { %2500 = vmatpush3.bf16.msra.mxu1 %v2497_v59  ;;  %v1238_v41 = vsel %vm932_vm4, %v2689_v35, 0.0  ;;  %v2691_v10 = vpop.eup %2690  ;;  %v1693_v27 = vpop.permute.xlu1 %1692 }
 0x340   : > { %2409 = vmatmul.mubr.msk.f32.gmra.mrb[14].mxu0 %vm932_vm4, %v2689_v35  ;;  %1239 = vadd.xlane.f32.xlu0 %v1238_v41  ;;  %v2693_v0 = vpop.eup %2692  ;;  %v1244_v44 = vsel %vm932_vm4, %v2691_v10, 0.0  ;;  %v3417_v57 = vpop.permute.xlu0 %1722  ;;  %v1770_v20 = vmul.f32 %v1693_v27, %v1674_v50  ;;  %v1192_v35 = vmul.f32 %v3319_v38, %v1176_v55  ;;  %v1175_v41 = vld [vmem:[#allocation4 + $0x10] sm:$0xff]  ;;  %v1198_v38 = vmul.f32 %v3331_v26, %v1182_v23  ;;  %v1180_v27 = vld [vmem:[#allocation4 + $0x38] sm:$0xff] }
 0x341   : > { %2395 = vmatmul.mubr.msk.f32.gmra.mrb[10].mxu1 %vm932_vm4, %v3372_v63  ;;  %2502 = vmatprep.subr.bf16.mxu1 %v2501_v22  ;;  %v2695_v56 = vpop.eup %2694  ;;  %v1247_v62 = vsel %vm932_vm4, %v2693_v0, 0.0  ;;  %v1197_v26 = vmul.f32 %v3313_v11, %v1181_v12 }
 0x342   : > { %1242 = vadd.xlane.f32.xlu1 %v1241_v14  ;;  %2419 = vmatprep.mubr.msk.f32.mxu1 %vm932_vm4, %v2687_v61  ;;  %v1250_v63 = vsel %vm932_vm4, %v2695_v56, 0.0  ;;  %v3409_v18 = vpop.eup %2696  ;;  %v1191_v14 = vmul.f32 %v3311_v4, %v1175_v41  ;;  %v1196_v4 = vmul.f32 %v3328_v5, %v1180_v27 }
 0x343   : > { %2504 = vmatpush3.bf16.msra.mxu1 %v2501_v22  ;;  %v3412_v36 = vpop.eup %2698  ;;  %v1703_v6 = vpop.permute.xlu1 %1702 }
 0x344   : > { %1245 = vadd.xlane.f32.xlu0 %v1244_v44  ;;  %v3419_v31 = vpop.permute.xlu0 %1732  ;;  %v1772_v59 = vmul.f32 %v1703_v6, %v1676_v19  ;;  %v1178_v44 = vld [vmem:[#allocation4 + $0x28] sm:$0xff] }
 0x345   : > { %v1186_v19 = vld [vmem:[#allocation4 + $0x68] sm:$0xff] }
 0x346   : > { %2420 = vmatmul.mubr.msk.f32.vlgmr.msra.gmra.mrb[12].mxu1 %vm932_vm4, %v2691_v10  ;;  %1248 = vadd.xlane.f32.xlu1 %v1247_v62  ;;  %v1194_v62 = vmul.f32 %v3325_v1, %v1178_v44  ;;  %v1678_v44 = vld [vmem:[#allocation5 + $0x20] sm:$0xff] }
 0x347   : > { %2422 = vmatprep.mubr.msk.f32.mxu1 %vm932_vm4, %v2693_v0  ;;  %v1708_v58 = vpop.permute.xlu1 %1707 }
 0x348   : > { %1251 = vadd.xlane.f32.xlu0 %v1250_v63  ;;  %v3421_v8 = vpop.permute.xlu0 %1742  ;;  %v1773_v48 = vmul.f32 %v1708_v58, %v1677_v46 }
 0x34a   : > { %2423 = vmatmul.mubr.msk.f32.gmra.mrb[14].mxu1 %vm932_vm4, %v2695_v56 }
 0x34b   : > { %v3423_v42 = vpop.permute.xlu1 %1717 }
 0x34f   : > { %v3427_v28 = vpop.permute.xlu1 %1727 }
 0x353   : > { %v3429_v39 = vpop.permute.xlu1 %1737 }
 0x357   : > { %1767 = vperm.xlu1 %2604, %v3409_v18   ;;  %v3431_v33 = vpop.permute.xlu1 %1747 }
 0x35e   : > { %1762 = vperm.xlu0 %2605, %v3412_v36  }
 0x374   : > { %v1207_v16 = vpop.xlane.xlu0 %1206 }
 0x375   : > { %v1253_v9 = vadd.f32 %v1207_v16, %v1189_v45  ;;  %v1177_v16 = vld [vmem:[#allocation4 + $0x20] sm:$0xff] }
 0x376   : > { %v1193_v1 = vmul.f32 %v3288_v24, %v1177_v16 }
 0x377   : > { %1270 = vst.msk [vmem:[#allocation4] sm:$0xff] %vm1269_vm5, %v1253_v9 }
 0x37c   : > { %v3439_v61 = vpop.permute.xlu0 %1752 }
 0x389   : > { %v2379_v53 = vpop.f32.mrb[8].mxu0  ;;  %v1210_v32 = vpop.xlane.xlu1 %1209 }
 0x38a   : > { %v1787_v51 = vadd.f32 %v2379_v53, %v1771_v17  ;;  %v1254_v54 = vadd.f32 %v1210_v32, %v1190_v49  ;;  %v1364_v13 = vpop.f32.mrb[9].mxu0  ;;  %v1179_v49 = vld [vmem:[#allocation4 + $0x30] sm:$0xff] }
 0x38b   : > { %v1786_v40 = vadd.f32 %v1770_v20, %v1364_v13  ;;  %v1195_v5 = vmul.f32 %v3305_v60, %v1179_v49  ;;  %v1183_v53 = vld [vmem:[#allocation4 + $0x50] sm:$0xff]  ;;  %v1185_v13 = vld [vmem:[#allocation4 + $0x60] sm:$0xff] }
 0x38c   : > { %1803 = vst.msk [vmem:[#allocation5 + $0x8] sm:$0xff] %vm495_vm2, %v1787_v51  ;;  %v1184_v51 = vld [vmem:[#allocation4 + $0x58] sm:$0xff]  ;;  %v1199_v24 = vmul.f32 %v3321_v52, %v1183_v53  ;;  %v1201_v60 = vmul.f32 %v3342_v37, %v1185_v13 }
 0x38d   : > { %1271 = vst.msk [vmem:[#allocation4 + $0x8] sm:$0xff] %vm1269_vm5, %v1254_v54  ;;  %v3450_v3 = vpop.permute.xlu1 %1757  ;;  %v1200_v11 = vmul.f32 %v3334_v29, %v1184_v51  ;;  %v1688_v51 = vld [vmem:[#allocation5 + $0x70] sm:$0xff] }
 0x38e   : > { %1802 = vst.msk [vmem:[#allocation5] sm:$0xff] %vm495_vm2, %v1786_v40 }
 0x391   : > { %v2382_v25 = vpop.f32.mrb[10].mxu0 }
 0x392   : > { %v1789_v34 = vadd.f32 %v2382_v25, %v1773_v48  ;;  %v1374_v15 = vpop.f32.mrb[11].mxu0  ;;  %v1187_v25 = vld [vmem:[#allocation4 + $0x70] sm:$0xff] }
 0x393   : > { %v1788_v43 = vadd.f32 %v1772_v59, %v1374_v15  ;;  %v1202_v15 = vmul.f32 %v3348_v2, %v1186_v19  ;;  %v1203_v29 = vmul.f32 %v3412_v36, %v1187_v25  ;;  %v1683_v2 = vld [vmem:[#allocation5 + $0x48] sm:$0xff] }
 0x394   : > { %1805 = vst.msk [vmem:[#allocation5 + $0x18] sm:$0xff] %vm495_vm2, %v1789_v34 }
 0x395   : > { %1804 = vst.msk [vmem:[#allocation5 + $0x10] sm:$0xff] %vm495_vm2, %v1788_v43  ;;  %v1188_v43 = vld [vmem:[#allocation4 + $0x78] sm:$0xff] }
 0x396   : > { %v1204_v37 = vmul.f32 %v3409_v18, %v1188_v43  ;;  %v1774_v18 = vmul.f32 %v3414_v30, %v1678_v44 }
 0x3a9   : > { %v1216_v22 = vpop.xlane.xlu0 %1215 }
 0x3aa   : > { %v1256_v10 = vadd.f32 %v1216_v22, %v1192_v35 }
 0x3ac   : > { %1273 = vst.msk [vmem:[#allocation4 + $0x18] sm:$0xff] %vm1269_vm5, %v1256_v10 }
 0x3ad   : > { %v1213_v0 = vpop.xlane.xlu0 %1212 }
 0x3ae   : > { %v1255_v56 = vadd.f32 %v1213_v0, %v1191_v14  ;;  %v1682_v14 = vld [vmem:[#allocation5 + $0x40] sm:$0xff]  ;;  %v1679_v0 = vld [vmem:[#allocation5 + $0x28] sm:$0xff] }
 0x3af   : > { %v1778_v36 = vmul.f32 %v3419_v31, %v1682_v14 }
 0x3b0   : > { %1272 = vst.msk [vmem:[#allocation4 + $0x10] sm:$0xff] %vm1269_vm5, %v1255_v56  ;;  %v1779_v56 = vmul.f32 %v3429_v39, %v1683_v2 }
 0x3b1   : > { %v1222_v63 = vpop.xlane.xlu0 %1221 }
 0x3b2   : > { %v1258_v7 = vadd.f32 %v1222_v63, %v1194_v62  ;;  %v1775_v62 = vmul.f32 %v3423_v42, %v1679_v0  ;;  %v1685_v63 = vld [vmem:[#allocation5 + $0x58] sm:$0xff] }
 0x3b4   : > { %1275 = vst.msk [vmem:[#allocation4 + $0x28] sm:$0xff] %vm1269_vm5, %v1258_v7  ;;  %v1684_v7 = vld [vmem:[#allocation5 + $0x50] sm:$0xff] }
 0x3b5   : > { %v1234_v21 = vpop.xlane.xlu0 %1233  ;;  %v1780_v42 = vmul.f32 %v3421_v8, %v1684_v7 }
 0x3b6   : > { %v1262_v6 = vadd.f32 %v1234_v21, %v1198_v38  ;;  %v1681_v38 = vld [vmem:[#allocation5 + $0x38] sm:$0xff] }
 0x3b7   : > { %v1777_v39 = vmul.f32 %v3427_v28, %v1681_v38  ;;  %v1840_v38 = vld [vmem:[#allocation4 + $0x10] sm:$0xff] (!%p2246_p10) }
 0x3b8   : > { %1279 = vst.msk [vmem:[#allocation4 + $0x48] sm:$0xff] %vm1269_vm5, %v1262_v6 }
 0x3b9   : > { %v1228_v58 = vpop.xlane.xlu0 %1227 }
 0x3ba   : > { %v1260_v45 = vadd.f32 %v1228_v58, %v1196_v4  ;;  %v1680_v4 = vld [vmem:[#allocation5 + $0x30] sm:$0xff] }
 0x3bc   : > { %1277 = vst.msk [vmem:[#allocation4 + $0x38] sm:$0xff] %vm1269_vm5, %v1260_v45 }
 0x3be   : > { %v1219_v9 = vpop.xlane.xlu1 %1218 }
 0x3bf   : > { %v1257_v47 = vadd.f32 %v1219_v9, %v1193_v1  ;;  %v1781_v1 = vmul.f32 %v3431_v33, %v1685_v63  ;;  %v1776_v9 = vmul.f32 %v3417_v57, %v1680_v4  ;;  %v1687_v33 = vld [vmem:[#allocation5 + $0x68] sm:$0xff]  ;;  %v1838_v63 = vld [vmem:[#allocation4] sm:$0xff] (!%p2246_p10) }
 0x3c0   : > { %v1783_v28 = vmul.f32 %v3450_v3, %v1687_v33 }
 0x3c1   : > { %1274 = vst.msk [vmem:[#allocation4 + $0x20] sm:$0xff] %vm1269_vm5, %v1257_v47 }
 0x3c2   : > { %v1231_v50 = vpop.xlane.xlu1 %1230 }
 0x3c3   : > { %v1261_v17 = vadd.f32 %v1231_v50, %v1197_v26  ;;  %v1845_v25 = vld [vmem:[#allocation4 + $0x38] sm:$0xff] (!%p2246_p10) }
 0x3c5   : > { %1278 = vst.msk [vmem:[#allocation4 + $0x40] sm:$0xff] %vm1269_vm5, %v1261_v17 }
 0x3c7   : > { %v1225_v20 = vpop.xlane.xlu1 %1224 }
 0x3c8   : > { %v1259_v32 = vadd.f32 %v1225_v20, %v1195_v5  ;;  %v1686_v5 = vld [vmem:[#allocation5 + $0x60] sm:$0xff]  ;;  %v1689_v20 = vld [vmem:[#allocation5 + $0x78] sm:$0xff] }
 0x3c9   : > { %v1782_v57 = vmul.f32 %v3439_v61, %v1686_v5 }
 0x3ca   : > { %1276 = vst.msk [vmem:[#allocation4 + $0x30] sm:$0xff] %vm1269_vm5, %v1259_v32 }
 0x3cb   : > { %v1237_v54 = vpop.xlane.xlu1 %1236 }
 0x3cc   : > { %v1263_v40 = vadd.f32 %v1237_v54, %v1199_v24  ;;  %v1846_v43 = vld [vmem:[#allocation4 + $0x40] sm:$0xff] (!%p2246_p10) }
 0x3cd   : > { %v1240_v46 = vpop.xlane.xlu0 %1239 }
 0x3ce   : > { %1280 = vst.msk [vmem:[#allocation4 + $0x50] sm:$0xff] %vm1269_vm5, %v1263_v40  ;;  %v1264_v48 = vadd.f32 %v1240_v46, %v1200_v11 }
 0x3cf   : > { %v1243_v59 = vpop.xlane.xlu1 %1242 }
 0x3d0   : > { %1281 = vst.msk [vmem:[#allocation4 + $0x58] sm:$0xff] %vm1269_vm5, %v1264_v48  ;;  %v1265_v34 = vadd.f32 %v1243_v59, %v1201_v60  ;;  %v1842_v59 = vld [vmem:[#allocation4 + $0x20] sm:$0xff] (!%p2246_p10) }
 0x3d1   : > { %v1246_v52 = vpop.xlane.xlu0 %1245  ;;  %v1844_v61 = vld [vmem:[#allocation4 + $0x30] sm:$0xff] (!%p2246_p10) }
 0x3d2   : > { %1282 = vst.msk [vmem:[#allocation4 + $0x60] sm:$0xff] %vm1269_vm5, %v1265_v34  ;;  %v1266_v55 = vadd.f32 %v1246_v52, %v1202_v15  ;;  %v2799_v34 = vmov (!%p2246_p10), 0   ;;  %2702 = vrcp.f32 (!%p2246_p10), %v1844_v61  ;;  %v1843_v15 = vld [vmem:[#allocation4 + $0x28] sm:$0xff] (!%p2246_p10) }
 0x3d3   : > { %v1249_v35 = vpop.xlane.xlu1 %1248  ;;  %2701 = vset.pattern.permute.xlu1 (!%p2246_p10), %v2799_v34  ;;  %2700 = vset.pattern.permute.xlu0 (!%p2246_p10), %v2799_v34  ;;  %2704 = vrcp.f32 (!%p2246_p10), %v1842_v59  ;;  %v1847_v52 = vld [vmem:[#allocation4 + $0x48] sm:$0xff] (!%p2246_p10) }
 0x3d4   : > { %1283 = vst.msk [vmem:[#allocation4 + $0x68] sm:$0xff] %vm1269_vm5, %v1266_v55  ;;  %v1267_v22 = vadd.f32 %v1249_v35, %v1203_v29  ;;  %2706 = vrcp.f32 (!%p2246_p10), %v1845_v25 }
 0x3d5   : > { %v1252_v41 = vpop.xlane.xlu0 %1251  ;;  %2708 = vrcp.f32 (!%p2246_p10), %v1843_v15  ;;  %v1848_v29 = vld [vmem:[#allocation4 + $0x50] sm:$0xff] (!%p2246_p10) }
 0x3d6   : > { %1284 = vst.msk [vmem:[#allocation4 + $0x70] sm:$0xff] %vm1269_vm5, %v1267_v22  ;;  %v1268_v10 = vadd.f32 %v1252_v41, %v1204_v37  ;;  %2710 = vrcp.f32 (!%p2246_p10), %v1847_v52 }
 0x3d7   : > { %v1768_v53 = vpop.permute.xlu1 %1767  ;;  %2712 = vrcp.f32 (!%p2246_p10), %v1846_v43  ;;  %v1849_v55 = vld [vmem:[#allocation4 + $0x58] sm:$0xff] (!%p2246_p10) }
 0x3d8   : > { %1285 = vst.msk [vmem:[#allocation4 + $0x78] sm:$0xff] %vm1269_vm5, %v1268_v10  ;;  %v1785_v11 = vmul.f32 %v1768_v53, %v1689_v20  ;;  %2714 = vrcp.f32 (!%p2246_p10), %v1849_v55 }
 0x3d9   : > { %2716 = vrcp.f32 (!%p2246_p10), %v1848_v29  ;;  %v1850_v10 = vld [vmem:[#allocation4 + $0x60] sm:$0xff] (!%p2246_p10) }
 0x3db   : > { %v1851_v37 = vld [vmem:[#allocation4 + $0x68] sm:$0xff] (!%p2246_p10) }
 0x3dc   : > { %v2703_v35 = vpop.eup (!%p2246_p10), %2702  ;;  %2718 = vrcp.f32 (!%p2246_p10), %v1851_v37 }
 0x3dd   : > { %v1763_v24 = vpop.permute.xlu0 %1762  ;;  %v2705_v22 = vpop.eup (!%p2246_p10), %2704  ;;  %1918 = vperm.xlu1 (!%p2246_p10), %2701, %v2703_v35   ;;  %2720 = vrcp.f32 (!%p2246_p10), %v1850_v10  ;;  %v1852_v44 = vld [vmem:[#allocation4 + $0x70] sm:$0xff] (!%p2246_p10) }
 0x3de   : > { %v1784_v46 = vmul.f32 %v1763_v24, %v1688_v51  ;;  %v2707_v41 = vpop.eup (!%p2246_p10), %2706  ;;  %1908 = vperm.xlu0 (!%p2246_p10), %2700, %v2705_v22  }
 0x3df   : > { %v2709_v2 = vpop.eup (!%p2246_p10), %2708  ;;  %v1853_v14 = vld [vmem:[#allocation4 + $0x78] sm:$0xff] (!%p2246_p10) }
 0x3e0   : > { %v2711_v0 = vpop.eup (!%p2246_p10), %2710  ;;  %2722 = vrcp.f32 (!%p2246_p10), %v1853_v14 }
 0x3e1   : > { %1923 = vperm.xlu1 (!%p2246_p10), %2701, %v2707_v41   ;;  %2724 = vrcp.f32 (!%p2246_p10), %v1852_v44 }
 0x3e2   : > { %1913 = vperm.xlu0 (!%p2246_p10), %2700, %v2709_v2   ;;  %v1870_v2 = vld [vmem:[#allocation5] sm:$0xff] (!%p2246_p10) }
 0x3e5   : > { %1933 = vperm.xlu1 (!%p2246_p10), %2701, %v2711_v0  }
 0x40f   : > { %v2407_v23 = vpop.f32.mrb[12].mxu0 }
 0x410   : > { %v2393_v21 = vpop.f32.mrb[8].mxu1  ;;  %v1795_v27 = vadd.f32 %v2407_v23, %v1779_v56  ;;  %v1558_v6 = vpop.f32.mrb[13].mxu0 }
 0x411   : > { %v1791_v58 = vadd.f32 %v2393_v21, %v1775_v62  ;;  %v1461_v45 = vpop.f32.mrb[9].mxu1  ;;  %v1794_v16 = vadd.f32 %v1778_v36, %v1558_v6  ;;  %v2713_v56 = vpop.eup (!%p2246_p10), %2712  ;;  %v1839_v36 = vld [vmem:[#allocation4 + $0x8] sm:$0xff] (!%p2246_p10) }
 0x412   : > { %1811 = vst.msk [vmem:[#allocation5 + $0x48] sm:$0xff] %vm495_vm2, %v1795_v27  ;;  %v1790_v31 = vadd.f32 %v1774_v18, %v1461_v45  ;;  %v2715_v62 = vpop.eup (!%p2246_p10), %2714  ;;  %1928 = vperm.xlu0 (!%p2246_p10), %2700, %v2713_v56   ;;  %2726 = vrcp.f32 (!%p2246_p10), %v1839_v36  ;;  %v1841_v18 = vld [vmem:[#allocation4 + $0x18] sm:$0xff] (!%p2246_p10)  ;;  %v1871_v56 = vld [vmem:[#allocation5 + $0x8] sm:$0xff] (!%p2246_p10)  ;;  %v1872_v36 = vld [vmem:[#allocation5 + $0x10] sm:$0xff] (!%p2246_p10) }
 0x413   : > { %1807 = vst.msk [vmem:[#allocation5 + $0x28] sm:$0xff] %vm495_vm2, %v1791_v58  ;;  %1810 = vst.msk [vmem:[#allocation5 + $0x40] sm:$0xff] %vm495_vm2, %v1794_v16  ;;  %v2410_v30 = vpop.f32.mrb[14].mxu0  ;;  %v2717_v23 = vpop.eup (!%p2246_p10), %2716  ;;  %1943 = vperm.xlu1 (!%p2246_p10), %2701, %v2715_v62   ;;  %2728 = vrcp.f32 (!%p2246_p10), %v1838_v63 }
 0x414   : > { %1806 = vst.msk [vmem:[#allocation5 + $0x20] sm:$0xff] %vm495_vm2, %v1790_v31  ;;  %v2396_v12 = vpop.f32.mrb[10].mxu1  ;;  %v1797_v47 = vadd.f32 %v2410_v30, %v1781_v1  ;;  %v1568_v26 = vpop.f32.mrb[15].mxu0  ;;  %2730 = vrcp.f32 (!%p2246_p10), %v1841_v18 }
 0x415   : > { %v1793_v50 = vadd.f32 %v2396_v12, %v1777_v39  ;;  %v1471_v17 = vpop.f32.mrb[11].mxu1  ;;  %v1796_v49 = vadd.f32 %v1780_v42, %v1568_v26  ;;  %v2719_v7 = vpop.eup (!%p2246_p10), %2718  ;;  %2732 = vrcp.f32 (!%p2246_p10), %v1840_v38 }
 0x416   : > { %1813 = vst.msk [vmem:[#allocation5 + $0x58] sm:$0xff] %vm495_vm2, %v1797_v47  ;;  %v1792_v8 = vadd.f32 %v1776_v9, %v1471_v17  ;;  %1938 = vperm.xlu0 (!%p2246_p10), %2700, %v2717_v23   ;;  %v2721_v21 = vpop.eup (!%p2246_p10), %2720 }
 0x417   : > { %1809 = vst.msk [vmem:[#allocation5 + $0x38] sm:$0xff] %vm495_vm2, %v1793_v50  ;;  %1812 = vst.msk [vmem:[#allocation5 + $0x50] sm:$0xff] %vm495_vm2, %v1796_v49  ;;  %1953 = vperm.xlu1 (!%p2246_p10), %2701, %v2719_v7   ;;  %v2723_v27 = vpop.eup (!%p2246_p10), %2722 }
 0x418   : > { %1808 = vst.msk [vmem:[#allocation5 + $0x30] sm:$0xff] %vm495_vm2, %v1792_v8  ;;  %v2725_v6 = vpop.eup (!%p2246_p10), %2724 }
 0x419   : > { %v2421_v32 = vpop.f32.mrb[12].mxu1 }
 0x41a   : > { %v1799_v54 = vadd.f32 %v2421_v32, %v1783_v28  ;;  %v1655_v13 = vpop.f32.mrb[13].mxu1  ;;  %1948 = vperm.xlu0 (!%p2246_p10), %2700, %v2721_v21   ;;  %v1875_v9 = vld [vmem:[#allocation5 + $0x28] sm:$0xff] (!%p2246_p10)  ;;  %v1878_v17 = vld [vmem:[#allocation5 + $0x40] sm:$0xff] (!%p2246_p10) }
 0x41b   : > { %v1798_v40 = vadd.f32 %v1782_v57, %v1655_v13  ;;  %1837 = sbr.rel (%p2246_p10) target bundleno = 1301 (0x515), region = 40  ;;  %1963 = vperm.xlu1 (!%p2246_p10), %2701, %v2723_v27   ;;  %v1874_v1 = vld [vmem:[#allocation5 + $0x20] sm:$0xff] (!%p2246_p10)  ;;  %v1879_v57 = vld [vmem:[#allocation5 + $0x48] sm:$0xff] (!%p2246_p10)  ;;  %v1873_v27 = vld [vmem:[#allocation5 + $0x18] sm:$0xff] (!%p2246_p10) }
 0x41c   : > { %1815 = vst.msk [vmem:[#allocation5 + $0x68] sm:$0xff] %vm495_vm2, %v1799_v54  ;;  %v2727_v4 = vpop.eup (!%p2246_p10), %2726 }
 0x41d   : > { %1814 = vst.msk [vmem:[#allocation5 + $0x60] sm:$0xff] %vm495_vm2, %v1798_v40  ;;  %v2424_v19 = vpop.f32.mrb[14].mxu1  ;;  %v2729_v58 = vpop.eup (!%p2246_p10), %2728  ;;  %v1881_v54 = vld [vmem:[#allocation5 + $0x58] sm:$0xff] (!%p2246_p10) }
 0x41e   : > { %v1801_v3 = vadd.f32 %v2424_v19, %v1785_v11  ;;  %v1665_v48 = vpop.f32.mrb[15].mxu1  ;;  %1958 = vperm.xlu0 (!%p2246_p10), %2700, %v2725_v6   ;;  %v2731_v45 = vpop.eup (!%p2246_p10), %2730  ;;  %v1877_v50 = vld [vmem:[#allocation5 + $0x38] sm:$0xff] (!%p2246_p10)  ;;  %v1880_v20 = vld [vmem:[#allocation5 + $0x50] sm:$0xff] (!%p2246_p10) }
 0x41f   : > { %v1800_v60 = vadd.f32 %v1784_v46, %v1665_v48  ;;  %1893 = vperm.xlu1 (!%p2246_p10), %2701, %v2727_v4   ;;  %v2733_v16 = vpop.eup (!%p2246_p10), %2732  ;;  %v1876_v42 = vld [vmem:[#allocation5 + $0x30] sm:$0xff] (!%p2246_p10) }
 0x420   : > { %1817 = vst.msk [vmem:[#allocation5 + $0x78] sm:$0xff] %vm495_vm2, %v1801_v3 }
 0x421   : > { %1816 = vst.msk [vmem:[#allocation5 + $0x70] sm:$0xff] %vm495_vm2, %v1800_v60 }
 0x422   : > { %1888 = vperm.xlu0 %2700, %v2729_v58  }
 0x423   : > { %1903 = vperm.xlu1 %2701, %v2731_v45   ;;  %v1883_v3 = vld [vmem:[#allocation5 + $0x68] sm:$0xff] }
 0x424   : > { %v1882_v13 = vld [vmem:[#allocation5 + $0x60] sm:$0xff] }
 0x426   : > { %1898 = vperm.xlu0 %2700, %v2733_v16  }
 0x427   : > { %v1885_v25 = vld [vmem:[#allocation5 + $0x78] sm:$0xff] }
 0x428   : > { %v1884_v48 = vld [vmem:[#allocation5 + $0x70] sm:$0xff] }
 0x45c   : > { %v1919_v31 = vpop.permute.xlu1 %1918 }
 0x45d   : > { %v1909_v39 = vpop.permute.xlu0 %1908  ;;  %v1972_v12 = vmul.f32 %v1919_v31, %v1876_v42 }
 0x45e   : > { %v1970_v30 = vmul.f32 %v1909_v39, %v1874_v1 }
 0x460   : > { %1986 = vrot.lane.b32.xlu0 %v1970_v30, %s2800_s12  ;;  %v1924_v47 = vpop.permute.xlu1 %1923 }
 0x461   : > { %v1914_v26 = vpop.permute.xlu0 %1913  ;;  %v1973_v8 = vmul.f32 %v1924_v47, %v1877_v50 }
 0x462   : > { %v1971_v33 = vmul.f32 %v1914_v26, %v1875_v9 }
 0x464   : > { %1988 = vrot.lane.b32.xlu1 %v1971_v33, %s2800_s12  ;;  %1990 = vrot.lane.b32.xlu0 %v1972_v12, %s2800_s12  ;;  %v1934_v49 = vpop.permute.xlu1 %1933 }
 0x465   : > { %v1975_v51 = vmul.f32 %v1934_v49, %v1879_v57 }
 0x468   : > { %1992 = vrot.lane.b32.xlu1 %v1973_v8, %s2800_s12 }
 0x46c   : > { %2004 = vrot.lane.b32.xlu1 %v1975_v51, %s2801_s28 }
 0x491   : > { %v1929_v5 = vpop.permute.xlu0 %1928 }
 0x492   : > { %v1974_v28 = vmul.f32 %v1929_v5, %v1878_v17  ;;  %v1944_v53 = vpop.permute.xlu1 %1943 }
 0x493   : > { %v1977_v46 = vmul.f32 %v1944_v53, %v1881_v54 }
 0x494   : > { %2002 = vrot.lane.b32.xlu0 %v1974_v28, %s2801_s28 }
 0x495   : > { %v1939_v32 = vpop.permute.xlu0 %1938  ;;  %2008 = vrot.lane.b32.xlu1 %v1977_v46, %s2801_s28 }
 0x496   : > { %v1976_v24 = vmul.f32 %v1939_v32, %v1880_v20  ;;  %v1954_v40 = vpop.permute.xlu1 %1953 }
 0x497   : > { %v1979_v61 = vmul.f32 %v1954_v40, %v1883_v3 }
 0x498   : > { %2006 = vrot.lane.b32.xlu0 %v1976_v24, %s2801_s28 }
 0x499   : > { %v1949_v11 = vpop.permute.xlu0 %1948  ;;  %2020 = vrot.lane.b32.xlu1 %v1979_v61, %s2802_s29 }
 0x49a   : > { %v1978_v19 = vmul.f32 %v1949_v11, %v1882_v13  ;;  %v1964_v34 = vpop.permute.xlu1 %1963 }
 0x49b   : > { %v1981_v15 = vmul.f32 %v1964_v34, %v1885_v25 }
 0x49c   : > { %2018 = vrot.lane.b32.xlu0 %v1978_v19, %s2802_s29 }
 0x49d   : > { %v1959_v60 = vpop.permute.xlu0 %1958  ;;  %2024 = vrot.lane.b32.xlu1 %v1981_v15, %s2802_s29 }
 0x49e   : > { %v1980_v59 = vmul.f32 %v1959_v60, %v1884_v48  ;;  %v1894_v43 = vpop.permute.xlu1 %1893 }
 0x49f   : > { %v1967_v7 = vmul.f32 %v1894_v43, %v1871_v56 }
 0x4a0   : > { %2022 = vrot.lane.b32.xlu0 %v1980_v59, %s2802_s29 }
 0x4a1   : > { %v1889_v52 = vpop.permute.xlu0 %1888 }
 0x4a2   : > { %v1904_v29 = vpop.permute.xlu1 %1903  ;;  %v1966_v44 = vmul.f32 %v1889_v52, %v1870_v2 }
 0x4a3   : > { %v1969_v31 = vmul.f32 %v1904_v29, %v1873_v27 }
 0x4a5   : > { %v1899_v55 = vpop.permute.xlu0 %1898 }
 0x4a6   : > { %v1968_v38 = vmul.f32 %v1899_v55, %v1872_v36 }
 0x4d2   : > { %v1987_v35 = vpop.permute.xlu0 %1986 }
 0x4d3   : > { %v2030_v62 = vsel %vm495_vm2, %v1966_v44, %v1987_v35 }
 0x4d6   : > { %v1989_v22 = vpop.permute.xlu1 %1988  ;;  %v1991_v37 = vpop.permute.xlu0 %1990 }
 0x4d7   : > { %v2031_v6 = vsel %vm495_vm2, %v1967_v7, %v1989_v22  ;;  %v2032_v4 = vsel %vm495_vm2, %v1968_v38, %v1991_v37 }
 0x4da   : > { %v1993_v41 = vpop.permute.xlu1 %1992 }
 0x4db   : > { %v2033_v30 = vsel %vm495_vm2, %v1969_v31, %v1993_v41 }
 0x4de   : > { %v2005_v14 = vpop.permute.xlu1 %2004 }
 0x4df   : > { %v2036_v58 = vsel %vm2034_vm6, %v2031_v6, %v2005_v14 }
 0x506   : > { %v2003_v10 = vpop.permute.xlu0 %2002 }
 0x507   : > { %v2035_v63 = vsel %vm2034_vm6, %v2030_v62, %v2003_v10  ;;  %v2009_v23 = vpop.permute.xlu1 %2008 }
 0x508   : > { %v2038_v9 = vsel %vm2034_vm6, %v2033_v30, %v2009_v23 }
 0x50a   : > { %v2007_v0 = vpop.permute.xlu0 %2006 }
 0x50b   : > { %v2037_v45 = vsel %vm2034_vm6, %v2032_v4, %v2007_v0  ;;  %v2021_v16 = vpop.permute.xlu1 %2020 }
 0x50c   : > { %v2041_v42 = vsel %vm2039_vm7, %v2036_v58, %v2021_v16 }
 0x50d   : > { %2045 = vst.msk [vmem:[%s2876_s5 + $0x8] sm:$0xff] %vm932_vm4, %v2041_v42 }
 0x50e   : > { %v2019_v18 = vpop.permute.xlu0 %2018 }
 0x50f   : > { %v2040_v21 = vsel %vm2039_vm7, %v2035_v63, %v2019_v18  ;;  %v2025_v12 = vpop.permute.xlu1 %2024 }
 0x510   : > { %2044 = vst.msk [vmem:[%s2876_s5] sm:$0xff] %vm932_vm4, %v2040_v21  ;;  %v2043_v47 = vsel %vm2039_vm7, %v2038_v9, %v2025_v12 }
 0x511   : > { %2047 = vst.msk [vmem:[%s2876_s5 + $0x18] sm:$0xff] %vm932_vm4, %v2043_v47 }
 0x512   : > { %v2023_v1 = vpop.permute.xlu0 %2022 }
 0x513   : > { %v2042_v39 = vsel %vm2039_vm7, %v2037_v45, %v2023_v1 }
 0x514   : > { %2046 = vst.msk [vmem:[%s2876_s5 + $0x10] sm:$0xff] %vm932_vm4, %v2042_v39 }
 0x515 PF: > { %s13_s18 = sadd.s32 1, %s2788_s18   ;;  %s3541_s12 = smov %s2776_s15 }
 0x516   : > { %p10_p11 = scmp.ge.s32.totalorder %s13_s18, 10   ;;  %s3542_s13 = smov %s2780_s16 }
 0x517   : > { %s3543_s14 = smov %s2784_s17  ;;  %s3544_s15 = smov %s3548_s19 }
 0x518   : > { %s3545_s16 = smov %s3552_s20  ;;  %s3546_s17 = smov %s3556_s21 }
 0x519   :  { %12 = sbr.rel (!%p10_p11) target bundleno = 4 (0x4), region = 76 }

</bundles_post_ra>
